<compile_context>
chip_gen: v6e
topology: v6e:2x2x1
jax: 0.10.0
libtpu: 0.0.40
codegen_flags: <defaults>
</compile_context>

<pallas_src>
import functools

import jax
import jax.numpy as jnp
from jax.experimental import pallas as pl
from jax.experimental.pallas import tpu as pltpu


MXU_DTYPE = jnp.bfloat16           # matmul operand dtype (accumulate in f32)
_VMEM_LIMIT = 64 * 1024 * 1024     # <= physical VMEM on v5e / v6e / v7x


# ----------------------------- tiling helpers --------------------------------

def _pick_flat_tile(total, requested=None, target=512):
    """Spatial tile for flat (N, H*W, C) kernels: divides total, multiple of 8."""
    if requested is not None:
        if total % requested:
            raise ValueError(f"spatial tile {requested} must divide {total}")
        if requested != total and requested % 8:
            raise ValueError("spatial tile must be a multiple of 8")
        return requested
    for t in range(min(target, total), 7, -1):
        if total % t == 0 and t % 8 == 0:
            return t
    return total


def _pick_row_tile(H, W, requested=None, target_flat=512):
    """Row tile for the 3x3 convs: divides H, row_tile*W multiple of 8."""
    if requested is not None:
        if H % requested:
            raise ValueError(f"row tile {requested} must divide {H}")
        if requested != H and (requested * W) % 8:
            raise ValueError("row_tile * W must be a multiple of 8")
        return requested
    target_rows = max(1, target_flat // max(W, 1))
    for t in range(min(target_rows, H), 0, -1):
        if H % t == 0 and (t * W) % 8 == 0:
            return t
    return H


# ----------------------------- Pallas kernels --------------------------------

def instance_norm_stats(x_flat, spatial_tile=None, eps=1e-5):
    """nn.InstanceNorm2d(affine=False) statistics: per-(n, c) mean and
    rsqrt(biased var) over the flattened spatial axis.

    x_flat: (N, H*W, C).  Returns (mean, rstd), each (N, 1, C) float32.
    The normalize step itself is fused into the SPADE modulation epilogue so a
    `normalized` tensor is never materialized in HBM.
    """
    N, HW, C = x_flat.shape
    ts = _pick_flat_tile(HW, spatial_tile)
    inv_count = 1.0 / float(HW)

    def kernel(x_ref, mean_ref, rstd_ref, s_ref, ss_ref):
        s = pl.program_id(1)

        @pl.when(s == 0)
        def _():
            s_ref[...] = jnp.zeros_like(s_ref)
            ss_ref[...] = jnp.zeros_like(ss_ref)

        v = x_ref[0].astype(jnp.float32)                       # (ts, C)
        s_ref[...] += jnp.sum(v, axis=0, keepdims=True)
        ss_ref[...] += jnp.sum(v * v, axis=0, keepdims=True)

        @pl.when(s == pl.num_programs(1) - 1)
        def _():
            mean = s_ref[...] * inv_count
            var = ss_ref[...] * inv_count - mean * mean
            mean_ref[...] = mean[None]
            rstd_ref[...] = jax.lax.rsqrt(var + eps)[None]

    return pl.pallas_call(
        kernel,
        out_shape=(jax.ShapeDtypeStruct((N, 1, C), jnp.float32),
                   jax.ShapeDtypeStruct((N, 1, C), jnp.float32)),
        grid=(N, HW // ts),
        in_specs=[pl.BlockSpec((1, ts, C), lambda n, s: (n, s, 0))],
        out_specs=(pl.BlockSpec((1, 1, C), lambda n, s: (n, 0, 0)),
                   pl.BlockSpec((1, 1, C), lambda n, s: (n, 0, 0))),
        scratch_shapes=[pltpu.VMEM((1, C), jnp.float32),
                        pltpu.VMEM((1, C), jnp.float32)],
        compiler_params=pltpu.CompilerParams(
            dimension_semantics=("parallel", "arbitrary")),
    )(x_flat)


def conv1x1_flat(x_flat, w, b=None, activation=None, residual=None,
                 spatial_tile=None, out_dtype=jnp.float32):
    """Pointwise conv as a tiled (ts, Cin) @ (Cin, Cout) MXU matmul with fused
    bias / ReLU / residual add.  Also used for the 3x3 segmap conv after
    wrapper-side im2col (Cin = 9*3), which deepens the MXU contraction 9x."""
    N, HW, Cin = x_flat.shape
    Cout = w.shape[-1]
    ts = _pick_flat_tile(HW, spatial_tile)
    x_flat = x_flat.astype(MXU_DTYPE)
    w2d = w.reshape(-1, Cout).astype(MXU_DTYPE)
    assert w2d.shape[0] == Cin, (w2d.shape, Cin)
    bias = (jnp.zeros((1, Cout), jnp.float32) if b is None
            else b.reshape(1, Cout).astype(jnp.float32))
    has_res = residual is not None

    def kernel(*refs):
        if has_res:
            x_ref, w_ref, b_ref, r_ref, o_ref = refs
        else:
            x_ref, w_ref, b_ref, o_ref = refs
        acc = jnp.dot(x_ref[0], w_ref[...], preferred_element_type=jnp.float32)
        acc = acc + b_ref[...]
        if activation == "relu":
            acc = jnp.maximum(acc, 0.0)
        if has_res:
            acc = acc + r_ref[0].astype(jnp.float32)
        o_ref[...] = acc[None].astype(o_ref.dtype)

    in_specs = [
        pl.BlockSpec((1, ts, Cin), lambda n, s: (n, s, 0)),
        pl.BlockSpec((Cin, Cout), lambda n, s: (0, 0)),
        pl.BlockSpec((1, Cout), lambda n, s: (0, 0)),
    ]
    args = [x_flat, w2d, bias]
    if has_res:
        in_specs.append(pl.BlockSpec((1, ts, Cout), lambda n, s: (n, s, 0)))
        args.append(residual)

    return pl.pallas_call(
        kernel,
        out_shape=jax.ShapeDtypeStruct((N, HW, Cout), out_dtype),
        grid=(N, HW // ts),
        in_specs=in_specs,
        out_specs=pl.BlockSpec((1, ts, Cout), lambda n, s: (n, s, 0)),
        compiler_params=pltpu.CompilerParams(
            dimension_semantics=("parallel", "parallel"),
            vmem_limit_bytes=_VMEM_LIMIT),
    )(*args)


def _accum_taps_3x3(xp_ref, w_ref, acc_ref, row0, th, W):
    """Accumulate the 3x3 shifted-window matmuls into a VMEM f32 scratch
    accumulator (bounded vreg pressure; MXU pushes can overlap).  Operands
    arrive pre-cast to MXU_DTYPE; accumulation is float32."""
    first = True
    for dy in range(3):
        for dx in range(3):
            patch = xp_ref[0, pl.ds(row0 + dy, th), dx:dx + W, :]   # (th, W, Cin)
            lhs = patch.reshape(th * W, patch.shape[-1])
            contrib = jnp.dot(lhs, w_ref[dy, dx],
                              preferred_element_type=jnp.float32)
            if first:
                acc_ref[...] = contrib
                first = False
            else:
                acc_ref[...] += contrib
    return acc_ref[...]


def conv2d_3x3_flat(x_flat, w, b=None, *, H, W, activation=None, residual=None,
                    row_tile=None, out_dtype=jnp.float32):
    """3x3 'same' conv.  Input/output use flattened-NHWC (N, H*W, C); the padded
    4-D bf16 input block is resident in VMEM across the row-tile axis while the
    output (and optional fused residual) are row-tiled and pipelined."""
    N, HW, Cin = x_flat.shape
    assert H * W == HW
    Cout = w.shape[-1]
    th = _pick_row_tile(H, W, row_tile)
    ts = th * W
    Hp, Wp = H + 2, W + 2
    xp = jnp.pad(x_flat.reshape(N, H, W, Cin),
                 ((0, 0), (1, 1), (1, 1), (0, 0))).astype(MXU_DTYPE)
    wq = w.astype(MXU_DTYPE)
    bias = (jnp.zeros((1, Cout), jnp.float32) if b is None
            else b.reshape(1, Cout).astype(jnp.float32))
    has_res = residual is not None

    def kernel(*refs):
        if has_res:
            xp_ref, w_ref, b_ref, r_ref, o_ref, acc_ref = refs
        else:
            xp_ref, w_ref, b_ref, o_ref, acc_ref = refs
        row0 = pl.multiple_of(pl.program_id(1) * th, th)
        acc = _accum_taps_3x3(xp_ref, w_ref, acc_ref, row0, th, W) + b_ref[...]
        if activation == "relu":
            acc = jnp.maximum(acc, 0.0)
        if has_res:
            acc = acc + r_ref[0].astype(jnp.float32)
        o_ref[...] = acc[None].astype(o_ref.dtype)

    in_specs = [
        pl.BlockSpec((1, Hp, Wp, Cin), lambda n, r: (n, 0, 0, 0)),
        pl.BlockSpec((3, 3, Cin, Cout), lambda n, r: (0, 0, 0, 0)),
        pl.BlockSpec((1, Cout), lambda n, r: (0, 0)),
    ]
    args = [xp, wq, bias]
    if has_res:
        in_specs.append(pl.BlockSpec((1, ts, Cout), lambda n, r: (n, r, 0)))
        args.append(residual)

    return pl.pallas_call(
        kernel,
        out_shape=jax.ShapeDtypeStruct((N, HW, Cout), out_dtype),
        grid=(N, H // th),
        in_specs=in_specs,
        out_specs=pl.BlockSpec((1, ts, Cout), lambda n, r: (n, r, 0)),
        scratch_shapes=[pltpu.VMEM((ts, Cout), jnp.float32)],
        compiler_params=pltpu.CompilerParams(
            dimension_semantics=("parallel", "parallel"),
            vmem_limit_bytes=_VMEM_LIMIT),
    )(*args)


def spade_conv_modulate_lrelu(hp, w2, b2, x_flat, mean, rstd, *, H, W,
                              alpha=0.2, row_tile=None, out_dtype=MXU_DTYPE):
    """Fused SPADE tail:  embed = conv3x3(hidden); gamma, beta = split(embed);
    out = LeakyReLU(((x - mean) * rstd) * (1 + gamma) + beta, alpha).

    `embed`, `gamma`, `beta` and the normalized tensor exist only in VMEM/vregs
    (no HBM round trips); gamma/beta are sliced along the lane axis in-kernel.
    """
    N, HW, nc = x_flat.shape
    Ch = hp.shape[-1]
    Hp, Wp = hp.shape[1], hp.shape[2]
    Cout = w2.shape[-1]
    assert Cout == 2 * nc and Hp == H + 2 and Wp == W + 2
    th = _pick_row_tile(H, W, row_tile)
    ts = th * W
    bias = b2.reshape(1, Cout).astype(jnp.float32)
    w2q = w2.astype(MXU_DTYPE)

    def kernel(hp_ref, w_ref, b_ref, x_ref, mu_ref, rs_ref, o_ref, acc_ref):
        row0 = pl.multiple_of(pl.program_id(1) * th, th)
        emb = _accum_taps_3x3(hp_ref, w_ref, acc_ref, row0, th, W) + b_ref[...]
        gamma = emb[:, :nc]
        beta = emb[:, nc:]
        xn = (x_ref[0].astype(jnp.float32) - mu_ref[0]) * rs_ref[0]
        v = xn * (1.0 + gamma) + beta
        o_ref[...] = jnp.maximum(v, alpha * v)[None].astype(o_ref.dtype)

    return pl.pallas_call(
        kernel,
        out_shape=jax.ShapeDtypeStruct((N, HW, nc), out_dtype),
        grid=(N, H // th),
        in_specs=[
            pl.BlockSpec((1, Hp, Wp, Ch), lambda n, r: (n, 0, 0, 0)),
            pl.BlockSpec((3, 3, Ch, Cout), lambda n, r: (0, 0, 0, 0)),
            pl.BlockSpec((1, Cout), lambda n, r: (0, 0)),
            pl.BlockSpec((1, ts, nc), lambda n, r: (n, r, 0)),
            pl.BlockSpec((1, 1, nc), lambda n, r: (n, 0, 0)),
            pl.BlockSpec((1, 1, nc), lambda n, r: (n, 0, 0)),
        ],
        out_specs=pl.BlockSpec((1, ts, nc), lambda n, r: (n, r, 0)),
        scratch_shapes=[pltpu.VMEM((ts, Cout), jnp.float32)],
        compiler_params=pltpu.CompilerParams(
            dimension_semantics=("parallel", "parallel"),
            vmem_limit_bytes=_VMEM_LIMIT),
    )(hp, w2q, bias, x_flat, mean, rstd)


# ----------------------------- wrapper glue -----------------------------------

def im2col_3x3(x_nhwc):
    """Wrapper-side im2col for the tiny-Cin (RGB) segmap conv: folds the 9 taps
    into the MXU contraction dim (Cin 3 -> 27)."""
    N, H, W, C = x_nhwc.shape
    xp = jnp.pad(x_nhwc, ((0, 0), (1, 1), (1, 1), (0, 0)))
    cols = [xp[:, dy:dy + H, dx:dx + W, :] for dy in range(3) for dx in range(3)]
    return jnp.concatenate(cols, axis=-1).reshape(N, H * W, 9 * C)


def spade_lrelu(sp, x_flat, mean, rstd, cmap_cols, *, H, W, alpha=0.2,
                row_tile=None, spatial_tile=None):
    """SPADE(x | segmap) with the following LeakyReLU(alpha) fused in."""
    N = x_flat.shape[0]
    Ch = sp["w1"].shape[-1]
    hidden = conv1x1_flat(cmap_cols, sp["w1"], sp["b1"], activation="relu",
                          spatial_tile=spatial_tile, out_dtype=MXU_DTYPE)
    hp = jnp.pad(hidden.reshape(N, H, W, Ch), ((0, 0), (1, 1), (1, 1), (0, 0)))
    return spade_conv_modulate_lrelu(hp, sp["w2"], sp["b2"], x_flat, mean, rstd,
                                     H=H, W=W, alpha=alpha, row_tile=row_tile)


# ----------------------------- parameter setup --------------------------------

def _init_conv(key, k, cin, cout, bias=True):
    kw, kb = jax.random.split(key)
    fan_in = cin * k * k
    bound = 1.0 / (fan_in ** 0.5)
    w = jax.random.uniform(kw, (k, k, cin, cout), jnp.float32, -bound, bound)
    b = (jax.random.uniform(kb, (cout,), jnp.float32, -bound, bound)
         if bias else None)
    return w, b


def spectral_normalize(w, n_iter=20, eps=1e-12):
    """torch.nn.utils.spectral_norm reparameterization: W / sigma(W.view(Cout,-1)).

    TODO(synk): PyTorch uses a random power-iteration vector updated once per
    forward; here we use a deterministic start vector iterated to convergence,
    so sigma will not match PyTorch bit-for-bit.
    """
    k1, k2, cin, cout = w.shape
    wm = jnp.transpose(w, (3, 2, 0, 1)).reshape(cout, -1)
    u = jnp.ones((cout,), jnp.float32) / jnp.sqrt(jnp.float32(cout))
    v = None
    for _ in range(n_iter):
        v = wm.T @ u
        v = v / (jnp.linalg.norm(v) + eps)
        u = wm @ v
        u = u / (jnp.linalg.norm(u) + eps)
    sigma = u @ (wm @ v)
    return w / sigma


def init_spade_params(key, norm_nc):
    k1, k2 = jax.random.split(key)
    w1, b1 = _init_conv(k1, 3, 3, 64)                 # Conv2d(3, 64, 3, 'same')
    w2, b2 = _init_conv(k2, 3, 64, 2 * norm_nc)       # Conv2d(64, 2*nc, 3, 'same')
    return dict(w1=w1, b1=b1, w2=w2, b2=b2)


def init_spade_resnet_block(key, in_channels, out_channels):
    nc_in, nc_out = in_channels, out_channels
    nc_mid = min(nc_in, nc_out)
    keys = jax.random.split(key, 6)
    p = {}
    p["spade0"] = init_spade_params(keys[0], nc_in)
    w, b = _init_conv(keys[1], 3, nc_in, nc_mid)
    p["conv0_w"], p["conv0_b"] = spectral_normalize(w), b
    p["spade1"] = init_spade_params(keys[2], nc_mid)
    w, b = _init_conv(keys[3], 3, nc_mid, nc_out)
    p["conv1_w"], p["conv1_b"] = spectral_normalize(w), b
    if nc_in != nc_out:
        p["spade_s"] = init_spade_params(keys[4], nc_in)
        w, _ = _init_conv(keys[5], 1, nc_in, nc_out, bias=False)
        p["conv_s_w"] = spectral_normalize(w)
    return p


# ----------------------------- forward pass ------------------------------------

def spade_resnet_block_forward(params, images_nchw, cmaps_nchw, *, alpha=0.2,
                               row_tile=None, spatial_tile=None):
    images = jnp.transpose(images_nchw, (0, 2, 3, 1))      # NCHW -> NHWC
    cmaps = jnp.transpose(cmaps_nchw, (0, 2, 3, 1))
    N, H, W, nc_in = images.shape
    HW = H * W

    images_flat = images.reshape(N, HW, nc_in)
    # im2col'ed segmap, shared by every SPADE (depends only on cmaps).
    cmap_cols = im2col_3x3(cmaps).astype(MXU_DTYPE)

    # InstanceNorm stats of `images`, computed once and shared by spade0 and
    # the learned-shortcut SPADE (they normalize the same tensor).
    mean_i, rstd_i = instance_norm_stats(images_flat, spatial_tile)

    kw = dict(H=H, W=W, alpha=alpha, row_tile=row_tile, spatial_tile=spatial_tile)

    if "spade_s" in params:          # learned shortcut (nc_in != nc_out)
        # Per the reference module, the shortcut includes the LeakyReLU.
        ds = spade_lrelu(params["spade_s"], images_flat, mean_i, rstd_i,
                         cmap_cols, **kw)
        shortcut = conv1x1_flat(ds, params["conv_s_w"], None,
                                spatial_tile=spatial_tile)
    else:                            # nn.Identity()
        shortcut = images_flat

    d0 = spade_lrelu(params["spade0"], images_flat, mean_i, rstd_i, cmap_cols, **kw)
    h = conv2d_3x3_flat(d0, params["conv0_w"], params["conv0_b"],
                        H=H, W=W, row_tile=row_tile)

    mean_h, rstd_h = instance_norm_stats(h, spatial_tile)
    d1 = spade_lrelu(params["spade1"], h, mean_h, rstd_h, cmap_cols, **kw)
    # Final conv with the residual add fused into its epilogue.
    out = conv2d_3x3_flat(d1, params["conv1_w"], params["conv1_b"],
                          H=H, W=W, row_tile=row_tile, residual=shortcut)

    nc_out = out.shape[-1]
    return jnp.transpose(out.reshape(N, H, W, nc_out), (0, 3, 1, 2))


# ----------------------------- demo --------------------------------------------

if __name__ == "__main__":
    key = jax.random.PRNGKey(0)
    k_img, k_cmap, k_param = jax.random.split(key, 3)

    N, C_IN, C_OUT, H, W = 2, 4, 8, 16, 16
    images = jax.random.normal(k_img, (N, C_IN, H, W), jnp.float32)   # NCHW
    cmaps = jax.random.normal(k_cmap, (N, 3, H, W), jnp.float32)      # NCHW (RGB)

    params = init_spade_resnet_block(k_param, C_IN, C_OUT)

    fwd = jax.jit(functools.partial(spade_resnet_block_forward,
                                    row_tile=8, spatial_tile=64))
    out = jax.block_until_ready(fwd(params, images, cmaps))

    assert out.shape == (N, C_OUT, H, W), out.shape
    assert jnp.all(jnp.isfinite(out))
    print("KERNEL_OK")
</pallas_src>

<mosaic_0001>
module attributes {stable_mosaic.version = 11 : i64} {
  func.func @kernel(%arg0: i32, %arg1: i32, %arg2: memref<1x64x27xbf16, #tpu.memory_space<vmem>>, %arg3: memref<27x64xbf16, #tpu.memory_space<vmem>>, %arg4: memref<1x64xf32, #tpu.memory_space<vmem>>, %arg5: memref<1x64x64xbf16, #tpu.memory_space<vmem>>) attributes {dimension_semantics = [#tpu.dimension_semantics<parallel>, #tpu.dimension_semantics<parallel>], iteration_bounds = array<i64: 2, 4>, scalar_prefetch = 0 : i64, scratch_operands = 0 : i64, tpu.core_type = #tpu.core_type<tc>, window_params = [{transform_indices = @transform_0, window_bounds = array<i64: 1, 64, 27>}, {pipeline_mode = #tpu.pipeline_mode<synchronous>, transform_indices = @transform_1, window_bounds = array<i64: 27, 64>}, {pipeline_mode = #tpu.pipeline_mode<synchronous>, transform_indices = @transform_2, window_bounds = array<i64: 1, 64>}, {transform_indices = @transform_3, window_bounds = array<i64: 1, 64, 64>}]} {
    %c0 = arith.constant 0 : index
    %c0_0 = arith.constant 0 : index
    %c0_1 = arith.constant 0 : index
    %0 = vector.load %arg2[%c0, %c0_0, %c0_1] : memref<1x64x27xbf16, #tpu.memory_space<vmem>>, vector<1x64x27xbf16>
    %1 = vector.shape_cast %0 : vector<1x64x27xbf16> to vector<64x27xbf16>
    %c0_2 = arith.constant 0 : index
    %c0_3 = arith.constant 0 : index
    %2 = vector.load %arg3[%c0_2, %c0_3] : memref<27x64xbf16, #tpu.memory_space<vmem>>, vector<27x64xbf16>
    %cst = arith.constant dense<0.000000e+00> : vector<64x64xf32>
    %3 = tpu.matmul %1, %2, %cst {dimension_numbers = #tpu.dot_dimension_numbers<[1], [0], [0], [1], [0, 0, 1, 1], [], []>} : vector<64x27xbf16>, vector<27x64xbf16>, vector<64x64xf32> -> vector<64x64xf32>
    %c0_4 = arith.constant 0 : index
    %c0_5 = arith.constant 0 : index
    %4 = vector.load %arg4[%c0_4, %c0_5] : memref<1x64xf32, #tpu.memory_space<vmem>>, vector<1x64xf32>
    %5 = vector.broadcast %4 : vector<1x64xf32> to vector<64x64xf32>
    %6 = arith.addf %3, %5 : vector<64x64xf32>
    %cst_6 = arith.constant 0.000000e+00 : f32
    %7 = vector.broadcast %cst_6 : f32 to vector<64x64xf32>
    %8 = arith.maximumf %6, %7 : vector<64x64xf32>
    %9 = vector.shape_cast %8 : vector<64x64xf32> to vector<1x64x64xf32>
    %10 = arith.truncf %9 : vector<1x64x64xf32> to vector<1x64x64xbf16>
    %c0_7 = arith.constant 0 : index
    %c0_8 = arith.constant 0 : index
    %c0_9 = arith.constant 0 : index
    %11 = vector.load %arg5[%c0_7, %c0_8, %c0_9] : memref<1x64x64xbf16, #tpu.memory_space<vmem>>, vector<1x64x64xbf16>
    tpu.vector_store %arg5[%c0_7, %c0_8, %c0_9], %10 {strides = array<i32>} : memref<1x64x64xbf16, #tpu.memory_space<vmem>>, vector<1x64x64xbf16>,
    return
  }
  func.func @transform_0(%arg0: i32, %arg1: i32) -> (i32, i32, i32) {
    %c0_i32 = arith.constant 0 : i32
    %c0_i32_0 = arith.constant 0 : i32
    return %arg0, %arg1, %c0_i32 : i32, i32, i32
  }
  func.func @transform_1(%arg0: i32, %arg1: i32) -> (i32, i32) {
    %c0_i32 = arith.constant 0 : i32
    %c0_i32_0 = arith.constant 0 : i32
    %c0_i32_1 = arith.constant 0 : i32
    return %c0_i32, %c0_i32_0 : i32, i32
  }
  func.func @transform_2(%arg0: i32, %arg1: i32) -> (i32, i32) {
    %c0_i32 = arith.constant 0 : i32
    %c0_i32_0 = arith.constant 0 : i32
    %c0_i32_1 = arith.constant 0 : i32
    return %c0_i32, %c0_i32_0 : i32, i32
  }
  func.func @transform_3(%arg0: i32, %arg1: i32) -> (i32, i32, i32) {
    %c0_i32 = arith.constant 0 : i32
    %c0_i32_0 = arith.constant 0 : i32
    return %arg0, %arg1, %c0_i32 : i32, i32, i32
  }
}

module attributes {stable_mosaic.version = 11 : i64} {
  func.func @kernel(%arg0: i32, %arg1: i32, %arg2: memref<1x64x4xf32, #tpu.memory_space<vmem>>, %arg3: memref<1x1x4xf32, #tpu.memory_space<vmem>>, %arg4: memref<1x1x4xf32, #tpu.memory_space<vmem>>, %arg5: memref<1x4xf32, #tpu.memory_space<vmem>>, %arg6: memref<1x4xf32, #tpu.memory_space<vmem>>) attributes {dimension_semantics = [#tpu.dimension_semantics<parallel>, #tpu.dimension_semantics<arbitrary>], iteration_bounds = array<i64: 2, 4>, scalar_prefetch = 0 : i64, scratch_operands = 2 : i64, tpu.core_type = #tpu.core_type<tc>, window_params = [{transform_indices = @transform_0, window_bounds = array<i64: 1, 64, 4>}, {transform_indices = @transform_1, window_bounds = array<i64: 1, 1, 4>}, {transform_indices = @transform_2, window_bounds = array<i64: 1, 1, 4>}]} {
    %c0_i32 = arith.constant 0 : i32
    %0 = arith.cmpi eq, %arg1, %c0_i32 : i32
    %1 = arith.extui %0 : i1 to i32
    %c0_i32_0 = arith.constant 0 : i32
    %2 = arith.cmpi ne, %1, %c0_i32_0 : i32
    scf.if %2 {
      %cst_13 = arith.constant 0.000000e+00 : f32
      %19 = vector.broadcast %cst_13 : f32 to vector<1x4xf32>
      %c0_14 = arith.constant 0 : index
      %c0_15 = arith.constant 0 : index
      %20 = vector.load %arg5[%c0_14, %c0_15] : memref<1x4xf32, #tpu.memory_space<vmem>>, vector<1x4xf32>
      tpu.vector_store %arg5[%c0_14, %c0_15], %19 {strides = array<i32>} : memref<1x4xf32, #tpu.memory_space<vmem>>, vector<1x4xf32>,
      %cst_16 = arith.constant 0.000000e+00 : f32
      %21 = vector.broadcast %cst_16 : f32 to vector<1x4xf32>
      %c0_17 = arith.constant 0 : index
      %c0_18 = arith.constant 0 : index
      %22 = vector.load %arg6[%c0_17, %c0_18] : memref<1x4xf32, #tpu.memory_space<vmem>>, vector<1x4xf32>
      tpu.vector_store %arg6[%c0_17, %c0_18], %21 {strides = array<i32>} : memref<1x4xf32, #tpu.memory_space<vmem>>, vector<1x4xf32>,
    } else {
    }
    %c0 = arith.constant 0 : index
    %c0_1 = arith.constant 0 : index
    %c0_2 = arith.constant 0 : index
    %3 = vector.load %arg2[%c0, %c0_1, %c0_2] : memref<1x64x4xf32, #tpu.memory_space<vmem>>, vector<1x64x4xf32>
    %4 = vector.shape_cast %3 : vector<1x64x4xf32> to vector<64x4xf32>
    %c0_3 = arith.constant 0 : index
    %c0_4 = arith.constant 0 : index
    %5 = vector.load %arg5[%c0_3, %c0_4] : memref<1x4xf32, #tpu.memory_space<vmem>>, vector<1x4xf32>
    %cst = arith.constant dense<0.000000e+00> : vector<4xf32>
    %6 = vector.multi_reduction <add>, %4, %cst [0] : vector<64x4xf32> to vector<4xf32>
    %7 = vector.shape_cast %6 : vector<4xf32> to vector<1x4xf32>
    %8 = arith.addf %5, %7 : vector<1x4xf32>
    %c0_5 = arith.constant 0 : index
    %c0_6 = arith.constant 0 : index
    %9 = vector.load %arg5[%c0_5, %c0_6] : memref<1x4xf32, #tpu.memory_space<vmem>>, vector<1x4xf32>
    tpu.vector_store %arg5[%c0_5, %c0_6], %8 {strides = array<i32>} : memref<1x4xf32, #tpu.memory_space<vmem>>, vector<1x4xf32>,
    %c0_7 = arith.constant 0 : index
    %c0_8 = arith.constant 0 : index
    %10 = vector.load %arg6[%c0_7, %c0_8] : memref<1x4xf32, #tpu.memory_space<vmem>>, vector<1x4xf32>
    %11 = arith.mulf %4, %4 : vector<64x4xf32>
    %cst_9 = arith.constant dense<0.000000e+00> : vector<4xf32>
    %12 = vector.multi_reduction <add>, %11, %cst_9 [0] : vector<64x4xf32> to vector<4xf32>
    %13 = vector.shape_cast %12 : vector<4xf32> to vector<1x4xf32>
    %14 = arith.addf %10, %13 : vector<1x4xf32>
    %c0_10 = arith.constant 0 : index
    %c0_11 = arith.constant 0 : index
    %15 = vector.load %arg6[%c0_10, %c0_11] : memref<1x4xf32, #tpu.memory_space<vmem>>, vector<1x4xf32>
    tpu.vector_store %arg6[%c0_10, %c0_11], %14 {strides = array<i32>} : memref<1x4xf32, #tpu.memory_space<vmem>>, vector<1x4xf32>,
    %c3_i32 = arith.constant 3 : i32
    %16 = arith.cmpi eq, %arg1, %c3_i32 : i32
    %17 = arith.extui %16 : i1 to i32
    %c0_i32_12 = arith.constant 0 : i32
    %18 = arith.cmpi ne, %17, %c0_i32_12 : i32
    scf.if %18 {
      %c0_13 = arith.constant 0 : index
      %c0_14 = arith.constant 0 : index
      %19 = vector.load %arg5[%c0_13, %c0_14] : memref<1x4xf32, #tpu.memory_space<vmem>>, vector<1x4xf32>
      %cst_15 = arith.constant 3.906250e-03 : f32
      %20 = vector.broadcast %cst_15 : f32 to vector<1x4xf32>
      %21 = arith.mulf %19, %20 : vector<1x4xf32>
      %c0_16 = arith.constant 0 : index
      %c0_17 = arith.constant 0 : index
      %22 = vector.load %arg6[%c0_16, %c0_17] : memref<1x4xf32, #tpu.memory_space<vmem>>, vector<1x4xf32>
      %cst_18 = arith.constant 3.906250e-03 : f32
      %23 = vector.broadcast %cst_18 : f32 to vector<1x4xf32>
      %24 = arith.mulf %22, %23 : vector<1x4xf32>
      %25 = arith.mulf %21, %21 : vector<1x4xf32>
      %26 = arith.subf %24, %25 : vector<1x4xf32>
      %27 = vector.shape_cast %21 : vector<1x4xf32> to vector<1x1x4xf32>
      %c0_19 = arith.constant 0 : index
      %c0_20 = arith.constant 0 : index
      %c0_21 = arith.constant 0 : index
      %28 = vector.load %arg3[%c0_19, %c0_20, %c0_21] : memref<1x1x4xf32, #tpu.memory_space<vmem>>, vector<1x1x4xf32>
      tpu.vector_store %arg3[%c0_19, %c0_20, %c0_21], %27 {strides = array<i32>} : memref<1x1x4xf32, #tpu.memory_space<vmem>>, vector<1x1x4xf32>,
      %cst_22 = arith.constant 9.99999974E-6 : f32
      %29 = vector.broadcast %cst_22 : f32 to vector<1x4xf32>
      %30 = arith.addf %26, %29 : vector<1x4xf32>
      %31 = math.rsqrt %30 : vector<1x4xf32>
      %32 = vector.shape_cast %31 : vector<1x4xf32> to vector<1x1x4xf32>
      %c0_23 = arith.constant 0 : index
      %c0_24 = arith.constant 0 : index
      %c0_25 = arith.constant 0 : index
      %33 = vector.load %arg4[%c0_23, %c0_24, %c0_25] : memref<1x1x4xf32, #tpu.memory_space<vmem>>, vector<1x1x4xf32>
      tpu.vector_store %arg4[%c0_23, %c0_24, %c0_25], %32 {strides = array<i32>} : memref<1x1x4xf32, #tpu.memory_space<vmem>>, vector<1x1x4xf32>,
    } else {
    }
    return
  }
  func.func @transform_0(%arg0: i32, %arg1: i32) -> (i32, i32, i32) {
    %c0_i32 = arith.constant 0 : i32
    %c0_i32_0 = arith.constant 0 : i32
    return %arg0, %arg1, %c0_i32 : i32, i32, i32
  }
  func.func @transform_1(%arg0: i32, %arg1: i32) -> (i32, i32, i32) {
    %c0_i32 = arith.constant 0 : i32
    %c0_i32_0 = arith.constant 0 : i32
    %c0_i32_1 = arith.constant 0 : i32
    return %arg0, %c0_i32, %c0_i32_0 : i32, i32, i32
  }
  func.func @transform_2(%arg0: i32, %arg1: i32) -> (i32, i32, i32) {
    %c0_i32 = arith.constant 0 : i32
    %c0_i32_0 = arith.constant 0 : i32
    %c0_i32_1 = arith.constant 0 : i32
    return %arg0, %c0_i32, %c0_i32_0 : i32, i32, i32
  }
}

module attributes {stable_mosaic.version = 11 : i64} {
  func.func @kernel(%arg0: i32, %arg1: i32, %arg2: memref<1x18x18x64xbf16, #tpu.memory_space<vmem>>, %arg3: memref<3x3x64x8xbf16, #tpu.memory_space<vmem>>, %arg4: memref<1x8xf32, #tpu.memory_space<vmem>>, %arg5: memref<1x128x4xf32, #tpu.memory_space<vmem>>, %arg6: memref<1x1x4xf32, #tpu.memory_space<vmem>>, %arg7: memref<1x1x4xf32, #tpu.memory_space<vmem>>, %arg8: memref<1x128x4xbf16, #tpu.memory_space<vmem>>, %arg9: memref<128x8xf32, #tpu.memory_space<vmem>>) attributes {dimension_semantics = [#tpu.dimension_semantics<parallel>, #tpu.dimension_semantics<parallel>], iteration_bounds = array<i64: 2, 2>, scalar_prefetch = 0 : i64, scratch_operands = 1 : i64, tpu.core_type = #tpu.core_type<tc>, window_params = [{transform_indices = @transform_0, window_bounds = array<i64: 1, 18, 18, 64>}, {pipeline_mode = #tpu.pipeline_mode<synchronous>, transform_indices = @transform_1, window_bounds = array<i64: 3, 3, 64, 8>}, {pipeline_mode = #tpu.pipeline_mode<synchronous>, transform_indices = @transform_2, window_bounds = array<i64: 1, 8>}, {transform_indices = @transform_3, window_bounds = array<i64: 1, 128, 4>}, {transform_indices = @transform_4, window_bounds = array<i64: 1, 1, 4>}, {transform_indices = @transform_5, window_bounds = array<i64: 1, 1, 4>}, {transform_indices = @transform_6, window_bounds = array<i64: 1, 128, 4>}]} {
    %c8_i32 = arith.constant 8 : i32
    %0 = arith.muli %arg1, %c8_i32 : i32
    %1 = tpu.assume_multiple %0, 8 : i32
    %c0_i32 = arith.constant 0 : i32
    %2 = arith.addi %1, %c0_i32 : i32
    %c0 = arith.constant 0 : index
    %3 = arith.index_cast %2 : i32 to index
    %c0_0 = arith.constant 0 : index
    %c0_1 = arith.constant 0 : index
    %4 = vector.load %arg2[%c0, %3, %c0_0, %c0_1] : memref<1x18x18x64xbf16, #tpu.memory_space<vmem>>, vector<1x8x16x64xbf16>
    %5 = vector.shape_cast %4 : vector<1x8x16x64xbf16> to vector<8x16x64xbf16>
    %6 = vector.shape_cast %5 : vector<8x16x64xbf16> to vector<128x64xbf16>
    %c0_2 = arith.constant 0 : index
    %c0_3 = arith.constant 0 : index
    %c0_4 = arith.constant 0 : index
    %c0_5 = arith.constant 0 : index
    %7 = vector.load %arg3[%c0_2, %c0_3, %c0_4, %c0_5] : memref<3x3x64x8xbf16, #tpu.memory_space<vmem>>, vector<1x1x64x8xbf16>
    %8 = vector.shape_cast %7 : vector<1x1x64x8xbf16> to vector<64x8xbf16>
    %cst = arith.constant dense<0.000000e+00> : vector<128x8xf32>
    %9 = tpu.matmul %6, %8, %cst {dimension_numbers = #tpu.dot_dimension_numbers<[1], [0], [0], [1], [0, 0, 1, 1], [], []>} : vector<128x64xbf16>, vector<64x8xbf16>, vector<128x8xf32> -> vector<128x8xf32>
    %c0_6 = arith.constant 0 : index
    %c0_7 = arith.constant 0 : index
    %10 = vector.load %arg9[%c0_6, %c0_7] : memref<128x8xf32, #tpu.memory_space<vmem>>, vector<128x8xf32>
    tpu.vector_store %arg9[%c0_6, %c0_7], %9 {strides = array<i32>} : memref<128x8xf32, #tpu.memory_space<vmem>>, vector<128x8xf32>,
    %c0_i32_8 = arith.constant 0 : i32
    %11 = arith.addi %1, %c0_i32_8 : i32
    %c0_9 = arith.constant 0 : index
    %12 = arith.index_cast %11 : i32 to index
    %c1 = arith.constant 1 : index
    %c0_10 = arith.constant 0 : index
    %13 = vector.load %arg2[%c0_9, %12, %c1, %c0_10] : memref<1x18x18x64xbf16, #tpu.memory_space<vmem>>, vector<1x8x16x64xbf16>
    %14 = vector.shape_cast %13 : vector<1x8x16x64xbf16> to vector<8x16x64xbf16>
    %15 = vector.shape_cast %14 : vector<8x16x64xbf16> to vector<128x64xbf16>
    %c0_11 = arith.constant 0 : index
    %c1_12 = arith.constant 1 : index
    %c0_13 = arith.constant 0 : index
    %c0_14 = arith.constant 0 : index
    %16 = vector.load %arg3[%c0_11, %c1_12, %c0_13, %c0_14] : memref<3x3x64x8xbf16, #tpu.memory_space<vmem>>, vector<1x1x64x8xbf16>
    %17 = vector.shape_cast %16 : vector<1x1x64x8xbf16> to vector<64x8xbf16>
    %cst_15 = arith.constant dense<0.000000e+00> : vector<128x8xf32>
    %18 = tpu.matmul %15, %17, %cst_15 {dimension_numbers = #tpu.dot_dimension_numbers<[1], [0], [0], [1], [0, 0, 1, 1], [], []>} : vector<128x64xbf16>, vector<64x8xbf16>, vector<128x8xf32> -> vector<128x8xf32>
    %c0_16 = arith.constant 0 : index
    %c0_17 = arith.constant 0 : index
    %19 = vector.load %arg9[%c0_16, %c0_17] : memref<128x8xf32, #tpu.memory_space<vmem>>, vector<128x8xf32>
    %20 = arith.addf %19, %18 : vector<128x8xf32>
    %c0_18 = arith.constant 0 : index
    %c0_19 = arith.constant 0 : index
    %21 = vector.load %arg9[%c0_18, %c0_19] : memref<128x8xf32, #tpu.memory_space<vmem>>, vector<128x8xf32>
    tpu.vector_store %arg9[%c0_18, %c0_19], %20 {strides = array<i32>} : memref<128x8xf32, #tpu.memory_space<vmem>>, vector<128x8xf32>,
    %c0_i32_20 = arith.constant 0 : i32
    %22 = arith.addi %1, %c0_i32_20 : i32
    %c0_21 = arith.constant 0 : index
    %23 = arith.index_cast %22 : i32 to index
    %c2 = arith.constant 2 : index
    %c0_22 = arith.constant 0 : index
    %24 = vector.load %arg2[%c0_21, %23, %c2, %c0_22] : memref<1x18x18x64xbf16, #tpu.memory_space<vmem>>, vector<1x8x16x64xbf16>
    %25 = vector.shape_cast %24 : vector<1x8x16x64xbf16> to vector<8x16x64xbf16>
    %26 = vector.shape_cast %25 : vector<8x16x64xbf16> to vector<128x64xbf16>
    %c0_23 = arith.constant 0 : index
    %c2_24 = arith.constant 2 : index
    %c0_25 = arith.constant 0 : index
    %c0_26 = arith.constant 0 : index
    %27 = vector.load %arg3[%c0_23, %c2_24, %c0_25, %c0_26] : memref<3x3x64x8xbf16, #tpu.memory_space<vmem>>, vector<1x1x64x8xbf16>
    %28 = vector.shape_cast %27 : vector<1x1x64x8xbf16> to vector<64x8xbf16>
    %cst_27 = arith.constant dense<0.000000e+00> : vector<128x8xf32>
    %29 = tpu.matmul %26, %28, %cst_27 {dimension_numbers = #tpu.dot_dimension_numbers<[1], [0], [0], [1], [0, 0, 1, 1], [], []>} : vector<128x64xbf16>, vector<64x8xbf16>, vector<128x8xf32> -> vector<128x8xf32>
    %c0_28 = arith.constant 0 : index
    %c0_29 = arith.constant 0 : index
    %30 = vector.load %arg9[%c0_28, %c0_29] : memref<128x8xf32, #tpu.memory_space<vmem>>, vector<128x8xf32>
    %31 = arith.addf %30, %29 : vector<128x8xf32>
    %c0_30 = arith.constant 0 : index
    %c0_31 = arith.constant 0 : index
    %32 = vector.load %arg9[%c0_30, %c0_31] : memref<128x8xf32, #tpu.memory_space<vmem>>, vector<128x8xf32>
    tpu.vector_store %arg9[%c0_30, %c0_31], %31 {strides = array<i32>} : memref<128x8xf32, #tpu.memory_space<vmem>>, vector<128x8xf32>,
    %c1_i32 = arith.constant 1 : i32
    %33 = arith.addi %1, %c1_i32 : i32
    %c0_32 = arith.constant 0 : index
    %34 = arith.index_cast %33 : i32 to index
    %c0_33 = arith.constant 0 : index
    %c0_34 = arith.constant 0 : index
    %35 = vector.load %arg2[%c0_32, %34, %c0_33, %c0_34] : memref<1x18x18x64xbf16, #tpu.memory_space<vmem>>, vector<1x8x16x64xbf16>
    %36 = vector.shape_cast %35 : vector<1x8x16x64xbf16> to vector<8x16x64xbf16>
    %37 = vector.shape_cast %36 : vector<8x16x64xbf16> to vector<128x64xbf16>
    %c1_35 = arith.constant 1 : index
    %c0_36 = arith.constant 0 : index
    %c0_37 = arith.constant 0 : index
    %c0_38 = arith.constant 0 : index
    %38 = vector.load %arg3[%c1_35, %c0_36, %c0_37, %c0_38] : memref<3x3x64x8xbf16, #tpu.memory_space<vmem>>, vector<1x1x64x8xbf16>
    %39 = vector.shape_cast %38 : vector<1x1x64x8xbf16> to vector<64x8xbf16>
    %cst_39 = arith.constant dense<0.000000e+00> : vector<128x8xf32>
    %40 = tpu.matmul %37, %39, %cst_39 {dimension_numbers = #tpu.dot_dimension_numbers<[1], [0], [0], [1], [0, 0, 1, 1], [], []>} : vector<128x64xbf16>, vector<64x8xbf16>, vector<128x8xf32> -> vector<128x8xf32>
    %c0_40 = arith.constant 0 : index
    %c0_41 = arith.constant 0 : index
    %41 = vector.load %arg9[%c0_40, %c0_41] : memref<128x8xf32, #tpu.memory_space<vmem>>, vector<128x8xf32>
    %42 = arith.addf %41, %40 : vector<128x8xf32>
    %c0_42 = arith.constant 0 : index
    %c0_43 = arith.constant 0 : index
    %43 = vector.load %arg9[%c0_42, %c0_43] : memref<128x8xf32, #tpu.memory_space<vmem>>, vector<128x8xf32>
    tpu.vector_store %arg9[%c0_42, %c0_43], %42 {strides = array<i32>} : memref<128x8xf32, #tpu.memory_space<vmem>>, vector<128x8xf32>,
    %c1_i32_44 = arith.constant 1 : i32
    %44 = arith.addi %1, %c1_i32_44 : i32
    %c0_45 = arith.constant 0 : index
    %45 = arith.index_cast %44 : i32 to index
    %c1_46 = arith.constant 1 : index
    %c0_47 = arith.constant 0 : index
    %46 = vector.load %arg2[%c0_45, %45, %c1_46, %c0_47] : memref<1x18x18x64xbf16, #tpu.memory_space<vmem>>, vector<1x8x16x64xbf16>
    %47 = vector.shape_cast %46 : vector<1x8x16x64xbf16> to vector<8x16x64xbf16>
    %48 = vector.shape_cast %47 : vector<8x16x64xbf16> to vector<128x64xbf16>
    %c1_48 = arith.constant 1 : index
    %c1_49 = arith.constant 1 : index
    %c0_50 = arith.constant 0 : index
    %c0_51 = arith.constant 0 : index
    %49 = vector.load %arg3[%c1_48, %c1_49, %c0_50, %c0_51] : memref<3x3x64x8xbf16, #tpu.memory_space<vmem>>, vector<1x1x64x8xbf16>
    %50 = vector.shape_cast %49 : vector<1x1x64x8xbf16> to vector<64x8xbf16>
    %cst_52 = arith.constant dense<0.000000e+00> : vector<128x8xf32>
    %51 = tpu.matmul %48, %50, %cst_52 {dimension_numbers = #tpu.dot_dimension_numbers<[1], [0], [0], [1], [0, 0, 1, 1], [], []>} : vector<128x64xbf16>, vector<64x8xbf16>, vector<128x8xf32> -> vector<128x8xf32>
    %c0_53 = arith.constant 0 : index
    %c0_54 = arith.constant 0 : index
    %52 = vector.load %arg9[%c0_53, %c0_54] : memref<128x8xf32, #tpu.memory_space<vmem>>, vector<128x8xf32>
    %53 = arith.addf %52, %51 : vector<128x8xf32>
    %c0_55 = arith.constant 0 : index
    %c0_56 = arith.constant 0 : index
    %54 = vector.load %arg9[%c0_55, %c0_56] : memref<128x8xf32, #tpu.memory_space<vmem>>, vector<128x8xf32>
    tpu.vector_store %arg9[%c0_55, %c0_56], %53 {strides = array<i32>} : memref<128x8xf32, #tpu.memory_space<vmem>>, vector<128x8xf32>,
    %c1_i32_57 = arith.constant 1 : i32
    %55 = arith.addi %1, %c1_i32_57 : i32
    %c0_58 = arith.constant 0 : index
    %56 = arith.index_cast %55 : i32 to index
    %c2_59 = arith.constant 2 : index
    %c0_60 = arith.constant 0 : index
    %57 = vector.load %arg2[%c0_58, %56, %c2_59, %c0_60] : memref<1x18x18x64xbf16, #tpu.memory_space<vmem>>, vector<1x8x16x64xbf16>
    %58 = vector.shape_cast %57 : vector<1x8x16x64xbf16> to vector<8x16x64xbf16>
    %59 = vector.shape_cast %58 : vector<8x16x64xbf16> to vector<128x64xbf16>
    %c1_61 = arith.constant 1 : index
    %c2_62 = arith.constant 2 : index
    %c0_63 = arith.constant 0 : index
    %c0_64 = arith.constant 0 : index
    %60 = vector.load %arg3[%c1_61, %c2_62, %c0_63, %c0_64] : memref<3x3x64x8xbf16, #tpu.memory_space<vmem>>, vector<1x1x64x8xbf16>
    %61 = vector.shape_cast %60 : vector<1x1x64x8xbf16> to vector<64x8xbf16>
    %cst_65 = arith.constant dense<0.000000e+00> : vector<128x8xf32>
    %62 = tpu.matmul %59, %61, %cst_65 {dimension_numbers = #tpu.dot_dimension_numbers<[1], [0], [0], [1], [0, 0, 1, 1], [], []>} : vector<128x64xbf16>, vector<64x8xbf16>, vector<128x8xf32> -> vector<128x8xf32>
    %c0_66 = arith.constant 0 : index
    %c0_67 = arith.constant 0 : index
    %63 = vector.load %arg9[%c0_66, %c0_67] : memref<128x8xf32, #tpu.memory_space<vmem>>, vector<128x8xf32>
    %64 = arith.addf %63, %62 : vector<128x8xf32>
    %c0_68 = arith.constant 0 : index
    %c0_69 = arith.constant 0 : index
    %65 = vector.load %arg9[%c0_68, %c0_69] : memref<128x8xf32, #tpu.memory_space<vmem>>, vector<128x8xf32>
    tpu.vector_store %arg9[%c0_68, %c0_69], %64 {strides = array<i32>} : memref<128x8xf32, #tpu.memory_space<vmem>>, vector<128x8xf32>,
    %c2_i32 = arith.constant 2 : i32
    %66 = arith.addi %1, %c2_i32 : i32
    %c0_70 = arith.constant 0 : index
    %67 = arith.index_cast %66 : i32 to index
    %c0_71 = arith.constant 0 : index
    %c0_72 = arith.constant 0 : index
    %68 = vector.load %arg2[%c0_70, %67, %c0_71, %c0_72] : memref<1x18x18x64xbf16, #tpu.memory_space<vmem>>, vector<1x8x16x64xbf16>
    %69 = vector.shape_cast %68 : vector<1x8x16x64xbf16> to vector<8x16x64xbf16>
    %70 = vector.shape_cast %69 : vector<8x16x64xbf16> to vector<128x64xbf16>
    %c2_73 = arith.constant 2 : index
    %c0_74 = arith.constant 0 : index
    %c0_75 = arith.constant 0 : index
    %c0_76 = arith.constant 0 : index
    %71 = vector.load %arg3[%c2_73, %c0_74, %c0_75, %c0_76] : memref<3x3x64x8xbf16, #tpu.memory_space<vmem>>, vector<1x1x64x8xbf16>
    %72 = vector.shape_cast %71 : vector<1x1x64x8xbf16> to vector<64x8xbf16>
    %cst_77 = arith.constant dense<0.000000e+00> : vector<128x8xf32>
    %73 = tpu.matmul %70, %72, %cst_77 {dimension_numbers = #tpu.dot_dimension_numbers<[1], [0], [0], [1], [0, 0, 1, 1], [], []>} : vector<128x64xbf16>, vector<64x8xbf16>, vector<128x8xf32> -> vector<128x8xf32>
    %c0_78 = arith.constant 0 : index
    %c0_79 = arith.constant 0 : index
    %74 = vector.load %arg9[%c0_78, %c0_79] : memref<128x8xf32, #tpu.memory_space<vmem>>, vector<128x8xf32>
    %75 = arith.addf %74, %73 : vector<128x8xf32>
    %c0_80 = arith.constant 0 : index
    %c0_81 = arith.constant 0 : index
    %76 = vector.load %arg9[%c0_80, %c0_81] : memref<128x8xf32, #tpu.memory_space<vmem>>, vector<128x8xf32>
    tpu.vector_store %arg9[%c0_80, %c0_81], %75 {strides = array<i32>} : memref<128x8xf32, #tpu.memory_space<vmem>>, vector<128x8xf32>,
    %c2_i32_82 = arith.constant 2 : i32
    %77 = arith.addi %1, %c2_i32_82 : i32
    %c0_83 = arith.constant 0 : index
    %78 = arith.index_cast %77 : i32 to index
    %c1_84 = arith.constant 1 : index
    %c0_85 = arith.constant 0 : index
    %79 = vector.load %arg2[%c0_83, %78, %c1_84, %c0_85] : memref<1x18x18x64xbf16, #tpu.memory_space<vmem>>, vector<1x8x16x64xbf16>
    %80 = vector.shape_cast %79 : vector<1x8x16x64xbf16> to vector<8x16x64xbf16>
    %81 = vector.shape_cast %80 : vector<8x16x64xbf16> to vector<128x64xbf16>
    %c2_86 = arith.constant 2 : index
    %c1_87 = arith.constant 1 : index
    %c0_88 = arith.constant 0 : index
    %c0_89 = arith.constant 0 : index
    %82 = vector.load %arg3[%c2_86, %c1_87, %c0_88, %c0_89] : memref<3x3x64x8xbf16, #tpu.memory_space<vmem>>, vector<1x1x64x8xbf16>
    %83 = vector.shape_cast %82 : vector<1x1x64x8xbf16> to vector<64x8xbf16>
    %cst_90 = arith.constant dense<0.000000e+00> : vector<128x8xf32>
    %84 = tpu.matmul %81, %83, %cst_90 {dimension_numbers = #tpu.dot_dimension_numbers<[1], [0], [0], [1], [0, 0, 1, 1], [], []>} : vector<128x64xbf16>, vector<64x8xbf16>, vector<128x8xf32> -> vector<128x8xf32>
    %c0_91 = arith.constant 0 : index
    %c0_92 = arith.constant 0 : index
    %85 = vector.load %arg9[%c0_91, %c0_92] : memref<128x8xf32, #tpu.memory_space<vmem>>, vector<128x8xf32>
    %86 = arith.addf %85, %84 : vector<128x8xf32>
    %c0_93 = arith.constant 0 : index
    %c0_94 = arith.constant 0 : index
    %87 = vector.load %arg9[%c0_93, %c0_94] : memref<128x8xf32, #tpu.memory_space<vmem>>, vector<128x8xf32>
    tpu.vector_store %arg9[%c0_93, %c0_94], %86 {strides = array<i32>} : memref<128x8xf32, #tpu.memory_space<vmem>>, vector<128x8xf32>,
    %c2_i32_95 = arith.constant 2 : i32
    %88 = arith.addi %1, %c2_i32_95 : i32
    %c0_96 = arith.constant 0 : index
    %89 = arith.index_cast %88 : i32 to index
    %c2_97 = arith.constant 2 : index
    %c0_98 = arith.constant 0 : index
    %90 = vector.load %arg2[%c0_96, %89, %c2_97, %c0_98] : memref<1x18x18x64xbf16, #tpu.memory_space<vmem>>, vector<1x8x16x64xbf16>
    %91 = vector.shape_cast %90 : vector<1x8x16x64xbf16> to vector<8x16x64xbf16>
    %92 = vector.shape_cast %91 : vector<8x16x64xbf16> to vector<128x64xbf16>
    %c2_99 = arith.constant 2 : index
    %c2_100 = arith.constant 2 : index
    %c0_101 = arith.constant 0 : index
    %c0_102 = arith.constant 0 : index
    %93 = vector.load %arg3[%c2_99, %c2_100, %c0_101, %c0_102] : memref<3x3x64x8xbf16, #tpu.memory_space<vmem>>, vector<1x1x64x8xbf16>
    %94 = vector.shape_cast %93 : vector<1x1x64x8xbf16> to vector<64x8xbf16>
    %cst_103 = arith.constant dense<0.000000e+00> : vector<128x8xf32>
    %95 = tpu.matmul %92, %94, %cst_103 {dimension_numbers = #tpu.dot_dimension_numbers<[1], [0], [0], [1], [0, 0, 1, 1], [], []>} : vector<128x64xbf16>, vector<64x8xbf16>, vector<128x8xf32> -> vector<128x8xf32>
    %c0_104 = arith.constant 0 : index
    %c0_105 = arith.constant 0 : index
    %96 = vector.load %arg9[%c0_104, %c0_105] : memref<128x8xf32, #tpu.memory_space<vmem>>, vector<128x8xf32>
    %97 = arith.addf %96, %95 : vector<128x8xf32>
    %c0_106 = arith.constant 0 : index
    %c0_107 = arith.constant 0 : index
    %98 = vector.load %arg9[%c0_106, %c0_107] : memref<128x8xf32, #tpu.memory_space<vmem>>, vector<128x8xf32>
    tpu.vector_store %arg9[%c0_106, %c0_107], %97 {strides = array<i32>} : memref<128x8xf32, #tpu.memory_space<vmem>>, vector<128x8xf32>,
    %c0_108 = arith.constant 0 : index
    %c0_109 = arith.constant 0 : index
    %99 = vector.load %arg9[%c0_108, %c0_109] : memref<128x8xf32, #tpu.memory_space<vmem>>, vector<128x8xf32>
    %c0_110 = arith.constant 0 : index
    %c0_111 = arith.constant 0 : index
    %100 = vector.load %arg4[%c0_110, %c0_111] : memref<1x8xf32, #tpu.memory_space<vmem>>, vector<1x8xf32>
    %101 = vector.broadcast %100 : vector<1x8xf32> to vector<128x8xf32>
    %102 = arith.addf %99, %101 : vector<128x8xf32>
    %103 = vector.extract_strided_slice %102 {offsets = [0, 0], sizes = [128, 4], strides = [1, 1]} : vector<128x8xf32> to vector<128x4xf32>
    %104 = vector.extract_strided_slice %102 {offsets = [0, 4], sizes = [128, 4], strides = [1, 1]} : vector<128x8xf32> to vector<128x4xf32>
    %c0_112 = arith.constant 0 : index
    %c0_113 = arith.constant 0 : index
    %c0_114 = arith.constant 0 : index
    %105 = vector.load %arg5[%c0_112, %c0_113, %c0_114] : memref<1x128x4xf32, #tpu.memory_space<vmem>>, vector<1x128x4xf32>
    %106 = vector.shape_cast %105 : vector<1x128x4xf32> to vector<128x4xf32>
    %c0_115 = arith.constant 0 : index
    %c0_116 = arith.constant 0 : index
    %c0_117 = arith.constant 0 : index
    %107 = vector.load %arg6[%c0_115, %c0_116, %c0_117] : memref<1x1x4xf32, #tpu.memory_space<vmem>>, vector<1x1x4xf32>
    %108 = vector.shape_cast %107 : vector<1x1x4xf32> to vector<1x4xf32>
    %109 = vector.broadcast %108 : vector<1x4xf32> to vector<128x4xf32>
    %110 = arith.subf %106, %109 : vector<128x4xf32>
    %c0_118 = arith.constant 0 : index
    %c0_119 = arith.constant 0 : index
    %c0_120 = arith.constant 0 : index
    %111 = vector.load %arg7[%c0_118, %c0_119, %c0_120] : memref<1x1x4xf32, #tpu.memory_space<vmem>>, vector<1x1x4xf32>
    %112 = vector.shape_cast %111 : vector<1x1x4xf32> to vector<1x4xf32>
    %113 = vector.broadcast %112 : vector<1x4xf32> to vector<128x4xf32>
    %114 = arith.mulf %110, %113 : vector<128x4xf32>
    %cst_121 = arith.constant 1.000000e+00 : f32
    %115 = vector.broadcast %cst_121 : f32 to vector<128x4xf32>
    %116 = arith.addf %115, %103 : vector<128x4xf32>
    %117 = arith.mulf %114, %116 : vector<128x4xf32>
    %118 = arith.addf %117, %104 : vector<128x4xf32>
    %cst_122 = arith.constant 2.000000e-01 : f32
    %119 = vector.broadcast %cst_122 : f32 to vector<128x4xf32>
    %120 = arith.mulf %119, %118 : vector<128x4xf32>
    %121 = arith.maximumf %118, %120 : vector<128x4xf32>
    %122 = vector.shape_cast %121 : vector<128x4xf32> to vector<1x128x4xf32>
    %123 = arith.truncf %122 : vector<1x128x4xf32> to vector<1x128x4xbf16>
    %c0_123 = arith.constant 0 : index
    %c0_124 = arith.constant 0 : index
    %c0_125 = arith.constant 0 : index
    %124 = vector.load %arg8[%c0_123, %c0_124, %c0_125] : memref<1x128x4xbf16, #tpu.memory_space<vmem>>, vector<1x128x4xbf16>
    tpu.vector_store %arg8[%c0_123, %c0_124, %c0_125], %123 {strides = array<i32>} : memref<1x128x4xbf16, #tpu.memory_space<vmem>>, vector<1x128x4xbf16>,
    return
  }
  func.func @transform_0(%arg0: i32, %arg1: i32) -> (i32, i32, i32, i32) {
    %c0_i32 = arith.constant 0 : i32
    %c0_i32_0 = arith.constant 0 : i32
    %c0_i32_1 = arith.constant 0 : i32
    %c0_i32_2 = arith.constant 0 : i32
    return %arg0, %c0_i32, %c0_i32_0, %c0_i32_1 : i32, i32, i32, i32
  }
  func.func @transform_1(%arg0: i32, %arg1: i32) -> (i32, i32, i32, i32) {
    %c0_i32 = arith.constant 0 : i32
    %c0_i32_0 = arith.constant 0 : i32
    %c0_i32_1 = arith.constant 0 : i32
    %c0_i32_2 = arith.constant 0 : i32
    %c0_i32_3 = arith.constant 0 : i32
    return %c0_i32, %c0_i32_0, %c0_i32_1, %c0_i32_2 : i32, i32, i32, i32
  }
  func.func @transform_2(%arg0: i32, %arg1: i32) -> (i32, i32) {
    %c0_i32 = arith.constant 0 : i32
    %c0_i32_0 = arith.constant 0 : i32
    %c0_i32_1 = arith.constant 0 : i32
    return %c0_i32, %c0_i32_0 : i32, i32
  }
  func.func @transform_3(%arg0: i32, %arg1: i32) -> (i32, i32, i32) {
    %c0_i32 = arith.constant 0 : i32
    %c0_i32_0 = arith.constant 0 : i32
    return %arg0, %arg1, %c0_i32 : i32, i32, i32
  }
  func.func @transform_4(%arg0: i32, %arg1: i32) -> (i32, i32, i32) {
    %c0_i32 = arith.constant 0 : i32
    %c0_i32_0 = arith.constant 0 : i32
    %c0_i32_1 = arith.constant 0 : i32
    return %arg0, %c0_i32, %c0_i32_0 : i32, i32, i32
  }
  func.func @transform_5(%arg0: i32, %arg1: i32) -> (i32, i32, i32) {
    %c0_i32 = arith.constant 0 : i32
    %c0_i32_0 = arith.constant 0 : i32
    %c0_i32_1 = arith.constant 0 : i32
    return %arg0, %c0_i32, %c0_i32_0 : i32, i32, i32
  }
  func.func @transform_6(%arg0: i32, %arg1: i32) -> (i32, i32, i32) {
    %c0_i32 = arith.constant 0 : i32
    %c0_i32_0 = arith.constant 0 : i32
    return %arg0, %arg1, %c0_i32 : i32, i32, i32
  }
}

module attributes {stable_mosaic.version = 11 : i64} {
  func.func @kernel(%arg0: i32, %arg1: i32, %arg2: memref<1x64x4xbf16, #tpu.memory_space<vmem>>, %arg3: memref<4x8xbf16, #tpu.memory_space<vmem>>, %arg4: memref<1x8xf32, #tpu.memory_space<vmem>>, %arg5: memref<1x64x8xf32, #tpu.memory_space<vmem>>) attributes {dimension_semantics = [#tpu.dimension_semantics<parallel>, #tpu.dimension_semantics<parallel>], iteration_bounds = array<i64: 2, 4>, scalar_prefetch = 0 : i64, scratch_operands = 0 : i64, tpu.core_type = #tpu.core_type<tc>, window_params = [{transform_indices = @transform_0, window_bounds = array<i64: 1, 64, 4>}, {pipeline_mode = #tpu.pipeline_mode<synchronous>, transform_indices = @transform_1, window_bounds = array<i64: 4, 8>}, {pipeline_mode = #tpu.pipeline_mode<synchronous>, transform_indices = @transform_2, window_bounds = array<i64: 1, 8>}, {transform_indices = @transform_3, window_bounds = array<i64: 1, 64, 8>}]} {
    %c0 = arith.constant 0 : index
    %c0_0 = arith.constant 0 : index
    %c0_1 = arith.constant 0 : index
    %0 = vector.load %arg2[%c0, %c0_0, %c0_1] : memref<1x64x4xbf16, #tpu.memory_space<vmem>>, vector<1x64x4xbf16>
    %1 = vector.shape_cast %0 : vector<1x64x4xbf16> to vector<64x4xbf16>
    %c0_2 = arith.constant 0 : index
    %c0_3 = arith.constant 0 : index
    %2 = vector.load %arg3[%c0_2, %c0_3] : memref<4x8xbf16, #tpu.memory_space<vmem>>, vector<4x8xbf16>
    %cst = arith.constant dense<0.000000e+00> : vector<64x8xf32>
    %3 = tpu.matmul %1, %2, %cst {dimension_numbers = #tpu.dot_dimension_numbers<[1], [0], [0], [1], [0, 0, 1, 1], [], []>} : vector<64x4xbf16>, vector<4x8xbf16>, vector<64x8xf32> -> vector<64x8xf32>
    %c0_4 = arith.constant 0 : index
    %c0_5 = arith.constant 0 : index
    %4 = vector.load %arg4[%c0_4, %c0_5] : memref<1x8xf32, #tpu.memory_space<vmem>>, vector<1x8xf32>
    %5 = vector.broadcast %4 : vector<1x8xf32> to vector<64x8xf32>
    %6 = arith.addf %3, %5 : vector<64x8xf32>
    %7 = vector.shape_cast %6 : vector<64x8xf32> to vector<1x64x8xf32>
    %c0_6 = arith.constant 0 : index
    %c0_7 = arith.constant 0 : index
    %c0_8 = arith.constant 0 : index
    %8 = vector.load %arg5[%c0_6, %c0_7, %c0_8] : memref<1x64x8xf32, #tpu.memory_space<vmem>>, vector<1x64x8xf32>
    tpu.vector_store %arg5[%c0_6, %c0_7, %c0_8], %7 {strides = array<i32>} : memref<1x64x8xf32, #tpu.memory_space<vmem>>, vector<1x64x8xf32>,
    return
  }
  func.func @transform_0(%arg0: i32, %arg1: i32) -> (i32, i32, i32) {
    %c0_i32 = arith.constant 0 : i32
    %c0_i32_0 = arith.constant 0 : i32
    return %arg0, %arg1, %c0_i32 : i32, i32, i32
  }
  func.func @transform_1(%arg0: i32, %arg1: i32) -> (i32, i32) {
    %c0_i32 = arith.constant 0 : i32
    %c0_i32_0 = arith.constant 0 : i32
    %c0_i32_1 = arith.constant 0 : i32
    return %c0_i32, %c0_i32_0 : i32, i32
  }
  func.func @transform_2(%arg0: i32, %arg1: i32) -> (i32, i32) {
    %c0_i32 = arith.constant 0 : i32
    %c0_i32_0 = arith.constant 0 : i32
    %c0_i32_1 = arith.constant 0 : i32
    return %c0_i32, %c0_i32_0 : i32, i32
  }
  func.func @transform_3(%arg0: i32, %arg1: i32) -> (i32, i32, i32) {
    %c0_i32 = arith.constant 0 : i32
    %c0_i32_0 = arith.constant 0 : i32
    return %arg0, %arg1, %c0_i32 : i32, i32, i32
  }
}

module attributes {stable_mosaic.version = 11 : i64} {
  func.func @kernel(%arg0: i32, %arg1: i32, %arg2: memref<1x18x18x4xbf16, #tpu.memory_space<vmem>>, %arg3: memref<3x3x4x4xbf16, #tpu.memory_space<vmem>>, %arg4: memref<1x4xf32, #tpu.memory_space<vmem>>, %arg5: memref<1x128x4xf32, #tpu.memory_space<vmem>>, %arg6: memref<128x4xf32, #tpu.memory_space<vmem>>) attributes {dimension_semantics = [#tpu.dimension_semantics<parallel>, #tpu.dimension_semantics<parallel>], iteration_bounds = array<i64: 2, 2>, scalar_prefetch = 0 : i64, scratch_operands = 1 : i64, tpu.core_type = #tpu.core_type<tc>, window_params = [{transform_indices = @transform_0, window_bounds = array<i64: 1, 18, 18, 4>}, {pipeline_mode = #tpu.pipeline_mode<synchronous>, transform_indices = @transform_1, window_bounds = array<i64: 3, 3, 4, 4>}, {pipeline_mode = #tpu.pipeline_mode<synchronous>, transform_indices = @transform_2, window_bounds = array<i64: 1, 4>}, {transform_indices = @transform_3, window_bounds = array<i64: 1, 128, 4>}]} {
    %c8_i32 = arith.constant 8 : i32
    %0 = arith.muli %arg1, %c8_i32 : i32
    %1 = tpu.assume_multiple %0, 8 : i32
    %c0_i32 = arith.constant 0 : i32
    %2 = arith.addi %1, %c0_i32 : i32
    %c0 = arith.constant 0 : index
    %3 = arith.index_cast %2 : i32 to index
    %c0_0 = arith.constant 0 : index
    %c0_1 = arith.constant 0 : index
    %4 = vector.load %arg2[%c0, %3, %c0_0, %c0_1] : memref<1x18x18x4xbf16, #tpu.memory_space<vmem>>, vector<1x8x16x4xbf16>
    %5 = vector.shape_cast %4 : vector<1x8x16x4xbf16> to vector<8x16x4xbf16>
    %6 = vector.shape_cast %5 : vector<8x16x4xbf16> to vector<128x4xbf16>
    %c0_2 = arith.constant 0 : index
    %c0_3 = arith.constant 0 : index
    %c0_4 = arith.constant 0 : index
    %c0_5 = arith.constant 0 : index
    %7 = vector.load %arg3[%c0_2, %c0_3, %c0_4, %c0_5] : memref<3x3x4x4xbf16, #tpu.memory_space<vmem>>, vector<1x1x4x4xbf16>
    %8 = vector.shape_cast %7 : vector<1x1x4x4xbf16> to vector<4x4xbf16>
    %cst = arith.constant dense<0.000000e+00> : vector<128x4xf32>
    %9 = tpu.matmul %6, %8, %cst {dimension_numbers = #tpu.dot_dimension_numbers<[1], [0], [0], [1], [0, 0, 1, 1], [], []>} : vector<128x4xbf16>, vector<4x4xbf16>, vector<128x4xf32> -> vector<128x4xf32>
    %c0_6 = arith.constant 0 : index
    %c0_7 = arith.constant 0 : index
    %10 = vector.load %arg6[%c0_6, %c0_7] : memref<128x4xf32, #tpu.memory_space<vmem>>, vector<128x4xf32>
    tpu.vector_store %arg6[%c0_6, %c0_7], %9 {strides = array<i32>} : memref<128x4xf32, #tpu.memory_space<vmem>>, vector<128x4xf32>,
    %c0_i32_8 = arith.constant 0 : i32
    %11 = arith.addi %1, %c0_i32_8 : i32
    %c0_9 = arith.constant 0 : index
    %12 = arith.index_cast %11 : i32 to index
    %c1 = arith.constant 1 : index
    %c0_10 = arith.constant 0 : index
    %13 = vector.load %arg2[%c0_9, %12, %c1, %c0_10] : memref<1x18x18x4xbf16, #tpu.memory_space<vmem>>, vector<1x8x16x4xbf16>
    %14 = vector.shape_cast %13 : vector<1x8x16x4xbf16> to vector<8x16x4xbf16>
    %15 = vector.shape_cast %14 : vector<8x16x4xbf16> to vector<128x4xbf16>
    %c0_11 = arith.constant 0 : index
    %c1_12 = arith.constant 1 : index
    %c0_13 = arith.constant 0 : index
    %c0_14 = arith.constant 0 : index
    %16 = vector.load %arg3[%c0_11, %c1_12, %c0_13, %c0_14] : memref<3x3x4x4xbf16, #tpu.memory_space<vmem>>, vector<1x1x4x4xbf16>
    %17 = vector.shape_cast %16 : vector<1x1x4x4xbf16> to vector<4x4xbf16>
    %cst_15 = arith.constant dense<0.000000e+00> : vector<128x4xf32>
    %18 = tpu.matmul %15, %17, %cst_15 {dimension_numbers = #tpu.dot_dimension_numbers<[1], [0], [0], [1], [0, 0, 1, 1], [], []>} : vector<128x4xbf16>, vector<4x4xbf16>, vector<128x4xf32> -> vector<128x4xf32>
    %c0_16 = arith.constant 0 : index
    %c0_17 = arith.constant 0 : index
    %19 = vector.load %arg6[%c0_16, %c0_17] : memref<128x4xf32, #tpu.memory_space<vmem>>, vector<128x4xf32>
    %20 = arith.addf %19, %18 : vector<128x4xf32>
    %c0_18 = arith.constant 0 : index
    %c0_19 = arith.constant 0 : index
    %21 = vector.load %arg6[%c0_18, %c0_19] : memref<128x4xf32, #tpu.memory_space<vmem>>, vector<128x4xf32>
    tpu.vector_store %arg6[%c0_18, %c0_19], %20 {strides = array<i32>} : memref<128x4xf32, #tpu.memory_space<vmem>>, vector<128x4xf32>,
    %c0_i32_20 = arith.constant 0 : i32
    %22 = arith.addi %1, %c0_i32_20 : i32
    %c0_21 = arith.constant 0 : index
    %23 = arith.index_cast %22 : i32 to index
    %c2 = arith.constant 2 : index
    %c0_22 = arith.constant 0 : index
    %24 = vector.load %arg2[%c0_21, %23, %c2, %c0_22] : memref<1x18x18x4xbf16, #tpu.memory_space<vmem>>, vector<1x8x16x4xbf16>
    %25 = vector.shape_cast %24 : vector<1x8x16x4xbf16> to vector<8x16x4xbf16>
    %26 = vector.shape_cast %25 : vector<8x16x4xbf16> to vector<128x4xbf16>
    %c0_23 = arith.constant 0 : index
    %c2_24 = arith.constant 2 : index
    %c0_25 = arith.constant 0 : index
    %c0_26 = arith.constant 0 : index
    %27 = vector.load %arg3[%c0_23, %c2_24, %c0_25, %c0_26] : memref<3x3x4x4xbf16, #tpu.memory_space<vmem>>, vector<1x1x4x4xbf16>
    %28 = vector.shape_cast %27 : vector<1x1x4x4xbf16> to vector<4x4xbf16>
    %cst_27 = arith.constant dense<0.000000e+00> : vector<128x4xf32>
    %29 = tpu.matmul %26, %28, %cst_27 {dimension_numbers = #tpu.dot_dimension_numbers<[1], [0], [0], [1], [0, 0, 1, 1], [], []>} : vector<128x4xbf16>, vector<4x4xbf16>, vector<128x4xf32> -> vector<128x4xf32>
    %c0_28 = arith.constant 0 : index
    %c0_29 = arith.constant 0 : index
    %30 = vector.load %arg6[%c0_28, %c0_29] : memref<128x4xf32, #tpu.memory_space<vmem>>, vector<128x4xf32>
    %31 = arith.addf %30, %29 : vector<128x4xf32>
    %c0_30 = arith.constant 0 : index
    %c0_31 = arith.constant 0 : index
    %32 = vector.load %arg6[%c0_30, %c0_31] : memref<128x4xf32, #tpu.memory_space<vmem>>, vector<128x4xf32>
    tpu.vector_store %arg6[%c0_30, %c0_31], %31 {strides = array<i32>} : memref<128x4xf32, #tpu.memory_space<vmem>>, vector<128x4xf32>,
    %c1_i32 = arith.constant 1 : i32
    %33 = arith.addi %1, %c1_i32 : i32
    %c0_32 = arith.constant 0 : index
    %34 = arith.index_cast %33 : i32 to index
    %c0_33 = arith.constant 0 : index
    %c0_34 = arith.constant 0 : index
    %35 = vector.load %arg2[%c0_32, %34, %c0_33, %c0_34] : memref<1x18x18x4xbf16, #tpu.memory_space<vmem>>, vector<1x8x16x4xbf16>
    %36 = vector.shape_cast %35 : vector<1x8x16x4xbf16> to vector<8x16x4xbf16>
    %37 = vector.shape_cast %36 : vector<8x16x4xbf16> to vector<128x4xbf16>
    %c1_35 = arith.constant 1 : index
    %c0_36 = arith.constant 0 : index
    %c0_37 = arith.constant 0 : index
    %c0_38 = arith.constant 0 : index
    %38 = vector.load %arg3[%c1_35, %c0_36, %c0_37, %c0_38] : memref<3x3x4x4xbf16, #tpu.memory_space<vmem>>, vector<1x1x4x4xbf16>
    %39 = vector.shape_cast %38 : vector<1x1x4x4xbf16> to vector<4x4xbf16>
    %cst_39 = arith.constant dense<0.000000e+00> : vector<128x4xf32>
    %40 = tpu.matmul %37, %39, %cst_39 {dimension_numbers = #tpu.dot_dimension_numbers<[1], [0], [0], [1], [0, 0, 1, 1], [], []>} : vector<128x4xbf16>, vector<4x4xbf16>, vector<128x4xf32> -> vector<128x4xf32>
    %c0_40 = arith.constant 0 : index
    %c0_41 = arith.constant 0 : index
    %41 = vector.load %arg6[%c0_40, %c0_41] : memref<128x4xf32, #tpu.memory_space<vmem>>, vector<128x4xf32>
    %42 = arith.addf %41, %40 : vector<128x4xf32>
    %c0_42 = arith.constant 0 : index
    %c0_43 = arith.constant 0 : index
    %43 = vector.load %arg6[%c0_42, %c0_43] : memref<128x4xf32, #tpu.memory_space<vmem>>, vector<128x4xf32>
    tpu.vector_store %arg6[%c0_42, %c0_43], %42 {strides = array<i32>} : memref<128x4xf32, #tpu.memory_space<vmem>>, vector<128x4xf32>,
    %c1_i32_44 = arith.constant 1 : i32
    %44 = arith.addi %1, %c1_i32_44 : i32
    %c0_45 = arith.constant 0 : index
    %45 = arith.index_cast %44 : i32 to index
    %c1_46 = arith.constant 1 : index
    %c0_47 = arith.constant 0 : index
    %46 = vector.load %arg2[%c0_45, %45, %c1_46, %c0_47] : memref<1x18x18x4xbf16, #tpu.memory_space<vmem>>, vector<1x8x16x4xbf16>
    %47 = vector.shape_cast %46 : vector<1x8x16x4xbf16> to vector<8x16x4xbf16>
    %48 = vector.shape_cast %47 : vector<8x16x4xbf16> to vector<128x4xbf16>
    %c1_48 = arith.constant 1 : index
    %c1_49 = arith.constant 1 : index
    %c0_50 = arith.constant 0 : index
    %c0_51 = arith.constant 0 : index
    %49 = vector.load %arg3[%c1_48, %c1_49, %c0_50, %c0_51] : memref<3x3x4x4xbf16, #tpu.memory_space<vmem>>, vector<1x1x4x4xbf16>
    %50 = vector.shape_cast %49 : vector<1x1x4x4xbf16> to vector<4x4xbf16>
    %cst_52 = arith.constant dense<0.000000e+00> : vector<128x4xf32>
    %51 = tpu.matmul %48, %50, %cst_52 {dimension_numbers = #tpu.dot_dimension_numbers<[1], [0], [0], [1], [0, 0, 1, 1], [], []>} : vector<128x4xbf16>, vector<4x4xbf16>, vector<128x4xf32> -> vector<128x4xf32>
    %c0_53 = arith.constant 0 : index
    %c0_54 = arith.constant 0 : index
    %52 = vector.load %arg6[%c0_53, %c0_54] : memref<128x4xf32, #tpu.memory_space<vmem>>, vector<128x4xf32>
    %53 = arith.addf %52, %51 : vector<128x4xf32>
    %c0_55 = arith.constant 0 : index
    %c0_56 = arith.constant 0 : index
    %54 = vector.load %arg6[%c0_55, %c0_56] : memref<128x4xf32, #tpu.memory_space<vmem>>, vector<128x4xf32>
    tpu.vector_store %arg6[%c0_55, %c0_56], %53 {strides = array<i32>} : memref<128x4xf32, #tpu.memory_space<vmem>>, vector<128x4xf32>,
    %c1_i32_57 = arith.constant 1 : i32
    %55 = arith.addi %1, %c1_i32_57 : i32
    %c0_58 = arith.constant 0 : index
    %56 = arith.index_cast %55 : i32 to index
    %c2_59 = arith.constant 2 : index
    %c0_60 = arith.constant 0 : index
    %57 = vector.load %arg2[%c0_58, %56, %c2_59, %c0_60] : memref<1x18x18x4xbf16, #tpu.memory_space<vmem>>, vector<1x8x16x4xbf16>
    %58 = vector.shape_cast %57 : vector<1x8x16x4xbf16> to vector<8x16x4xbf16>
    %59 = vector.shape_cast %58 : vector<8x16x4xbf16> to vector<128x4xbf16>
    %c1_61 = arith.constant 1 : index
    %c2_62 = arith.constant 2 : index
    %c0_63 = arith.constant 0 : index
    %c0_64 = arith.constant 0 : index
    %60 = vector.load %arg3[%c1_61, %c2_62, %c0_63, %c0_64] : memref<3x3x4x4xbf16, #tpu.memory_space<vmem>>, vector<1x1x4x4xbf16>
    %61 = vector.shape_cast %60 : vector<1x1x4x4xbf16> to vector<4x4xbf16>
    %cst_65 = arith.constant dense<0.000000e+00> : vector<128x4xf32>
    %62 = tpu.matmul %59, %61, %cst_65 {dimension_numbers = #tpu.dot_dimension_numbers<[1], [0], [0], [1], [0, 0, 1, 1], [], []>} : vector<128x4xbf16>, vector<4x4xbf16>, vector<128x4xf32> -> vector<128x4xf32>
    %c0_66 = arith.constant 0 : index
    %c0_67 = arith.constant 0 : index
    %63 = vector.load %arg6[%c0_66, %c0_67] : memref<128x4xf32, #tpu.memory_space<vmem>>, vector<128x4xf32>
    %64 = arith.addf %63, %62 : vector<128x4xf32>
    %c0_68 = arith.constant 0 : index
    %c0_69 = arith.constant 0 : index
    %65 = vector.load %arg6[%c0_68, %c0_69] : memref<128x4xf32, #tpu.memory_space<vmem>>, vector<128x4xf32>
    tpu.vector_store %arg6[%c0_68, %c0_69], %64 {strides = array<i32>} : memref<128x4xf32, #tpu.memory_space<vmem>>, vector<128x4xf32>,
    %c2_i32 = arith.constant 2 : i32
    %66 = arith.addi %1, %c2_i32 : i32
    %c0_70 = arith.constant 0 : index
    %67 = arith.index_cast %66 : i32 to index
    %c0_71 = arith.constant 0 : index
    %c0_72 = arith.constant 0 : index
    %68 = vector.load %arg2[%c0_70, %67, %c0_71, %c0_72] : memref<1x18x18x4xbf16, #tpu.memory_space<vmem>>, vector<1x8x16x4xbf16>
    %69 = vector.shape_cast %68 : vector<1x8x16x4xbf16> to vector<8x16x4xbf16>
    %70 = vector.shape_cast %69 : vector<8x16x4xbf16> to vector<128x4xbf16>
    %c2_73 = arith.constant 2 : index
    %c0_74 = arith.constant 0 : index
    %c0_75 = arith.constant 0 : index
    %c0_76 = arith.constant 0 : index
    %71 = vector.load %arg3[%c2_73, %c0_74, %c0_75, %c0_76] : memref<3x3x4x4xbf16, #tpu.memory_space<vmem>>, vector<1x1x4x4xbf16>
    %72 = vector.shape_cast %71 : vector<1x1x4x4xbf16> to vector<4x4xbf16>
    %cst_77 = arith.constant dense<0.000000e+00> : vector<128x4xf32>
    %73 = tpu.matmul %70, %72, %cst_77 {dimension_numbers = #tpu.dot_dimension_numbers<[1], [0], [0], [1], [0, 0, 1, 1], [], []>} : vector<128x4xbf16>, vector<4x4xbf16>, vector<128x4xf32> -> vector<128x4xf32>
    %c0_78 = arith.constant 0 : index
    %c0_79 = arith.constant 0 : index
    %74 = vector.load %arg6[%c0_78, %c0_79] : memref<128x4xf32, #tpu.memory_space<vmem>>, vector<128x4xf32>
    %75 = arith.addf %74, %73 : vector<128x4xf32>
    %c0_80 = arith.constant 0 : index
    %c0_81 = arith.constant 0 : index
    %76 = vector.load %arg6[%c0_80, %c0_81] : memref<128x4xf32, #tpu.memory_space<vmem>>, vector<128x4xf32>
    tpu.vector_store %arg6[%c0_80, %c0_81], %75 {strides = array<i32>} : memref<128x4xf32, #tpu.memory_space<vmem>>, vector<128x4xf32>,
    %c2_i32_82 = arith.constant 2 : i32
    %77 = arith.addi %1, %c2_i32_82 : i32
    %c0_83 = arith.constant 0 : index
    %78 = arith.index_cast %77 : i32 to index
    %c1_84 = arith.constant 1 : index
    %c0_85 = arith.constant 0 : index
    %79 = vector.load %arg2[%c0_83, %78, %c1_84, %c0_85] : memref<1x18x18x4xbf16, #tpu.memory_space<vmem>>, vector<1x8x16x4xbf16>
    %80 = vector.shape_cast %79 : vector<1x8x16x4xbf16> to vector<8x16x4xbf16>
    %81 = vector.shape_cast %80 : vector<8x16x4xbf16> to vector<128x4xbf16>
    %c2_86 = arith.constant 2 : index
    %c1_87 = arith.constant 1 : index
    %c0_88 = arith.constant 0 : index
    %c0_89 = arith.constant 0 : index
    %82 = vector.load %arg3[%c2_86, %c1_87, %c0_88, %c0_89] : memref<3x3x4x4xbf16, #tpu.memory_space<vmem>>, vector<1x1x4x4xbf16>
    %83 = vector.shape_cast %82 : vector<1x1x4x4xbf16> to vector<4x4xbf16>
    %cst_90 = arith.constant dense<0.000000e+00> : vector<128x4xf32>
    %84 = tpu.matmul %81, %83, %cst_90 {dimension_numbers = #tpu.dot_dimension_numbers<[1], [0], [0], [1], [0, 0, 1, 1], [], []>} : vector<128x4xbf16>, vector<4x4xbf16>, vector<128x4xf32> -> vector<128x4xf32>
    %c0_91 = arith.constant 0 : index
    %c0_92 = arith.constant 0 : index
    %85 = vector.load %arg6[%c0_91, %c0_92] : memref<128x4xf32, #tpu.memory_space<vmem>>, vector<128x4xf32>
    %86 = arith.addf %85, %84 : vector<128x4xf32>
    %c0_93 = arith.constant 0 : index
    %c0_94 = arith.constant 0 : index
    %87 = vector.load %arg6[%c0_93, %c0_94] : memref<128x4xf32, #tpu.memory_space<vmem>>, vector<128x4xf32>
    tpu.vector_store %arg6[%c0_93, %c0_94], %86 {strides = array<i32>} : memref<128x4xf32, #tpu.memory_space<vmem>>, vector<128x4xf32>,
    %c2_i32_95 = arith.constant 2 : i32
    %88 = arith.addi %1, %c2_i32_95 : i32
    %c0_96 = arith.constant 0 : index
    %89 = arith.index_cast %88 : i32 to index
    %c2_97 = arith.constant 2 : index
    %c0_98 = arith.constant 0 : index
    %90 = vector.load %arg2[%c0_96, %89, %c2_97, %c0_98] : memref<1x18x18x4xbf16, #tpu.memory_space<vmem>>, vector<1x8x16x4xbf16>
    %91 = vector.shape_cast %90 : vector<1x8x16x4xbf16> to vector<8x16x4xbf16>
    %92 = vector.shape_cast %91 : vector<8x16x4xbf16> to vector<128x4xbf16>
    %c2_99 = arith.constant 2 : index
    %c2_100 = arith.constant 2 : index
    %c0_101 = arith.constant 0 : index
    %c0_102 = arith.constant 0 : index
    %93 = vector.load %arg3[%c2_99, %c2_100, %c0_101, %c0_102] : memref<3x3x4x4xbf16, #tpu.memory_space<vmem>>, vector<1x1x4x4xbf16>
    %94 = vector.shape_cast %93 : vector<1x1x4x4xbf16> to vector<4x4xbf16>
    %cst_103 = arith.constant dense<0.000000e+00> : vector<128x4xf32>
    %95 = tpu.matmul %92, %94, %cst_103 {dimension_numbers = #tpu.dot_dimension_numbers<[1], [0], [0], [1], [0, 0, 1, 1], [], []>} : vector<128x4xbf16>, vector<4x4xbf16>, vector<128x4xf32> -> vector<128x4xf32>
    %c0_104 = arith.constant 0 : index
    %c0_105 = arith.constant 0 : index
    %96 = vector.load %arg6[%c0_104, %c0_105] : memref<128x4xf32, #tpu.memory_space<vmem>>, vector<128x4xf32>
    %97 = arith.addf %96, %95 : vector<128x4xf32>
    %c0_106 = arith.constant 0 : index
    %c0_107 = arith.constant 0 : index
    %98 = vector.load %arg6[%c0_106, %c0_107] : memref<128x4xf32, #tpu.memory_space<vmem>>, vector<128x4xf32>
    tpu.vector_store %arg6[%c0_106, %c0_107], %97 {strides = array<i32>} : memref<128x4xf32, #tpu.memory_space<vmem>>, vector<128x4xf32>,
    %c0_108 = arith.constant 0 : index
    %c0_109 = arith.constant 0 : index
    %99 = vector.load %arg6[%c0_108, %c0_109] : memref<128x4xf32, #tpu.memory_space<vmem>>, vector<128x4xf32>
    %c0_110 = arith.constant 0 : index
    %c0_111 = arith.constant 0 : index
    %100 = vector.load %arg4[%c0_110, %c0_111] : memref<1x4xf32, #tpu.memory_space<vmem>>, vector<1x4xf32>
    %101 = vector.broadcast %100 : vector<1x4xf32> to vector<128x4xf32>
    %102 = arith.addf %99, %101 : vector<128x4xf32>
    %103 = vector.shape_cast %102 : vector<128x4xf32> to vector<1x128x4xf32>
    %c0_112 = arith.constant 0 : index
    %c0_113 = arith.constant 0 : index
    %c0_114 = arith.constant 0 : index
    %104 = vector.load %arg5[%c0_112, %c0_113, %c0_114] : memref<1x128x4xf32, #tpu.memory_space<vmem>>, vector<1x128x4xf32>
    tpu.vector_store %arg5[%c0_112, %c0_113, %c0_114], %103 {strides = array<i32>} : memref<1x128x4xf32, #tpu.memory_space<vmem>>, vector<1x128x4xf32>,
    return
  }
  func.func @transform_0(%arg0: i32, %arg1: i32) -> (i32, i32, i32, i32) {
    %c0_i32 = arith.constant 0 : i32
    %c0_i32_0 = arith.constant 0 : i32
    %c0_i32_1 = arith.constant 0 : i32
    %c0_i32_2 = arith.constant 0 : i32
    return %arg0, %c0_i32, %c0_i32_0, %c0_i32_1 : i32, i32, i32, i32
  }
  func.func @transform_1(%arg0: i32, %arg1: i32) -> (i32, i32, i32, i32) {
    %c0_i32 = arith.constant 0 : i32
    %c0_i32_0 = arith.constant 0 : i32
    %c0_i32_1 = arith.constant 0 : i32
    %c0_i32_2 = arith.constant 0 : i32
    %c0_i32_3 = arith.constant 0 : i32
    return %c0_i32, %c0_i32_0, %c0_i32_1, %c0_i32_2 : i32, i32, i32, i32
  }
  func.func @transform_2(%arg0: i32, %arg1: i32) -> (i32, i32) {
    %c0_i32 = arith.constant 0 : i32
    %c0_i32_0 = arith.constant 0 : i32
    %c0_i32_1 = arith.constant 0 : i32
    return %c0_i32, %c0_i32_0 : i32, i32
  }
  func.func @transform_3(%arg0: i32, %arg1: i32) -> (i32, i32, i32) {
    %c0_i32 = arith.constant 0 : i32
    %c0_i32_0 = arith.constant 0 : i32
    return %arg0, %arg1, %c0_i32 : i32, i32, i32
  }
}

module attributes {stable_mosaic.version = 11 : i64} {
  func.func @kernel(%arg0: i32, %arg1: i32, %arg2: memref<1x18x18x4xbf16, #tpu.memory_space<vmem>>, %arg3: memref<3x3x4x8xbf16, #tpu.memory_space<vmem>>, %arg4: memref<1x8xf32, #tpu.memory_space<vmem>>, %arg5: memref<1x128x8xf32, #tpu.memory_space<vmem>>, %arg6: memref<1x128x8xf32, #tpu.memory_space<vmem>>, %arg7: memref<128x8xf32, #tpu.memory_space<vmem>>) attributes {dimension_semantics = [#tpu.dimension_semantics<parallel>, #tpu.dimension_semantics<parallel>], iteration_bounds = array<i64: 2, 2>, scalar_prefetch = 0 : i64, scratch_operands = 1 : i64, tpu.core_type = #tpu.core_type<tc>, window_params = [{transform_indices = @transform_0, window_bounds = array<i64: 1, 18, 18, 4>}, {pipeline_mode = #tpu.pipeline_mode<synchronous>, transform_indices = @transform_1, window_bounds = array<i64: 3, 3, 4, 8>}, {pipeline_mode = #tpu.pipeline_mode<synchronous>, transform_indices = @transform_2, window_bounds = array<i64: 1, 8>}, {transform_indices = @transform_3, window_bounds = array<i64: 1, 128, 8>}, {transform_indices = @transform_4, window_bounds = array<i64: 1, 128, 8>}]} {
    %c8_i32 = arith.constant 8 : i32
    %0 = arith.muli %arg1, %c8_i32 : i32
    %1 = tpu.assume_multiple %0, 8 : i32
    %c0_i32 = arith.constant 0 : i32
    %2 = arith.addi %1, %c0_i32 : i32
    %c0 = arith.constant 0 : index
    %3 = arith.index_cast %2 : i32 to index
    %c0_0 = arith.constant 0 : index
    %c0_1 = arith.constant 0 : index
    %4 = vector.load %arg2[%c0, %3, %c0_0, %c0_1] : memref<1x18x18x4xbf16, #tpu.memory_space<vmem>>, vector<1x8x16x4xbf16>
    %5 = vector.shape_cast %4 : vector<1x8x16x4xbf16> to vector<8x16x4xbf16>
    %6 = vector.shape_cast %5 : vector<8x16x4xbf16> to vector<128x4xbf16>
    %c0_2 = arith.constant 0 : index
    %c0_3 = arith.constant 0 : index
    %c0_4 = arith.constant 0 : index
    %c0_5 = arith.constant 0 : index
    %7 = vector.load %arg3[%c0_2, %c0_3, %c0_4, %c0_5] : memref<3x3x4x8xbf16, #tpu.memory_space<vmem>>, vector<1x1x4x8xbf16>
    %8 = vector.shape_cast %7 : vector<1x1x4x8xbf16> to vector<4x8xbf16>
    %cst = arith.constant dense<0.000000e+00> : vector<128x8xf32>
    %9 = tpu.matmul %6, %8, %cst {dimension_numbers = #tpu.dot_dimension_numbers<[1], [0], [0], [1], [0, 0, 1, 1], [], []>} : vector<128x4xbf16>, vector<4x8xbf16>, vector<128x8xf32> -> vector<128x8xf32>
    %c0_6 = arith.constant 0 : index
    %c0_7 = arith.constant 0 : index
    %10 = vector.load %arg7[%c0_6, %c0_7] : memref<128x8xf32, #tpu.memory_space<vmem>>, vector<128x8xf32>
    tpu.vector_store %arg7[%c0_6, %c0_7], %9 {strides = array<i32>} : memref<128x8xf32, #tpu.memory_space<vmem>>, vector<128x8xf32>,
    %c0_i32_8 = arith.constant 0 : i32
    %11 = arith.addi %1, %c0_i32_8 : i32
    %c0_9 = arith.constant 0 : index
    %12 = arith.index_cast %11 : i32 to index
    %c1 = arith.constant 1 : index
    %c0_10 = arith.constant 0 : index
    %13 = vector.load %arg2[%c0_9, %12, %c1, %c0_10] : memref<1x18x18x4xbf16, #tpu.memory_space<vmem>>, vector<1x8x16x4xbf16>
    %14 = vector.shape_cast %13 : vector<1x8x16x4xbf16> to vector<8x16x4xbf16>
    %15 = vector.shape_cast %14 : vector<8x16x4xbf16> to vector<128x4xbf16>
    %c0_11 = arith.constant 0 : index
    %c1_12 = arith.constant 1 : index
    %c0_13 = arith.constant 0 : index
    %c0_14 = arith.constant 0 : index
    %16 = vector.load %arg3[%c0_11, %c1_12, %c0_13, %c0_14] : memref<3x3x4x8xbf16, #tpu.memory_space<vmem>>, vector<1x1x4x8xbf16>
    %17 = vector.shape_cast %16 : vector<1x1x4x8xbf16> to vector<4x8xbf16>
    %cst_15 = arith.constant dense<0.000000e+00> : vector<128x8xf32>
    %18 = tpu.matmul %15, %17, %cst_15 {dimension_numbers = #tpu.dot_dimension_numbers<[1], [0], [0], [1], [0, 0, 1, 1], [], []>} : vector<128x4xbf16>, vector<4x8xbf16>, vector<128x8xf32> -> vector<128x8xf32>
    %c0_16 = arith.constant 0 : index
    %c0_17 = arith.constant 0 : index
    %19 = vector.load %arg7[%c0_16, %c0_17] : memref<128x8xf32, #tpu.memory_space<vmem>>, vector<128x8xf32>
    %20 = arith.addf %19, %18 : vector<128x8xf32>
    %c0_18 = arith.constant 0 : index
    %c0_19 = arith.constant 0 : index
    %21 = vector.load %arg7[%c0_18, %c0_19] : memref<128x8xf32, #tpu.memory_space<vmem>>, vector<128x8xf32>
    tpu.vector_store %arg7[%c0_18, %c0_19], %20 {strides = array<i32>} : memref<128x8xf32, #tpu.memory_space<vmem>>, vector<128x8xf32>,
    %c0_i32_20 = arith.constant 0 : i32
    %22 = arith.addi %1, %c0_i32_20 : i32
    %c0_21 = arith.constant 0 : index
    %23 = arith.index_cast %22 : i32 to index
    %c2 = arith.constant 2 : index
    %c0_22 = arith.constant 0 : index
    %24 = vector.load %arg2[%c0_21, %23, %c2, %c0_22] : memref<1x18x18x4xbf16, #tpu.memory_space<vmem>>, vector<1x8x16x4xbf16>
    %25 = vector.shape_cast %24 : vector<1x8x16x4xbf16> to vector<8x16x4xbf16>
    %26 = vector.shape_cast %25 : vector<8x16x4xbf16> to vector<128x4xbf16>
    %c0_23 = arith.constant 0 : index
    %c2_24 = arith.constant 2 : index
    %c0_25 = arith.constant 0 : index
    %c0_26 = arith.constant 0 : index
    %27 = vector.load %arg3[%c0_23, %c2_24, %c0_25, %c0_26] : memref<3x3x4x8xbf16, #tpu.memory_space<vmem>>, vector<1x1x4x8xbf16>
    %28 = vector.shape_cast %27 : vector<1x1x4x8xbf16> to vector<4x8xbf16>
    %cst_27 = arith.constant dense<0.000000e+00> : vector<128x8xf32>
    %29 = tpu.matmul %26, %28, %cst_27 {dimension_numbers = #tpu.dot_dimension_numbers<[1], [0], [0], [1], [0, 0, 1, 1], [], []>} : vector<128x4xbf16>, vector<4x8xbf16>, vector<128x8xf32> -> vector<128x8xf32>
    %c0_28 = arith.constant 0 : index
    %c0_29 = arith.constant 0 : index
    %30 = vector.load %arg7[%c0_28, %c0_29] : memref<128x8xf32, #tpu.memory_space<vmem>>, vector<128x8xf32>
    %31 = arith.addf %30, %29 : vector<128x8xf32>
    %c0_30 = arith.constant 0 : index
    %c0_31 = arith.constant 0 : index
    %32 = vector.load %arg7[%c0_30, %c0_31] : memref<128x8xf32, #tpu.memory_space<vmem>>, vector<128x8xf32>
    tpu.vector_store %arg7[%c0_30, %c0_31], %31 {strides = array<i32>} : memref<128x8xf32, #tpu.memory_space<vmem>>, vector<128x8xf32>,
    %c1_i32 = arith.constant 1 : i32
    %33 = arith.addi %1, %c1_i32 : i32
    %c0_32 = arith.constant 0 : index
    %34 = arith.index_cast %33 : i32 to index
    %c0_33 = arith.constant 0 : index
    %c0_34 = arith.constant 0 : index
    %35 = vector.load %arg2[%c0_32, %34, %c0_33, %c0_34] : memref<1x18x18x4xbf16, #tpu.memory_space<vmem>>, vector<1x8x16x4xbf16>
    %36 = vector.shape_cast %35 : vector<1x8x16x4xbf16> to vector<8x16x4xbf16>
    %37 = vector.shape_cast %36 : vector<8x16x4xbf16> to vector<128x4xbf16>
    %c1_35 = arith.constant 1 : index
    %c0_36 = arith.constant 0 : index
    %c0_37 = arith.constant 0 : index
    %c0_38 = arith.constant 0 : index
    %38 = vector.load %arg3[%c1_35, %c0_36, %c0_37, %c0_38] : memref<3x3x4x8xbf16, #tpu.memory_space<vmem>>, vector<1x1x4x8xbf16>
    %39 = vector.shape_cast %38 : vector<1x1x4x8xbf16> to vector<4x8xbf16>
    %cst_39 = arith.constant dense<0.000000e+00> : vector<128x8xf32>
    %40 = tpu.matmul %37, %39, %cst_39 {dimension_numbers = #tpu.dot_dimension_numbers<[1], [0], [0], [1], [0, 0, 1, 1], [], []>} : vector<128x4xbf16>, vector<4x8xbf16>, vector<128x8xf32> -> vector<128x8xf32>
    %c0_40 = arith.constant 0 : index
    %c0_41 = arith.constant 0 : index
    %41 = vector.load %arg7[%c0_40, %c0_41] : memref<128x8xf32, #tpu.memory_space<vmem>>, vector<128x8xf32>
    %42 = arith.addf %41, %40 : vector<128x8xf32>
    %c0_42 = arith.constant 0 : index
    %c0_43 = arith.constant 0 : index
    %43 = vector.load %arg7[%c0_42, %c0_43] : memref<128x8xf32, #tpu.memory_space<vmem>>, vector<128x8xf32>
    tpu.vector_store %arg7[%c0_42, %c0_43], %42 {strides = array<i32>} : memref<128x8xf32, #tpu.memory_space<vmem>>, vector<128x8xf32>,
    %c1_i32_44 = arith.constant 1 : i32
    %44 = arith.addi %1, %c1_i32_44 : i32
    %c0_45 = arith.constant 0 : index
    %45 = arith.index_cast %44 : i32 to index
    %c1_46 = arith.constant 1 : index
    %c0_47 = arith.constant 0 : index
    %46 = vector.load %arg2[%c0_45, %45, %c1_46, %c0_47] : memref<1x18x18x4xbf16, #tpu.memory_space<vmem>>, vector<1x8x16x4xbf16>
    %47 = vector.shape_cast %46 : vector<1x8x16x4xbf16> to vector<8x16x4xbf16>
    %48 = vector.shape_cast %47 : vector<8x16x4xbf16> to vector<128x4xbf16>
    %c1_48 = arith.constant 1 : index
    %c1_49 = arith.constant 1 : index
    %c0_50 = arith.constant 0 : index
    %c0_51 = arith.constant 0 : index
    %49 = vector.load %arg3[%c1_48, %c1_49, %c0_50, %c0_51] : memref<3x3x4x8xbf16, #tpu.memory_space<vmem>>, vector<1x1x4x8xbf16>
    %50 = vector.shape_cast %49 : vector<1x1x4x8xbf16> to vector<4x8xbf16>
    %cst_52 = arith.constant dense<0.000000e+00> : vector<128x8xf32>
    %51 = tpu.matmul %48, %50, %cst_52 {dimension_numbers = #tpu.dot_dimension_numbers<[1], [0], [0], [1], [0, 0, 1, 1], [], []>} : vector<128x4xbf16>, vector<4x8xbf16>, vector<128x8xf32> -> vector<128x8xf32>
    %c0_53 = arith.constant 0 : index
    %c0_54 = arith.constant 0 : index
    %52 = vector.load %arg7[%c0_53, %c0_54] : memref<128x8xf32, #tpu.memory_space<vmem>>, vector<128x8xf32>
    %53 = arith.addf %52, %51 : vector<128x8xf32>
    %c0_55 = arith.constant 0 : index
    %c0_56 = arith.constant 0 : index
    %54 = vector.load %arg7[%c0_55, %c0_56] : memref<128x8xf32, #tpu.memory_space<vmem>>, vector<128x8xf32>
    tpu.vector_store %arg7[%c0_55, %c0_56], %53 {strides = array<i32>} : memref<128x8xf32, #tpu.memory_space<vmem>>, vector<128x8xf32>,
    %c1_i32_57 = arith.constant 1 : i32
    %55 = arith.addi %1, %c1_i32_57 : i32
    %c0_58 = arith.constant 0 : index
    %56 = arith.index_cast %55 : i32 to index
    %c2_59 = arith.constant 2 : index
    %c0_60 = arith.constant 0 : index
    %57 = vector.load %arg2[%c0_58, %56, %c2_59, %c0_60] : memref<1x18x18x4xbf16, #tpu.memory_space<vmem>>, vector<1x8x16x4xbf16>
    %58 = vector.shape_cast %57 : vector<1x8x16x4xbf16> to vector<8x16x4xbf16>
    %59 = vector.shape_cast %58 : vector<8x16x4xbf16> to vector<128x4xbf16>
    %c1_61 = arith.constant 1 : index
    %c2_62 = arith.constant 2 : index
    %c0_63 = arith.constant 0 : index
    %c0_64 = arith.constant 0 : index
    %60 = vector.load %arg3[%c1_61, %c2_62, %c0_63, %c0_64] : memref<3x3x4x8xbf16, #tpu.memory_space<vmem>>, vector<1x1x4x8xbf16>
    %61 = vector.shape_cast %60 : vector<1x1x4x8xbf16> to vector<4x8xbf16>
    %cst_65 = arith.constant dense<0.000000e+00> : vector<128x8xf32>
    %62 = tpu.matmul %59, %61, %cst_65 {dimension_numbers = #tpu.dot_dimension_numbers<[1], [0], [0], [1], [0, 0, 1, 1], [], []>} : vector<128x4xbf16>, vector<4x8xbf16>, vector<128x8xf32> -> vector<128x8xf32>
    %c0_66 = arith.constant 0 : index
    %c0_67 = arith.constant 0 : index
    %63 = vector.load %arg7[%c0_66, %c0_67] : memref<128x8xf32, #tpu.memory_space<vmem>>, vector<128x8xf32>
    %64 = arith.addf %63, %62 : vector<128x8xf32>
    %c0_68 = arith.constant 0 : index
    %c0_69 = arith.constant 0 : index
    %65 = vector.load %arg7[%c0_68, %c0_69] : memref<128x8xf32, #tpu.memory_space<vmem>>, vector<128x8xf32>
    tpu.vector_store %arg7[%c0_68, %c0_69], %64 {strides = array<i32>} : memref<128x8xf32, #tpu.memory_space<vmem>>, vector<128x8xf32>,
    %c2_i32 = arith.constant 2 : i32
    %66 = arith.addi %1, %c2_i32 : i32
    %c0_70 = arith.constant 0 : index
    %67 = arith.index_cast %66 : i32 to index
    %c0_71 = arith.constant 0 : index
    %c0_72 = arith.constant 0 : index
    %68 = vector.load %arg2[%c0_70, %67, %c0_71, %c0_72] : memref<1x18x18x4xbf16, #tpu.memory_space<vmem>>, vector<1x8x16x4xbf16>
    %69 = vector.shape_cast %68 : vector<1x8x16x4xbf16> to vector<8x16x4xbf16>
    %70 = vector.shape_cast %69 : vector<8x16x4xbf16> to vector<128x4xbf16>
    %c2_73 = arith.constant 2 : index
    %c0_74 = arith.constant 0 : index
    %c0_75 = arith.constant 0 : index
    %c0_76 = arith.constant 0 : index
    %71 = vector.load %arg3[%c2_73, %c0_74, %c0_75, %c0_76] : memref<3x3x4x8xbf16, #tpu.memory_space<vmem>>, vector<1x1x4x8xbf16>
    %72 = vector.shape_cast %71 : vector<1x1x4x8xbf16> to vector<4x8xbf16>
    %cst_77 = arith.constant dense<0.000000e+00> : vector<128x8xf32>
    %73 = tpu.matmul %70, %72, %cst_77 {dimension_numbers = #tpu.dot_dimension_numbers<[1], [0], [0], [1], [0, 0, 1, 1], [], []>} : vector<128x4xbf16>, vector<4x8xbf16>, vector<128x8xf32> -> vector<128x8xf32>
    %c0_78 = arith.constant 0 : index
    %c0_79 = arith.constant 0 : index
    %74 = vector.load %arg7[%c0_78, %c0_79] : memref<128x8xf32, #tpu.memory_space<vmem>>, vector<128x8xf32>
    %75 = arith.addf %74, %73 : vector<128x8xf32>
    %c0_80 = arith.constant 0 : index
    %c0_81 = arith.constant 0 : index
    %76 = vector.load %arg7[%c0_80, %c0_81] : memref<128x8xf32, #tpu.memory_space<vmem>>, vector<128x8xf32>
    tpu.vector_store %arg7[%c0_80, %c0_81], %75 {strides = array<i32>} : memref<128x8xf32, #tpu.memory_space<vmem>>, vector<128x8xf32>,
    %c2_i32_82 = arith.constant 2 : i32
    %77 = arith.addi %1, %c2_i32_82 : i32
    %c0_83 = arith.constant 0 : index
    %78 = arith.index_cast %77 : i32 to index
    %c1_84 = arith.constant 1 : index
    %c0_85 = arith.constant 0 : index
    %79 = vector.load %arg2[%c0_83, %78, %c1_84, %c0_85] : memref<1x18x18x4xbf16, #tpu.memory_space<vmem>>, vector<1x8x16x4xbf16>
    %80 = vector.shape_cast %79 : vector<1x8x16x4xbf16> to vector<8x16x4xbf16>
    %81 = vector.shape_cast %80 : vector<8x16x4xbf16> to vector<128x4xbf16>
    %c2_86 = arith.constant 2 : index
    %c1_87 = arith.constant 1 : index
    %c0_88 = arith.constant 0 : index
    %c0_89 = arith.constant 0 : index
    %82 = vector.load %arg3[%c2_86, %c1_87, %c0_88, %c0_89] : memref<3x3x4x8xbf16, #tpu.memory_space<vmem>>, vector<1x1x4x8xbf16>
    %83 = vector.shape_cast %82 : vector<1x1x4x8xbf16> to vector<4x8xbf16>
    %cst_90 = arith.constant dense<0.000000e+00> : vector<128x8xf32>
    %84 = tpu.matmul %81, %83, %cst_90 {dimension_numbers = #tpu.dot_dimension_numbers<[1], [0], [0], [1], [0, 0, 1, 1], [], []>} : vector<128x4xbf16>, vector<4x8xbf16>, vector<128x8xf32> -> vector<128x8xf32>
    %c0_91 = arith.constant 0 : index
    %c0_92 = arith.constant 0 : index
    %85 = vector.load %arg7[%c0_91, %c0_92] : memref<128x8xf32, #tpu.memory_space<vmem>>, vector<128x8xf32>
    %86 = arith.addf %85, %84 : vector<128x8xf32>
    %c0_93 = arith.constant 0 : index
    %c0_94 = arith.constant 0 : index
    %87 = vector.load %arg7[%c0_93, %c0_94] : memref<128x8xf32, #tpu.memory_space<vmem>>, vector<128x8xf32>
    tpu.vector_store %arg7[%c0_93, %c0_94], %86 {strides = array<i32>} : memref<128x8xf32, #tpu.memory_space<vmem>>, vector<128x8xf32>,
    %c2_i32_95 = arith.constant 2 : i32
    %88 = arith.addi %1, %c2_i32_95 : i32
    %c0_96 = arith.constant 0 : index
    %89 = arith.index_cast %88 : i32 to index
    %c2_97 = arith.constant 2 : index
    %c0_98 = arith.constant 0 : index
    %90 = vector.load %arg2[%c0_96, %89, %c2_97, %c0_98] : memref<1x18x18x4xbf16, #tpu.memory_space<vmem>>, vector<1x8x16x4xbf16>
    %91 = vector.shape_cast %90 : vector<1x8x16x4xbf16> to vector<8x16x4xbf16>
    %92 = vector.shape_cast %91 : vector<8x16x4xbf16> to vector<128x4xbf16>
    %c2_99 = arith.constant 2 : index
    %c2_100 = arith.constant 2 : index
    %c0_101 = arith.constant 0 : index
    %c0_102 = arith.constant 0 : index
    %93 = vector.load %arg3[%c2_99, %c2_100, %c0_101, %c0_102] : memref<3x3x4x8xbf16, #tpu.memory_space<vmem>>, vector<1x1x4x8xbf16>
    %94 = vector.shape_cast %93 : vector<1x1x4x8xbf16> to vector<4x8xbf16>
    %cst_103 = arith.constant dense<0.000000e+00> : vector<128x8xf32>
    %95 = tpu.matmul %92, %94, %cst_103 {dimension_numbers = #tpu.dot_dimension_numbers<[1], [0], [0], [1], [0, 0, 1, 1], [], []>} : vector<128x4xbf16>, vector<4x8xbf16>, vector<128x8xf32> -> vector<128x8xf32>
    %c0_104 = arith.constant 0 : index
    %c0_105 = arith.constant 0 : index
    %96 = vector.load %arg7[%c0_104, %c0_105] : memref<128x8xf32, #tpu.memory_space<vmem>>, vector<128x8xf32>
    %97 = arith.addf %96, %95 : vector<128x8xf32>
    %c0_106 = arith.constant 0 : index
    %c0_107 = arith.constant 0 : index
    %98 = vector.load %arg7[%c0_106, %c0_107] : memref<128x8xf32, #tpu.memory_space<vmem>>, vector<128x8xf32>
    tpu.vector_store %arg7[%c0_106, %c0_107], %97 {strides = array<i32>} : memref<128x8xf32, #tpu.memory_space<vmem>>, vector<128x8xf32>,
    %c0_108 = arith.constant 0 : index
    %c0_109 = arith.constant 0 : index
    %99 = vector.load %arg7[%c0_108, %c0_109] : memref<128x8xf32, #tpu.memory_space<vmem>>, vector<128x8xf32>
    %c0_110 = arith.constant 0 : index
    %c0_111 = arith.constant 0 : index
    %100 = vector.load %arg4[%c0_110, %c0_111] : memref<1x8xf32, #tpu.memory_space<vmem>>, vector<1x8xf32>
    %101 = vector.broadcast %100 : vector<1x8xf32> to vector<128x8xf32>
    %102 = arith.addf %99, %101 : vector<128x8xf32>
    %c0_112 = arith.constant 0 : index
    %c0_113 = arith.constant 0 : index
    %c0_114 = arith.constant 0 : index
    %103 = vector.load %arg5[%c0_112, %c0_113, %c0_114] : memref<1x128x8xf32, #tpu.memory_space<vmem>>, vector<1x128x8xf32>
    %104 = vector.shape_cast %103 : vector<1x128x8xf32> to vector<128x8xf32>
    %105 = arith.addf %102, %104 : vector<128x8xf32>
    %106 = vector.shape_cast %105 : vector<128x8xf32> to vector<1x128x8xf32>
    %c0_115 = arith.constant 0 : index
    %c0_116 = arith.constant 0 : index
    %c0_117 = arith.constant 0 : index
    %107 = vector.load %arg6[%c0_115, %c0_116, %c0_117] : memref<1x128x8xf32, #tpu.memory_space<vmem>>, vector<1x128x8xf32>
    tpu.vector_store %arg6[%c0_115, %c0_116, %c0_117], %106 {strides = array<i32>} : memref<1x128x8xf32, #tpu.memory_space<vmem>>, vector<1x128x8xf32>,
    return
  }
  func.func @transform_0(%arg0: i32, %arg1: i32) -> (i32, i32, i32, i32) {
    %c0_i32 = arith.constant 0 : i32
    %c0_i32_0 = arith.constant 0 : i32
    %c0_i32_1 = arith.constant 0 : i32
    %c0_i32_2 = arith.constant 0 : i32
    return %arg0, %c0_i32, %c0_i32_0, %c0_i32_1 : i32, i32, i32, i32
  }
  func.func @transform_1(%arg0: i32, %arg1: i32) -> (i32, i32, i32, i32) {
    %c0_i32 = arith.constant 0 : i32
    %c0_i32_0 = arith.constant 0 : i32
    %c0_i32_1 = arith.constant 0 : i32
    %c0_i32_2 = arith.constant 0 : i32
    %c0_i32_3 = arith.constant 0 : i32
    return %c0_i32, %c0_i32_0, %c0_i32_1, %c0_i32_2 : i32, i32, i32, i32
  }
  func.func @transform_2(%arg0: i32, %arg1: i32) -> (i32, i32) {
    %c0_i32 = arith.constant 0 : i32
    %c0_i32_0 = arith.constant 0 : i32
    %c0_i32_1 = arith.constant 0 : i32
    return %c0_i32, %c0_i32_0 : i32, i32
  }
  func.func @transform_3(%arg0: i32, %arg1: i32) -> (i32, i32, i32) {
    %c0_i32 = arith.constant 0 : i32
    %c0_i32_0 = arith.constant 0 : i32
    return %arg0, %arg1, %c0_i32 : i32, i32, i32
  }
  func.func @transform_4(%arg0: i32, %arg1: i32) -> (i32, i32, i32) {
    %c0_i32 = arith.constant 0 : i32
    %c0_i32_0 = arith.constant 0 : i32
    return %arg0, %arg1, %c0_i32 : i32, i32, i32
  }
}

</mosaic_0001>

<bundles_post_ra>
// kernel: spade_resnet_block_forward.11
= control target key start
LH: loop header
LB: loop body
LE: loop exit
PB: predicated region body
PF: predicated region fallthrough
CT: control target
= control target key end

     0   :  { %s464_s9 = smov 0   ;;  %s466_s10 = smov 0   ;;  %s568_s0 = inlined_call_operand.vmem [shape: f32[2,256,4], index: 0, kind: input, shape index: {}]   ;;  %s569_s1 = inlined_call_operand.vmem [shape: f32[2,1,4], index: 1, kind: output, shape index: {0}]   ;;  %s570_s2 = inlined_call_operand.vmem [shape: f32[2,1,4], index: 2, kind: output, shape index: {1}]  }
   0x1   :  { %s468_s11 = smov 0   ;;  %s470_s12 = smov 0  }
   0x2   :  { %s472_s13 = smov 0  }
   0x3 LB: > { %s22_s14 = sadd.s32 1, %s438_s11  ;;  %s25_s15 = sadd.s32 1, %s442_s12  ;;  %s446_s13 = sphi %s472_s13, %s13_s13   ;;  %s442_s12 = sphi %s470_s12, %s574_s12   ;;  %s438_s11 = sphi %s468_s11, %s573_s11   ;;  %s434_s10 = sphi %s466_s10, %s572_s10   ;;  %s430_s9 = sphi %s464_s9, %s571_s9  }
   0x4   : > { %p23_p0 = scmp.ge.s32.totalorder %s22_s14, 4  ;;  %p357_p1 = scmp.ge.s32.totalorder %s446_s13, 1 }
   0x5   : > { %p134_p2 = scmp.lt.s32.totalorder %s446_s13, 9 }
   0x6   : > { %s576_s14 = smov (%p23_p0, %s22_s14), 0  ;;  %s578_s15 = smov (!%p23_p0, %s25_s15), %s442_s12 }
   0x7   : > { %p135_p3 = pnand %p357_p1, %p134_p2  ;;  %p27_p4 = scmp.ge.s32.totalorder %s578_s15, 2 }
   0x8   : > { %s358_s16 = sshll.u32 (!%p135_p3), %s430_s9, 3  ;;  %p162_p5 = scmp.lt.s32.totalorder (!%p135_p3), %s434_s10, 1 }
   0x9   : > { %s580_s15 = smov (%p27_p4, %s578_s15), 0  ;;  %138 = sbr.rel (%p135_p3) target bundleno = 86 (0x56), region = 24 }
   0xa   : > { %p164_p6 = scmp.lt.s32.totalorder (!%p135_p3), %s358_s16, 31  ;;  %p361_p7 = scmp.ne.s32.totalorder (!%p135_p3), %s430_s9, 0 }
   0xe   : > { %s582_s10 = smov (!%p162_p5, %s434_s10), 1  ;;  %s584_s16 = smov (!%p164_p6, %s358_s16), 31 }
   0xf   : > { %s359_s17 = sshll.u32 %s582_s10, 5  ;;  %s173_s20 = scalar_lea.vmem %s569_s1, %s582_s10 }
  0x10   : > { %s167_s21 = sadd.s32 %s359_s17, %s584_s16  ;;  %s176_s24 = scalar_lea.vmem %s570_s2, %s582_s10 }
  0x11   : > { %s360_s25 = sshll.u32 %s167_s21, 3  ;;  %180 = sbr.rel (%p361_p7) target bundleno = 24 (0x18), region = 28 }
  0x12   : > { %s511_s28 = scalar_lea.vmem %s568_s0, %s360_s25 }
  0x16   : > { %vm181_vm0 = vcmask 24576   ;;  %v448_v0 = vmov 0.0  }
  0x17   : > { %182 = vst.msk [vmem:[#allocation2] sm:$0x1] %vm181_vm0, %v448_v0  ;;  %183 = vst.msk [vmem:[#allocation3] sm:$0x1] %vm181_vm0, %v448_v0 }
  0x18 PF: > { %v184_v1 = vld [vmem:[%s511_s28] sm:$0xff]  ;;  %v185_v2 = vld [vmem:[%s511_s28 + $0x8] sm:$0xff]  ;;  %v186_v3 = vld [vmem:[%s511_s28 + $0x10] sm:$0xff]  ;;  %vm193_vm1 = vcmask 31744   ;;  %vm216_vm2 = vcmask 24576   ;;  %p362_p8 = scmp.ne.s32.totalorder %s430_s9, 3 }
  0x19   : > { %v187_v4 = vld [vmem:[%s511_s28 + $0x18] sm:$0xff]  ;;  %v194_v5 = vsel %vm193_vm1, %v184_v1, 0.0  ;;  %v195_v6 = vsel %vm193_vm1, %v185_v2, 0.0  ;;  %v197_v7 = vsel %vm193_vm1, %v186_v3, 0.0  ;;  %v219_v8 = vmul.f32 %v184_v1, %v184_v1  ;;  %v188_v9 = vld [vmem:[%s511_s28 + $0x20] sm:$0xff]  ;;  %v189_v14 = vld [vmem:[%s511_s28 + $0x28] sm:$0xff] }
  0x1a   : > { %v196_v10 = vadd.f32 %v195_v6, %v194_v5  ;;  %v220_v11 = vmul.f32 %v185_v2, %v185_v2  ;;  %v199_v12 = vsel %vm193_vm1, %v187_v4, 0.0  ;;  %v221_v13 = vmul.f32 %v186_v3, %v186_v3  ;;  %v190_v21 = vld [vmem:[%s511_s28 + $0x30] sm:$0xff]  ;;  %v191_v28 = vld [vmem:[%s511_s28 + $0x38] sm:$0xff] }
  0x1b   : > { %v222_v16 = vmul.f32 %v187_v4, %v187_v4  ;;  %v201_v17 = vsel %vm193_vm1, %v188_v9, 0.0  ;;  %v223_v18 = vmul.f32 %v188_v9, %v188_v9  ;;  %v227_v19 = vsel %vm193_vm1, %v219_v8, 0.0 }
  0x1c   : > { %v198_v15 = vadd.f32 %v197_v7, %v196_v10  ;;  %v228_v20 = vsel %vm193_vm1, %v220_v11, 0.0  ;;  %v230_v24 = vsel %vm193_vm1, %v221_v13, 0.0  ;;  %v203_v25 = vsel %vm193_vm1, %v189_v14, 0.0 }
  0x1d   : > { %v229_v23 = vadd.f32 %v228_v20, %v227_v19  ;;  %v224_v26 = vmul.f32 %v189_v14, %v189_v14  ;;  %v232_v27 = vsel %vm193_vm1, %v222_v16, 0.0  ;;  %v205_v31 = vsel %vm193_vm1, %v190_v21, 0.0 }
  0x1e   : > { %v200_v22 = vadd.f32 %v199_v12, %v198_v15  ;;  %v225_v32 = vmul.f32 %v190_v21, %v190_v21  ;;  %v234_v33 = vsel %vm193_vm1, %v223_v18, 0.0  ;;  %v207_v36 = vsel %vm193_vm1, %v191_v28, 0.0  ;;  %v192_v55 = vld [vmem:[#allocation2] sm:$0x1]  ;;  %v218_v60 = vld [vmem:[#allocation3] sm:$0x1] }
  0x1f   : > { %v231_v30 = vadd.f32 %v230_v24, %v229_v23  ;;  %v226_v37 = vmul.f32 %v191_v28, %v191_v28  ;;  %v236_v38 = vsel %vm193_vm1, %v224_v26, 0.0 }
  0x20   : > { %v202_v29 = vadd.f32 %v201_v17, %v200_v22  ;;  %v238_v41 = vsel %vm193_vm1, %v225_v32, 0.0 }
  0x21   : > { %v233_v35 = vadd.f32 %v232_v27, %v231_v30  ;;  %v240_v44 = vsel %vm193_vm1, %v226_v37, 0.0 }
  0x22   : > { %v204_v34 = vadd.f32 %v203_v25, %v202_v29 }
  0x23   : > { %v235_v40 = vadd.f32 %v234_v33, %v233_v35 }
  0x24   : > { %v206_v39 = vadd.f32 %v205_v31, %v204_v34 }
  0x25   : > { %v237_v43 = vadd.f32 %v236_v38, %v235_v40 }
  0x26   : > { %v208_v42 = vadd.f32 %v207_v36, %v206_v39 }
  0x27   : > { %v239_v46 = vadd.f32 %v238_v41, %v237_v43 }
  0x28   : > { %v209_v45 = vrot.slane %v208_v42, 4 }
  0x29   : > { %v241_v48 = vadd.f32 %v240_v44, %v239_v46 }
  0x2a   : > { %v210_v47 = vadd.f32 %v209_v45, %v208_v42 }
  0x2b   : > { %v242_v50 = vrot.slane %v241_v48, 4 }
  0x2c   : > { %v211_v49 = vrot.slane %v210_v47, 2 }
  0x2d   : > { %v243_v52 = vadd.f32 %v242_v50, %v241_v48 }
  0x2e   : > { %v212_v51 = vadd.f32 %v211_v49, %v210_v47 }
  0x2f   : > { %v244_v54 = vrot.slane %v243_v52, 2 }
  0x30   : > { %v213_v53 = vrot.slane %v212_v51, 1 }
  0x31   : > { %v245_v57 = vadd.f32 %v244_v54, %v243_v52 }
  0x32   : > { %v214_v56 = vadd.f32 %v213_v53, %v212_v51 }
  0x33   : > { %v246_v59 = vrot.slane %v245_v57, 1 }
  0x34   : > { %v215_v58 = vadd.f32 %v214_v56, %v192_v55 }
  0x35   : > { %v247_v61 = vadd.f32 %v246_v59, %v245_v57  ;;  %253 = sbr.rel (%p362_p8) target bundleno = 86 (0x56), region = 32 }
  0x36   : > { %217 = vst.msk [vmem:[#allocation2] sm:$0x1] %vm216_vm2, %v215_v58 }
  0x37   : > { %v248_v62 = vadd.f32 %v247_v61, %v218_v60 }
  0x39   : > { %249 = vst.msk [vmem:[#allocation3] sm:$0x1] %vm216_vm2, %v248_v62 }
  0x3d   : > { %v254_v63 = vld [vmem:[#allocation2] sm:$0x1] }
  0x3e   : > { %v255_v1 = vmul.f32 0.00390625, %v254_v63 }
  0x40   : > { %v256_v0 = vld [vmem:[#allocation3] sm:$0x1]  ;;  %v258_v3 = vmul.f32 %v255_v1, %v255_v1  ;;  %260 = vst.msk [vmem:[%s173_s20] sm:$0x1] %vm216_vm2, %v255_v1 }
  0x41   : > { %v257_v2 = vmul.f32 0.00390625, %v256_v0 }
  0x43   : > { %v259_v4 = vsub.f32 %v257_v2, %v258_v3 }
  0x45   : > { %v261_v5 = vadd.f32 1e-05, %v259_v4 }
  0x47   : > { %406 = vrsqrt.f32 %v261_v5 }
  0x54   : > { %v407_v6 = vpop.eup %406 }
  0x55   : > { %263 = vst.msk [vmem:[%s176_s24] sm:$0x1] %vm216_vm2, %v407_v6 }
  0x56 PF: > { %s13_s13 = sadd.s32 1, %s446_s13   ;;  %s571_s9 = smov %s438_s11 }
  0x57   : > { %p10_p9 = scmp.ge.s32.totalorder %s13_s13, 10   ;;  %s572_s10 = smov %s442_s12 }
  0x58   : > { %s573_s11 = smov %s576_s14  ;;  %s574_s12 = smov %s580_s15 }
  0x59   :  { %12 = sbr.rel (!%p10_p9) target bundleno = 3 (0x3), region = 74 }

// kernel: spade_resnet_block_forward.15
= control target key start
LH: loop header
LB: loop body
LE: loop exit
PB: predicated region body
PF: predicated region fallthrough
CT: control target
= control target key end

     0   :  { %s655_s12 = smov 0   ;;  %s657_s13 = smov 0   ;;  %s733_s0 = inlined_call_operand.vmem [shape: bf16[2,256,27], index: 0, kind: input, shape index: {}]   ;;  %s734_s1 = inlined_call_operand.vmem [shape: bf16[27,64], index: 1, kind: input, shape index: {}]   ;;  %s735_s2 = inlined_call_operand.vmem [shape: f32[1,64], index: 2, kind: input, shape index: {}]   ;;  %s736_s3 = inlined_call_operand.vmem [shape: bf16[2,256,64], index: 3, kind: output, shape index: {}]  }
   0x1   :  { %s659_s14 = smov 0   ;;  %s661_s15 = smov 0  }
   0x2   :  { %s663_s16 = smov 0  }
   0x3 LB: > { %s22_s17 = sadd.s32 1, %s624_s14  ;;  %s25_s18 = sadd.s32 1, %s628_s15  ;;  %s632_s16 = sphi %s663_s16, %s13_s16   ;;  %s628_s15 = sphi %s661_s15, %s740_s15   ;;  %s624_s14 = sphi %s659_s14, %s739_s14   ;;  %s620_s13 = sphi %s657_s13, %s738_s13   ;;  %s616_s12 = sphi %s655_s12, %s737_s12  }
   0x4   : > { %p23_p0 = scmp.ge.s32.totalorder %s22_s17, 4  ;;  %p489_p1 = scmp.ge.s32.totalorder %s632_s16, 1 }
   0x5   : > { %p158_p2 = scmp.lt.s32.totalorder %s632_s16, 9 }
   0x6   : > { %s742_s17 = smov (%p23_p0, %s22_s17), 0  ;;  %s744_s18 = smov (!%p23_p0, %s25_s18), %s628_s15 }
   0x7   : > { %p159_p3 = pnand %p489_p1, %p158_p2  ;;  %p27_p4 = scmp.ge.s32.totalorder %s744_s18, 2 }
   0x8   : > { %s490_s21 = sshll.u32 (!%p159_p3), %s616_s12, 3  ;;  %p191_p5 = scmp.lt.s32.totalorder (!%p159_p3), %s620_s13, 1 }
   0x9   : > { %s746_s18 = smov (%p27_p4, %s744_s18), 0  ;;  %162 = sbr.rel (%p159_p3) target bundleno = 233 (0xe9), region = 32 }
   0xa   : > { %p193_p6 = scmp.lt.s32.totalorder (!%p159_p3), %s490_s21, 31 }
   0xe   : > { %v588_v0 = vld [vmem:[%s734_s1 + $0x8] sm:$0x3f]   ;;  %vm274_vm0 = vcmask 1044480   ;;  %vm275_vm1 = vcmask 1045504   ;;  %v634_v1 = vmov 65535   ;;  %v589_v5 = vld [vmem:[%s734_s1] sm:$0xff]  }
   0xf   : > { %v276_v2 = vsel %vm274_vm0, 4294967295, %v634_v1  ;;  %s748_s13 = smov (!%p191_p5, %s620_s13), 1  ;;  %s750_s21 = smov (!%p193_p6, %s490_s21), 31  ;;  %vm261_vm2 = vcmask 220160   ;;  %v496_v10 = vld [vmem:[%s735_s2] ss:$0 sm:$0xff] }
  0x10   : > { %v277_v3 = vsel %vm275_vm1, %v276_v2, 0  ;;  %s491_s24 = sshll.u32 %s748_s13, 5  ;;  %vm386_vm3 = vcmask 519168  }
  0x11   : > { %v279_v4 = vand.u32 %v588_v0, %v277_v3  ;;  %s196_s25 = sadd.s32 %s491_s24, %s750_s21 }
  0x12   : > { %s492_s26 = sshll.u32 %s196_s25, 2 }
  0x13   : > { %531 = vmatprep.subr.bf16.mxu0 %v279_v4  ;;  %543 = vmatprep.subr.bf16.mxu1 %v279_v4  ;;  %s198_s29 = scalar_lea.vmem %s733_s0, %s492_s26  ;;  %s700_s7 = scalar_lea.vmem %s736_s3, %s492_s26 }
  0x14   : > { %532 = vmatpush3.bf16.msra.mxu0 %v279_v4  ;;  %545 = vmatpush3.bf16.msra.mxu1 %v279_v4  ;;  %v590_v6 = vld [vmem:[%s198_s29] sm:$0xff]   ;;  %v591_v7 = vld [vmem:[%s198_s29 + $0x10] sm:$0xff]   ;;  %v592_v8 = vld [vmem:[%s198_s29 + $0x8] sm:$0xff]  }
  0x15   : > { %533 = vmatprep.subr.bf16.mxu0 %v589_v5  ;;  %544 = vmatprep.subr.bf16.mxu1 %v589_v5  ;;  %v593_v9 = vld [vmem:[%s198_s29 + $0x18] sm:$0xff]  }
  0x16   : > { %535 = vmatprep.mubr.msk.bf16.mxu0 %vm261_vm2, %v590_v6  ;;  %539 = vmatprep.mubr.msk.bf16.mxu1 %vm261_vm2, %v591_v7 }
  0x18   : > { %534 = vmatpush3.bf16.msra.mxu0 %v589_v5  ;;  %546 = vmatpush3.bf16.msra.mxu1 %v589_v5 }
  0x1b   : > { %536 = vmatmul.mubr.msk.bf16.vlgmr.msra.gmra.mxu0 %vm261_vm2, %v592_v8  ;;  %540 = vmatmul.mubr.msk.bf16.vlgmr.msra.gmra.mxu1 %vm261_vm2, %v593_v9 }
  0xdb   : > { %v537_v11 = vpop.f32.mrf.mxu0  ;;  %v541_v13 = vpop.f32.mrf.mxu1 }
  0xdc   : > { %v324_v12 = vadd.f32 %v537_v11, %v496_v10  ;;  %v340_v14 = vadd.f32 %v541_v13, %v496_v10 }
  0xdd   : > { %v315_v15 = vpop.f32.mrf.mxu0  ;;  %v331_v18 = vpop.f32.mrf.mxu1 }
  0xde   : > { %v348_v16 = vmax.f32 %v324_v12, 0.0  ;;  %v316_v17 = vadd.f32 %v496_v10, %v315_v15  ;;  %v352_v19 = vmax.f32 %v340_v14, 0.0  ;;  %v332_v20 = vadd.f32 %v496_v10, %v331_v18 }
  0xdf   : > { %v538_v21 = vpop.f32.mrf.mxu0  ;;  %v542_v25 = vpop.f32.mrf.mxu1 }
  0xe0   : > { %v519_v22 = vpack.c.bf16 %v348_v16, %v348_v16  ;;  %v346_v23 = vmax.f32 %v316_v17, 0.0  ;;  %v327_v24 = vadd.f32 %v538_v21, %v496_v10  ;;  %v523_v26 = vpack.c.bf16 %v352_v19, %v352_v19 }
  0xe1   : > { %v350_v27 = vmax.f32 %v332_v20, 0.0  ;;  %v343_v28 = vadd.f32 %v542_v25, %v496_v10  ;;  %v318_v29 = vpop.f32.mrf.mxu0  ;;  %v334_v33 = vpop.f32.mrf.mxu1 }
  0xe2   : > { %389 = vst.msk [vmem:[%s700_s7 + $0x8] sm:$0xf] %vm386_vm3, %v519_v22  ;;  %v517_v30 = vpack.c.bf16 %v346_v23, %v346_v23  ;;  %v349_v31 = vmax.f32 %v327_v24, 0.0  ;;  %v319_v32 = vadd.f32 %v496_v10, %v318_v29  ;;  %393 = vst.msk [vmem:[%s700_s7 + $0x18] sm:$0xf] %vm386_vm3, %v523_v26  ;;  %v335_v36 = vadd.f32 %v496_v10, %v334_v33 }
  0xe3   : > { %v521_v34 = vpack.c.bf16 %v350_v27, %v350_v27  ;;  %v353_v35 = vmax.f32 %v343_v28, 0.0 }
  0xe4   : > { %387 = vst.msk [vmem:[%s700_s7] sm:$0xf] %vm386_vm3, %v517_v30  ;;  %v520_v37 = vpack.c.bf16 %v349_v31, %v349_v31  ;;  %v347_v38 = vmax.f32 %v319_v32, 0.0  ;;  %v351_v40 = vmax.f32 %v335_v36, 0.0 }
  0xe5   : > { %391 = vst.msk [vmem:[%s700_s7 + $0x10] sm:$0xf] %vm386_vm3, %v521_v34  ;;  %v524_v39 = vpack.c.bf16 %v353_v35, %v353_v35 }
  0xe6   : > { %390 = vst.msk [vmem:[%s700_s7 + $0xc] sm:$0xf] %vm386_vm3, %v520_v37  ;;  %v518_v41 = vpack.c.bf16 %v347_v38, %v347_v38  ;;  %v522_v42 = vpack.c.bf16 %v351_v40, %v351_v40 }
  0xe7   : > { %394 = vst.msk [vmem:[%s700_s7 + $0x1c] sm:$0xf] %vm386_vm3, %v524_v39 }
  0xe8   : > { %388 = vst.msk [vmem:[%s700_s7 + $0x4] sm:$0xf] %vm386_vm3, %v518_v41  ;;  %392 = vst.msk [vmem:[%s700_s7 + $0x14] sm:$0xf] %vm386_vm3, %v522_v42 }
  0xe9 PF: > { %s13_s16 = sadd.s32 1, %s632_s16   ;;  %s737_s12 = smov %s624_s14 }
  0xea   : > { %p10_p7 = scmp.ge.s32.totalorder %s13_s16, 10   ;;  %s738_s13 = smov %s628_s15 }
  0xeb   : > { %s739_s14 = smov %s742_s17  ;;  %s740_s15 = smov %s746_s18 }
  0xec   :  { %12 = sbr.rel (!%p10_p7) target bundleno = 3 (0x3), region = 62 }

// kernel: spade_resnet_block_forward.14
= control target key start
LH: loop header
LB: loop body
LE: loop exit
PB: predicated region body
PF: predicated region fallthrough
CT: control target
= control target key end

     0   :  { %s573_s12 = smov 0   ;;  %s575_s13 = smov 0   ;;  %s638_s0 = inlined_call_operand.vmem [shape: bf16[2,256,4], index: 0, kind: input, shape index: {}]   ;;  %s639_s1 = inlined_call_operand.vmem [shape: bf16[4,8], index: 1, kind: input, shape index: {}]   ;;  %s640_s2 = inlined_call_operand.vmem [shape: f32[1,8], index: 2, kind: input, shape index: {}]   ;;  %s641_s3 = inlined_call_operand.vmem [shape: f32[2,256,8], index: 3, kind: output, shape index: {}]  }
   0x1   :  { %s577_s14 = smov 0   ;;  %s579_s15 = smov 0  }
   0x2   :  { %s581_s16 = smov 0  }
   0x3 LB: > { %s22_s17 = sadd.s32 1, %s543_s14  ;;  %s25_s18 = sadd.s32 1, %s547_s15  ;;  %s551_s16 = sphi %s581_s16, %s13_s16   ;;  %s547_s15 = sphi %s579_s15, %s645_s15   ;;  %s543_s14 = sphi %s577_s14, %s644_s14   ;;  %s539_s13 = sphi %s575_s13, %s643_s13   ;;  %s535_s12 = sphi %s573_s12, %s642_s12  }
   0x4   : > { %p23_p0 = scmp.ge.s32.totalorder %s22_s17, 4  ;;  %p432_p1 = scmp.ge.s32.totalorder %s551_s16, 1 }
   0x5   : > { %p158_p2 = scmp.lt.s32.totalorder %s551_s16, 9 }
   0x6   : > { %s647_s17 = smov (%p23_p0, %s22_s17), 0  ;;  %s649_s18 = smov (!%p23_p0, %s25_s18), %s547_s15 }
   0x7   : > { %p159_p3 = pnand %p432_p1, %p158_p2  ;;  %p27_p4 = scmp.ge.s32.totalorder %s649_s18, 2 }
   0x8   : > { %s433_s21 = sshll.u32 (!%p159_p3), %s535_s12, 3  ;;  %p191_p5 = scmp.lt.s32.totalorder (!%p159_p3), %s539_s13, 1 }
   0x9   : > { %s651_s18 = smov (%p27_p4, %s649_s18), 0  ;;  %162 = sbr.rel (%p159_p3) target bundleno = 223 (0xdf), region = 32 }
   0xa   : > { %p193_p6 = scmp.lt.s32.totalorder (!%p159_p3), %s433_s21, 31 }
   0xe   : > { %v219_v0 = vld [vmem:[%s639_s1] sm:$0x3]  ;;  %vm260_vm0 = vcmask 1041408   ;;  %s653_s13 = smov (!%p191_p5, %s539_s13), 1  ;;  %s655_s21 = smov (!%p193_p6, %s433_s21), 31  ;;  %vm247_vm1 = vcmask 31744  }
   0xf   : > { %467 = vmatprep.subr.msk.bf16.mxu0 %vm260_vm0, %v219_v0  ;;  %468 = vmatprep.subr.msk.bf16.mxu1 %vm260_vm0, %v219_v0  ;;  %v262_v1 = vsel %vm260_vm0, %v219_v0, 0  ;;  %s434_s22 = sshll.u32 %s653_s13, 5  ;;  %v439_v6 = vld [vmem:[%s640_s2] ss:$0 sm:$0xff]  ;;  %vm329_vm2 = vcmask 64512  }
  0x10   : > { %456 = vmatpush3.bf16.msra.mxu0 %v262_v1  ;;  %466 = vmatpush3.bf16.msra.mxu1 %v262_v1  ;;  %s196_s23 = sadd.s32 %s434_s22, %s655_s21 }
  0x11   : > { %s435_s24 = sshll.u32 %s196_s23, 2  ;;  %s438_s28 = sshll.u32 %s196_s23, 3 }
  0x12   : > { %s198_s27 = scalar_lea.vmem %s638_s0, %s435_s24  ;;  %s208_s6 = scalar_lea.vmem %s641_s3, %s438_s28 }
  0x13   : > { %v509_v2 = vld [vmem:[%s198_s27] sm:$0xff]   ;;  %v510_v3 = vld [vmem:[%s198_s27 + $0x10] sm:$0xff]   ;;  %v511_v4 = vld [vmem:[%s198_s27 + $0x8] sm:$0xff]  }
  0x14   : > { %457 = vmatprep.mubr.msk.bf16.mxu0 %vm247_vm1, %v509_v2  ;;  %461 = vmatprep.mubr.msk.bf16.mxu1 %vm247_vm1, %v510_v3  ;;  %v512_v5 = vld [vmem:[%s198_s27 + $0x18] sm:$0xff]  }
  0x15   : > { %458 = vmatmul.mubr.msk.bf16.vlgmr.msra.gmra.mxu0 %vm247_vm1, %v511_v4  ;;  %462 = vmatmul.mubr.msk.bf16.vlgmr.msra.gmra.mxu1 %vm247_vm1, %v512_v5 }
  0xd5   : > { %v459_v7 = vpop.f32.mrf.mxu0  ;;  %v463_v9 = vpop.f32.mrf.mxu1 }
  0xd6   : > { %v307_v8 = vadd.f32 %v459_v7, %v439_v6  ;;  %v323_v10 = vadd.f32 %v463_v9, %v439_v6 }
  0xd7   : > { %v298_v11 = vpop.f32.mrf.mxu0  ;;  %v314_v13 = vpop.f32.mrf.mxu1 }
  0xd8   : > { %332 = vst.msk [vmem:[%s208_s6 + $0x10] sm:$0xff] %vm329_vm2, %v307_v8  ;;  %v299_v12 = vadd.f32 %v439_v6, %v298_v11  ;;  %336 = vst.msk [vmem:[%s208_s6 + $0x30] sm:$0xff] %vm329_vm2, %v323_v10  ;;  %v315_v14 = vadd.f32 %v439_v6, %v314_v13 }
  0xd9   : > { %v460_v15 = vpop.f32.mrf.mxu0  ;;  %v464_v17 = vpop.f32.mrf.mxu1 }
  0xda   : > { %330 = vst.msk [vmem:[%s208_s6] sm:$0xff] %vm329_vm2, %v299_v12  ;;  %v310_v16 = vadd.f32 %v460_v15, %v439_v6  ;;  %334 = vst.msk [vmem:[%s208_s6 + $0x20] sm:$0xff] %vm329_vm2, %v315_v14  ;;  %v326_v18 = vadd.f32 %v464_v17, %v439_v6 }
  0xdb   : > { %v301_v19 = vpop.f32.mrf.mxu0  ;;  %v317_v21 = vpop.f32.mrf.mxu1 }
  0xdc   : > { %333 = vst.msk [vmem:[%s208_s6 + $0x18] sm:$0xff] %vm329_vm2, %v310_v16  ;;  %v302_v20 = vadd.f32 %v439_v6, %v301_v19  ;;  %337 = vst.msk [vmem:[%s208_s6 + $0x38] sm:$0xff] %vm329_vm2, %v326_v18  ;;  %v318_v22 = vadd.f32 %v439_v6, %v317_v21 }
  0xde   : > { %331 = vst.msk [vmem:[%s208_s6 + $0x8] sm:$0xff] %vm329_vm2, %v302_v20  ;;  %335 = vst.msk [vmem:[%s208_s6 + $0x28] sm:$0xff] %vm329_vm2, %v318_v22 }
  0xdf PF: > { %s13_s16 = sadd.s32 1, %s551_s16   ;;  %s642_s12 = smov %s543_s14 }
  0xe0   : > { %p10_p7 = scmp.ge.s32.totalorder %s13_s16, 10   ;;  %s643_s13 = smov %s547_s15 }
  0xe1   : > { %s644_s14 = smov %s647_s17  ;;  %s645_s15 = smov %s651_s18 }
  0xe2   :  { %12 = sbr.rel (!%p10_p7) target bundleno = 3 (0x3), region = 62 }

// kernel: spade_resnet_block_forward.16
= control target key start
LH: loop header
LB: loop body
LE: loop exit
PB: predicated region body
PF: predicated region fallthrough
CT: control target
= control target key end

     0   :  { %s4836_s21 = smov 0   ;;  %s4838_s22 = smov 0   ;;  %s5816_s0 = inlined_call_operand.vmem [shape: bf16[2,18,18,64], index: 0, kind: input, shape index: {}]   ;;  %s5817_s1 = inlined_call_operand.vmem [shape: bf16[3,3,64,8], index: 1, kind: input, shape index: {}]   ;;  %s5818_s2 = inlined_call_operand.vmem [shape: f32[1,8], index: 2, kind: input, shape index: {}]   ;;  %s5819_s3 = inlined_call_operand.vmem [shape: f32[2,256,4], index: 3, kind: input, shape index: {}]   ;;  %s5820_s4 = inlined_call_operand.vmem [shape: f32[2,1,4], index: 4, kind: input, shape index: {}]   ;;  %s5821_s5 = inlined_call_operand.vmem [shape: f32[2,1,4], index: 5, kind: input, shape index: {}]   ;;  %s5822_s6 = inlined_call_operand.vmem [shape: bf16[2,256,4], index: 6, kind: output, shape index: {}]  }
   0x1   :  { %s4840_s23 = smov 0   ;;  %s4842_s24 = smov 0  }
   0x2   :  { %s4844_s25 = smov 0  }
   0x3 LB: > { %s25_s26 = sadd.s32 1, %s4790_s23  ;;  %s28_s27 = sadd.s32 1, %s4794_s24  ;;  %s4798_s25 = sphi %s4844_s25, %s16_s25   ;;  %s4794_s24 = sphi %s4842_s24, %s5830_s24   ;;  %s4790_s23 = sphi %s4840_s23, %s5829_s23   ;;  %s4786_s22 = sphi %s4838_s22, %s5828_s22   ;;  %s4782_s21 = sphi %s4836_s21, %s5827_s21  }
   0x4   : > { %p26_p0 = scmp.ge.s32.totalorder %s25_s26, 2  ;;  %p3877_p1 = scmp.ge.s32.totalorder %s4798_s25, 1 }
   0x5   : > { %p259_p2 = scmp.lt.s32.totalorder %s4798_s25, 5 }
   0x6   : > { %s5832_s26 = smov (%p26_p0, %s25_s26), 0  ;;  %s5834_s27 = smov (!%p26_p0, %s28_s27), %s4794_s24 }
   0x7   : > { %p260_p3 = pnand %p3877_p1, %p259_p2  ;;  %p30_p4 = scmp.ge.s32.totalorder %s5834_s27, 2 }
   0x8   : > { %p308_p5 = scmp.lt.s32.totalorder (!%p260_p3), %s4786_s22, 1  ;;  %s4309_s8 = smul.u32 (!%p260_p3), 96, %s4782_s21 }
   0x9   : > { %s5836_s27 = smov (%p30_p4, %s5834_s27), 0  ;;  %263 = sbr.rel (%p260_p3) target bundleno = 521 (0x209), region = 44 }
   0xa   : > { %s4800_s19 = smov (!%p260_p3), 124   ;;  %s3879_s20 = sshll.u32 (!%p260_p3), %s4782_s21, 4 }
   0xb   : > { %p316_p6 = scmp.lt.s32.totalorder (!%p260_p3), %s3879_s20, 31 }
   0xe   : > { %v4700_v0 = vld [vmem:[%s5817_s1 + $0x18] sm:$0xff]   ;;  %v4701_v1 = vld [vmem:[%s5817_s1 + $0x10] sm:$0xff]   ;;  %s5838_s22 = smov (!%p308_p5, %s4786_s22), 1  ;;  %v4702_v2 = vld [vmem:[%s5817_s1 + $0x8] sm:$0xff]   ;;  %vm432_vm0 = vcmask 523264   ;;  %vm1064_vm1 = vcmask 1042432  }
   0xf   : > { %4650 = vmatprep.subr.bf16.mxu1 %v4700_v0  ;;  %4434 = vmatprep.subr.bf16.mxu0 %v4700_v0  ;;  %s4658_s11 = smul.u32 216, %s5838_s22  ;;  %v4703_v3 = vld [vmem:[%s5817_s1] sm:$0xff]   ;;  %v4706_v6 = vld [vmem:[%s5817_s1 + $0x38] sm:$0xff]   ;;  %v4708_v9 = vld [vmem:[%s5817_s1 + $0x30] sm:$0xff]   ;;  %vm1065_vm2 = vcmask 1046532   ;;  %vm554_vm7 = vcmask 64512   ;;  %s325_s21 = scalar_lea.vmem %s5820_s4, %s5838_s22 }
  0x10   : > { %4654 = vmatpush3.bf16.msra.mxu1 %v4700_v0  ;;  %4435 = vmatpush3.bf16.msra.mxu0 %v4700_v0  ;;  %v4710_v7 = vld [vmem:[%s5817_s1 + $0x58] sm:$0xff]   ;;  %v4714_v12 = vld [vmem:[%s5817_s1 + $0x50] sm:$0xff]   ;;  %v4713_v14 = vld [vmem:[%s5817_s1 + $0x28] sm:$0xff]   ;;  %vm595_vm3 = vsmask.f32 3328  ;;  %s5840_s20 = smov (!%p316_p6, %s3879_s20), 31 }
  0x11   : > { %4651 = vmatprep.subr.bf16.mxu1 %v4701_v1  ;;  %4436 = vmatprep.subr.bf16.mxu0 %v4701_v1  ;;  %s312_s14 = scalar_lea.vmem %s5816_s0, %s4658_s11  ;;  %v4718_v15 = vld [vmem:[%s5817_s1 + $0x48] sm:$0xff]   ;;  %vm596_vm4 = vsmask.f32 7440  ;;  %v4716_v27 = vld [vmem:[%s5817_s1 + $0x20] sm:$0xff]   ;;  %vm4946_vm6 = vmor %vm1064_vm1, %vm1065_vm2  ;;  %s3880_s28 = sshll.u32 %s5838_s22, 5  ;;  %vm3726_vm8 = vcmask 27648  }
  0x12   : > { %s4887_s17 = scalar_lea.vmem %s312_s14, %s4309_s8  ;;  %v4720_v40 = vld [vmem:[%s5817_s1 + $0x40] sm:$0xff]   ;;  %vm4935_vm5 = vmor %vm595_vm3, %vm596_vm4  ;;  %v4719_v58 = vld [vmem:[%s5817_s1 + $0x78] sm:$0xff]   ;;  %s5679_s29 = sadd.s32 %s3880_s28, %s5840_s20 }
  0x13   : > { %v4704_v4 = vld [vmem:[%s4887_s17 + $0x30] sm:$0xff]   ;;  %v4707_v5 = vld [vmem:[%s4887_s17] sm:$0xff]   ;;  %v4711_v11 = vld [vmem:[%s4887_s17 + $0x48] sm:$0xff]   ;;  %s3881_s30 = sshll.u32 %s5679_s29, 3  ;;  %s328_s14 = scalar_lea.vmem %s5821_s5, %s5838_s22 }
  0x14   : > { %4655 = vmatpush3.bf16.msra.mxu1 %v4701_v1  ;;  %4437 = vmatpush3.bf16.msra.mxu0 %v4701_v1  ;;  %v4705_v8 = vld [vmem:[%s4887_s17 + $0x3c] sm:$0xff]   ;;  %v4709_v10 = vld [vmem:[%s4887_s17 + $0xc] sm:$0xff]   ;;  %v572_v17 = vld [vmem:[%s4887_s17 + $0x4] sm:$0xf]  ;;  %s5685_s9 = scalar_lea.vmem %s5819_s3, %s3881_s30  ;;  %s3884_s22 = sshll.u32 %s5679_s29, 2 }
  0x15   : > { %4652 = vmatprep.subr.bf16.mxu1 %v4702_v2  ;;  %4438 = vmatprep.subr.bf16.mxu0 %v4702_v2  ;;  %v4715_v13 = vld [vmem:[%s4887_s17 + $0x18] sm:$0xff]   ;;  %v571_v16 = vld [vmem:[%s4887_s17] sm:$0xf]  ;;  %v573_v18 = vld [vmem:[%s4887_s17 + $0x8] sm:$0x1]  ;;  %v608_v23 = vshll.u32 %v572_v17, 16 }
  0x16   : > { %4450 = vmatprep.mubr.msk.bf16.mxu1 %vm432_vm0, %v4704_v4  ;;  %4442 = vmatprep.mubr.msk.bf16.mxu0 %vm432_vm0, %v4707_v5  ;;  %v4712_v19 = vld [vmem:[%s4887_s17 + $0x54] sm:$0xff]   ;;  %v599_v20 = vshrl.u32 %v571_v16, 16  ;;  %v602_v21 = vshll.u32 %v571_v16, 16  ;;  %v4717_v22 = vld [vmem:[%s4887_s17 + $0x24] sm:$0xff]   ;;  %v612_v24 = vshrl.u32 %v572_v17, 16  ;;  %v618_v25 = vshll.u32 %v573_v18, 16 }
  0x17   : > { %v574_v26 = vld [vmem:[%s4887_s17 + $0xc] sm:$0xf]  ;;  %v575_v30 = vld [vmem:[%s4887_s17 + $0x10] sm:$0xf]  ;;  %v576_v31 = vld [vmem:[%s4887_s17 + $0x14] sm:$0x1] }
  0x18   : > { %4656 = vmatpush3.bf16.msra.mxu1 %v4702_v2  ;;  %4439 = vmatpush3.bf16.msra.mxu0 %v4702_v2  ;;  %v601_v28 = vrot.slane %v599_v20, 4  ;;  %v604_v29 = vrot.slane %v602_v21, 5  ;;  %v610_v32 = vrot.slane %v608_v23, 5  ;;  %v614_v33 = vrot.slane %v612_v24, 4  ;;  %v1016_v49 = vld [vmem:[%s4887_s17] sm:$0xe] }
  0x19   : > { %4653 = vmatprep.subr.bf16.mxu1 %v4703_v3  ;;  %4440 = vmatprep.subr.bf16.mxu0 %v4703_v3  ;;  %v620_v34 = vrot.slane %v618_v25, 5  ;;  %v623_v35 = vshrl.u32 %v574_v26, 16  ;;  %v626_v37 = vshll.u32 %v574_v26, 16  ;;  %v632_v38 = vshll.u32 %v575_v30, 16  ;;  %v1017_v52 = vld [vmem:[%s4887_s17 + $0x4] sm:$0xf] }
  0x1a   : > { %v605_v36 = vor.u32 %v604_v29, %v601_v28  ;;  %v636_v39 = vshrl.u32 %v575_v30, 16  ;;  %v615_v42 = vor.u32 %v614_v33, %v610_v32  ;;  %v642_v44 = vshll.u32 %v576_v31, 16  ;;  %v1018_v53 = vld [vmem:[%s4887_s17 + $0x8] sm:$0x1]  ;;  %v1019_v60 = vld [vmem:[%s4887_s17 + $0xc] sm:$0xe] }
  0x1b   : > { %v625_v43 = vrot.slane %v623_v35, 4  ;;  %v628_v46 = vrot.slane %v626_v37, 5  ;;  %v634_v47 = vrot.slane %v632_v38, 5  ;;  %v3936_v59 = vrot.slane %v1016_v49, 9  ;;  %v1020_v61 = vld [vmem:[%s4887_s17 + $0x10] sm:$0xf] }
  0x1c   : > { %4657 = vmatpush3.bf16.msra.mxu1 %v4703_v3  ;;  %4441 = vmatpush3.bf16.msra.mxu0 %v4703_v3  ;;  %v606_v45 = vrot.slane %v605_v36, 4  ;;  %v638_v48 = vrot.slane %v636_v39, 4  ;;  %v616_v50 = vrot.slane %v615_v42, 4  ;;  %v644_v51 = vrot.slane %v642_v44, 5  ;;  %v1021_v1 = vld [vmem:[%s4887_s17 + $0x14] sm:$0x1] }
  0x1d   : > { %4458 = vmatprep.subr.bf16.mxu1 %v4706_v6  ;;  %4482 = vmatprep.subr.bf16.mxu0 %v4710_v7  ;;  %v629_v56 = vor.u32 %v628_v46, %v625_v43  ;;  %v1069_v63 = vrot.slane %v1017_v52, 5  ;;  %v1072_v0 = vrot.slane %v1018_v53, 5  ;;  %v3937_v2 = vrot.slane %v1019_v60, 9  ;;  %v4722_v3 = vld [vmem:[%s5817_s1 + $0x98] sm:$0xff]   ;;  %v580_v18 = vld [vmem:[%s4887_s17 + $0x24] sm:$0xf] }
  0x1e   : > { %v611_v55 = vsel %vm4935_vm5, %v606_v45, %v610_v32  ;;  %v639_v57 = vor.u32 %v638_v48, %v634_v47  ;;  %v621_v62 = vsel %vm4935_vm5, %v616_v50, %v620_v34  ;;  %v4721_v20 = vld [vmem:[%s5817_s1 + $0x70] sm:$0xff]   ;;  %v582_v25 = vld [vmem:[%s4887_s17 + $0x2c] sm:$0x1]  ;;  %v671_v37 = vshrl.u32 %v580_v18, 16  ;;  %v1022_v39 = vld [vmem:[%s4887_s17 + $0x18] sm:$0xe] }
  0x1f   : > { %4451 = vmatmul.mubr.msk.bf16.vlgmr.msra.gmra.mxu1 %vm432_vm0, %v4705_v8  ;;  %4443 = vmatmul.mubr.msk.bf16.vlgmr.msra.gmra.mxu0 %vm432_vm0, %v4709_v10  ;;  %v3916_v4 = vcombine.low %v611_v55, %v621_v62  ;;  %v630_v5 = vrot.slane %v629_v56, 4  ;;  %v577_v8 = vld [vmem:[%s4887_s17 + $0x18] sm:$0xf]  ;;  %v1071_v10 = vrot.slane %v1069_v63, 4  ;;  %v4724_v34 = vld [vmem:[%s5817_s1 + $0x90] sm:$0xff]   ;;  %v674_v38 = vshll.u32 %v580_v18, 16 }
  0x20   : > { %4459 = vmatpush3.bf16.msra.mxu1 %v4706_v6  ;;  %4483 = vmatpush3.bf16.msra.mxu0 %v4710_v7  ;;  %v640_v6 = vrot.slane %v639_v57, 4  ;;  %v1076_v7 = vrot.slane %v1020_v61, 5  ;;  %v647_v23 = vshrl.u32 %v577_v8, 16  ;;  %v650_v24 = vshll.u32 %v577_v8, 16  ;;  %v1023_v45 = vld [vmem:[%s4887_s17 + $0x1c] sm:$0xf] }
  0x21   : > { %4460 = vmatprep.subr.bf16.mxu1 %v4708_v9  ;;  %4454 = vmatprep.mubr.msk.bf16.mxu1 %vm432_vm0, %v4711_v11  ;;  %v1079_v11 = vrot.slane %v1021_v1, 5  ;;  %v4723_v46 = vld [vmem:[%s5817_s1 + $0x68] sm:$0xff]   ;;  %v673_v48 = vrot.slane %v671_v37, 4  ;;  %v676_v49 = vrot.slane %v674_v38, 5  ;;  %v690_v50 = vshll.u32 %v582_v25, 16 }
  0x22   : > { %4484 = vmatprep.subr.bf16.mxu0 %v4714_v12  ;;  %4446 = vmatprep.mubr.msk.bf16.mxu0 %vm432_vm0, %v4715_v13  ;;  %v579_v13 = vld [vmem:[%s4887_s17 + $0x20] sm:$0x1]  ;;  %v1077_v16 = vsel %vm4946_vm6, %v3937_v2, %v1076_v7  ;;  %v1078_v17 = vrot.slane %v1076_v7, 4  ;;  %v649_v31 = vrot.slane %v647_v23, 4  ;;  %v652_v32 = vrot.slane %v650_v24, 5  ;;  %v4726_v52 = vld [vmem:[%s5817_s1 + $0x88] sm:$0xff]  }
  0x23   : > { %v666_v33 = vshll.u32 %v579_v13, 16  ;;  %v3938_v57 = vrot.slane %v1022_v39, 9  ;;  %v677_v60 = vor.u32 %v676_v49, %v673_v48  ;;  %v692_v61 = vrot.slane %v690_v50, 5  ;;  %v1030_v49 = vld [vmem:[%s4887_s17 + $0x38] sm:$0x1] }
  0x24   : > { %4461 = vmatpush3.bf16.msra.mxu1 %v4708_v9  ;;  %4485 = vmatpush3.bf16.msra.mxu0 %v4714_v12  ;;  %v1070_v9 = vsel %vm4946_vm6, %v3936_v59, %v1069_v63  ;;  %v578_v12 = vld [vmem:[%s4887_s17 + $0x1c] sm:$0xf]  ;;  %v1083_v62 = vrot.slane %v1023_v45, 5  ;;  %v1026_v63 = vld [vmem:[%s4887_s17 + $0x28] sm:$0xf] }
  0x25   : > { %4462 = vmatprep.subr.bf16.mxu1 %v4713_v14  ;;  %4486 = vmatprep.subr.bf16.mxu0 %v4718_v15  ;;  %v656_v28 = vshll.u32 %v578_v12, 16  ;;  %v660_v29 = vshrl.u32 %v578_v12, 16  ;;  %v668_v42 = vrot.slane %v666_v33, 5  ;;  %v678_v8 = vrot.slane %v677_v60, 4  ;;  %v5033_v33 = vld [vmem:[%s5817_s1 + $0xb8] sm:$0xff]  }
  0x26   : > { %v1032_v60 = vld [vmem:[%s4887_s17 + $0x40] sm:$0xf] }
  0x27   : > { %4455 = vmatmul.mubr.msk.bf16.gmra.mxu1 %vm432_vm0, %v4712_v19  ;;  %4447 = vmatmul.mubr.msk.bf16.gmra.mxu0 %vm432_vm0, %v4717_v22  ;;  %v581_v19 = vld [vmem:[%s4887_s17 + $0x28] sm:$0xf]  ;;  %v1073_v22 = vsel %vm4946_vm6, %v1071_v10, %v1072_v0  ;;  %v658_v35 = vrot.slane %v656_v28, 5  ;;  %v662_v36 = vrot.slane %v660_v29, 4  ;;  %v4725_v0 = vld [vmem:[%s5817_s1 + $0x60] sm:$0xff]   ;;  %v1085_v10 = vrot.slane %v1083_v62, 4 }
  0x28   : > { %4463 = vmatpush3.bf16.msra.mxu1 %v4713_v14  ;;  %4487 = vmatpush3.bf16.msra.mxu0 %v4718_v15  ;;  %v635_v14 = vsel %vm4935_vm5, %v630_v5, %v634_v47  ;;  %v645_v15 = vsel %vm4935_vm5, %v640_v6, %v644_v51  ;;  %v3952_v26 = vcombine.low %v1070_v9, %v1073_v22  ;;  %v680_v43 = vshll.u32 %v581_v19, 16  ;;  %v1024_v51 = vld [vmem:[%s4887_s17 + $0x20] sm:$0x1]  ;;  %v583_v6 = vld [vmem:[%s4887_s17 + $0x30] sm:$0xf] }
  0x29   : > { %4464 = vmatprep.subr.bf16.mxu1 %v4716_v27  ;;  %4488 = vmatprep.subr.bf16.mxu0 %v4720_v40  ;;  %v3917_v21 = vcombine.low %v635_v14, %v645_v15  ;;  %v684_v44 = vshrl.u32 %v581_v19, 16  ;;  %v663_v47 = vor.u32 %v662_v36, %v658_v35  ;;  %v1084_v9 = vsel %vm4946_vm6, %v3938_v57, %v1083_v62  ;;  %v587_v22 = vld [vmem:[%s4887_s17 + $0x40] sm:$0xf] }
  0x2a   : > { %4466 = vmatprep.mubr.msk.bf16.mxu1 %vm432_vm0, %v3916_v4  ;;  %4490 = vmatprep.mubr.msk.bf16.mxu0 %vm432_vm0, %v3952_v26  ;;  %v682_v55 = vrot.slane %v680_v43, 5  ;;  %v1027_v4 = vld [vmem:[%s4887_s17 + $0x2c] sm:$0x1]  ;;  %v1090_v14 = vrot.slane %v1026_v63, 5  ;;  %v695_v19 = vshrl.u32 %v583_v6, 16  ;;  %v4730_v28 = vld [vmem:[%s5817_s1 + $0x80] sm:$0xff]  }
  0x2b   : > { %v686_v56 = vrot.slane %v684_v44, 4  ;;  %v664_v59 = vrot.slane %v663_v47, 4  ;;  %v1093_v15 = vrot.slane %v1027_v4, 5  ;;  %v1028_v43 = vld [vmem:[%s4887_s17 + $0x30] sm:$0xe]  ;;  %v728_v48 = vshll.u32 %v587_v22, 16 }
  0x2c   : > { %4465 = vmatpush3.bf16.msra.mxu1 %v4716_v27  ;;  %4489 = vmatpush3.bf16.msra.mxu0 %v4720_v40  ;;  %v1080_v27 = vsel %vm4946_vm6, %v1078_v17, %v1079_v11  ;;  %v653_v40 = vor.u32 %v652_v32, %v649_v31  ;;  %v584_v11 = vld [vmem:[%s4887_s17 + $0x34] sm:$0xf]  ;;  %v683_v17 = vsel %vm4935_vm5, %v678_v8, %v682_v55  ;;  %v1092_v26 = vrot.slane %v1090_v14, 4 }
  0x2d   : > { %4506 = vmatprep.subr.bf16.mxu1 %v4719_v58  ;;  %4530 = vmatprep.subr.bf16.mxu0 %v4722_v3  ;;  %v3953_v30 = vcombine.low %v1077_v16, %v1080_v27  ;;  %v687_v2 = vor.u32 %v686_v56, %v682_v55  ;;  %v669_v7 = vsel %vm4935_vm5, %v664_v59, %v668_v42  ;;  %v585_v16 = vld [vmem:[%s4887_s17 + $0x38] sm:$0x1]  ;;  %v588_v27 = vld [vmem:[%s4887_s17 + $0x44] sm:$0x1]  ;;  %v704_v32 = vshll.u32 %v584_v11, 16 }
  0x2e   : > { %v654_v53 = vrot.slane %v653_v40, 4  ;;  %v714_v36 = vshll.u32 %v585_v16, 16  ;;  %v1029_v44 = vld [vmem:[%s4887_s17 + $0x34] sm:$0xf]  ;;  %v1031_v55 = vld [vmem:[%s4887_s17 + $0x3c] sm:$0xe] }
  0x2f   : > { %4467 = vmatmul.mubr.msk.bf16.vlgmr.msra.gmra.mxu1 %vm432_vm0, %v3917_v21  ;;  %4491 = vmatmul.mubr.msk.bf16.vlgmr.msra.gmra.mxu0 %vm432_vm0, %v3953_v30  ;;  %v688_v13 = vrot.slane %v687_v2, 4  ;;  %v586_v21 = vld [vmem:[%s4887_s17 + $0x3c] sm:$0xf]  ;;  %v697_v30 = vrot.slane %v695_v19, 4  ;;  %v706_v40 = vrot.slane %v704_v32, 5  ;;  %v730_v57 = vrot.slane %v728_v48, 5 }
  0x30   : > { %4507 = vmatpush3.bf16.msra.mxu1 %v4719_v58  ;;  %4531 = vmatpush3.bf16.msra.mxu0 %v4722_v3  ;;  %v1025_v58 = vld [vmem:[%s4887_s17 + $0x24] sm:$0xe]  ;;  %v659_v1 = vsel %vm4935_vm5, %v654_v53, %v658_v35  ;;  %v1086_v3 = vrot.slane %v1024_v51, 5  ;;  %v708_v35 = vshrl.u32 %v584_v11, 16  ;;  %v719_v37 = vshrl.u32 %v586_v21, 16 }
  0x31   : > { %4508 = vmatprep.subr.bf16.mxu1 %v4721_v20  ;;  %4532 = vmatprep.subr.bf16.mxu0 %v4724_v34  ;;  %v3939_v5 = vrot.slane %v1025_v58, 9  ;;  %v3918_v12 = vcombine.low %v659_v1, %v669_v7  ;;  %v693_v23 = vsel %vm4935_vm5, %v688_v13, %v692_v61  ;;  %v722_v42 = vshll.u32 %v586_v21, 16  ;;  %v1033_v1 = vld [vmem:[%s4887_s17 + $0x44] sm:$0x1]  ;;  %v589_v2 = vld [vmem:[%s4887_s17 + $0x48] sm:$0xf] }
  0x32   : > { %v1087_v18 = vsel %vm4946_vm6, %v1085_v10, %v1086_v3  ;;  %v3919_v29 = vcombine.low %v683_v17, %v693_v23  ;;  %v710_v45 = vrot.slane %v708_v35, 4  ;;  %v721_v47 = vrot.slane %v719_v37, 4  ;;  %v5055_v7 = vld [vmem:[%s5817_s1 + $0xd8] sm:$0xff]   ;;  %v591_v16 = vld [vmem:[%s4887_s17 + $0x50] sm:$0x1] }
  0x33   : > { %4470 = vmatprep.mubr.msk.bf16.mxu1 %vm432_vm0, %v3918_v12  ;;  %v3954_v24 = vcombine.low %v1084_v9, %v1087_v18  ;;  %v1091_v25 = vsel %vm4946_vm6, %v3939_v5, %v1090_v14  ;;  %v724_v51 = vrot.slane %v722_v42, 5  ;;  %v738_v53 = vshll.u32 %v588_v27, 16  ;;  %v590_v12 = vld [vmem:[%s4887_s17 + $0x4c] sm:$0xf]  ;;  %v592_v18 = vld [vmem:[%s4887_s17 + $0x54] sm:$0xf] }
  0x34   : > { %4509 = vmatpush3.bf16.msra.mxu1 %v4721_v20  ;;  %4533 = vmatpush3.bf16.msra.mxu0 %v4724_v34  ;;  %v698_v20 = vshll.u32 %v583_v6, 16  ;;  %v1094_v34 = vsel %vm4946_vm6, %v1092_v26, %v1093_v15  ;;  %v711_v56 = vor.u32 %v710_v45, %v706_v40  ;;  %v3940_v58 = vrot.slane %v1028_v43, 9  ;;  %v593_v23 = vld [vmem:[%s4887_s17 + $0x58] sm:$0xf] }
  0x35   : > { %4510 = vmatprep.subr.bf16.mxu1 %v4723_v46  ;;  %4534 = vmatprep.subr.bf16.mxu0 %v4726_v52  ;;  %v3955_v38 = vcombine.low %v1091_v25, %v1094_v34  ;;  %v1097_v59 = vrot.slane %v1029_v44, 5  ;;  %v725_v62 = vor.u32 %v724_v51, %v721_v47  ;;  %v1100_v6 = vrot.slane %v1030_v49, 5  ;;  %v1035_v44 = vld [vmem:[%s4887_s17 + $0x4c] sm:$0xf]  ;;  %v1036_v49 = vld [vmem:[%s4887_s17 + $0x50] sm:$0x1] }
  0x36   : > { %v700_v31 = vrot.slane %v698_v20, 5  ;;  %4494 = vmatprep.mubr.msk.bf16.mxu0 %vm432_vm0, %v3954_v24  ;;  %v712_v3 = vrot.slane %v711_v56, 4  ;;  %v3941_v10 = vrot.slane %v1031_v55, 9  ;;  %v1104_v11 = vrot.slane %v1032_v60, 5  ;;  %v1037_v55 = vld [vmem:[%s4887_s17 + $0x54] sm:$0xe] }
  0x37   : > { %4471 = vmatmul.mubr.msk.bf16.gmra.mxu1 %vm432_vm0, %v3919_v29  ;;  %4495 = vmatmul.mubr.msk.bf16.gmra.mxu0 %vm432_vm0, %v3955_v38  ;;  %v1098_v4 = vsel %vm4946_vm6, %v3940_v58, %v1097_v59  ;;  %v1099_v5 = vrot.slane %v1097_v59, 4  ;;  %v726_v8 = vrot.slane %v725_v62, 4  ;;  %v1107_v15 = vrot.slane %v1033_v1, 5  ;;  %v1034_v38 = vld [vmem:[%s4887_s17 + $0x48] sm:$0xe] }
  0x38   : > { %4511 = vmatpush3.bf16.msra.mxu1 %v4723_v46  ;;  %4535 = vmatpush3.bf16.msra.mxu0 %v4726_v52  ;;  %v701_v39 = vor.u32 %v700_v31, %v697_v30  ;;  %v716_v46 = vrot.slane %v714_v36, 5  ;;  %v732_v52 = vshrl.u32 %v587_v22, 16  ;;  %v743_v17 = vshrl.u32 %v589_v2, 16  ;;  %v1038_v60 = vld [vmem:[%s4887_s17 + $0x58] sm:$0xf] }
  0x39   : > { %4512 = vmatprep.subr.bf16.mxu1 %v4725_v0  ;;  %4536 = vmatprep.subr.bf16.mxu0 %v4730_v28  ;;  %v1101_v14 = vsel %vm4946_vm6, %v1099_v5, %v1100_v6  ;;  %v731_v20 = vsel %vm4935_vm5, %v726_v8, %v730_v57  ;;  %v1105_v24 = vsel %vm4946_vm6, %v3941_v10, %v1104_v11  ;;  %v1106_v25 = vrot.slane %v1104_v11, 4  ;;  %v1039_v1 = vld [vmem:[%s4887_s17 + $0x5c] sm:$0x1] }
  0x3a   : > { %v702_v50 = vrot.slane %v701_v39, 4  ;;  %v734_v63 = vrot.slane %v732_v52, 4  ;;  %v717_v13 = vsel %vm4935_vm5, %v712_v3, %v716_v46  ;;  %v3956_v22 = vcombine.low %v1098_v4, %v1101_v14 }
  0x3b   : > { %v745_v26 = vrot.slane %v743_v17, 4  ;;  %v746_v27 = vshll.u32 %v589_v2, 16  ;;  %v752_v30 = vshll.u32 %v590_v12, 16  ;;  %v756_v31 = vshrl.u32 %v590_v12, 16 }
  0x3c   : > { %4513 = vmatpush3.bf16.msra.mxu1 %v4725_v0  ;;  %4537 = vmatpush3.bf16.msra.mxu0 %v4730_v28  ;;  %v707_v61 = vsel %vm4935_vm5, %v702_v50, %v706_v40  ;;  %v740_v0 = vrot.slane %v738_v53, 5  ;;  %v735_v9 = vor.u32 %v734_v63, %v730_v57  ;;  %v594_v28 = vld [vmem:[%s4887_s17 + $0x5c] sm:$0x1]  ;;  %v762_v32 = vshll.u32 %v591_v16, 16 }
  0x3d   : > { %4554 = vmatprep.subr.bf16.mxu1 %v5033_v33  ;;  %4578 = vmatprep.subr.bf16.mxu0 %v5055_v7  ;;  %v3920_v19 = vcombine.low %v707_v61, %v717_v13  ;;  %v1108_v35 = vsel %vm4946_vm6, %v1106_v25, %v1107_v15  ;;  %v748_v36 = vrot.slane %v746_v27, 5  ;;  %v767_v37 = vshrl.u32 %v592_v18, 16 }
  0x3e   : > { %v736_v21 = vrot.slane %v735_v9, 4  ;;  %4498 = vmatprep.mubr.msk.bf16.mxu0 %vm432_vm0, %v3956_v22  ;;  %v3957_v39 = vcombine.low %v1105_v24, %v1108_v35  ;;  %v754_v40 = vrot.slane %v752_v30, 5  ;;  %v758_v42 = vrot.slane %v756_v31, 4  ;;  %v4019_v22 = vld [vmem:[%s4887_s17 + $0x10] sm:$0xf] }
  0x3f   : > { %4474 = vmatprep.mubr.msk.bf16.mxu1 %vm432_vm0, %v3920_v19  ;;  %v764_v43 = vrot.slane %v762_v32, 5  ;;  %v749_v45 = vor.u32 %v748_v36, %v745_v26  ;;  %v769_v46 = vrot.slane %v767_v37, 4  ;;  %v770_v47 = vshll.u32 %v592_v18, 16  ;;  %v4727_v19 = vld [vmem:[%s4887_s17 + $0xc] sm:$0xff]   ;;  %v4023_v35 = vld [vmem:[%s4887_s17 + $0x20] sm:$0x1] }
  0x40   : > { %v741_v29 = vsel %vm4935_vm5, %v736_v21, %v740_v0  ;;  %v776_v48 = vshll.u32 %v593_v23, 16  ;;  %4499 = vmatmul.mubr.msk.bf16.gmra.mxu0 %vm432_vm0, %v3957_v39  ;;  %v759_v50 = vor.u32 %v758_v42, %v754_v40  ;;  %v780_v51 = vshrl.u32 %v593_v23, 16  ;;  %v4018_v21 = vld [vmem:[%s4887_s17 + $0xc] sm:$0xf]  ;;  %v4020_v23 = vld [vmem:[%s4887_s17 + $0x14] sm:$0x1] }
  0x41   : > { %v3921_v34 = vcombine.low %v731_v20, %v741_v29  ;;  %v786_v52 = vshll.u32 %v594_v28, 16  ;;  %v3942_v53 = vrot.slane %v1034_v38, 9  ;;  %v750_v56 = vrot.slane %v749_v45, 4  ;;  %v4021_v28 = vld [vmem:[%s4887_s17 + $0x18] sm:$0xf] }
  0x42   : > { %v772_v57 = vrot.slane %v770_v47, 5  ;;  %v778_v58 = vrot.slane %v776_v48, 5  ;;  %v1111_v59 = vrot.slane %v1035_v44, 5  ;;  %v760_v61 = vrot.slane %v759_v50, 4  ;;  %v4022_v29 = vld [vmem:[%s4887_s17 + $0x1c] sm:$0xf] }
  0x43   : > { %4475 = vmatmul.mubr.msk.bf16.gmra.mxu1 %vm432_vm0, %v3921_v34  ;;  %v782_v62 = vrot.slane %v780_v51, 4  ;;  %v788_v63 = vrot.slane %v786_v52, 5  ;;  %v1114_v0 = vrot.slane %v1036_v49, 5  ;;  %v755_v2 = vsel %vm4935_vm5, %v750_v56, %v754_v40  ;;  %v4728_v49 = vld [vmem:[%s4887_s17 + $0x18] sm:$0xff]  }
  0x44   : > { %v773_v3 = vor.u32 %v772_v57, %v769_v46  ;;  %v1112_v4 = vsel %vm4946_vm6, %v3942_v53, %v1111_v59  ;;  %v1113_v5 = vrot.slane %v1111_v59, 4  ;;  %v765_v6 = vsel %vm4935_vm5, %v760_v61, %v764_v43  ;;  %v4024_v61 = vld [vmem:[%s4887_s17 + $0x24] sm:$0xf] }
  0x45   : > { %v783_v8 = vor.u32 %v782_v62, %v778_v58  ;;  %v3943_v9 = vrot.slane %v1037_v55, 9  ;;  %v1118_v10 = vrot.slane %v1038_v60, 5  ;;  %v3922_v11 = vcombine.low %v755_v2, %v765_v6  ;;  %v4731_v60 = vld [vmem:[%s4887_s17 + $0x24] sm:$0xff]   ;;  %v4733_v6 = vld [vmem:[%s5817_s1 + $0xb0] sm:$0xff]  }
  0x46   : > { %v774_v12 = vrot.slane %v773_v3, 4  ;;  %v1115_v13 = vsel %vm4946_vm6, %v1113_v5, %v1114_v0  ;;  %v1121_v14 = vrot.slane %v1039_v1, 5  ;;  %v1636_v26 = vshrl.u32 %v4018_v21, 16  ;;  %v4025_v0 = vld [vmem:[%s4887_s17 + $0x28] sm:$0xf] }
  0x47   : > { %v784_v15 = vrot.slane %v783_v8, 4  ;;  %v3958_v16 = vcombine.low %v1112_v4, %v1115_v13  ;;  %v1119_v17 = vsel %vm4946_vm6, %v3943_v9, %v1118_v10  ;;  %v1120_v18 = vrot.slane %v1118_v10, 4  ;;  %4478 = vmatprep.mubr.msk.bf16.mxu1 %vm432_vm0, %v3922_v11  ;;  %v4026_v1 = vld [vmem:[%s4887_s17 + $0x2c] sm:$0x1]  ;;  %v4027_v10 = vld [vmem:[%s4887_s17 + $0x30] sm:$0xf] }
  0x48   : > { %v779_v20 = vsel %vm4935_vm5, %v774_v12, %v778_v58  ;;  %v1639_v27 = vshll.u32 %v4018_v21, 16  ;;  %v1645_v32 = vshll.u32 %v4019_v22, 16  ;;  %v1649_v34 = vshrl.u32 %v4019_v22, 16  ;;  %v4737_v21 = vld [vmem:[%s5817_s1 + $0xa8] sm:$0xff]   ;;  %v4738_v22 = vld [vmem:[%s5817_s1 + $0xd0] sm:$0xff]  }
  0x49   : > { %v789_v24 = vsel %vm4935_vm5, %v784_v15, %v788_v63  ;;  %4502 = vmatprep.mubr.msk.bf16.mxu0 %vm432_vm0, %v3958_v16  ;;  %v1122_v25 = vsel %vm4946_vm6, %v1120_v18, %v1121_v14  ;;  %v1638_v36 = vrot.slane %v1636_v26, 4  ;;  %v1655_v38 = vshll.u32 %v4020_v23, 16  ;;  %v4028_v15 = vld [vmem:[%s4887_s17 + $0x34] sm:$0xf] }
  0x4a   : > { %v3923_v30 = vcombine.low %v779_v20, %v789_v24  ;;  %v3959_v31 = vcombine.low %v1119_v17, %v1122_v25  ;;  %v1641_v37 = vrot.slane %v1639_v27, 5  ;;  %v1660_v39 = vshrl.u32 %v4021_v28, 16  ;;  %v4029_v20 = vld [vmem:[%s4887_s17 + $0x38] sm:$0x1] }
  0x4b   : > { %v1647_v40 = vrot.slane %v1645_v32, 5  ;;  %v1651_v42 = vrot.slane %v1649_v34, 4  ;;  %v1663_v43 = vshll.u32 %v4021_v28, 16  ;;  %v1669_v44 = vshll.u32 %v4022_v29, 16  ;;  %v4732_v28 = vld [vmem:[%s4887_s17 + $0x30] sm:$0xff]  }
  0x4c   : > { %4479 = vmatmul.mubr.msk.bf16.gmra.mxu1 %vm432_vm0, %v3923_v30  ;;  %4503 = vmatmul.mubr.msk.bf16.gmra.mxu0 %vm432_vm0, %v3959_v31  ;;  %v1642_v45 = vor.u32 %v1641_v37, %v1638_v36  ;;  %v1657_v46 = vrot.slane %v1655_v38, 5  ;;  %v1662_v47 = vrot.slane %v1660_v39, 4  ;;  %v1673_v48 = vshrl.u32 %v4022_v29, 16  ;;  %v4735_v39 = vld [vmem:[%s4887_s17 + $0x3c] sm:$0xff]  }
  0x4d   : > { %4514 = vmatprep.mubr.msk.bf16.mxu1 %vm432_vm0, %v4727_v19  ;;  %v1652_v50 = vor.u32 %v1651_v42, %v1647_v40  ;;  %v1665_v51 = vrot.slane %v1663_v43, 5  ;;  %v1671_v52 = vrot.slane %v1669_v44, 5  ;;  %v1679_v53 = vshll.u32 %v4023_v35, 16  ;;  %v4741_v44 = vld [vmem:[%s5817_s1 + $0xa0] sm:$0xff]  }
  0x4e   : > { %v1643_v55 = vrot.slane %v1642_v45, 4  ;;  %v1675_v56 = vrot.slane %v1673_v48, 4  ;;  %v1684_v2 = vshrl.u32 %v4024_v61, 16  ;;  %v1687_v3 = vshll.u32 %v4024_v61, 16  ;;  %v4031_v48 = vld [vmem:[%s4887_s17 + $0x40] sm:$0xf] }
  0x4f   : > { %v1653_v57 = vrot.slane %v1652_v50, 4  ;;  %v1666_v58 = vor.u32 %v1665_v51, %v1662_v47  ;;  %v1681_v59 = vrot.slane %v1679_v53, 5  ;;  %v1693_v8 = vshll.u32 %v4025_v0, 16  ;;  %v4030_v47 = vld [vmem:[%s4887_s17 + $0x3c] sm:$0xf] }
  0x50   : > { %v1648_v62 = vsel %vm4935_vm5, %v1643_v55, %v1647_v40  ;;  %v1676_v63 = vor.u32 %v1675_v56, %v1671_v52  ;;  %v1697_v9 = vshrl.u32 %v4025_v0, 16  ;;  %v1686_v13 = vrot.slane %v1684_v2, 4  ;;  %v4033_v55 = vld [vmem:[%s4887_s17 + $0x48] sm:$0xf]  ;;  %v4035_v0 = vld [vmem:[%s4887_s17 + $0x50] sm:$0x1] }
  0x51   : > { %v1658_v4 = vsel %vm4935_vm5, %v1653_v57, %v1657_v46  ;;  %v1667_v5 = vrot.slane %v1666_v58, 4  ;;  %v1689_v14 = vrot.slane %v1687_v3, 5  ;;  %v1695_v17 = vrot.slane %v1693_v8, 5  ;;  %v4736_v2 = vld [vmem:[%s4887_s17 + $0x48] sm:$0xff]  }
  0x52   : > { %v4050_v11 = vcombine.low %v1648_v62, %v1658_v4  ;;  %v1677_v12 = vrot.slane %v1676_v63, 4  ;;  %v1699_v18 = vrot.slane %v1697_v9, 4  ;;  %v1703_v19 = vshll.u32 %v4026_v1, 16 }
  0x53   : > { %v1672_v16 = vsel %vm4935_vm5, %v1667_v5, %v1671_v52  ;;  %v1690_v24 = vor.u32 %v1689_v14, %v1686_v13  ;;  %v1708_v25 = vshrl.u32 %v4027_v10, 16  ;;  %v1711_v26 = vshll.u32 %v4027_v10, 16  ;;  %v4032_v52 = vld [vmem:[%s4887_s17 + $0x44] sm:$0x1] }
  0x54   : > { %4515 = vmatmul.mubr.msk.bf16.vlgmr.msra.gmra.mxu1 %vm432_vm0, %v4728_v49  ;;  %4538 = vmatprep.mubr.msk.bf16.mxu0 %vm432_vm0, %v4050_v11  ;;  %v1682_v23 = vsel %vm4935_vm5, %v1677_v12, %v1681_v59  ;;  %v1700_v29 = vor.u32 %v1699_v18, %v1695_v17  ;;  %v1705_v30 = vrot.slane %v1703_v19, 5  ;;  %v1717_v31 = vshll.u32 %v4028_v15, 16  ;;  %v5173_v12 = vld [vmem:[%s5817_s1 + $0xf8] sm:$0xff]  }
  0x55   : > { %4555 = vmatpush3.bf16.msra.mxu1 %v5033_v33  ;;  %v4051_v27 = vcombine.low %v1672_v16, %v1682_v23  ;;  %4518 = vmatprep.mubr.msk.bf16.mxu1 %vm432_vm0, %v4731_v60  ;;  %v1691_v32 = vrot.slane %v1690_v24, 4  ;;  %v1710_v34 = vrot.slane %v1708_v25, 4  ;;  %v1713_v33 = vrot.slane %v1711_v26, 5  ;;  %v4034_v60 = vld [vmem:[%s4887_s17 + $0x4c] sm:$0xf] }
  0x56   : > { %4556 = vmatprep.subr.bf16.mxu1 %v4733_v6  ;;  %v1721_v35 = vshrl.u32 %v4028_v15, 16  ;;  %v1701_v36 = vrot.slane %v1700_v29, 4  ;;  %v1719_v37 = vrot.slane %v1717_v31, 5  ;;  %v1727_v38 = vshll.u32 %v4029_v20, 16  ;;  %v4036_v31 = vld [vmem:[%s4887_s17 + $0x54] sm:$0xf] }
  0x57   : > { %4539 = vmatmul.mubr.msk.bf16.vlgmr.msra.gmra.mxu0 %vm432_vm0, %v4051_v27  ;;  %v1696_v40 = vsel %vm4935_vm5, %v1691_v32, %v1695_v17  ;;  %v1714_v42 = vor.u32 %v1713_v33, %v1710_v34  ;;  %v1732_v53 = vshrl.u32 %v4030_v47, 16  ;;  %v1735_v56 = vshll.u32 %v4030_v47, 16  ;;  %v4744_v17 = vld [vmem:[%s5817_s1 + $0xc0] sm:$0xff]   ;;  %v5184_v27 = vld [vmem:[%s5817_s1 + $0x118] sm:$0xff]  }
  0x58   : > { %4579 = vmatpush3.bf16.msra.mxu0 %v5055_v7  ;;  %v1723_v43 = vrot.slane %v1721_v35, 4  ;;  %v1706_v45 = vsel %vm4935_vm5, %v1701_v36, %v1705_v30  ;;  %v1729_v46 = vrot.slane %v1727_v38, 5  ;;  %v4742_v7 = vld [vmem:[%s5817_s1 + $0xc8] sm:$0xff]   ;;  %v1741_v57 = vshll.u32 %v4031_v48, 16  ;;  %v4037_v32 = vld [vmem:[%s4887_s17 + $0x58] sm:$0xf] }
  0x59   : > { %4557 = vmatpush3.bf16.msra.mxu1 %v4733_v6  ;;  %4580 = vmatprep.subr.bf16.mxu0 %v4738_v22  ;;  %v4052_v49 = vcombine.low %v1696_v40, %v1706_v45  ;;  %v1715_v50 = vrot.slane %v1714_v42, 4  ;;  %v1745_v58 = vshrl.u32 %v4031_v48, 16  ;;  %v1751_v59 = vshll.u32 %v4032_v52, 16  ;;  %v4038_v34 = vld [vmem:[%s4887_s17 + $0x5c] sm:$0x1] }
  0x5a   : > { %4558 = vmatprep.subr.bf16.mxu1 %v4737_v21  ;;  %v1724_v51 = vor.u32 %v1723_v43, %v1719_v37  ;;  %v1734_v63 = vrot.slane %v1732_v53, 4  ;;  %v1756_v1 = vshrl.u32 %v4033_v55, 16  ;;  %v1737_v3 = vrot.slane %v1735_v56, 5  ;;  %v4039_v38 = vld [vmem:[%s4887_s17 + $0x60] sm:$0xf] }
  0x5b   : > { %4542 = vmatprep.mubr.msk.bf16.mxu0 %vm432_vm0, %v4052_v49  ;;  %v1720_v61 = vsel %vm4935_vm5, %v1715_v50, %v1719_v37  ;;  %v1743_v4 = vrot.slane %v1741_v57, 5  ;;  %v1747_v5 = vrot.slane %v1745_v58, 4  ;;  %v1753_v6 = vrot.slane %v1751_v59, 5  ;;  %v4041_v48 = vld [vmem:[%s4887_s17 + $0x68] sm:$0x1]  ;;  %v4740_v50 = vld [vmem:[%s4887_s17 + $0x60] sm:$0xff]  }
  0x5c   : > { %4519 = vmatmul.mubr.msk.bf16.gmra.mxu1 %vm432_vm0, %v4732_v28  ;;  %v1725_v62 = vrot.slane %v1724_v51, 4  ;;  %4581 = vmatpush3.bf16.msra.mxu0 %v4738_v22  ;;  %v1758_v9 = vrot.slane %v1756_v1, 4  ;;  %v1759_v10 = vshll.u32 %v4033_v55, 16  ;;  %v1765_v11 = vshll.u32 %v4034_v60, 16  ;;  %v4070_v55 = vld [vmem:[%s4887_s17 + $0xc] sm:$0xe] }
  0x5d   : > { %4522 = vmatprep.mubr.msk.bf16.mxu1 %vm432_vm0, %v4735_v39  ;;  %4559 = vmatpush3.bf16.msra.mxu1 %v4737_v21  ;;  %v1738_v14 = vor.u32 %v1737_v3, %v1734_v63  ;;  %v1748_v15 = vor.u32 %v1747_v5, %v1743_v4  ;;  %v1769_v16 = vshrl.u32 %v4034_v60, 16  ;;  %v1775_v20 = vshll.u32 %v4035_v0, 16  ;;  %v4739_v21 = vld [vmem:[%s4887_s17 + $0x54] sm:$0xff]   ;;  %v4071_v60 = vld [vmem:[%s4887_s17 + $0x10] sm:$0xf] }
  0x5e   : > { %v1730_v8 = vsel %vm4935_vm5, %v1725_v62, %v1729_v46  ;;  %4560 = vmatprep.subr.bf16.mxu1 %v4741_v44  ;;  %4582 = vmatprep.subr.bf16.mxu0 %v4742_v7  ;;  %v1761_v18 = vrot.slane %v1759_v10, 5  ;;  %v1767_v19 = vrot.slane %v1765_v11, 5  ;;  %v1780_v36 = vshrl.u32 %v4036_v31, 16 }
  0x5f   : > { %v4053_v13 = vcombine.low %v1720_v61, %v1730_v8  ;;  %v1739_v22 = vrot.slane %v1738_v14, 4  ;;  %v1749_v23 = vrot.slane %v1748_v15, 4  ;;  %v1771_v24 = vrot.slane %v1769_v16, 4  ;;  %v4072_v61 = vld [vmem:[%s4887_s17 + $0x14] sm:$0x1] }
  0x60   : > { %v1762_v25 = vor.u32 %v1761_v18, %v1758_v9  ;;  %v1777_v26 = vrot.slane %v1775_v20, 5  ;;  %4583 = vmatpush3.bf16.msra.mxu0 %v4742_v7  ;;  %v1783_v37 = vshll.u32 %v4036_v31, 16  ;;  %v1789_v40 = vshll.u32 %v4037_v32, 16  ;;  %v4074_v8 = vld [vmem:[%s4887_s17 + $0x1c] sm:$0xf] }
  0x61   : > { %4543 = vmatmul.mubr.msk.bf16.gmra.mxu0 %vm432_vm0, %v4053_v13  ;;  %4561 = vmatpush3.bf16.msra.mxu1 %v4741_v44  ;;  %v1744_v28 = vsel %vm4935_vm5, %v1739_v22, %v1743_v4  ;;  %v1754_v29 = vsel %vm4935_vm5, %v1749_v23, %v1753_v6  ;;  %v1772_v30 = vor.u32 %v1771_v24, %v1767_v19  ;;  %v1793_v42 = vshrl.u32 %v4037_v32, 16  ;;  %v4040_v44 = vld [vmem:[%s4887_s17 + $0x64] sm:$0xf]  ;;  %v4075_v14 = vld [vmem:[%s4887_s17 + $0x20] sm:$0x1] }
  0x62   : > { %4602 = vmatprep.subr.bf16.mxu1 %v5173_v12  ;;  %4584 = vmatprep.subr.bf16.mxu0 %v4744_v17  ;;  %v4054_v33 = vcombine.low %v1744_v28, %v1754_v29  ;;  %v1763_v35 = vrot.slane %v1762_v25, 4  ;;  %v1799_v43 = vshll.u32 %v4038_v34, 16  ;;  %v1782_v46 = vrot.slane %v1780_v36, 4 }
  0x63   : > { %v1773_v39 = vrot.slane %v1772_v30, 4  ;;  %v1785_v47 = vrot.slane %v1783_v37, 5  ;;  %v1804_v7 = vshrl.u32 %v4039_v38, 16  ;;  %v1791_v51 = vrot.slane %v1789_v40, 5  ;;  %v4077_v37 = vld [vmem:[%s4887_s17 + $0x28] sm:$0xf] }
  0x64   : > { %4523 = vmatmul.mubr.msk.bf16.gmra.mxu1 %vm432_vm0, %v4736_v2  ;;  %4546 = vmatprep.mubr.msk.bf16.mxu0 %vm432_vm0, %v4054_v33  ;;  %v1768_v45 = vsel %vm4935_vm5, %v1763_v35, %v1767_v19  ;;  %v1795_v52 = vrot.slane %v1793_v42, 4  ;;  %v1801_v53 = vrot.slane %v1799_v43, 5  ;;  %v1807_v59 = vshll.u32 %v4039_v38, 16  ;;  %v4073_v2 = vld [vmem:[%s4887_s17 + $0x18] sm:$0xe]  ;;  %v4747_v40 = vld [vmem:[%s5817_s1 + $0xf0] sm:$0xff]  }
  0x65   : > { %4526 = vmatprep.mubr.msk.bf16.mxu1 %vm432_vm0, %v4739_v21  ;;  %4585 = vmatpush3.bf16.msra.mxu0 %v4744_v17  ;;  %v1778_v49 = vsel %vm4935_vm5, %v1773_v39, %v1777_v26  ;;  %v1786_v57 = vor.u32 %v1785_v47, %v1782_v46  ;;  %v1806_v58 = vrot.slane %v1804_v7, 4  ;;  %v1813_v63 = vshll.u32 %v4040_v44, 16  ;;  %v4745_v33 = vld [vmem:[%s4887_s17 + $0x18] sm:$0xff]   ;;  %v4076_v35 = vld [vmem:[%s4887_s17 + $0x24] sm:$0xe] }
  0x66   : > { %4626 = vmatprep.subr.bf16.mxu0 %v5184_v27  ;;  %v4055_v56 = vcombine.low %v1768_v45, %v1778_v49  ;;  %v1796_v62 = vor.u32 %v1795_v52, %v1791_v51  ;;  %v1817_v0 = vshrl.u32 %v4040_v44, 16  ;;  %v1823_v1 = vshll.u32 %v4041_v48, 16  ;;  %v4078_v38 = vld [vmem:[%s4887_s17 + $0x2c] sm:$0x1]  ;;  %v4079_v46 = vld [vmem:[%s4887_s17 + $0x30] sm:$0xe] }
  0x67   : > { %v1787_v3 = vrot.slane %v1786_v57, 4  ;;  %v1809_v4 = vrot.slane %v1807_v59, 5  ;;  %v4094_v5 = vrot.slane %v4070_v55, 9  ;;  %v2103_v6 = vrot.slane %v4071_v60, 5  ;;  %v4080_v47 = vld [vmem:[%s4887_s17 + $0x34] sm:$0xf] }
  0x68   : > { %v1797_v9 = vrot.slane %v1796_v62, 4  ;;  %v1815_v10 = vrot.slane %v1813_v63, 5  ;;  %v1819_v11 = vrot.slane %v1817_v0, 4  ;;  %v1825_v13 = vrot.slane %v1823_v1, 5  ;;  %v4081_v7 = vld [vmem:[%s4887_s17 + $0x38] sm:$0x1] }
  0x69   : > { %4547 = vmatmul.mubr.msk.bf16.gmra.mxu0 %vm432_vm0, %v4055_v56  ;;  %v1792_v15 = vsel %vm4935_vm5, %v1787_v3, %v1791_v51  ;;  %v1810_v16 = vor.u32 %v1809_v4, %v1806_v58  ;;  %v2104_v17 = vsel %vm4946_vm6, %v4094_v5, %v2103_v6  ;;  %v2105_v18 = vrot.slane %v2103_v6, 4  ;;  %v4751_v56 = vld [vmem:[%s5817_s1 + $0xe8] sm:$0xff]   ;;  %v4083_v62 = vld [vmem:[%s4887_s17 + $0x40] sm:$0xf]  ;;  %v4084_v63 = vld [vmem:[%s4887_s17 + $0x44] sm:$0x1] }
  0x6a   : > { %v1802_v19 = vsel %vm4935_vm5, %v1797_v9, %v1801_v53  ;;  %v1820_v20 = vor.u32 %v1819_v11, %v1815_v10  ;;  %v2106_v21 = vrot.slane %v4072_v61, 5  ;;  %v4095_v22 = vrot.slane %v4073_v2, 9  ;;  %v4082_v61 = vld [vmem:[%s4887_s17 + $0x3c] sm:$0xe]  ;;  %v4746_v0 = vld [vmem:[%s4887_s17 + $0x24] sm:$0xff]   ;;  %v4749_v5 = vld [vmem:[%s4887_s17 + $0x30] sm:$0xff]  }
  0x6b   : > { %v4056_v23 = vcombine.low %v1792_v15, %v1802_v19  ;;  %v1811_v24 = vrot.slane %v1810_v16, 4  ;;  %v2110_v25 = vrot.slane %v4074_v8, 5  ;;  %v2113_v26 = vrot.slane %v4075_v14, 5  ;;  %v4085_v3 = vld [vmem:[%s4887_s17 + $0x48] sm:$0xe]  ;;  %v4752_v15 = vld [vmem:[%s5817_s1 + $0x110] sm:$0xff]  }
  0x6c   : > { %4527 = vmatmul.mubr.msk.bf16.gmra.mxu1 %vm432_vm0, %v4740_v50  ;;  %v1821_v28 = vrot.slane %v1820_v20, 4  ;;  %v2107_v29 = vsel %vm4946_vm6, %v2105_v18, %v2106_v21  ;;  %v4096_v39 = vrot.slane %v4076_v35, 9  ;;  %v2117_v44 = vrot.slane %v4077_v37, 5  ;;  %v4086_v6 = vld [vmem:[%s4887_s17 + $0x4c] sm:$0xf]  ;;  %v4755_v18 = vld [vmem:[%s5817_s1 + $0xe0] sm:$0xff]  }
  0x6d   : > { %4550 = vmatprep.mubr.msk.bf16.mxu0 %vm432_vm0, %v4056_v23  ;;  %v1816_v30 = vsel %vm4935_vm5, %v1811_v24, %v1815_v10  ;;  %v4110_v31 = vcombine.low %v2104_v17, %v2107_v29  ;;  %v2111_v32 = vsel %vm4946_vm6, %v4095_v22, %v2110_v25  ;;  %v2112_v34 = vrot.slane %v2110_v25, 4  ;;  %v4087_v8 = vld [vmem:[%s4887_s17 + $0x50] sm:$0x1]  ;;  %v4088_v20 = vld [vmem:[%s4887_s17 + $0x54] sm:$0xe]  ;;  %v4750_v21 = vld [vmem:[%s4887_s17 + $0x3c] sm:$0xff]  }
  0x6e   : > { %v1826_v36 = vsel %vm4935_vm5, %v1821_v28, %v1825_v13  ;;  %v2120_v45 = vrot.slane %v4078_v38, 5  ;;  %v4097_v49 = vrot.slane %v4079_v46, 9  ;;  %v2124_v50 = vrot.slane %v4080_v47, 5  ;;  %v4089_v24 = vld [vmem:[%s4887_s17 + $0x58] sm:$0xf]  ;;  %v4753_v28 = vld [vmem:[%s4887_s17 + $0x48] sm:$0xff]  }
  0x6f   : > { %v4057_v42 = vcombine.low %v1816_v30, %v1826_v36  ;;  %4562 = vmatprep.mubr.msk.bf16.mxu1 %vm432_vm0, %v4110_v31  ;;  %v2114_v43 = vsel %vm4946_vm6, %v2112_v34, %v2113_v26  ;;  %v2118_v51 = vsel %vm4946_vm6, %v4096_v39, %v2117_v44  ;;  %v2119_v52 = vrot.slane %v2117_v44, 4  ;;  %v4090_v25 = vld [vmem:[%s4887_s17 + $0x5c] sm:$0x1]  ;;  %v4091_v31 = vld [vmem:[%s4887_s17 + $0x60] sm:$0xe] }
  0x70   : > { %v4111_v48 = vcombine.low %v2111_v32, %v2114_v43  ;;  %v2127_v53 = vrot.slane %v4081_v7, 5  ;;  %v2126_v55 = vrot.slane %v2124_v50, 4  ;;  %v2125_v58 = vsel %vm4946_vm6, %v4097_v49, %v2124_v50  ;;  %v4092_v32 = vld [vmem:[%s4887_s17 + $0x64] sm:$0xf]  ;;  %v4093_v34 = vld [vmem:[%s4887_s17 + $0x68] sm:$0x1] }
  0x71   : > { %4551 = vmatmul.mubr.msk.bf16.gmra.mxu0 %vm432_vm0, %v4057_v42  ;;  %v2121_v57 = vsel %vm4946_vm6, %v2119_v52, %v2120_v45  ;;  %v4098_v1 = vrot.slane %v4082_v61, 9  ;;  %v2134_v2 = vrot.slane %v4084_v63, 5  ;;  %v4099_v9 = vrot.slane %v4085_v3, 9  ;;  %v4759_v42 = vld [vmem:[%s5817_s1 + $0x100] sm:$0xff]   ;;  %v4176_v47 = vld [vmem:[%s4887_s17 + $0x18] sm:$0xf] }
  0x72   : > { %4586 = vmatprep.mubr.msk.bf16.mxu0 %vm432_vm0, %v4745_v33  ;;  %v4112_v59 = vcombine.low %v2118_v51, %v2121_v57  ;;  %v2128_v60 = vsel %vm4946_vm6, %v2126_v55, %v2127_v53  ;;  %v2138_v13 = vrot.slane %v4086_v6, 5  ;;  %v2141_v14 = vrot.slane %v4087_v8, 5  ;;  %v4178_v7 = vld [vmem:[%s4887_s17 + $0x20] sm:$0x1]  ;;  %v4179_v52 = vld [vmem:[%s4887_s17 + $0x24] sm:$0xf] }
  0x73   : > { %v4113_v4 = vcombine.low %v2125_v58, %v2128_v60  ;;  %v4100_v26 = vrot.slane %v4088_v20, 9  ;;  %v2145_v29 = vrot.slane %v4089_v24, 5  ;;  %v2148_v30 = vrot.slane %v4090_v25, 5  ;;  %v4754_v53 = vld [vmem:[%s4887_s17 + $0x54] sm:$0xff]   ;;  %v4180_v58 = vld [vmem:[%s4887_s17 + $0x28] sm:$0xf] }
  0x74   : > { %4563 = vmatmul.mubr.msk.bf16.vlgmr.msra.gmra.mxu1 %vm432_vm0, %v4111_v48  ;;  %v2140_v17 = vrot.slane %v2138_v13, 4  ;;  %v2139_v22 = vsel %vm4946_vm6, %v4099_v9, %v2138_v13  ;;  %v4101_v33 = vrot.slane %v4091_v31, 9  ;;  %v2152_v35 = vrot.slane %v4092_v32, 5  ;;  %v4177_v48 = vld [vmem:[%s4887_s17 + $0x1c] sm:$0xf]  ;;  %v4757_v3 = vld [vmem:[%s4887_s17 + $0x60] sm:$0xff]  }
  0x75   : > { %4603 = vmatpush3.bf16.msra.mxu1 %v5173_v12  ;;  %v2131_v12 = vrot.slane %v4083_v62, 5  ;;  %4566 = vmatprep.mubr.msk.bf16.mxu1 %vm432_vm0, %v4112_v59  ;;  %v2146_v37 = vsel %vm4946_vm6, %v4100_v26, %v2145_v29  ;;  %v2147_v38 = vrot.slane %v2145_v29, 4  ;;  %v2155_v39 = vrot.slane %v4093_v34, 5  ;;  %v4181_v59 = vld [vmem:[%s4887_s17 + $0x2c] sm:$0x1] }
  0x76   : > { %4604 = vmatprep.subr.bf16.mxu1 %v4747_v40  ;;  %v2142_v23 = vsel %vm4946_vm6, %v2140_v17, %v2141_v14  ;;  %v2153_v44 = vsel %vm4946_vm6, %v4101_v33, %v2152_v35  ;;  %v2670_v49 = vshrl.u32 %v4176_v47, 16  ;;  %v2673_v50 = vshll.u32 %v4176_v47, 16  ;;  %v4228_v9 = vld [vmem:[%s4887_s17 + $0x18] sm:$0xe]  ;;  %v4229_v14 = vld [vmem:[%s4887_s17 + $0x1c] sm:$0xf] }
  0x77   : > { %v2132_v10 = vsel %vm4946_vm6, %v4098_v1, %v2131_v12  ;;  %v2133_v11 = vrot.slane %v2131_v12, 4  ;;  %v4115_v36 = vcombine.low %v2139_v22, %v2142_v23  ;;  %v2149_v43 = vsel %vm4946_vm6, %v2147_v38, %v2148_v30  ;;  %v4231_v20 = vld [vmem:[%s4887_s17 + $0x24] sm:$0xe]  ;;  %v4232_v25 = vld [vmem:[%s4887_s17 + $0x28] sm:$0xf] }
  0x78   : > { %v4116_v45 = vcombine.low %v2146_v37, %v2149_v43  ;;  %v2679_v51 = vshll.u32 %v4177_v48, 16  ;;  %v2689_v57 = vshll.u32 %v4178_v7, 16  ;;  %v2672_v60 = vrot.slane %v2670_v49, 4  ;;  %v4182_v31 = vld [vmem:[%s4887_s17 + $0x30] sm:$0xf] }
  0x79   : > { %4605 = vmatpush3.bf16.msra.mxu1 %v4747_v40  ;;  %4587 = vmatmul.mubr.msk.bf16.vlgmr.msra.gmra.mxu0 %vm432_vm0, %v4746_v0  ;;  %v2135_v16 = vsel %vm4946_vm6, %v2133_v11, %v2134_v2  ;;  %v2154_v40 = vrot.slane %v2152_v35, 4  ;;  %v2675_v61 = vrot.slane %v2673_v50, 5  ;;  %v2694_v63 = vshrl.u32 %v4179_v52, 16 }
  0x7a   : > { %4606 = vmatprep.subr.bf16.mxu1 %v4751_v56  ;;  %4627 = vmatpush3.bf16.msra.mxu0 %v5184_v27  ;;  %v4114_v19 = vcombine.low %v2132_v10, %v2135_v16  ;;  %v4756_v27 = vld [vmem:[%s5817_s1 + $0x108] sm:$0xff]   ;;  %v2681_v62 = vrot.slane %v2679_v51, 5  ;;  %v2691_v1 = vrot.slane %v2689_v57, 5  ;;  %v2697_v12 = vshll.u32 %v4179_v52, 16  ;;  %v4185_v51 = vld [vmem:[%s4887_s17 + $0x3c] sm:$0xf] }
  0x7b   : > { %4590 = vmatprep.mubr.msk.bf16.mxu0 %vm432_vm0, %v4749_v5  ;;  %4628 = vmatprep.subr.bf16.mxu0 %v4752_v15  ;;  %v2156_v46 = vsel %vm4946_vm6, %v2154_v40, %v2155_v39  ;;  %v2703_v2 = vshll.u32 %v4180_v58, 16  ;;  %v2696_v5 = vrot.slane %v2694_v63, 4  ;;  %v2707_v6 = vshrl.u32 %v4180_v58, 16  ;;  %v4186_v52 = vld [vmem:[%s4887_s17 + $0x40] sm:$0xf] }
  0x7c   : > { %4567 = vmatmul.mubr.msk.bf16.gmra.mxu1 %vm432_vm0, %v4113_v4  ;;  %v4117_v55 = vcombine.low %v2153_v44, %v2156_v46  ;;  %v2676_v4 = vor.u32 %v2675_v61, %v2672_v60  ;;  %v2713_v8 = vshll.u32 %v4181_v59, 16  ;;  %v2699_v11 = vrot.slane %v2697_v12, 5  ;;  %v4184_v46 = vld [vmem:[%s4887_s17 + $0x38] sm:$0x1]  ;;  %v4187_v58 = vld [vmem:[%s4887_s17 + $0x44] sm:$0x1] }
  0x7d   : > { %4607 = vmatpush3.bf16.msra.mxu1 %v4751_v56  ;;  %4570 = vmatprep.mubr.msk.bf16.mxu1 %vm432_vm0, %v4114_v19  ;;  %v2683_v56 = vshrl.u32 %v4177_v48, 16  ;;  %v2705_v13 = vrot.slane %v2703_v2, 5  ;;  %v2709_v17 = vrot.slane %v2707_v6, 4  ;;  %v4252_v19 = vrot.slane %v4228_v9, 9  ;;  %v4234_v59 = vld [vmem:[%s4887_s17 + $0x30] sm:$0xe] }
  0x7e   : > { %4608 = vmatprep.subr.bf16.mxu1 %v4755_v18  ;;  %4629 = vmatpush3.bf16.msra.mxu0 %v4752_v15  ;;  %v4230_v15 = vld [vmem:[%s4887_s17 + $0x20] sm:$0x1]  ;;  %v2677_v16 = vrot.slane %v2676_v4, 4  ;;  %v2700_v22 = vor.u32 %v2699_v11, %v2696_v5  ;;  %v3137_v23 = vrot.slane %v4229_v14, 5  ;;  %v4253_v29 = vrot.slane %v4231_v20, 9 }
  0x7f   : > { %4630 = vmatprep.subr.bf16.mxu0 %v4756_v27  ;;  %v2685_v0 = vrot.slane %v2683_v56, 4  ;;  %v3140_v24 = vrot.slane %v4230_v15, 5  ;;  %v3144_v30 = vrot.slane %v4232_v25, 5  ;;  %v2718_v47 = vshrl.u32 %v4182_v31, 16  ;;  %v4236_v4 = vld [vmem:[%s4887_s17 + $0x38] sm:$0x1] }
  0x80   : > { %v2682_v26 = vsel %vm4935_vm5, %v2677_v16, %v2681_v62  ;;  %v2701_v34 = vrot.slane %v2700_v22, 4  ;;  %v3138_v33 = vsel %vm4946_vm6, %v4252_v19, %v3137_v23  ;;  %v3139_v35 = vrot.slane %v3137_v23, 4  ;;  %v4238_v16 = vld [vmem:[%s4887_s17 + $0x40] sm:$0xf] }
  0x81   : > { %4609 = vmatpush3.bf16.msra.mxu1 %v4755_v18  ;;  %4591 = vmatmul.mubr.msk.bf16.gmra.mxu0 %vm432_vm0, %v4750_v21  ;;  %v2686_v10 = vor.u32 %v2685_v0, %v2681_v62  ;;  %v2715_v18 = vrot.slane %v2713_v8, 5  ;;  %v5337_v39 = vsel %vm4946_vm6, %v4253_v29, %v3144_v30  ;;  %v3146_v40 = vrot.slane %v3144_v30, 4  ;;  %v4235_v0 = vld [vmem:[%s4887_s17 + $0x34] sm:$0xf]  ;;  %v4188_v30 = vld [vmem:[%s4887_s17 + $0x48] sm:$0xf] }
  0x82   : > { %4594 = vmatprep.mubr.msk.bf16.mxu0 %vm432_vm0, %v4753_v28  ;;  %4631 = vmatpush3.bf16.msra.mxu0 %v4756_v27  ;;  %v2710_v27 = vor.u32 %v2709_v17, %v2705_v13  ;;  %v4233_v28 = vld [vmem:[%s4887_s17 + $0x2c] sm:$0x1]  ;;  %v2706_v43 = vsel %vm4935_vm5, %v2701_v34, %v2705_v13  ;;  %v3141_v44 = vsel %vm4946_vm6, %v3139_v35, %v3140_v24  ;;  %v2721_v49 = vshll.u32 %v4182_v31, 16 }
  0x83   : > { %4632 = vmatprep.subr.bf16.mxu0 %v4759_v42  ;;  %v2687_v21 = vrot.slane %v2686_v10, 4  ;;  %v4268_v7 = vcombine.low %v3138_v33, %v3141_v44  ;;  %v2720_v56 = vrot.slane %v2718_v47, 4  ;;  %v2737_v63 = vshll.u32 %v4184_v46, 16  ;;  %v4237_v10 = vld [vmem:[%s4887_s17 + $0x3c] sm:$0xe] }
  0x84   : > { %4571 = vmatmul.mubr.msk.bf16.gmra.mxu1 %vm432_vm0, %v4115_v36  ;;  %v4183_v36 = vld [vmem:[%s4887_s17 + $0x34] sm:$0xf]  ;;  %v2711_v38 = vrot.slane %v2710_v27, 4  ;;  %v2723_v61 = vrot.slane %v2721_v49, 5  ;;  %v2742_v12 = vshrl.u32 %v4185_v51, 16  ;;  %v2745_v2 = vshll.u32 %v4185_v51, 16 }
  0x85   : > { %4574 = vmatprep.mubr.msk.bf16.mxu1 %vm432_vm0, %v4116_v45  ;;  %v2692_v32 = vsel %vm4935_vm5, %v2687_v21, %v2691_v1  ;;  %v3147_v45 = vrot.slane %v4233_v28, 5  ;;  %v2727_v50 = vshll.u32 %v4183_v36, 16  ;;  %v2731_v57 = vshrl.u32 %v4183_v36, 16  ;;  %v4239_v27 = vld [vmem:[%s4887_s17 + $0x44] sm:$0x1] }
  0x86   : > { %4633 = vmatpush3.bf16.msra.mxu0 %v4759_v42  ;;  %v4208_v37 = vcombine.low %v2682_v26, %v2692_v32  ;;  %v4758_v42 = vld [vmem:[%s4887_s17 + $0x6c] sm:$0xff]   ;;  %v2716_v48 = vsel %vm4935_vm5, %v2711_v38, %v2715_v18  ;;  %v2724_v5 = vor.u32 %v2723_v61, %v2720_v56  ;;  %v2739_v6 = vrot.slane %v2737_v63, 5  ;;  %v4191_v49 = vld [vmem:[%s4887_s17 + $0x54] sm:$0xf]  ;;  %v4193_v56 = vld [vmem:[%s4887_s17 + $0x5c] sm:$0x1] }
  0x87   : > { %v2729_v62 = vrot.slane %v2727_v50, 5  ;;  %v2733_v1 = vrot.slane %v2731_v57, 4  ;;  %v2755_v8 = vshrl.u32 %v4186_v52, 16  ;;  %v2761_v9 = vshll.u32 %v4187_v58, 16  ;;  %v4189_v35 = vld [vmem:[%s4887_s17 + $0x4c] sm:$0xf] }
  0x88   : > { %v2744_v13 = vrot.slane %v2742_v12, 4  ;;  %v2747_v14 = vrot.slane %v2745_v2, 5  ;;  %v2725_v17 = vrot.slane %v2724_v5, 4  ;;  %v4254_v20 = vrot.slane %v4234_v59, 9  ;;  %v4190_v44 = vld [vmem:[%s4887_s17 + $0x50] sm:$0x1] }
  0x89   : > { %4595 = vmatmul.mubr.msk.bf16.gmra.mxu0 %vm432_vm0, %v4754_v53  ;;  %v4209_v53 = vcombine.low %v2706_v43, %v2716_v48  ;;  %v2734_v11 = vor.u32 %v2733_v1, %v2729_v62  ;;  %v2757_v18 = vrot.slane %v2755_v8, 4  ;;  %v2763_v19 = vrot.slane %v2761_v9, 5  ;;  %v4192_v50 = vld [vmem:[%s4887_s17 + $0x58] sm:$0xf]  ;;  %v4240_v57 = vld [vmem:[%s4887_s17 + $0x48] sm:$0xe] }
  0x8a   : > { %4598 = vmatprep.mubr.msk.bf16.mxu0 %vm432_vm0, %v4757_v3  ;;  %v2751_v3 = vshll.u32 %v4186_v52, 16  ;;  %v2748_v22 = vor.u32 %v2747_v14, %v2744_v13  ;;  %v3151_v23 = vrot.slane %v4235_v0, 5  ;;  %v3154_v24 = vrot.slane %v4236_v4, 5  ;;  %v4242_v2 = vld [vmem:[%s4887_s17 + $0x50] sm:$0x1] }
  0x8b   : > { %v2735_v21 = vrot.slane %v2734_v11, 4  ;;  %v2730_v25 = vsel %vm4935_vm5, %v2725_v17, %v2729_v62  ;;  %v4255_v28 = vrot.slane %v4237_v10, 9  ;;  %v3158_v29 = vrot.slane %v4238_v16, 5  ;;  %v4241_v62 = vld [vmem:[%s4887_s17 + $0x4c] sm:$0xf] }
  0x8c   : > { %4575 = vmatmul.mubr.msk.bf16.gmra.mxu1 %vm432_vm0, %v4117_v55  ;;  %v3148_v55 = vsel %vm4946_vm6, %v3146_v40, %v3147_v45  ;;  %v2753_v15 = vrot.slane %v2751_v3, 5  ;;  %v2749_v32 = vrot.slane %v2748_v22, 4  ;;  %v3152_v34 = vsel %vm4946_vm6, %v4254_v20, %v3151_v23  ;;  %v4243_v8 = vld [vmem:[%s4887_s17 + $0x54] sm:$0xe]  ;;  %v4244_v14 = vld [vmem:[%s4887_s17 + $0x58] sm:$0xf] }
  0x8d   : > { %4610 = vmatprep.mubr.msk.bf16.mxu1 %vm432_vm0, %v4208_v37  ;;  %v4269_v60 = vcombine.low %v5337_v39, %v3148_v55  ;;  %v2740_v31 = vsel %vm4935_vm5, %v2735_v21, %v2739_v6  ;;  %v3153_v33 = vrot.slane %v3151_v23, 4  ;;  %v3159_v38 = vsel %vm4946_vm6, %v4255_v28, %v3158_v29  ;;  %v4194_v28 = vld [vmem:[%s4887_s17 + $0x60] sm:$0xf] }
  0x8e   : > { %v2758_v26 = vor.u32 %v2757_v18, %v2753_v15  ;;  %v4210_v36 = vcombine.low %v2730_v25, %v2740_v31  ;;  %v3160_v39 = vrot.slane %v3158_v29, 4  ;;  %v2754_v40 = vsel %vm4935_vm5, %v2749_v32, %v2753_v15  ;;  %v4245_v25 = vld [vmem:[%s4887_s17 + $0x5c] sm:$0x1] }
  0x8f   : > { %v3161_v43 = vrot.slane %v4239_v27, 5  ;;  %v2766_v45 = vshrl.u32 %v4188_v30, 16  ;;  %v2769_v48 = vshll.u32 %v4188_v30, 16  ;;  %v2779_v55 = vshrl.u32 %v4189_v35, 16 }
  0x90   : > { %v2759_v37 = vrot.slane %v2758_v26, 4  ;;  %v2785_v61 = vshll.u32 %v4190_v44, 16  ;;  %v2790_v0 = vshrl.u32 %v4191_v49, 16  ;;  %v2793_v1 = vshll.u32 %v4191_v49, 16 }
  0x91   : > { %4599 = vmatmul.mubr.msk.bf16.gmra.mxu0 %vm432_vm0, %v4758_v42  ;;  %v3155_v42 = vsel %vm4946_vm6, %v3153_v33, %v3154_v24  ;;  %v3162_v52 = vsel %vm4946_vm6, %v3160_v39, %v3161_v43  ;;  %v2771_v59 = vrot.slane %v2769_v48, 5  ;;  %v2781_v63 = vrot.slane %v2779_v55, 4  ;;  %v4197_v48 = vld [vmem:[%s4887_s17 + $0x6c] sm:$0xf]  ;;  %v4246_v55 = vld [vmem:[%s4887_s17 + $0x60] sm:$0xe] }
  0x92   : > { %4634 = vmatprep.mubr.msk.bf16.mxu0 %vm432_vm0, %v4268_v7  ;;  %v2764_v46 = vsel %vm4935_vm5, %v2759_v37, %v2763_v19  ;;  %v4270_v47 = vcombine.low %v3152_v34, %v3155_v42  ;;  %v2775_v7 = vshll.u32 %v4189_v35, 16  ;;  %v4271_v58 = vcombine.low %v3159_v38, %v3162_v52  ;;  %v4195_v34 = vld [vmem:[%s4887_s17 + $0x64] sm:$0xf]  ;;  %v4196_v42 = vld [vmem:[%s4887_s17 + $0x68] sm:$0x1] }
  0x93   : > { %v4211_v51 = vcombine.low %v2754_v40, %v2764_v46  ;;  %v2799_v12 = vshll.u32 %v4192_v50, 16  ;;  %v2787_v4 = vrot.slane %v2785_v61, 5  ;;  %v2803_v5 = vshrl.u32 %v4192_v50, 16 }
  0x94   : > { %4611 = vmatmul.mubr.msk.bf16.vlgmr.msra.gmra.mxu1 %vm432_vm0, %v4209_v53  ;;  %v2768_v53 = vrot.slane %v2766_v45, 4  ;;  %v2809_v6 = vshll.u32 %v4193_v56, 16  ;;  %v2792_v10 = vrot.slane %v2790_v0, 4  ;;  %v2795_v11 = vrot.slane %v2793_v1, 5  ;;  %v4248_v1 = vld [vmem:[%s4887_s17 + $0x68] sm:$0x1] }
  0x95   : > { %4614 = vmatprep.mubr.msk.bf16.mxu1 %vm432_vm0, %v4210_v36  ;;  %v2801_v13 = vrot.slane %v2799_v12, 5  ;;  %v2805_v16 = vrot.slane %v2803_v5, 4  ;;  %v4256_v18 = vrot.slane %v4240_v57, 9  ;;  %v3165_v21 = vrot.slane %v4241_v62, 5  ;;  %v4249_v5 = vld [vmem:[%s4887_s17 + $0x6c] sm:$0xe] }
  0x96   : > { %v2772_v3 = vor.u32 %v2771_v59, %v2768_v53  ;;  %v2811_v17 = vrot.slane %v2809_v6, 5  ;;  %v2796_v20 = vor.u32 %v2795_v11, %v2792_v10  ;;  %v3168_v22 = vrot.slane %v4242_v2, 5  ;;  %v4199_v53 = vld [vmem:[%s4887_s17 + $0x74] sm:$0x1]  ;;  %v4250_v11 = vld [vmem:[%s4887_s17 + $0x70] sm:$0xf] }
  0x97   : > { %v2806_v24 = vor.u32 %v2805_v16, %v2801_v13  ;;  %v4257_v26 = vrot.slane %v4243_v8, 9  ;;  %v3172_v27 = vrot.slane %v4244_v14, 5  ;;  %v3166_v31 = vsel %vm4946_vm6, %v4256_v18, %v3165_v21 }
  0x98   : > { %v2773_v15 = vrot.slane %v2772_v3, 4  ;;  %v2797_v30 = vrot.slane %v2796_v20, 4  ;;  %v3167_v32 = vrot.slane %v3165_v21, 4  ;;  %v3175_v40 = vrot.slane %v4245_v25, 5 }
  0x99   : > { %4635 = vmatmul.mubr.msk.bf16.vlgmr.msra.gmra.mxu0 %vm432_vm0, %v4269_v60  ;;  %v2777_v60 = vrot.slane %v2775_v7, 5  ;;  %v2807_v35 = vrot.slane %v2806_v24, 4  ;;  %v3173_v36 = vsel %vm4946_vm6, %v4257_v26, %v3172_v27  ;;  %v3174_v37 = vrot.slane %v3172_v27, 4  ;;  %v4198_v7 = vld [vmem:[%s4887_s17 + $0x70] sm:$0xf] }
  0x9a   : > { %4638 = vmatprep.mubr.msk.bf16.mxu0 %vm432_vm0, %v4270_v47  ;;  %v2802_v38 = vsel %vm4935_vm5, %v2797_v30, %v2801_v13  ;;  %v3169_v39 = vsel %vm4946_vm6, %v3167_v32, %v3168_v22  ;;  %v2814_v43 = vshrl.u32 %v4194_v28, 16  ;;  %v2817_v46 = vshll.u32 %v4194_v28, 16 }
  0x9b   : > { %v2782_v9 = vor.u32 %v2781_v63, %v2777_v60  ;;  %v2778_v23 = vsel %vm4935_vm5, %v2773_v15, %v2777_v60  ;;  %v2812_v44 = vsel %vm4935_vm5, %v2807_v35, %v2811_v17  ;;  %v4272_v45 = vcombine.low %v3166_v31, %v3169_v39  ;;  %v4247_v60 = vld [vmem:[%s4887_s17 + $0x64] sm:$0xf] }
  0x9c   : > { %4615 = vmatmul.mubr.msk.bf16.gmra.mxu1 %vm432_vm0, %v4211_v51  ;;  %v2823_v47 = vshll.u32 %v4195_v34, 16  ;;  %v4213_v49 = vcombine.low %v2802_v38, %v2812_v44  ;;  %v3176_v50 = vsel %vm4946_vm6, %v3174_v37, %v3175_v40  ;;  %v2816_v51 = vrot.slane %v2814_v43, 4 }
  0x9d   : > { %v2783_v19 = vrot.slane %v2782_v9, 4  ;;  %v2827_v52 = vshrl.u32 %v4195_v34, 16  ;;  %v4273_v56 = vcombine.low %v3173_v36, %v3176_v50  ;;  %v2819_v57 = vrot.slane %v2817_v46, 5 }
  0x9e   : > { %v2833_v59 = vshll.u32 %v4196_v42, 16  ;;  %v2838_v62 = vshrl.u32 %v4197_v48, 16  ;;  %v2841_v63 = vshll.u32 %v4197_v48, 16  ;;  %v2847_v0 = vshll.u32 %v4198_v7, 16 }
  0x9f   : > { %v2788_v29 = vsel %vm4935_vm5, %v2783_v19, %v2787_v4  ;;  %v2829_v61 = vrot.slane %v2827_v52, 4  ;;  %v2820_v12 = vor.u32 %v2819_v57, %v2816_v51  ;;  %v2851_v3 = vshrl.u32 %v4198_v7, 16 }
  0xa0   : > { %v4212_v33 = vcombine.low %v2778_v23, %v2788_v29  ;;  %v2835_v2 = vrot.slane %v2833_v59, 5  ;;  %v2857_v4 = vshll.u32 %v4199_v53, 16  ;;  %v2840_v8 = vrot.slane %v2838_v62, 4  ;;  %v4251_v23 = vld [vmem:[%s4887_s17 + $0x74] sm:$0x1]  ;;  %s5724_s17 = scalar_lea.vmem %s5822_s6, %s3884_s22 }
  0xa1   : > { %4639 = vmatmul.mubr.msk.bf16.gmra.mxu0 %vm432_vm0, %v4271_v58  ;;  %v2825_v58 = vrot.slane %v2823_v47, 5  ;;  %v2843_v9 = vrot.slane %v2841_v63, 5  ;;  %v2849_v10 = vrot.slane %v2847_v0, 5  ;;  %v2821_v13 = vrot.slane %v2820_v12, 4 }
  0xa2   : > { %4618 = vmatprep.mubr.msk.bf16.mxu1 %vm432_vm0, %v4212_v33  ;;  %4642 = vmatprep.mubr.msk.bf16.mxu0 %vm432_vm0, %v4272_v45  ;;  %v2853_v14 = vrot.slane %v2851_v3, 4  ;;  %v2859_v15 = vrot.slane %v2857_v4, 5  ;;  %v4258_v16 = vrot.slane %v4246_v55, 9  ;;  %v3179_v19 = vrot.slane %v4247_v60, 5 }
  0xa3   : > { %v2830_v6 = vor.u32 %v2829_v61, %v2825_v58  ;;  %v2844_v18 = vor.u32 %v2843_v9, %v2840_v8  ;;  %v3182_v20 = vrot.slane %v4248_v1, 5  ;;  %v2826_v21 = vsel %vm4935_vm5, %v2821_v13, %v2825_v58 }
  0xa4   : > { %4619 = vmatmul.mubr.msk.bf16.gmra.mxu1 %vm432_vm0, %v4213_v49  ;;  %v2854_v22 = vor.u32 %v2853_v14, %v2849_v10  ;;  %v4259_v24 = vrot.slane %v4249_v5, 9  ;;  %v3186_v25 = vrot.slane %v4250_v11, 5  ;;  %v3180_v28 = vsel %vm4946_vm6, %v4258_v16, %v3179_v19 }
  0xa5   : > { %v2831_v17 = vrot.slane %v2830_v6, 4  ;;  %v2845_v27 = vrot.slane %v2844_v18, 4  ;;  %v3181_v29 = vrot.slane %v3179_v19, 4  ;;  %v3189_v36 = vrot.slane %v4251_v23, 5 }
  0xa6   : > { %v2855_v31 = vrot.slane %v2854_v22, 4  ;;  %v3188_v32 = vrot.slane %v3186_v25, 4  ;;  %v3187_v35 = vsel %vm4946_vm6, %v4259_v24, %v3186_v25 }
  0xa7   : > { %v2836_v26 = vsel %vm4935_vm5, %v2831_v17, %v2835_v2  ;;  %v2850_v34 = vsel %vm4935_vm5, %v2845_v27, %v2849_v10  ;;  %v3183_v33 = vsel %vm4946_vm6, %v3181_v29, %v3182_v20 }
  0xa8   : > { %v4214_v30 = vcombine.low %v2826_v21, %v2836_v26  ;;  %v2860_v37 = vsel %vm4935_vm5, %v2855_v31, %v2859_v15  ;;  %v4274_v38 = vcombine.low %v3180_v28, %v3183_v33  ;;  %v3190_v40 = vsel %vm4946_vm6, %v3188_v32, %v3189_v36 }
  0xa9   : > { %4643 = vmatmul.mubr.msk.bf16.gmra.mxu0 %vm432_vm0, %v4273_v56  ;;  %v4215_v39 = vcombine.low %v2850_v34, %v2860_v37  ;;  %v4275_v42 = vcombine.low %v3187_v35, %v3190_v40 }
  0xaa   : > { %4622 = vmatprep.mubr.msk.bf16.mxu1 %vm432_vm0, %v4214_v30  ;;  %4646 = vmatprep.mubr.msk.bf16.mxu0 %vm432_vm0, %v4274_v38 }
  0xac   : > { %4623 = vmatmul.mubr.msk.bf16.gmra.mxu1 %vm432_vm0, %v4215_v39 }
  0xb1   : > { %4647 = vmatmul.mubr.msk.bf16.gmra.mxu0 %vm432_vm0, %v4275_v42 }
  0xdf   : > { %v4452_v43 = vpop.f32.mrf.mxu1  ;;  %v4444_v44 = vpop.f32.mrf.mxu0 }
  0xe0   : > { %565 = vst.msk [vmem:[#allocation2 + $0x50] sm:$0xff] %vm554_vm7, %v4452_v43  ;;  %557 = vst.msk [vmem:[#allocation2 + $0x10] sm:$0xff] %vm554_vm7, %v4444_v44 }
  0xe1   : > { %v523_v41 = vpop.f32.mrf.mxu1  ;;  %v491_v45 = vpop.f32.mrf.mxu0 }
  0xe2   : > { %563 = vst.msk [vmem:[#allocation2 + $0x40] sm:$0xff] %vm554_vm7, %v523_v41  ;;  %555 = vst.msk [vmem:[#allocation2] sm:$0xff] %vm554_vm7, %v491_v45 }
  0xe3   : > { %v4453_v54 = vpop.f32.mrf.mxu1  ;;  %v4445_v46 = vpop.f32.mrf.mxu0 }
  0xe4   : > { %566 = vst.msk [vmem:[#allocation2 + $0x58] sm:$0xff] %vm554_vm7, %v4453_v54  ;;  %558 = vst.msk [vmem:[#allocation2 + $0x18] sm:$0xff] %vm554_vm7, %v4445_v46 }
  0xe5   : > { %v526_v47 = vpop.f32.mrf.mxu1  ;;  %v494_v48 = vpop.f32.mrf.mxu0 }
  0xe6   : > { %564 = vst.msk [vmem:[#allocation2 + $0x48] sm:$0xff] %vm554_vm7, %v526_v47  ;;  %556 = vst.msk [vmem:[#allocation2 + $0x8] sm:$0xff] %vm554_vm7, %v494_v48 }
  0xe7   : > { %v4456_v7 = vpop.f32.mrf.mxu1  ;;  %v4448_v49 = vpop.f32.mrf.mxu0  ;;  %v970_v57 = vld [vmem:[#allocation2 + $0x10] sm:$0xff] }
  0xe8   : > { %569 = vst.msk [vmem:[#allocation2 + $0x70] sm:$0xff] %vm554_vm7, %v4456_v7  ;;  %561 = vst.msk [vmem:[#allocation2 + $0x30] sm:$0xff] %vm554_vm7, %v4448_v49  ;;  %v978_v39 = vld [vmem:[#allocation2 + $0x50] sm:$0xff] }
  0xe9   : > { %v539_v50 = vpop.f32.mrf.mxu1  ;;  %v507_v51 = vpop.f32.mrf.mxu0  ;;  %v968_v59 = vld [vmem:[#allocation2] sm:$0xff] }
  0xea   : > { %567 = vst.msk [vmem:[#allocation2 + $0x60] sm:$0xff] %vm554_vm7, %v539_v50  ;;  %559 = vst.msk [vmem:[#allocation2 + $0x20] sm:$0xff] %vm554_vm7, %v507_v51  ;;  %v976_v45 = vld [vmem:[#allocation2 + $0x40] sm:$0xff] }
  0xeb   : > { %v4457_v52 = vpop.f32.mrf.mxu1  ;;  %v4449_v53 = vpop.f32.mrf.mxu0  ;;  %v971_v1 = vld [vmem:[#allocation2 + $0x18] sm:$0xff] }
  0xec   : > { %570 = vst.msk [vmem:[#allocation2 + $0x78] sm:$0xff] %vm554_vm7, %v4457_v52  ;;  %562 = vst.msk [vmem:[#allocation2 + $0x38] sm:$0xff] %vm554_vm7, %v4449_v53  ;;  %v979_v49 = vld [vmem:[#allocation2 + $0x58] sm:$0xff] }
  0xed   : > { %v542_v55 = vpop.f32.mrf.mxu1  ;;  %v510_v56 = vpop.f32.mrf.mxu0  ;;  %v969_v4 = vld [vmem:[#allocation2 + $0x8] sm:$0xff] }
  0xee   : > { %568 = vst.msk [vmem:[#allocation2 + $0x68] sm:$0xff] %vm554_vm7, %v542_v55  ;;  %560 = vst.msk [vmem:[#allocation2 + $0x28] sm:$0xff] %vm554_vm7, %v510_v56  ;;  %v977_v53 = vld [vmem:[#allocation2 + $0x48] sm:$0xff] }
  0xef   : > { %v4468_v58 = vpop.f32.mrf.mxu1  ;;  %v4492_v62 = vpop.f32.mrf.mxu0  ;;  %v974_v10 = vld [vmem:[#allocation2 + $0x30] sm:$0xff] }
  0xf0   : > { %v986_v60 = vadd.f32 %v4468_v58, %v970_v57 }
  0xf1   : > { %v905_v61 = vpop.f32.mrf.mxu1  ;;  %v1238_v12 = vpop.f32.mrf.mxu0  ;;  %v972_v16 = vld [vmem:[#allocation2 + $0x20] sm:$0xff] }
  0xf2   : > { %1002 = vst.msk [vmem:[#allocation2 + $0x10] sm:$0xff] %vm554_vm7, %v986_v60  ;;  %v984_v63 = vadd.f32 %v968_v59, %v905_v61  ;;  %v982_v61 = vld [vmem:[#allocation2 + $0x70] sm:$0xff] }
  0xf3   : > { %v4469_v0 = vpop.f32.mrf.mxu1  ;;  %v4493_v6 = vpop.f32.mrf.mxu0  ;;  %v975_v26 = vld [vmem:[#allocation2 + $0x38] sm:$0xff] }
  0xf4   : > { %1000 = vst.msk [vmem:[#allocation2] sm:$0xff] %vm554_vm7, %v984_v63  ;;  %v987_v2 = vadd.f32 %v4469_v0, %v971_v1 }
  0xf5   : > { %v908_v3 = vpop.f32.mrf.mxu1  ;;  %v1241_v11 = vpop.f32.mrf.mxu0  ;;  %v973_v30 = vld [vmem:[#allocation2 + $0x28] sm:$0xff] }
  0xf6   : > { %1003 = vst.msk [vmem:[#allocation2 + $0x18] sm:$0xff] %vm554_vm7, %v987_v2  ;;  %v985_v5 = vadd.f32 %v969_v4, %v908_v3  ;;  %v980_v2 = vld [vmem:[#allocation2 + $0x60] sm:$0xff] }
  0xf7   : > { %v4472_v15 = vpop.f32.mrf.mxu1  ;;  %v4496_v21 = vpop.f32.mrf.mxu0 }
  0xf8   : > { %1001 = vst.msk [vmem:[#allocation2 + $0x8] sm:$0xff] %vm554_vm7, %v985_v5  ;;  %v990_v17 = vadd.f32 %v4472_v15, %v974_v10  ;;  %v981_v15 = vld [vmem:[#allocation2 + $0x68] sm:$0xff] }
  0xf9   : > { %v1303_v8 = vld [vmem:[#allocation2 + $0x10] sm:$0xff]  ;;  %v921_v20 = vpop.f32.mrf.mxu1  ;;  %v1254_v27 = vpop.f32.mrf.mxu0 }
  0xfa   : > { %v1319_v9 = vadd.f32 %v4492_v62, %v1303_v8  ;;  %1006 = vst.msk [vmem:[#allocation2 + $0x30] sm:$0xff] %vm554_vm7, %v990_v17  ;;  %v988_v22 = vadd.f32 %v972_v16, %v921_v20 }
  0xfb   : > { %v1301_v13 = vld [vmem:[#allocation2] sm:$0xff]  ;;  %v4473_v25 = vpop.f32.mrf.mxu1  ;;  %v4497_v31 = vpop.f32.mrf.mxu0 }
  0xfc   : > { %1335 = vst.msk [vmem:[#allocation2 + $0x10] sm:$0xff] %vm554_vm7, %v1319_v9  ;;  %v1317_v14 = vadd.f32 %v1301_v13, %v1238_v12  ;;  %1004 = vst.msk [vmem:[#allocation2 + $0x20] sm:$0xff] %vm554_vm7, %v988_v22  ;;  %v991_v28 = vadd.f32 %v4473_v25, %v975_v26  ;;  %v983_v9 = vld [vmem:[#allocation2 + $0x78] sm:$0xff] }
  0xfd   : > { %v1304_v18 = vld [vmem:[#allocation2 + $0x18] sm:$0xff]  ;;  %v924_v29 = vpop.f32.mrf.mxu1  ;;  %v1257_v33 = vpop.f32.mrf.mxu0 }
  0xfe   : > { %1333 = vst.msk [vmem:[#allocation2] sm:$0xff] %vm554_vm7, %v1317_v14  ;;  %v1320_v19 = vadd.f32 %v4493_v6, %v1304_v18  ;;  %1007 = vst.msk [vmem:[#allocation2 + $0x38] sm:$0xff] %vm554_vm7, %v991_v28  ;;  %v989_v32 = vadd.f32 %v973_v30, %v924_v29 }
  0xff   : > { %v1302_v23 = vld [vmem:[#allocation2 + $0x8] sm:$0xff] }
 0x100   : > { %1336 = vst.msk [vmem:[#allocation2 + $0x18] sm:$0xff] %vm554_vm7, %v1320_v19  ;;  %v1318_v24 = vadd.f32 %v1302_v23, %v1241_v11  ;;  %1005 = vst.msk [vmem:[#allocation2 + $0x28] sm:$0xff] %vm554_vm7, %v989_v32  ;;  %v4500_v43 = vpop.f32.mrf.mxu0 }
 0x101   : > { %v1307_v34 = vld [vmem:[#allocation2 + $0x30] sm:$0xff] }
 0x102   : > { %1334 = vst.msk [vmem:[#allocation2 + $0x8] sm:$0xff] %vm554_vm7, %v1318_v24  ;;  %v1323_v35 = vadd.f32 %v4496_v21, %v1307_v34  ;;  %v1270_v47 = vpop.f32.mrf.mxu0 }
 0x103   : > { %v1305_v36 = vld [vmem:[#allocation2 + $0x20] sm:$0xff]  ;;  %v4476_v38 = vpop.f32.mrf.mxu1  ;;  %v1565_v18 = vld [vmem:[#allocation2 + $0x10] sm:$0xff] }
 0x104   : > { %1339 = vst.msk [vmem:[#allocation2 + $0x30] sm:$0xff] %vm554_vm7, %v1323_v35  ;;  %v1321_v37 = vadd.f32 %v1305_v36, %v1254_v27  ;;  %v994_v40 = vadd.f32 %v4476_v38, %v978_v39  ;;  %v4501_v51 = vpop.f32.mrf.mxu0 }
 0x105   : > { %v1308_v42 = vld [vmem:[#allocation2 + $0x38] sm:$0xff]  ;;  %v937_v41 = vpop.f32.mrf.mxu1  ;;  %v1563_v23 = vld [vmem:[#allocation2] sm:$0xff] }
 0x106   : > { %1337 = vst.msk [vmem:[#allocation2 + $0x20] sm:$0xff] %vm554_vm7, %v1321_v37  ;;  %v1324_v44 = vadd.f32 %v4497_v31, %v1308_v42  ;;  %1010 = vst.msk [vmem:[#allocation2 + $0x50] sm:$0xff] %vm554_vm7, %v994_v40  ;;  %v992_v54 = vadd.f32 %v976_v45, %v937_v41  ;;  %v1273_v56 = vpop.f32.mrf.mxu0 }
 0x107   : > { %v1306_v46 = vld [vmem:[#allocation2 + $0x28] sm:$0xff]  ;;  %v4477_v7 = vpop.f32.mrf.mxu1  ;;  %v1566_v28 = vld [vmem:[#allocation2 + $0x18] sm:$0xff] }
 0x108   : > { %1340 = vst.msk [vmem:[#allocation2 + $0x38] sm:$0xff] %vm554_vm7, %v1324_v44  ;;  %v1322_v48 = vadd.f32 %v1306_v46, %v1257_v33  ;;  %1008 = vst.msk [vmem:[#allocation2 + $0x40] sm:$0xff] %vm554_vm7, %v992_v54  ;;  %v995_v50 = vadd.f32 %v4477_v7, %v979_v49 }
 0x109   : > { %v940_v52 = vpop.f32.mrf.mxu1  ;;  %v1564_v33 = vld [vmem:[#allocation2 + $0x8] sm:$0xff] }
 0x10a   : > { %1338 = vst.msk [vmem:[#allocation2 + $0x28] sm:$0xff] %vm554_vm7, %v1322_v48  ;;  %1011 = vst.msk [vmem:[#allocation2 + $0x58] sm:$0xff] %vm554_vm7, %v995_v50  ;;  %v993_v55 = vadd.f32 %v977_v53, %v940_v52 }
 0x10b   : > { %v1569_v40 = vld [vmem:[#allocation2 + $0x30] sm:$0xff] }
 0x10c   : > { %1009 = vst.msk [vmem:[#allocation2 + $0x48] sm:$0xff] %vm554_vm7, %v993_v55  ;;  %v4480_v60 = vpop.f32.mrf.mxu1  ;;  %v4504_v62 = vpop.f32.mrf.mxu0 }
 0x10d   : > { %v1311_v57 = vld [vmem:[#allocation2 + $0x50] sm:$0xff]  ;;  %v998_v0 = vadd.f32 %v4480_v60, %v982_v61  ;;  %v1567_v54 = vld [vmem:[#allocation2 + $0x20] sm:$0xff] }
 0x10e   : > { %v1327_v58 = vadd.f32 %v4500_v43, %v1311_v57  ;;  %v953_v12 = vpop.f32.mrf.mxu1  ;;  %v1286_v3 = vpop.f32.mrf.mxu0 }
 0x10f   : > { %v1309_v59 = vld [vmem:[#allocation2 + $0x40] sm:$0xff]  ;;  %1014 = vst.msk [vmem:[#allocation2 + $0x70] sm:$0xff] %vm554_vm7, %v998_v0  ;;  %v996_v5 = vadd.f32 %v980_v2, %v953_v12  ;;  %v1570_v50 = vld [vmem:[#allocation2 + $0x38] sm:$0xff] }
 0x110   : > { %1343 = vst.msk [vmem:[#allocation2 + $0x50] sm:$0xff] %vm554_vm7, %v1327_v58  ;;  %v1325_v63 = vadd.f32 %v1309_v59, %v1270_v47  ;;  %v4481_v8 = vpop.f32.mrf.mxu1  ;;  %v4505_v10 = vpop.f32.mrf.mxu0 }
 0x111   : > { %v1312_v1 = vld [vmem:[#allocation2 + $0x58] sm:$0xff]  ;;  %1012 = vst.msk [vmem:[#allocation2 + $0x60] sm:$0xff] %vm554_vm7, %v996_v5  ;;  %v999_v13 = vadd.f32 %v4481_v8, %v983_v9  ;;  %v1568_v57 = vld [vmem:[#allocation2 + $0x28] sm:$0xff] }
 0x112   : > { %1341 = vst.msk [vmem:[#allocation2 + $0x40] sm:$0xff] %vm554_vm7, %v1325_v63  ;;  %v1328_v4 = vadd.f32 %v4501_v51, %v1312_v1  ;;  %v956_v14 = vpop.f32.mrf.mxu1  ;;  %v1289_v19 = vpop.f32.mrf.mxu0 }
 0x113   : > { %v1310_v6 = vld [vmem:[#allocation2 + $0x48] sm:$0xff]  ;;  %1015 = vst.msk [vmem:[#allocation2 + $0x78] sm:$0xff] %vm554_vm7, %v999_v13  ;;  %v997_v16 = vadd.f32 %v981_v15, %v956_v14 }
 0x114   : > { %1344 = vst.msk [vmem:[#allocation2 + $0x58] sm:$0xff] %vm554_vm7, %v1328_v4  ;;  %v1326_v11 = vadd.f32 %v1310_v6, %v1273_v56  ;;  %v4516_v17 = vpop.f32.mrf.mxu1 }
 0x115   : > { %1013 = vst.msk [vmem:[#allocation2 + $0x68] sm:$0xff] %vm554_vm7, %v997_v16  ;;  %v1581_v20 = vadd.f32 %v4516_v17, %v1565_v18 }
 0x116   : > { %1342 = vst.msk [vmem:[#allocation2 + $0x48] sm:$0xff] %vm554_vm7, %v1326_v11  ;;  %v1315_v21 = vld [vmem:[#allocation2 + $0x70] sm:$0xff]  ;;  %v1500_v22 = vpop.f32.mrf.mxu1 }
 0x117   : > { %v1331_v24 = vadd.f32 %v4504_v62, %v1315_v21  ;;  %1597 = vst.msk [vmem:[#allocation2 + $0x10] sm:$0xff] %vm554_vm7, %v1581_v20  ;;  %v1579_v25 = vadd.f32 %v1563_v23, %v1500_v22  ;;  %v4540_v29 = vpop.f32.mrf.mxu0  ;;  %v1573_v63 = vld [vmem:[#allocation2 + $0x50] sm:$0xff] }
 0x118   : > { %v1313_v26 = vld [vmem:[#allocation2 + $0x60] sm:$0xff]  ;;  %v4517_v27 = vpop.f32.mrf.mxu1 }
 0x119   : > { %1347 = vst.msk [vmem:[#allocation2 + $0x70] sm:$0xff] %vm554_vm7, %v1331_v24  ;;  %v1329_v30 = vadd.f32 %v1313_v26, %v1286_v3  ;;  %1595 = vst.msk [vmem:[#allocation2] sm:$0xff] %vm554_vm7, %v1579_v25  ;;  %v1582_v31 = vadd.f32 %v4517_v27, %v1566_v28  ;;  %v1942_v35 = vpop.f32.mrf.mxu0  ;;  %v1571_v4 = vld [vmem:[#allocation2 + $0x40] sm:$0xff] }
 0x11a   : > { %v1316_v32 = vld [vmem:[#allocation2 + $0x78] sm:$0xff]  ;;  %v1503_v34 = vpop.f32.mrf.mxu1 }
 0x11b   : > { %1345 = vst.msk [vmem:[#allocation2 + $0x60] sm:$0xff] %vm554_vm7, %v1329_v30  ;;  %v1332_v36 = vadd.f32 %v4505_v10, %v1316_v32  ;;  %1598 = vst.msk [vmem:[#allocation2 + $0x18] sm:$0xff] %vm554_vm7, %v1582_v31  ;;  %v1580_v37 = vadd.f32 %v1564_v33, %v1503_v34  ;;  %v4541_v42 = vpop.f32.mrf.mxu0  ;;  %v1574_v11 = vld [vmem:[#allocation2 + $0x58] sm:$0xff] }
 0x11c   : > { %v1314_v38 = vld [vmem:[#allocation2 + $0x68] sm:$0xff]  ;;  %v4520_v39 = vpop.f32.mrf.mxu1 }
 0x11d   : > { %1348 = vst.msk [vmem:[#allocation2 + $0x78] sm:$0xff] %vm554_vm7, %v1332_v36  ;;  %v1330_v43 = vadd.f32 %v1314_v38, %v1289_v19  ;;  %1596 = vst.msk [vmem:[#allocation2 + $0x8] sm:$0xff] %vm554_vm7, %v1580_v37  ;;  %v1585_v44 = vadd.f32 %v4520_v39, %v1569_v40  ;;  %v1945_v46 = vpop.f32.mrf.mxu0  ;;  %v1572_v17 = vld [vmem:[#allocation2 + $0x48] sm:$0xff] }
 0x11e   : > { %v2007_v41 = vld [vmem:[#allocation2 + $0x10] sm:$0xff]  ;;  %v1516_v45 = vpop.f32.mrf.mxu1 }
 0x11f   : > { %1346 = vst.msk [vmem:[#allocation2 + $0x68] sm:$0xff] %vm554_vm7, %v1330_v43  ;;  %v2023_v47 = vadd.f32 %v4540_v29, %v2007_v41  ;;  %1601 = vst.msk [vmem:[#allocation2 + $0x30] sm:$0xff] %vm554_vm7, %v1585_v44  ;;  %v1583_v48 = vadd.f32 %v1567_v54, %v1516_v45 }
 0x120   : > { %v2005_v7 = vld [vmem:[#allocation2] sm:$0xff]  ;;  %v4521_v49 = vpop.f32.mrf.mxu1  ;;  %v1577_v23 = vld [vmem:[#allocation2 + $0x70] sm:$0xff] }
 0x121   : > { %2039 = vst.msk [vmem:[#allocation2 + $0x10] sm:$0xff] %vm554_vm7, %v2023_v47  ;;  %v2021_v51 = vadd.f32 %v2005_v7, %v1942_v35  ;;  %1599 = vst.msk [vmem:[#allocation2 + $0x20] sm:$0xff] %vm554_vm7, %v1583_v48  ;;  %v1586_v52 = vadd.f32 %v4521_v49, %v1570_v50  ;;  %v4544_v55 = vpop.f32.mrf.mxu0 }
 0x122   : > { %v2008_v53 = vld [vmem:[#allocation2 + $0x18] sm:$0xff]  ;;  %v1519_v56 = vpop.f32.mrf.mxu1  ;;  %v1575_v29 = vld [vmem:[#allocation2 + $0x60] sm:$0xff] }
 0x123   : > { %2037 = vst.msk [vmem:[#allocation2] sm:$0xff] %vm554_vm7, %v2021_v51  ;;  %v2024_v58 = vadd.f32 %v4541_v42, %v2008_v53  ;;  %1602 = vst.msk [vmem:[#allocation2 + $0x38] sm:$0xff] %vm554_vm7, %v1586_v52  ;;  %v1584_v59 = vadd.f32 %v1568_v57, %v1519_v56  ;;  %v1958_v61 = vpop.f32.mrf.mxu0 }
 0x124   : > { %v2006_v60 = vld [vmem:[#allocation2 + $0x8] sm:$0xff]  ;;  %v4524_v62 = vpop.f32.mrf.mxu1  ;;  %v1578_v35 = vld [vmem:[#allocation2 + $0x78] sm:$0xff] }
 0x125   : > { %2040 = vst.msk [vmem:[#allocation2 + $0x18] sm:$0xff] %vm554_vm7, %v2024_v58  ;;  %v2022_v0 = vadd.f32 %v2006_v60, %v1945_v46  ;;  %1600 = vst.msk [vmem:[#allocation2 + $0x28] sm:$0xff] %vm554_vm7, %v1584_v59  ;;  %v1589_v1 = vadd.f32 %v4524_v62, %v1573_v63  ;;  %v4545_v2 = vpop.f32.mrf.mxu0 }
 0x126   : > { %v2011_v12 = vld [vmem:[#allocation2 + $0x30] sm:$0xff]  ;;  %v1532_v3 = vpop.f32.mrf.mxu1  ;;  %v1576_v42 = vld [vmem:[#allocation2 + $0x68] sm:$0xff] }
 0x127   : > { %2038 = vst.msk [vmem:[#allocation2 + $0x8] sm:$0xff] %vm554_vm7, %v2022_v0  ;;  %v2027_v5 = vadd.f32 %v4544_v55, %v2011_v12  ;;  %1605 = vst.msk [vmem:[#allocation2 + $0x50] sm:$0xff] %vm554_vm7, %v1589_v1  ;;  %v1587_v6 = vadd.f32 %v1571_v4, %v1532_v3  ;;  %v1961_v9 = vpop.f32.mrf.mxu0 }
 0x128   : > { %v2009_v8 = vld [vmem:[#allocation2 + $0x20] sm:$0xff]  ;;  %v4525_v10 = vpop.f32.mrf.mxu1  ;;  %v2337_v48 = vld [vmem:[#allocation2 + $0x10] sm:$0xff] }
 0x129   : > { %2043 = vst.msk [vmem:[#allocation2 + $0x30] sm:$0xff] %vm554_vm7, %v2027_v5  ;;  %v2025_v13 = vadd.f32 %v2009_v8, %v1958_v61  ;;  %1603 = vst.msk [vmem:[#allocation2 + $0x40] sm:$0xff] %vm554_vm7, %v1587_v6  ;;  %v1590_v14 = vadd.f32 %v4525_v10, %v1574_v11  ;;  %v4548_v19 = vpop.f32.mrf.mxu0 }
 0x12a   : > { %v2012_v15 = vld [vmem:[#allocation2 + $0x38] sm:$0xff]  ;;  %v1535_v16 = vpop.f32.mrf.mxu1  ;;  %v2335_v53 = vld [vmem:[#allocation2] sm:$0xff] }
 0x12b   : > { %2041 = vst.msk [vmem:[#allocation2 + $0x20] sm:$0xff] %vm554_vm7, %v2025_v13  ;;  %v2028_v18 = vadd.f32 %v4545_v2, %v2012_v15  ;;  %1606 = vst.msk [vmem:[#allocation2 + $0x58] sm:$0xff] %vm554_vm7, %v1590_v14  ;;  %v1588_v20 = vadd.f32 %v1572_v17, %v1535_v16  ;;  %v1974_v25 = vpop.f32.mrf.mxu0 }
 0x12c   : > { %v2010_v21 = vld [vmem:[#allocation2 + $0x28] sm:$0xff]  ;;  %v4528_v22 = vpop.f32.mrf.mxu1  ;;  %v2338_v60 = vld [vmem:[#allocation2 + $0x18] sm:$0xff] }
 0x12d   : > { %2044 = vst.msk [vmem:[#allocation2 + $0x38] sm:$0xff] %vm554_vm7, %v2028_v18  ;;  %v2026_v24 = vadd.f32 %v2010_v21, %v1961_v9  ;;  %1604 = vst.msk [vmem:[#allocation2 + $0x48] sm:$0xff] %vm554_vm7, %v1588_v20  ;;  %v1593_v26 = vadd.f32 %v4528_v22, %v1577_v23  ;;  %v4549_v31 = vpop.f32.mrf.mxu0 }
 0x12e   : > { %v2015_v27 = vld [vmem:[#allocation2 + $0x50] sm:$0xff]  ;;  %v1548_v28 = vpop.f32.mrf.mxu1  ;;  %v2336_v12 = vld [vmem:[#allocation2 + $0x8] sm:$0xff] }
 0x12f   : > { %2042 = vst.msk [vmem:[#allocation2 + $0x28] sm:$0xff] %vm554_vm7, %v2026_v24  ;;  %v2031_v30 = vadd.f32 %v4548_v19, %v2015_v27  ;;  %1609 = vst.msk [vmem:[#allocation2 + $0x70] sm:$0xff] %vm554_vm7, %v1593_v26  ;;  %v1591_v32 = vadd.f32 %v1575_v29, %v1548_v28  ;;  %v1977_v37 = vpop.f32.mrf.mxu0 }
 0x130   : > { %v2013_v34 = vld [vmem:[#allocation2 + $0x40] sm:$0xff]  ;;  %v4529_v33 = vpop.f32.mrf.mxu1  ;;  %v2341_v6 = vld [vmem:[#allocation2 + $0x30] sm:$0xff] }
 0x131   : > { %2047 = vst.msk [vmem:[#allocation2 + $0x50] sm:$0xff] %vm554_vm7, %v2031_v30  ;;  %v2029_v36 = vadd.f32 %v2013_v34, %v1974_v25  ;;  %1607 = vst.msk [vmem:[#allocation2 + $0x60] sm:$0xff] %vm554_vm7, %v1591_v32  ;;  %v1594_v38 = vadd.f32 %v4529_v33, %v1578_v35  ;;  %v4552_v54 = vpop.f32.mrf.mxu0 }
 0x132   : > { %v2016_v39 = vld [vmem:[#allocation2 + $0x58] sm:$0xff]  ;;  %v1551_v40 = vpop.f32.mrf.mxu1  ;;  %v2339_v13 = vld [vmem:[#allocation2 + $0x20] sm:$0xff] }
 0x133   : > { %2045 = vst.msk [vmem:[#allocation2 + $0x40] sm:$0xff] %vm554_vm7, %v2029_v36  ;;  %v2032_v43 = vadd.f32 %v4549_v31, %v2016_v39  ;;  %1610 = vst.msk [vmem:[#allocation2 + $0x78] sm:$0xff] %vm554_vm7, %v1594_v38  ;;  %v1592_v44 = vadd.f32 %v1576_v42, %v1551_v40  ;;  %v1990_v49 = vpop.f32.mrf.mxu0 }
 0x134   : > { %v2014_v41 = vld [vmem:[#allocation2 + $0x48] sm:$0xff]  ;;  %v4564_v47 = vpop.f32.mrf.mxu1  ;;  %v2342_v19 = vld [vmem:[#allocation2 + $0x38] sm:$0xff] }
 0x135   : > { %2048 = vst.msk [vmem:[#allocation2 + $0x58] sm:$0xff] %vm554_vm7, %v2032_v43  ;;  %v2030_v45 = vadd.f32 %v2014_v41, %v1977_v37  ;;  %1608 = vst.msk [vmem:[#allocation2 + $0x68] sm:$0xff] %vm554_vm7, %v1592_v44  ;;  %v2353_v50 = vadd.f32 %v4564_v47, %v2337_v48  ;;  %v4553_v56 = vpop.f32.mrf.mxu0 }
 0x136   : > { %v2019_v46 = vld [vmem:[#allocation2 + $0x70] sm:$0xff]  ;;  %v2272_v52 = vpop.f32.mrf.mxu1  ;;  %v2340_v25 = vld [vmem:[#allocation2 + $0x28] sm:$0xff] }
 0x137   : > { %2046 = vst.msk [vmem:[#allocation2 + $0x48] sm:$0xff] %vm554_vm7, %v2030_v45  ;;  %v2035_v7 = vadd.f32 %v4552_v54, %v2019_v46  ;;  %2369 = vst.msk [vmem:[#allocation2 + $0x10] sm:$0xff] %vm554_vm7, %v2353_v50  ;;  %v2351_v57 = vadd.f32 %v2335_v53, %v2272_v52  ;;  %v1993_v62 = vpop.f32.mrf.mxu0 }
 0x138   : > { %v2017_v51 = vld [vmem:[#allocation2 + $0x60] sm:$0xff]  ;;  %v4565_v59 = vpop.f32.mrf.mxu1  ;;  %v2345_v31 = vld [vmem:[#allocation2 + $0x50] sm:$0xff] }
 0x139   : > { %2051 = vst.msk [vmem:[#allocation2 + $0x70] sm:$0xff] %vm554_vm7, %v2035_v7  ;;  %v2033_v55 = vadd.f32 %v2017_v51, %v1990_v49  ;;  %2367 = vst.msk [vmem:[#allocation2] sm:$0xff] %vm554_vm7, %v2351_v57  ;;  %v2354_v63 = vadd.f32 %v4565_v59, %v2338_v60  ;;  %v4588_v3 = vpop.f32.mrf.mxu0 }
 0x13a   : > { %v2020_v58 = vld [vmem:[#allocation2 + $0x78] sm:$0xff]  ;;  %v2275_v1 = vpop.f32.mrf.mxu1  ;;  %v2343_v37 = vld [vmem:[#allocation2 + $0x40] sm:$0xff] }
 0x13b   : > { %2049 = vst.msk [vmem:[#allocation2 + $0x60] sm:$0xff] %vm554_vm7, %v2033_v55  ;;  %v2036_v61 = vadd.f32 %v4553_v56, %v2020_v58  ;;  %2370 = vst.msk [vmem:[#allocation2 + $0x18] sm:$0xff] %vm554_vm7, %v2354_v63  ;;  %v2352_v4 = vadd.f32 %v2336_v12, %v2275_v1  ;;  %v2534_v8 = vpop.f32.mrf.mxu0 }
 0x13c   : > { %v2018_v0 = vld [vmem:[#allocation2 + $0x68] sm:$0xff]  ;;  %v4568_v5 = vpop.f32.mrf.mxu1  ;;  %v2346_v44 = vld [vmem:[#allocation2 + $0x58] sm:$0xff] }
 0x13d   : > { %2052 = vst.msk [vmem:[#allocation2 + $0x78] sm:$0xff] %vm554_vm7, %v2036_v61  ;;  %v2034_v2 = vadd.f32 %v2018_v0, %v1993_v62  ;;  %2368 = vst.msk [vmem:[#allocation2 + $0x8] sm:$0xff] %vm554_vm7, %v2352_v4  ;;  %v2357_v9 = vadd.f32 %v4568_v5, %v2341_v6  ;;  %v4589_v15 = vpop.f32.mrf.mxu0 }
 0x13e   : > { %v2599_v10 = vld [vmem:[#allocation2 + $0x10] sm:$0xff]  ;;  %v2288_v11 = vpop.f32.mrf.mxu1  ;;  %v2344_v48 = vld [vmem:[#allocation2 + $0x48] sm:$0xff] }
 0x13f   : > { %2050 = vst.msk [vmem:[#allocation2 + $0x68] sm:$0xff] %vm554_vm7, %v2034_v2  ;;  %v2615_v14 = vadd.f32 %v4588_v3, %v2599_v10  ;;  %2373 = vst.msk [vmem:[#allocation2 + $0x30] sm:$0xff] %vm554_vm7, %v2357_v9  ;;  %v2355_v16 = vadd.f32 %v2339_v13, %v2288_v11  ;;  %v2537_v21 = vpop.f32.mrf.mxu0 }
 0x140   : > { %v2597_v17 = vld [vmem:[#allocation2] sm:$0xff]  ;;  %v4569_v18 = vpop.f32.mrf.mxu1  ;;  %v2349_v53 = vld [vmem:[#allocation2 + $0x70] sm:$0xff] }
 0x141   : > { %2631 = vst.msk [vmem:[#allocation2 + $0x10] sm:$0xff] %vm554_vm7, %v2615_v14  ;;  %v2613_v20 = vadd.f32 %v2597_v17, %v2534_v8  ;;  %2371 = vst.msk [vmem:[#allocation2 + $0x20] sm:$0xff] %vm554_vm7, %v2355_v16  ;;  %v2358_v22 = vadd.f32 %v4569_v18, %v2342_v19  ;;  %v4592_v27 = vpop.f32.mrf.mxu0 }
 0x142   : > { %v2600_v23 = vld [vmem:[#allocation2 + $0x18] sm:$0xff]  ;;  %v2291_v24 = vpop.f32.mrf.mxu1  ;;  %v2347_v60 = vld [vmem:[#allocation2 + $0x60] sm:$0xff] }
 0x143   : > { %2629 = vst.msk [vmem:[#allocation2] sm:$0xff] %vm554_vm7, %v2613_v20  ;;  %v2616_v26 = vadd.f32 %v4589_v15, %v2600_v23  ;;  %2374 = vst.msk [vmem:[#allocation2 + $0x38] sm:$0xff] %vm554_vm7, %v2358_v22  ;;  %v2356_v28 = vadd.f32 %v2340_v25, %v2291_v24  ;;  %v2550_v34 = vpop.f32.mrf.mxu0 }
 0x144   : > { %v2598_v29 = vld [vmem:[#allocation2 + $0x8] sm:$0xff]  ;;  %v4572_v30 = vpop.f32.mrf.mxu1  ;;  %v2350_v12 = vld [vmem:[#allocation2 + $0x78] sm:$0xff] }
 0x145   : > { %2632 = vst.msk [vmem:[#allocation2 + $0x18] sm:$0xff] %vm554_vm7, %v2616_v26  ;;  %v2614_v32 = vadd.f32 %v2598_v29, %v2537_v21  ;;  %2372 = vst.msk [vmem:[#allocation2 + $0x28] sm:$0xff] %vm554_vm7, %v2356_v28  ;;  %v2361_v33 = vadd.f32 %v4572_v30, %v2345_v31  ;;  %v4593_v39 = vpop.f32.mrf.mxu0 }
 0x146   : > { %v2603_v35 = vld [vmem:[#allocation2 + $0x30] sm:$0xff]  ;;  %v2304_v36 = vpop.f32.mrf.mxu1  ;;  %v2348_v8 = vld [vmem:[#allocation2 + $0x68] sm:$0xff] }
 0x147   : > { %2630 = vst.msk [vmem:[#allocation2 + $0x8] sm:$0xff] %vm554_vm7, %v2614_v32  ;;  %v2619_v38 = vadd.f32 %v4592_v27, %v2603_v35  ;;  %2377 = vst.msk [vmem:[#allocation2 + $0x50] sm:$0xff] %vm554_vm7, %v2361_v33  ;;  %v2359_v40 = vadd.f32 %v2343_v37, %v2304_v36  ;;  %v2553_v45 = vpop.f32.mrf.mxu0 }
 0x148   : > { %v2601_v42 = vld [vmem:[#allocation2 + $0x20] sm:$0xff]  ;;  %v4573_v43 = vpop.f32.mrf.mxu1  ;;  %v3041_v15 = vld [vmem:[#allocation2 + $0x10] sm:$0xff] }
 0x149   : > { %2635 = vst.msk [vmem:[#allocation2 + $0x30] sm:$0xff] %vm554_vm7, %v2619_v38  ;;  %v2617_v41 = vadd.f32 %v2601_v42, %v2550_v34  ;;  %2375 = vst.msk [vmem:[#allocation2 + $0x40] sm:$0xff] %vm554_vm7, %v2359_v40  ;;  %v2362_v54 = vadd.f32 %v4573_v43, %v2346_v44  ;;  %v4596_v49 = vpop.f32.mrf.mxu0 }
 0x14a   : > { %v2604_v46 = vld [vmem:[#allocation2 + $0x38] sm:$0xff]  ;;  %v2307_v47 = vpop.f32.mrf.mxu1  ;;  %v3039_v21 = vld [vmem:[#allocation2] sm:$0xff] }
 0x14b   : > { %2633 = vst.msk [vmem:[#allocation2 + $0x20] sm:$0xff] %vm554_vm7, %v2617_v41  ;;  %v2620_v7 = vadd.f32 %v4593_v39, %v2604_v46  ;;  %2378 = vst.msk [vmem:[#allocation2 + $0x58] sm:$0xff] %vm554_vm7, %v2362_v54  ;;  %v2360_v50 = vadd.f32 %v2344_v48, %v2307_v47  ;;  %v2566_v56 = vpop.f32.mrf.mxu0 }
 0x14c   : > { %v2602_v51 = vld [vmem:[#allocation2 + $0x28] sm:$0xff]  ;;  %v4576_v52 = vpop.f32.mrf.mxu1  ;;  %v3042_v27 = vld [vmem:[#allocation2 + $0x18] sm:$0xff] }
 0x14d   : > { %2636 = vst.msk [vmem:[#allocation2 + $0x38] sm:$0xff] %vm554_vm7, %v2620_v7  ;;  %v2618_v55 = vadd.f32 %v2602_v51, %v2553_v45  ;;  %2376 = vst.msk [vmem:[#allocation2 + $0x48] sm:$0xff] %vm554_vm7, %v2360_v50  ;;  %v2365_v57 = vadd.f32 %v4576_v52, %v2349_v53  ;;  %v4597_v62 = vpop.f32.mrf.mxu0 }
 0x14e   : > { %v2607_v58 = vld [vmem:[#allocation2 + $0x50] sm:$0xff]  ;;  %v2320_v59 = vpop.f32.mrf.mxu1  ;;  %v3040_v34 = vld [vmem:[#allocation2 + $0x8] sm:$0xff] }
 0x14f   : > { %2634 = vst.msk [vmem:[#allocation2 + $0x28] sm:$0xff] %vm554_vm7, %v2618_v55  ;;  %v2623_v61 = vadd.f32 %v4596_v49, %v2607_v58  ;;  %2381 = vst.msk [vmem:[#allocation2 + $0x70] sm:$0xff] %vm554_vm7, %v2365_v57  ;;  %v2363_v63 = vadd.f32 %v2347_v60, %v2320_v59  ;;  %v2569_v3 = vpop.f32.mrf.mxu0 }
 0x150   : > { %v2605_v0 = vld [vmem:[#allocation2 + $0x40] sm:$0xff]  ;;  %v4577_v1 = vpop.f32.mrf.mxu1  ;;  %v3045_v44 = vld [vmem:[#allocation2 + $0x30] sm:$0xff] }
 0x151   : > { %2639 = vst.msk [vmem:[#allocation2 + $0x50] sm:$0xff] %vm554_vm7, %v2623_v61  ;;  %v2621_v2 = vadd.f32 %v2605_v0, %v2566_v56  ;;  %2379 = vst.msk [vmem:[#allocation2 + $0x60] sm:$0xff] %vm554_vm7, %v2363_v63  ;;  %v2366_v4 = vadd.f32 %v4577_v1, %v2350_v12  ;;  %v4600_v10 = vpop.f32.mrf.mxu0  ;;  %v5573_v63 = vld [vmem:[%s5818_s2] ss:$0 sm:$0xff] }
 0x152   : > { %v2608_v5 = vld [vmem:[#allocation2 + $0x58] sm:$0xff]  ;;  %v2323_v6 = vpop.f32.mrf.mxu1  ;;  %v3043_v48 = vld [vmem:[#allocation2 + $0x20] sm:$0xff] }
 0x153   : > { %2637 = vst.msk [vmem:[#allocation2 + $0x40] sm:$0xff] %vm554_vm7, %v2621_v2  ;;  %v2624_v9 = vadd.f32 %v4597_v62, %v2608_v5  ;;  %2382 = vst.msk [vmem:[#allocation2 + $0x78] sm:$0xff] %vm554_vm7, %v2366_v4  ;;  %v2364_v11 = vadd.f32 %v2348_v8, %v2323_v6  ;;  %v2582_v17 = vpop.f32.mrf.mxu0 }
 0x154   : > { %v2606_v13 = vld [vmem:[#allocation2 + $0x48] sm:$0xff]  ;;  %v4612_v14 = vpop.f32.mrf.mxu1  ;;  %v3046_v53 = vld [vmem:[#allocation2 + $0x38] sm:$0xff] }
 0x155   : > { %2640 = vst.msk [vmem:[#allocation2 + $0x58] sm:$0xff] %vm554_vm7, %v2624_v9  ;;  %v2622_v16 = vadd.f32 %v2606_v13, %v2569_v3  ;;  %2380 = vst.msk [vmem:[#allocation2 + $0x68] sm:$0xff] %vm554_vm7, %v2364_v11  ;;  %v3057_v18 = vadd.f32 %v4612_v14, %v3041_v15  ;;  %v4601_v23 = vpop.f32.mrf.mxu0 }
 0x156   : > { %v2611_v19 = vld [vmem:[#allocation2 + $0x70] sm:$0xff]  ;;  %v2976_v20 = vpop.f32.mrf.mxu1  ;;  %v3044_v60 = vld [vmem:[#allocation2 + $0x28] sm:$0xff] }
 0x157   : > { %2638 = vst.msk [vmem:[#allocation2 + $0x48] sm:$0xff] %vm554_vm7, %v2622_v16  ;;  %v2627_v22 = vadd.f32 %v4600_v10, %v2611_v19  ;;  %3073 = vst.msk [vmem:[#allocation2 + $0x10] sm:$0xff] %vm554_vm7, %v3057_v18  ;;  %v3055_v24 = vadd.f32 %v3039_v21, %v2976_v20  ;;  %v2585_v29 = vpop.f32.mrf.mxu0 }
 0x158   : > { %v2609_v25 = vld [vmem:[#allocation2 + $0x60] sm:$0xff]  ;;  %v4613_v26 = vpop.f32.mrf.mxu1  ;;  %v3049_v9 = vld [vmem:[#allocation2 + $0x50] sm:$0xff] }
 0x159   : > { %2643 = vst.msk [vmem:[#allocation2 + $0x70] sm:$0xff] %vm554_vm7, %v2627_v22  ;;  %v2625_v28 = vadd.f32 %v2609_v25, %v2582_v17  ;;  %3071 = vst.msk [vmem:[#allocation2] sm:$0xff] %vm554_vm7, %v3055_v24  ;;  %v3058_v30 = vadd.f32 %v4613_v26, %v3042_v27  ;;  %v4636_v35 = vpop.f32.mrf.mxu0 }
 0x15a   : > { %v2612_v31 = vld [vmem:[#allocation2 + $0x78] sm:$0xff]  ;;  %v2979_v32 = vpop.f32.mrf.mxu1  ;;  %v3047_v18 = vld [vmem:[#allocation2 + $0x40] sm:$0xff] }
 0x15b   : > { %2641 = vst.msk [vmem:[#allocation2 + $0x60] sm:$0xff] %vm554_vm7, %v2625_v28  ;;  %v2628_v33 = vadd.f32 %v4601_v23, %v2612_v31  ;;  %3074 = vst.msk [vmem:[#allocation2 + $0x18] sm:$0xff] %vm554_vm7, %v3058_v30  ;;  %v3056_v36 = vadd.f32 %v3040_v34, %v2979_v32  ;;  %v3306_v39 = vpop.f32.mrf.mxu0 }
 0x15c   : > { %v2610_v37 = vld [vmem:[#allocation2 + $0x68] sm:$0xff]  ;;  %v4616_v43 = vpop.f32.mrf.mxu1  ;;  %v3050_v25 = vld [vmem:[#allocation2 + $0x58] sm:$0xff] }
 0x15d   : > { %2644 = vst.msk [vmem:[#allocation2 + $0x78] sm:$0xff] %vm554_vm7, %v2628_v33  ;;  %v2626_v38 = vadd.f32 %v2610_v37, %v2585_v29  ;;  %3072 = vst.msk [vmem:[#allocation2 + $0x8] sm:$0xff] %vm554_vm7, %v3056_v36  ;;  %v4637_v41 = vpop.f32.mrf.mxu0  ;;  %v3061_v54 = vadd.f32 %v4616_v43, %v3045_v44 }
 0x15e   : > { %v3371_v40 = vld [vmem:[#allocation2 + $0x10] sm:$0xff]  ;;  %v2992_v47 = vpop.f32.mrf.mxu1  ;;  %v3048_v31 = vld [vmem:[#allocation2 + $0x48] sm:$0xff] }
 0x15f   : > { %2642 = vst.msk [vmem:[#allocation2 + $0x68] sm:$0xff] %vm554_vm7, %v2626_v38  ;;  %v3387_v42 = vadd.f32 %v4636_v35, %v3371_v40  ;;  %v3309_v7 = vpop.f32.mrf.mxu0  ;;  %3077 = vst.msk [vmem:[#allocation2 + $0x30] sm:$0xff] %vm554_vm7, %v3061_v54  ;;  %v3059_v50 = vadd.f32 %v3043_v48, %v2992_v47 }
 0x160   : > { %v3369_v45 = vld [vmem:[#allocation2] sm:$0xff]  ;;  %v4617_v52 = vpop.f32.mrf.mxu1 }
 0x161   : > { %3403 = vst.msk [vmem:[#allocation2 + $0x10] sm:$0xff] %vm554_vm7, %v3387_v42  ;;  %v3385_v46 = vadd.f32 %v3369_v45, %v3306_v39  ;;  %v4640_v55 = vpop.f32.mrf.mxu0  ;;  %3075 = vst.msk [vmem:[#allocation2 + $0x20] sm:$0xff] %vm554_vm7, %v3059_v50  ;;  %v3062_v57 = vadd.f32 %v4617_v52, %v3046_v53  ;;  %v3053_v42 = vld [vmem:[#allocation2 + $0x70] sm:$0xff] }
 0x162   : > { %v3372_v49 = vld [vmem:[#allocation2 + $0x18] sm:$0xff]  ;;  %v2995_v59 = vpop.f32.mrf.mxu1 }
 0x163   : > { %3401 = vst.msk [vmem:[#allocation2] sm:$0xff] %vm554_vm7, %v3385_v46  ;;  %v3388_v51 = vadd.f32 %v4637_v41, %v3372_v49  ;;  %v3322_v61 = vpop.f32.mrf.mxu0  ;;  %3078 = vst.msk [vmem:[#allocation2 + $0x38] sm:$0xff] %vm554_vm7, %v3062_v57  ;;  %v3060_v62 = vadd.f32 %v3044_v60, %v2995_v59 }
 0x164   : > { %v3370_v56 = vld [vmem:[#allocation2 + $0x8] sm:$0xff]  ;;  %v4620_v8 = vpop.f32.mrf.mxu1 }
 0x165   : > { %3404 = vst.msk [vmem:[#allocation2 + $0x18] sm:$0xff] %vm554_vm7, %v3388_v51  ;;  %v3386_v58 = vadd.f32 %v3370_v56, %v3309_v7  ;;  %v4641_v0 = vpop.f32.mrf.mxu0  ;;  %3076 = vst.msk [vmem:[#allocation2 + $0x28] sm:$0xff] %vm554_vm7, %v3060_v62  ;;  %v3065_v13 = vadd.f32 %v4620_v8, %v3049_v9  ;;  %v3051_v7 = vld [vmem:[#allocation2 + $0x60] sm:$0xff] }
 0x166   : > { %v3375_v12 = vld [vmem:[#allocation2 + $0x30] sm:$0xff]  ;;  %v3008_v17 = vpop.f32.mrf.mxu1 }
 0x167   : > { %3402 = vst.msk [vmem:[#allocation2 + $0x8] sm:$0xff] %vm554_vm7, %v3386_v58  ;;  %v3325_v2 = vpop.f32.mrf.mxu0  ;;  %v3391_v4 = vadd.f32 %v4640_v55, %v3375_v12  ;;  %3081 = vst.msk [vmem:[#allocation2 + $0x50] sm:$0xff] %vm554_vm7, %v3065_v13  ;;  %v3063_v21 = vadd.f32 %v3047_v18, %v3008_v17  ;;  %v3054_v55 = vld [vmem:[#allocation2 + $0x78] sm:$0xff] }
 0x168   : > { %v3419_v1 = vld [vmem:[#allocation2 + $0x10] sm:$0xff]  ;;  %v3373_v6 = vld [vmem:[#allocation2 + $0x20] sm:$0xff]  ;;  %v4621_v24 = vpop.f32.mrf.mxu1 }
 0x169   : > { %v5578_v3 = vadd.f32 %v5573_v63, %v3419_v1  ;;  %3407 = vst.msk [vmem:[#allocation2 + $0x30] sm:$0xff] %vm554_vm7, %v3391_v4  ;;  %v3389_v11 = vadd.f32 %v3373_v6, %v3322_v61  ;;  %v4644_v14 = vpop.f32.mrf.mxu0  ;;  %3079 = vst.msk [vmem:[#allocation2 + $0x40] sm:$0xff] %vm554_vm7, %v3063_v21  ;;  %v3066_v29 = vadd.f32 %v4621_v24, %v3050_v25  ;;  %v3052_v61 = vld [vmem:[#allocation2 + $0x68] sm:$0xff] }
 0x16a   : > { %v3417_v5 = vld [vmem:[#allocation2] sm:$0xff]  ;;  %v3376_v16 = vld [vmem:[#allocation2 + $0x38] sm:$0xff]  ;;  %v3011_v30 = vpop.f32.mrf.mxu1 }
 0x16b   : > { %3570 = vrot.lane.b32.xlu1 %v5578_v3, %s4800_s19  ;;  %v5583_v10 = vadd.f32 %v5573_v63, %v3417_v5  ;;  %3405 = vst.msk [vmem:[#allocation2 + $0x20] sm:$0xff] %vm554_vm7, %v3389_v11  ;;  %v3392_v20 = vadd.f32 %v4641_v0, %v3376_v16  ;;  %v3338_v26 = vpop.f32.mrf.mxu0  ;;  %3082 = vst.msk [vmem:[#allocation2 + $0x58] sm:$0xff] %vm554_vm7, %v3066_v29  ;;  %v3064_v32 = vadd.f32 %v3048_v31, %v3011_v30 }
 0x16c   : > { %v3420_v15 = vld [vmem:[#allocation2 + $0x18] sm:$0xff]  ;;  %v3374_v23 = vld [vmem:[#allocation2 + $0x28] sm:$0xff]  ;;  %v4624_v40 = vpop.f32.mrf.mxu1 }
 0x16d   : > { %3566 = vrot.lane.b32.xlu0 %v5583_v10, %s4800_s19  ;;  %v5589_v19 = vadd.f32 %v5573_v63, %v3420_v15  ;;  %3408 = vst.msk [vmem:[#allocation2 + $0x38] sm:$0xff] %vm554_vm7, %v3392_v20  ;;  %v3390_v28 = vadd.f32 %v3374_v23, %v3325_v2  ;;  %v4645_v34 = vpop.f32.mrf.mxu0  ;;  %3080 = vst.msk [vmem:[#allocation2 + $0x48] sm:$0xff] %vm554_vm7, %v3064_v32  ;;  %v3069_v45 = vadd.f32 %v4624_v40, %v3053_v42  ;;  %v5692_v32 = vld [vmem:[%s325_s21] ss:$0 sm:$0xff] }
 0x16e   : > { %v3418_v22 = vld [vmem:[#allocation2 + $0x8] sm:$0xff]  ;;  %v3379_v36 = vld [vmem:[#allocation2 + $0x50] sm:$0xff]  ;;  %v3024_v48 = vpop.f32.mrf.mxu1  ;;  %v3520_v40 = vadd.f32 1.0, %v5578_v3 }
 0x16f   : > { %3572 = vrot.lane.b32.xlu1 %v5589_v19, %s4800_s19  ;;  %v5596_v27 = vadd.f32 %v5573_v63, %v3418_v22  ;;  %3406 = vst.msk [vmem:[#allocation2 + $0x28] sm:$0xff] %vm554_vm7, %v3390_v28  ;;  %v3395_v38 = vadd.f32 %v4644_v14, %v3379_v36  ;;  %v3341_v43 = vpop.f32.mrf.mxu0  ;;  %3085 = vst.msk [vmem:[#allocation2 + $0x70] sm:$0xff] %vm554_vm7, %v3069_v45  ;;  %v3067_v51 = vadd.f32 %v3051_v7, %v3024_v48  ;;  %v5700_v36 = vld [vmem:[%s328_s14] ss:$0 sm:$0xff] }
 0x170   : > { %v3423_v33 = vld [vmem:[#allocation2 + $0x30] sm:$0xff]  ;;  %v3377_v39 = vld [vmem:[#allocation2 + $0x40] sm:$0xff]  ;;  %v4625_v53 = vpop.f32.mrf.mxu1  ;;  %v3521_v7 = vadd.f32 1.0, %v5589_v19 }
 0x171   : > { %3568 = vrot.lane.b32.xlu0 %v5596_v27, %s4800_s19  ;;  %v5606_v35 = vadd.f32 %v5573_v63, %v3423_v33  ;;  %3411 = vst.msk [vmem:[#allocation2 + $0x50] sm:$0xff] %vm554_vm7, %v3395_v38  ;;  %v3393_v41 = vadd.f32 %v3377_v39, %v3338_v26  ;;  %v4648_v56 = vpop.f32.mrf.mxu0  ;;  %3083 = vst.msk [vmem:[#allocation2 + $0x60] sm:$0xff] %vm554_vm7, %v3067_v51  ;;  %v3070_v58 = vadd.f32 %v4625_v53, %v3054_v55  ;;  %v3457_v39 = vld [vmem:[%s5685_s9 + $0x8] sm:$0xff]  ;;  %v3460_v55 = vld [vmem:[%s5685_s9 + $0x20] sm:$0xff] }
 0x172   : > { %v3421_v37 = vld [vmem:[#allocation2 + $0x20] sm:$0xff]  ;;  %v3380_v47 = vld [vmem:[#allocation2 + $0x58] sm:$0xff]  ;;  %v3027_v60 = vpop.f32.mrf.mxu1  ;;  %v3480_v45 = vsub.f32 %v3457_v39, %v5692_v32  ;;  %v3519_v53 = vadd.f32 1.0, %v5596_v27  ;;  %v3483_v19 = vsub.f32 %v3460_v55, %v5692_v32 }
 0x173   : > { %v5615_v46 = vadd.f32 %v5573_v63, %v3421_v37  ;;  %3409 = vst.msk [vmem:[#allocation2 + $0x40] sm:$0xff] %vm554_vm7, %v3393_v41  ;;  %v3396_v50 = vadd.f32 %v4645_v34, %v3380_v47  ;;  %3086 = vst.msk [vmem:[#allocation2 + $0x78] sm:$0xff] %vm554_vm7, %v3070_v58  ;;  %v3068_v62 = vadd.f32 %v3052_v61, %v3027_v60  ;;  %v3354_v0 = vpop.f32.mrf.mxu0  ;;  %v3456_v34 = vld [vmem:[%s5685_s9] sm:$0xff]  ;;  %v3459_v37 = vld [vmem:[%s5685_s9 + $0x18] sm:$0xff] }
 0x174   : > { %v3424_v44 = vld [vmem:[#allocation2 + $0x38] sm:$0xff]  ;;  %v3378_v52 = vld [vmem:[#allocation2 + $0x48] sm:$0xff]  ;;  %v3479_v38 = vsub.f32 %v3456_v34, %v5692_v32  ;;  %v3466_v34 = vld [vmem:[%s5685_s9 + $0x50] sm:$0xff] }
 0x175   : > { %3578 = vrot.lane.b32.xlu0 %v5606_v35, %s4800_s19  ;;  %v5612_v54 = vadd.f32 %v5573_v63, %v3424_v44  ;;  %3412 = vst.msk [vmem:[#allocation2 + $0x58] sm:$0xff] %vm554_vm7, %v3396_v50  ;;  %v3394_v57 = vadd.f32 %v3378_v52, %v3341_v43  ;;  %3084 = vst.msk [vmem:[#allocation2 + $0x68] sm:$0xff] %vm554_vm7, %v3068_v62  ;;  %v4649_v8 = vpop.f32.mrf.mxu0  ;;  %v3482_v43 = vsub.f32 %v3459_v37, %v5692_v32  ;;  %v3463_v61 = vld [vmem:[%s5685_s9 + $0x38] sm:$0xff] }
 0x176   : > { %v3422_v49 = vld [vmem:[#allocation2 + $0x28] sm:$0xff]  ;;  %v3383_v2 = vld [vmem:[#allocation2 + $0x70] sm:$0xff]  ;;  %v3518_v44 = vadd.f32 1.0, %v5583_v10  ;;  %v3502_v41 = vmul.f32 %v5700_v36, %v3479_v38  ;;  %v3503_v52 = vmul.f32 %v5700_v36, %v3480_v45 }
 0x177   : > { %3580 = vrot.lane.b32.xlu1 %v5612_v54, %s4800_s19  ;;  %v5626_v59 = vadd.f32 %v5573_v63, %v3422_v49  ;;  %3410 = vst.msk [vmem:[#allocation2 + $0x48] sm:$0xff] %vm554_vm7, %v3394_v57  ;;  %v3399_v5 = vadd.f32 %v4648_v56, %v3383_v2  ;;  %v3357_v18 = vpop.f32.mrf.mxu0  ;;  %v3505_v48 = vmul.f32 %v5700_v36, %v3482_v43  ;;  %v3462_v49 = vld [vmem:[%s5685_s9 + $0x30] sm:$0xff] }
 0x178   : > { %v3427_v1 = vld [vmem:[#allocation2 + $0x50] sm:$0xff]  ;;  %v3381_v6 = vld [vmem:[#allocation2 + $0x60] sm:$0xff]  ;;  %v3534_v51 = vmul.f32 %v3518_v44, %v3502_v41  ;;  %v3485_v56 = vsub.f32 %v3462_v49, %v5692_v32  ;;  %v3489_v43 = vsub.f32 %v3466_v34, %v5692_v32 }
 0x179   : > { %3574 = vrot.lane.b32.xlu0 %v5615_v46, %s4800_s19  ;;  %v5634_v12 = vadd.f32 %v5573_v63, %v3427_v1  ;;  %3415 = vst.msk [vmem:[#allocation2 + $0x70] sm:$0xff] %vm554_vm7, %v3399_v5  ;;  %v3397_v11 = vadd.f32 %v3381_v6, %v3354_v0  ;;  %v3537_v60 = vmul.f32 %v3521_v7, %v3505_v48  ;;  %v3524_v6 = vadd.f32 1.0, %v5606_v35  ;;  %v3464_v44 = vld [vmem:[%s5685_s9 + $0x40] sm:$0xff]  ;;  %v3470_v34 = vld [vmem:[%s5685_s9 + $0x70] sm:$0xff] }
 0x17a   : > { %v3425_v4 = vld [vmem:[#allocation2 + $0x40] sm:$0xff]  ;;  %v3384_v15 = vld [vmem:[#allocation2 + $0x78] sm:$0xff]  ;;  %v3508_v5 = vmul.f32 %v5700_v36, %v3485_v56  ;;  %v3523_v45 = vadd.f32 1.0, %v5626_v59 }
 0x17b   : > { %3576 = vrot.lane.b32.xlu1 %v5626_v59, %s4800_s19  ;;  %v5643_v14 = vadd.f32 %v5573_v63, %v3425_v4  ;;  %3413 = vst.msk [vmem:[#allocation2 + $0x60] sm:$0xff] %vm554_vm7, %v3397_v11  ;;  %v3400_v17 = vadd.f32 %v4649_v8, %v3384_v15  ;;  %v3535_v4 = vmul.f32 %v3519_v53, %v3503_v52  ;;  %v3528_v53 = vadd.f32 1.0, %v5634_v12 }
 0x17c   : > { %v3428_v9 = vld [vmem:[#allocation2 + $0x58] sm:$0xff]  ;;  %v3382_v20 = vld [vmem:[#allocation2 + $0x68] sm:$0xff]  ;;  %v3486_v8 = vsub.f32 %v3463_v61, %v5692_v32  ;;  %v3512_v52 = vmul.f32 %v5700_v36, %v3489_v43  ;;  %v3493_v43 = vsub.f32 %v3470_v34, %v5692_v32 }
 0x17d   : > { %3586 = vrot.lane.b32.xlu0 %v5634_v12, %s4800_s19  ;;  %v5640_v13 = vadd.f32 %v5573_v63, %v3428_v9  ;;  %3416 = vst.msk [vmem:[#allocation2 + $0x78] sm:$0xff] %vm554_vm7, %v3400_v17  ;;  %v3398_v21 = vadd.f32 %v3382_v20, %v3357_v18  ;;  %v3461_v9 = vld [vmem:[%s5685_s9 + $0x28] sm:$0xff]  ;;  %v3506_v18 = vmul.f32 %v5700_v36, %v3483_v19 }
 0x17e   : > { %v3426_v16 = vld [vmem:[#allocation2 + $0x48] sm:$0xff]  ;;  %v3484_v35 = vsub.f32 %v3461_v9, %v5692_v32 }
 0x17f   : > { %3588 = vrot.lane.b32.xlu1 %v5640_v13, %s4800_s19  ;;  %v5652_v22 = vadd.f32 %v5573_v63, %v3426_v16  ;;  %3414 = vst.msk [vmem:[#allocation2 + $0x68] sm:$0xff] %vm554_vm7, %v3398_v21 }
 0x180   : > { %v3431_v25 = vld [vmem:[#allocation2 + $0x70] sm:$0xff] }
 0x181   : > { %3582 = vrot.lane.b32.xlu0 %v5643_v14, %s4800_s19  ;;  %v5663_v28 = vadd.f32 %v5573_v63, %v3431_v25  ;;  %v3540_v25 = vmul.f32 %v3524_v6, %v3508_v5 }
 0x182   : > { %v3429_v23 = vld [vmem:[#allocation2 + $0x60] sm:$0xff] }
 0x183   : > { %3584 = vrot.lane.b32.xlu1 %v5652_v22, %s4800_s19  ;;  %v5658_v24 = vadd.f32 %v5573_v63, %v3429_v23 }
 0x184   : > { %v3432_v30 = vld [vmem:[#allocation2 + $0x78] sm:$0xff] }
 0x185   : > { %3590 = vrot.lane.b32.xlu0 %v5658_v24, %s4800_s19  ;;  %v5673_v31 = vadd.f32 %v5573_v63, %v3432_v30  ;;  %v3525_v30 = vadd.f32 1.0, %v5612_v54 }
 0x186   : > { %v3430_v26 = vld [vmem:[#allocation2 + $0x68] sm:$0xff] }
 0x187   : > { %v5666_v29 = vadd.f32 %v5573_v63, %v3430_v26  ;;  %v3458_v63 = vld [vmem:[%s5685_s9 + $0x10] sm:$0xff]  ;;  %v3509_v26 = vmul.f32 %v5700_v36, %v3486_v8  ;;  %v3529_v8 = vadd.f32 1.0, %v5640_v13 }
 0x188   : > { %v3481_v33 = vsub.f32 %v3458_v63, %v5692_v32  ;;  %v3522_v63 = vadd.f32 1.0, %v5615_v46 }
 0x189   : > { %3594 = vrot.lane.b32.xlu0 %v5663_v28, %s4800_s19  ;;  %3592 = vrot.lane.b32.xlu1 %v5666_v29, %s4800_s19  ;;  %v3541_v41 = vmul.f32 %v3525_v30, %v3509_v26 }
 0x18a   : > { %v3504_v42 = vmul.f32 %v5700_v36, %v3481_v33  ;;  %v3538_v46 = vmul.f32 %v3522_v63, %v3506_v18 }
 0x18c   : > { %v3536_v47 = vmul.f32 %v3520_v40, %v3504_v42  ;;  %v3507_v42 = vmul.f32 %v5700_v36, %v3484_v35 }
 0x18d   : > { %3596 = vrot.lane.b32.xlu1 %v5673_v31, %s4800_s19 }
 0x1dd   : > { %v3571_v50 = vpop.permute.xlu1 %3570 }
 0x1de   : > { %v3616_v3 = vadd.f32 %v3571_v50, %v3536_v47  ;;  %v3467_v47 = vld [vmem:[%s5685_s9 + $0x58] sm:$0xff] }
 0x1df   : > { %v3567_v10 = vpop.permute.xlu0 %3566  ;;  %v3490_v55 = vsub.f32 %v3467_v47, %v5692_v32  ;;  %v3471_v47 = vld [vmem:[%s5685_s9 + $0x78] sm:$0xff] }
 0x1e0   : > { %v3632_v57 = vmul.f32 0.2, %v3616_v3  ;;  %v3614_v58 = vadd.f32 %v3567_v10, %v3534_v51  ;;  %v3487_v51 = vsub.f32 %v3464_v44, %v5692_v32 }
 0x1e1   : > { %v3573_v62 = vpop.permute.xlu1 %3572  ;;  %v3513_v12 = vmul.f32 %v5700_v36, %v3490_v55  ;;  %v3532_v55 = vadd.f32 1.0, %v5663_v28 }
 0x1e2   : > { %v3648_v0 = vmax.f32 %v3616_v3, %v3632_v57  ;;  %v3630_v1 = vmul.f32 0.2, %v3614_v58  ;;  %v3617_v2 = vadd.f32 %v3573_v62, %v3537_v60  ;;  %v3539_v57 = vmul.f32 %v3523_v45, %v3507_v42 }
 0x1e3   : > { %v3569_v27 = vpop.permute.xlu0 %3568  ;;  %v3530_v45 = vadd.f32 1.0, %v5658_v24  ;;  %v3531_v24 = vadd.f32 1.0, %v5666_v29 }
 0x1e4   : > { %v4312_v11 = vpack.c.bf16 %v3648_v0, %v3648_v0  ;;  %v3646_v15 = vmax.f32 %v3614_v58, %v3630_v1  ;;  %v3633_v16 = vmul.f32 0.2, %v3617_v2  ;;  %v3615_v17 = vadd.f32 %v3569_v27, %v3535_v4  ;;  %v3465_v58 = vld [vmem:[%s5685_s9 + $0x48] sm:$0xff] }
 0x1e5   : > { %v3510_v0 = vmul.f32 %v5700_v36, %v3487_v51  ;;  %v3544_v1 = vmul.f32 %v3528_v53, %v3512_v52  ;;  %v3488_v4 = vsub.f32 %v3465_v58, %v5692_v32  ;;  %v3494_v51 = vsub.f32 %v3471_v47, %v5692_v32 }
 0x1e6   : > { %3729 = vst.msk [vmem:[%s5724_s17 + $0x8] sm:$0xf] %vm3726_vm8, %v4312_v11  ;;  %v4310_v20 = vpack.c.bf16 %v3646_v15, %v3646_v15  ;;  %v3649_v21 = vmax.f32 %v3617_v2, %v3633_v16  ;;  %v3631_v23 = vmul.f32 0.2, %v3615_v17  ;;  %v3526_v2 = vadd.f32 1.0, %v5643_v14  ;;  %v3468_v16 = vld [vmem:[%s5685_s9 + $0x60] sm:$0xff] }
 0x1e7   : > { %v3579_v38 = vpop.permute.xlu0 %3578  ;;  %v3511_v14 = vmul.f32 %v5700_v36, %v3488_v4 }
 0x1e8   : > { %3727 = vst.msk [vmem:[%s5724_s17] sm:$0xf] %vm3726_vm8, %v4310_v20  ;;  %v4313_v33 = vpack.c.bf16 %v3649_v21, %v3649_v21  ;;  %v3647_v37 = vmax.f32 %v3615_v17, %v3631_v23  ;;  %v3620_v39 = vadd.f32 %v3579_v38, %v3540_v25  ;;  %v3542_v17 = vmul.f32 %v3526_v2, %v3510_v0 }
 0x1e9   : > { %v3581_v48 = vpop.permute.xlu1 %3580  ;;  %v3545_v21 = vmul.f32 %v3529_v8, %v3513_v12  ;;  %v3527_v23 = vadd.f32 1.0, %v5652_v22  ;;  %v3491_v25 = vsub.f32 %v3468_v16, %v5692_v32 }
 0x1ea   : > { %3730 = vst.msk [vmem:[%s5724_s17 + $0xc] sm:$0xf] %vm3726_vm8, %v4313_v33  ;;  %v4311_v40 = vpack.c.bf16 %v3647_v37, %v3647_v37  ;;  %v3636_v54 = vmul.f32 0.2, %v3620_v39  ;;  %v3621_v50 = vadd.f32 %v3581_v48, %v3541_v41  ;;  %v3469_v33 = vld [vmem:[%s5685_s9 + $0x68] sm:$0xff] }
 0x1eb   : > { %v3575_v7 = vpop.permute.xlu0 %3574  ;;  %v3514_v22 = vmul.f32 %v5700_v36, %v3491_v25  ;;  %v3492_v44 = vsub.f32 %v3469_v33, %v5692_v32 }
 0x1ec   : > { %3728 = vst.msk [vmem:[%s5724_s17 + $0x4] sm:$0xf] %vm3726_vm8, %v4311_v40  ;;  %v3652_v49 = vmax.f32 %v3620_v39, %v3636_v54  ;;  %v3618_v3 = vadd.f32 %v3575_v7, %v3538_v46  ;;  %v3637_v59 = vmul.f32 0.2, %v3621_v50  ;;  %v3543_v40 = vmul.f32 %v3527_v23, %v3511_v14 }
 0x1ed   : > { %v3577_v60 = vpop.permute.xlu1 %3576  ;;  %v3546_v53 = vmul.f32 %v3530_v45, %v3514_v22 }
 0x1ee   : > { %v4316_v10 = vpack.c.bf16 %v3652_v49, %v3652_v49  ;;  %v3634_v56 = vmul.f32 0.2, %v3618_v3  ;;  %v3653_v61 = vmax.f32 %v3621_v50, %v3637_v59  ;;  %v3619_v19 = vadd.f32 %v3577_v60, %v3539_v57 }
 0x1ef   : > { %v3587_v9 = vpop.permute.xlu0 %3586  ;;  %v3516_v50 = vmul.f32 %v5700_v36, %v3493_v43  ;;  %v3517_v57 = vmul.f32 %v5700_v36, %v3494_v51 }
 0x1f0   : > { %3733 = vst.msk [vmem:[%s5724_s17 + $0x18] sm:$0xf] %vm3726_vm8, %v4316_v10  ;;  %v3650_v62 = vmax.f32 %v3618_v3, %v3634_v56  ;;  %v4317_v27 = vpack.c.bf16 %v3653_v61, %v3653_v61  ;;  %v3635_v6 = vmul.f32 0.2, %v3619_v19  ;;  %v3624_v15 = vadd.f32 %v3587_v9, %v3544_v1 }
 0x1f1   : > { %v3589_v13 = vpop.permute.xlu1 %3588  ;;  %v3515_v3 = vmul.f32 %v5700_v36, %v3492_v44  ;;  %v3548_v32 = vmul.f32 %v3532_v55, %v3516_v50  ;;  %v3533_v61 = vadd.f32 1.0, %v5673_v31 }
 0x1f2   : > { %v4314_v5 = vpack.c.bf16 %v3650_v62, %v3650_v62  ;;  %3734 = vst.msk [vmem:[%s5724_s17 + $0x1c] sm:$0xf] %vm3726_vm8, %v4317_v27  ;;  %v3651_v11 = vmax.f32 %v3619_v19, %v3635_v6  ;;  %v3640_v20 = vmul.f32 0.2, %v3624_v15  ;;  %v3625_v30 = vadd.f32 %v3589_v13, %v3545_v21 }
 0x1f3   : > { %v3583_v35 = vpop.permute.xlu0 %3582  ;;  %v3547_v60 = vmul.f32 %v3531_v24, %v3515_v3  ;;  %v3549_v36 = vmul.f32 %v3533_v61, %v3517_v57 }
 0x1f4   : > { %3731 = vst.msk [vmem:[%s5724_s17 + $0x10] sm:$0xf] %vm3726_vm8, %v4314_v5  ;;  %v4315_v18 = vpack.c.bf16 %v3651_v11, %v3651_v11  ;;  %v3656_v26 = vmax.f32 %v3624_v15, %v3640_v20  ;;  %v3622_v63 = vadd.f32 %v3583_v35, %v3542_v17  ;;  %v3641_v38 = vmul.f32 0.2, %v3625_v30 }
 0x1f5   : > { %v3585_v42 = vpop.permute.xlu1 %3584 }
 0x1f6   : > { %3732 = vst.msk [vmem:[%s5724_s17 + $0x14] sm:$0xf] %vm3726_vm8, %v4315_v18  ;;  %v4320_v37 = vpack.c.bf16 %v3656_v26, %v3656_v26  ;;  %v3638_v39 = vmul.f32 0.2, %v3622_v63  ;;  %v3657_v54 = vmax.f32 %v3625_v30, %v3641_v38  ;;  %v3623_v46 = vadd.f32 %v3585_v42, %v3543_v40 }
 0x1f7   : > { %v3591_v10 = vpop.permute.xlu0 %3590 }
 0x1f8   : > { %3737 = vst.msk [vmem:[%s5724_s17 + $0x28] sm:$0xf] %vm3726_vm8, %v4320_v37  ;;  %v3654_v41 = vmax.f32 %v3622_v63, %v3638_v39  ;;  %v4321_v48 = vpack.c.bf16 %v3657_v54, %v3657_v54  ;;  %v3639_v49 = vmul.f32 0.2, %v3623_v46  ;;  %v3626_v56 = vadd.f32 %v3591_v10, %v3546_v53 }
 0x1fa   : > { %v4318_v7 = vpack.c.bf16 %v3654_v41, %v3654_v41  ;;  %3738 = vst.msk [vmem:[%s5724_s17 + $0x2c] sm:$0xf] %vm3726_vm8, %v4321_v48  ;;  %v3655_v52 = vmax.f32 %v3623_v46, %v3639_v49  ;;  %v3642_v58 = vmul.f32 0.2, %v3626_v56 }
 0x1fb   : > { %v3595_v62 = vpop.permute.xlu0 %3594  ;;  %v3593_v19 = vpop.permute.xlu1 %3592 }
 0x1fc   : > { %3735 = vst.msk [vmem:[%s5724_s17 + $0x20] sm:$0xf] %vm3726_vm8, %v4318_v7  ;;  %v4319_v59 = vpack.c.bf16 %v3655_v52, %v3655_v52  ;;  %v3658_v0 = vmax.f32 %v3626_v56, %v3642_v58  ;;  %v3628_v28 = vadd.f32 %v3595_v62, %v3548_v32  ;;  %v3627_v29 = vadd.f32 %v3593_v19, %v3547_v60 }
 0x1fe   : > { %3736 = vst.msk [vmem:[%s5724_s17 + $0x24] sm:$0xf] %vm3726_vm8, %v4319_v59  ;;  %v4322_v1 = vpack.c.bf16 %v3658_v0, %v3658_v0  ;;  %v3644_v12 = vmul.f32 0.2, %v3628_v28  ;;  %v3643_v2 = vmul.f32 0.2, %v3627_v29 }
 0x1ff   : > { %v3597_v4 = vpop.permute.xlu1 %3596 }
 0x200   : > { %3739 = vst.msk [vmem:[%s5724_s17 + $0x30] sm:$0xf] %vm3726_vm8, %v4322_v1  ;;  %v3660_v27 = vmax.f32 %v3628_v28, %v3644_v12  ;;  %v3659_v5 = vmax.f32 %v3627_v29, %v3643_v2  ;;  %v3629_v6 = vadd.f32 %v3597_v4, %v3549_v36 }
 0x202   : > { %v4324_v8 = vpack.c.bf16 %v3660_v27, %v3660_v27  ;;  %v4323_v31 = vpack.c.bf16 %v3659_v5, %v3659_v5  ;;  %v3645_v9 = vmul.f32 0.2, %v3629_v6 }
 0x204   : > { %3741 = vst.msk [vmem:[%s5724_s17 + $0x38] sm:$0xf] %vm3726_vm8, %v4324_v8  ;;  %3740 = vst.msk [vmem:[%s5724_s17 + $0x34] sm:$0xf] %vm3726_vm8, %v4323_v31  ;;  %v3661_v11 = vmax.f32 %v3629_v6, %v3645_v9 }
 0x206   : > { %v4325_v15 = vpack.c.bf16 %v3661_v11, %v3661_v11 }
 0x208   : > { %3742 = vst.msk [vmem:[%s5724_s17 + $0x3c] sm:$0xf] %vm3726_vm8, %v4325_v15 }
 0x209 PF: > { %s16_s25 = sadd.s32 1, %s4798_s25   ;;  %s5827_s21 = smov %s4790_s23 }
 0x20a   : > { %p13_p7 = scmp.ge.s32.totalorder %s16_s25, 6   ;;  %s5828_s22 = smov %s4794_s24 }
 0x20b   : > { %s5829_s23 = smov %s5832_s26  ;;  %s5830_s24 = smov %s5836_s27 }
 0x20c   :  { %15 = sbr.rel (!%p13_p7) target bundleno = 3 (0x3), region = 94 }

// kernel: spade_resnet_block_forward.17
= control target key start
LH: loop header
LB: loop body
LE: loop exit
PB: predicated region body
PF: predicated region fallthrough
CT: control target
= control target key end

     0   :  { %s3873_s12 = smov 0   ;;  %s3875_s13 = smov 0   ;;  %s4732_s0 = inlined_call_operand.vmem [shape: bf16[2,18,18,4], index: 0, kind: input, shape index: {}]   ;;  %s4733_s1 = inlined_call_operand.vmem [shape: bf16[3,3,4,4], index: 1, kind: input, shape index: {}]   ;;  %s4734_s2 = inlined_call_operand.vmem [shape: f32[1,4], index: 2, kind: input, shape index: {}]   ;;  %s4735_s3 = inlined_call_operand.vmem [shape: f32[2,256,4], index: 3, kind: output, shape index: {}]  }
   0x1   :  { %s3877_s14 = smov 0   ;;  %s3879_s15 = smov 0  }
   0x2   :  { %s3881_s16 = smov 0  }
   0x3 LB: > { %s22_s17 = sadd.s32 1, %s3843_s14  ;;  %s25_s18 = sadd.s32 1, %s3847_s15  ;;  %s3851_s16 = sphi %s3881_s16, %s13_s16   ;;  %s3847_s15 = sphi %s3879_s15, %s4744_s15   ;;  %s3843_s14 = sphi %s3877_s14, %s4743_s14   ;;  %s3839_s13 = sphi %s3875_s13, %s4742_s13   ;;  %s3835_s12 = sphi %s3873_s12, %s4741_s12  }
   0x4   : > { %p23_p0 = scmp.ge.s32.totalorder %s22_s17, 2  ;;  %p3173_p1 = scmp.ge.s32.totalorder %s3851_s16, 1 }
   0x5   : > { %p151_p2 = scmp.lt.s32.totalorder %s3851_s16, 5 }
   0x6   : > { %s4746_s17 = smov (%p23_p0, %s22_s17), 0  ;;  %s4748_s18 = smov (!%p23_p0, %s25_s18), %s3847_s15 }
   0x7   : > { %p152_p3 = pnand %p3173_p1, %p151_p2  ;;  %p27_p4 = scmp.ge.s32.totalorder %s4748_s18, 2 }
   0x8   : > { %p179_p5 = scmp.lt.s32.totalorder (!%p152_p3), %s3839_s13, 1  ;;  %s3492_s25 = smul.u32 (!%p152_p3), 96, %s3835_s12 }
   0x9   : > { %s4750_s18 = smov (%p27_p4, %s4748_s18), 0  ;;  %155 = sbr.rel (%p152_p3) target bundleno = 391 (0x187), region = 32 }
   0xa   : > { %s3175_s23 = sshll.u32 (!%p152_p3), %s3835_s12, 4 }
   0xb   : > { %p4619_p6 = scmp.lt.s32.totalorder (!%p152_p3), %s3175_s23, 31 }
   0xe   : > { %v215_v0 = vld [vmem:[%s4733_s1] sm:$0x3]  ;;  %vm281_vm0 = vcmask 1041408   ;;  %v3197_v2 = vld [vmem:[%s4733_s1 + $0x2] sm:$0x3]  ;;  %s4752_s13 = smov (!%p179_p5, %s3839_s13), 1 }
   0xf   : > { %3739 = vmatprep.subr.msk.bf16.mxu1 %vm281_vm0, %v215_v0  ;;  %v283_v1 = vsel %vm281_vm0, %v215_v0, 0  ;;  %3738 = vmatprep.subr.msk.bf16.mxu0 %vm281_vm0, %v215_v0  ;;  %v3222_v3 = vld [vmem:[%s4733_s1 + $0x4] sm:$0x3]  ;;  %s3748_s26 = smul.u32 216, %s4752_s13  ;;  %vm256_vm1 = vcmask 31744   ;;  %v668_v8 = vsel %vm281_vm0, %v3197_v2, 0 }
  0x10   : > { %3737 = vmatpush3.bf16.msra.mxu1 %v283_v1  ;;  %3575 = vmatpush3.bf16.msra.mxu0 %v283_v1  ;;  %v3257_v4 = vld [vmem:[%s4733_s1 + $0x6] sm:$0x3]  ;;  %v3298_v5 = vld [vmem:[%s4733_s1 + $0x8] sm:$0x3]  ;;  %v3937_v6 = vld [vmem:[%s4733_s1 + $0xa] sm:$0x3] }
  0x11   : > { %3740 = vmatprep.subr.msk.bf16.mxu1 %vm281_vm0, %v3197_v2  ;;  %3741 = vmatprep.subr.msk.bf16.mxu0 %vm281_vm0, %v3222_v3  ;;  %s183_s29 = scalar_lea.vmem %s4732_s0, %s3748_s26  ;;  %v3944_v9 = vld [vmem:[%s4733_s1 + $0xc] sm:$0x3]  ;;  %v973_v11 = vsel %vm281_vm0, %v3222_v3, 0  ;;  %v3951_v12 = vld [vmem:[%s4733_s1 + $0xe] sm:$0x3]  ;;  %v3956_v14 = vsel %vm281_vm0, %v3257_v4, 0 }
  0x12   : > { %s3926_s30 = scalar_lea.vmem %s183_s29, %s3492_s25  ;;  %vm863_vm2 = vcmask 1042432   ;;  %vm864_vm3 = vcmask 1046532   ;;  %v3961_v15 = vld [vmem:[%s4733_s1 + $0x10] sm:$0x3]  ;;  %vm422_vm4 = vsmask.f32 3328 }
  0x13   : > { %v3789_v7 = vld [vmem:[%s3926_s30 + $0x30] sm:$0xff]   ;;  %v3790_v10 = vld [vmem:[%s3926_s30 + $0x3c] sm:$0xff]   ;;  %vm423_vm5 = vsmask.f32 7440  ;;  %v3966_v17 = vsel %vm281_vm0, %v3298_v5, 0  ;;  %v3793_v18 = vld [vmem:[%s3926_s30 + $0x48] sm:$0xff]  }
  0x14   : > { %3584 = vmatprep.mubr.msk.bf16.mxu1 %vm256_vm1, %v3789_v7  ;;  %v3791_v13 = vld [vmem:[%s3926_s30] sm:$0xff]   ;;  %v3792_v16 = vld [vmem:[%s3926_s30 + $0xc] sm:$0xff]   ;;  %v3972_v19 = vsel %vm281_vm0, %v3937_v6, 0  ;;  %v3794_v20 = vld [vmem:[%s3926_s30 + $0x54] sm:$0xff]   ;;  %v3979_v21 = vsel %vm281_vm0, %v3944_v9, 0  ;;  %v3985_v23 = vsel %vm281_vm0, %v3951_v12, 0 }
  0x15   : > { %3585 = vmatmul.mubr.msk.bf16.vlgmr.msra.gmra.mxu1 %vm256_vm1, %v3790_v10  ;;  %3576 = vmatprep.mubr.msk.bf16.mxu0 %vm256_vm1, %v3791_v13  ;;  %v3795_v22 = vld [vmem:[%s3926_s30 + $0x18] sm:$0xff]   ;;  %v3796_v24 = vld [vmem:[%s3926_s30 + $0x24] sm:$0xff]   ;;  %v3991_v25 = vsel %vm281_vm0, %v3961_v15, 0  ;;  %v398_v26 = vld [vmem:[%s3926_s30] sm:$0xf]  ;;  %s4754_s23 = smov (!%p4619_p6, %s3175_s23), 31 }
  0x16   : > { %3593 = vmatpush3.bf16.msra.mxu1 %v668_v8  ;;  %3577 = vmatmul.mubr.msk.bf16.vlgmr.msra.gmra.mxu0 %vm256_vm1, %v3792_v16  ;;  %v399_v27 = vld [vmem:[%s3926_s30 + $0x4] sm:$0xf]  ;;  %v400_v28 = vld [vmem:[%s3926_s30 + $0x8] sm:$0x1]  ;;  %v426_v29 = vshrl.u32 %v398_v26, 16  ;;  %v429_v30 = vshll.u32 %v398_v26, 16  ;;  %vm4007_vm6 = vmor %vm863_vm2, %vm864_vm3 }
  0x17   : > { %3742 = vmatprep.subr.msk.bf16.mxu1 %vm281_vm0, %v3257_v4  ;;  %3588 = vmatprep.mubr.msk.bf16.mxu1 %vm256_vm1, %v3793_v18  ;;  %v435_v31 = vshll.u32 %v399_v27, 16  ;;  %v439_v32 = vshrl.u32 %v399_v27, 16  ;;  %v401_v33 = vld [vmem:[%s3926_s30 + $0xc] sm:$0xf]  ;;  %v445_v34 = vshll.u32 %v400_v28, 16  ;;  %vm4013_vm7 = vmor %vm422_vm4, %vm423_vm5  ;;  %s3176_s12 = sshll.u32 %s4752_s13, 5 }
  0x18   : > { %3611 = vmatpush3.bf16.msra.mxu0 %v973_v11  ;;  %3580 = vmatprep.mubr.msk.bf16.mxu0 %vm256_vm1, %v3795_v22  ;;  %v402_v35 = vld [vmem:[%s3926_s30 + $0x10] sm:$0xf]  ;;  %v403_v36 = vld [vmem:[%s3926_s30 + $0x14] sm:$0x1]  ;;  %v450_v37 = vshrl.u32 %v401_v33, 16  ;;  %v428_v38 = vrot.slane %v426_v29, 4  ;;  %s190_s25 = sadd.s32 %s3176_s12, %s4754_s23 }
  0x19   : > { %3743 = vmatprep.subr.msk.bf16.mxu0 %vm281_vm0, %v3298_v5  ;;  %v431_v39 = vrot.slane %v429_v30, 5  ;;  %v437_v40 = vrot.slane %v435_v31, 5  ;;  %v441_v41 = vrot.slane %v439_v32, 4  ;;  %v815_v42 = vld [vmem:[%s3926_s30] sm:$0xe]  ;;  %v447_v43 = vrot.slane %v445_v34, 5 }
  0x1a   : > { %v452_v44 = vrot.slane %v450_v37, 4  ;;  %v453_v45 = vshll.u32 %v401_v33, 16  ;;  %v459_v46 = vshll.u32 %v402_v35, 16  ;;  %v816_v47 = vld [vmem:[%s3926_s30 + $0x4] sm:$0xf]  ;;  %v463_v50 = vshrl.u32 %v402_v35, 16 }
  0x1b   : > { %v432_v48 = vor.u32 %v431_v39, %v428_v38  ;;  %v442_v49 = vor.u32 %v441_v41, %v437_v40  ;;  %v469_v51 = vshll.u32 %v403_v36, 16  ;;  %v817_v52 = vld [vmem:[%s3926_s30 + $0x8] sm:$0x1]  ;;  %v3214_v57 = vrot.slane %v815_v42, 9  ;;  %v818_v59 = vld [vmem:[%s3926_s30 + $0xc] sm:$0xe] }
  0x1c   : > { %v455_v55 = vrot.slane %v453_v45, 5  ;;  %v461_v56 = vrot.slane %v459_v46, 5  ;;  %v868_v58 = vrot.slane %v816_v47, 5  ;;  %v465_v62 = vrot.slane %v463_v50, 4  ;;  %v819_v0 = vld [vmem:[%s3926_s30 + $0x10] sm:$0xf] }
  0x1d   : > { %3589 = vmatmul.mubr.msk.bf16.gmra.mxu1 %vm256_vm1, %v3794_v20  ;;  %v433_v60 = vrot.slane %v432_v48, 4  ;;  %v443_v61 = vrot.slane %v442_v49, 4  ;;  %v471_v63 = vrot.slane %v469_v51, 5  ;;  %v871_v4 = vrot.slane %v817_v52, 5  ;;  %v820_v5 = vld [vmem:[%s3926_s30 + $0x14] sm:$0x1] }
  0x1e   : > { %3581 = vmatmul.mubr.msk.bf16.gmra.mxu0 %vm256_vm1, %v3796_v24  ;;  %v456_v1 = vor.u32 %v455_v55, %v452_v44  ;;  %v869_v2 = vsel %vm4007_vm6, %v3214_v57, %v868_v58  ;;  %v870_v3 = vrot.slane %v868_v58, 4  ;;  %v404_v7 = vld [vmem:[%s3926_s30 + $0x18] sm:$0xf]  ;;  %v466_v11 = vor.u32 %v465_v62, %v461_v56  ;;  %v405_v24 = vld [vmem:[%s3926_s30 + $0x1c] sm:$0xf]  ;;  %s3177_s13 = sshll.u32 %s190_s25, 3 }
  0x1f   : > { %v438_v8 = vsel %vm4013_vm7, %v433_v60, %v437_v40  ;;  %v448_v10 = vsel %vm4013_vm7, %v443_v61, %v447_v43  ;;  %v3215_v13 = vrot.slane %v818_v59, 9  ;;  %v875_v22 = vrot.slane %v819_v0, 5  ;;  %v406_v29 = vld [vmem:[%s3926_s30 + $0x20] sm:$0x1]  ;;  %v407_v35 = vld [vmem:[%s3926_s30 + $0x24] sm:$0xf] }
  0x20   : > { %v3198_v16 = vcombine.low %v438_v8, %v448_v10  ;;  %v457_v18 = vrot.slane %v456_v1, 4  ;;  %v872_v20 = vsel %vm4007_vm6, %v870_v3, %v871_v4  ;;  %v467_v26 = vrot.slane %v466_v11, 4  ;;  %v408_v40 = vld [vmem:[%s3926_s30 + $0x28] sm:$0xf]  ;;  %v409_v45 = vld [vmem:[%s3926_s30 + $0x2c] sm:$0x1] }
  0x21   : > { %v3223_v27 = vcombine.low %v869_v2, %v872_v20  ;;  %v878_v28 = vrot.slane %v820_v5, 5  ;;  %v474_v30 = vshrl.u32 %v404_v7, 16  ;;  %v876_v32 = vsel %vm4007_vm6, %v3215_v13, %v875_v22  ;;  %v821_v46 = vld [vmem:[%s3926_s30 + $0x18] sm:$0xe]  ;;  %v822_v51 = vld [vmem:[%s3926_s30 + $0x1c] sm:$0xf] }
  0x22   : > { %3594 = vmatprep.mubr.msk.bf16.mxu1 %vm256_vm1, %v3198_v16  ;;  %v462_v31 = vsel %vm4013_vm7, %v457_v18, %v461_v56  ;;  %v877_v33 = vrot.slane %v875_v22, 4  ;;  %v477_v34 = vshll.u32 %v404_v7, 16  ;;  %v472_v36 = vsel %vm4013_vm7, %v467_v26, %v471_v63  ;;  %v823_v58 = vld [vmem:[%s3926_s30 + $0x20] sm:$0x1]  ;;  %v824_v63 = vld [vmem:[%s3926_s30 + $0x24] sm:$0xe] }
  0x23   : > { %3612 = vmatprep.mubr.msk.bf16.mxu0 %vm256_vm1, %v3223_v27  ;;  %v476_v37 = vrot.slane %v474_v30, 4  ;;  %v483_v38 = vshll.u32 %v405_v24, 16  ;;  %v487_v39 = vshrl.u32 %v405_v24, 16  ;;  %v3199_v41 = vcombine.low %v462_v31, %v472_v36  ;;  %v825_v4 = vld [vmem:[%s3926_s30 + $0x28] sm:$0xf] }
  0x24   : > { %v879_v42 = vsel %vm4007_vm6, %v877_v33, %v878_v28  ;;  %v479_v43 = vrot.slane %v477_v34, 5  ;;  %v493_v44 = vshll.u32 %v406_v29, 16  ;;  %v498_v50 = vshrl.u32 %v407_v35, 16  ;;  %v826_v10 = vld [vmem:[%s3926_s30 + $0x2c] sm:$0x1] }
  0x25   : > { %v3224_v47 = vcombine.low %v876_v32, %v879_v42  ;;  %v485_v48 = vrot.slane %v483_v38, 5  ;;  %v489_v49 = vrot.slane %v487_v39, 4  ;;  %3595 = vmatmul.mubr.msk.bf16.vlgmr.msra.gmra.mxu1 %vm256_vm1, %v3199_v41  ;;  %v501_v56 = vshll.u32 %v407_v35, 16  ;;  %v410_v18 = vld [vmem:[%s3926_s30 + $0x30] sm:$0xf] }
  0x26   : > { %v480_v52 = vor.u32 %v479_v43, %v476_v37  ;;  %v495_v55 = vrot.slane %v493_v44, 5  ;;  %v507_v57 = vshll.u32 %v408_v40, 16  ;;  %3629 = vmatpush3.bf16.msra.mxu1 %v3956_v14  ;;  %v500_v60 = vrot.slane %v498_v50, 4  ;;  %v411_v29 = vld [vmem:[%s3926_s30 + $0x34] sm:$0xf] }
  0x27   : > { %3613 = vmatmul.mubr.msk.bf16.vlgmr.msra.gmra.mxu0 %vm256_vm1, %v3224_v47  ;;  %v490_v59 = vor.u32 %v489_v49, %v485_v48  ;;  %v511_v61 = vshrl.u32 %v408_v40, 16  ;;  %v517_v62 = vshll.u32 %v409_v45, 16  ;;  %v503_v1 = vrot.slane %v501_v56, 5  ;;  %3744 = vmatprep.subr.msk.bf16.mxu1 %vm281_vm0, %v3937_v6  ;;  %v412_v32 = vld [vmem:[%s3926_s30 + $0x38] sm:$0x1] }
  0x28   : > { %v481_v0 = vrot.slane %v480_v52, 4  ;;  %v509_v2 = vrot.slane %v507_v57, 5  ;;  %3647 = vmatpush3.bf16.msra.mxu0 %v3966_v17  ;;  %v3216_v3 = vrot.slane %v821_v46, 9  ;;  %v882_v8 = vrot.slane %v822_v51, 5  ;;  %v413_v39 = vld [vmem:[%s3926_s30 + $0x3c] sm:$0xf] }
  0x29   : > { %v491_v14 = vrot.slane %v490_v59, 4  ;;  %v513_v5 = vrot.slane %v511_v61, 4  ;;  %v519_v7 = vrot.slane %v517_v62, 5  ;;  %3745 = vmatprep.subr.msk.bf16.mxu0 %vm281_vm0, %v3944_v9  ;;  %v504_v13 = vor.u32 %v503_v1, %v500_v60  ;;  %v414_v44 = vld [vmem:[%s3926_s30 + $0x40] sm:$0xf] }
  0x2a   : > { %v486_v11 = vsel %vm4013_vm7, %v481_v0, %v485_v48  ;;  %v885_v17 = vrot.slane %v823_v58, 5  ;;  %v3217_v16 = vrot.slane %v824_v63, 9  ;;  %v883_v22 = vsel %vm4007_vm6, %v3216_v3, %v882_v8  ;;  %v415_v49 = vld [vmem:[%s3926_s30 + $0x44] sm:$0x1]  ;;  %v827_v50 = vld [vmem:[%s3926_s30 + $0x30] sm:$0xe] }
  0x2b   : > { %v496_v6 = vsel %vm4013_vm7, %v491_v14, %v495_v55  ;;  %v514_v20 = vor.u32 %v513_v5, %v509_v2  ;;  %v884_v24 = vrot.slane %v882_v8, 4  ;;  %v505_v27 = vrot.slane %v504_v13, 4  ;;  %v828_v57 = vld [vmem:[%s3926_s30 + $0x34] sm:$0xf]  ;;  %v829_v58 = vld [vmem:[%s3926_s30 + $0x38] sm:$0x1] }
  0x2c   : > { %v3200_v26 = vcombine.low %v486_v11, %v496_v6  ;;  %v889_v9 = vrot.slane %v825_v4, 5  ;;  %v892_v28 = vrot.slane %v826_v10, 5  ;;  %v522_v33 = vshrl.u32 %v410_v18, 16  ;;  %v830_v63 = vld [vmem:[%s3926_s30 + $0x3c] sm:$0xe] }
  0x2d   : > { %v515_v30 = vrot.slane %v514_v20, 4  ;;  %v886_v31 = vsel %vm4007_vm6, %v884_v24, %v885_v17  ;;  %v525_v34 = vshll.u32 %v410_v18, 16  ;;  %v510_v35 = vsel %vm4013_vm7, %v505_v27, %v509_v2  ;;  %v831_v4 = vld [vmem:[%s3926_s30 + $0x40] sm:$0xf]  ;;  %v832_v10 = vld [vmem:[%s3926_s30 + $0x44] sm:$0x1] }
  0x2e   : > { %3598 = vmatprep.mubr.msk.bf16.mxu1 %vm256_vm1, %v3200_v26  ;;  %v3225_v36 = vcombine.low %v883_v22, %v886_v31  ;;  %v890_v37 = vsel %vm4007_vm6, %v3217_v16, %v889_v9  ;;  %v891_v38 = vrot.slane %v889_v9, 4  ;;  %v524_v41 = vrot.slane %v522_v33, 4  ;;  %v416_v18 = vld [vmem:[%s3926_s30 + $0x48] sm:$0xf]  ;;  %v417_v26 = vld [vmem:[%s3926_s30 + $0x4c] sm:$0xf] }
  0x2f   : > { %v520_v40 = vsel %vm4013_vm7, %v515_v30, %v519_v7  ;;  %v527_v42 = vrot.slane %v525_v34, 5  ;;  %v531_v43 = vshll.u32 %v411_v29, 16  ;;  %v535_v47 = vshrl.u32 %v411_v29, 16  ;;  %v418_v30 = vld [vmem:[%s3926_s30 + $0x50] sm:$0x1] }
  0x30   : > { %v3201_v45 = vcombine.low %v510_v35, %v520_v40  ;;  %3616 = vmatprep.mubr.msk.bf16.mxu0 %vm256_vm1, %v3225_v36  ;;  %v893_v46 = vsel %vm4007_vm6, %v891_v38, %v892_v28  ;;  %v541_v48 = vshll.u32 %v412_v32, 16  ;;  %v546_v56 = vshrl.u32 %v413_v39, 16  ;;  %v419_v31 = vld [vmem:[%s3926_s30 + $0x54] sm:$0xf] }
  0x31   : > { %v3226_v51 = vcombine.low %v890_v37, %v893_v46  ;;  %v528_v52 = vor.u32 %v527_v42, %v524_v41  ;;  %v533_v55 = vrot.slane %v531_v43, 5  ;;  %v537_v59 = vrot.slane %v535_v47, 4 }
  0x32   : > { %3599 = vmatmul.mubr.msk.bf16.gmra.mxu1 %vm256_vm1, %v3201_v45  ;;  %v543_v60 = vrot.slane %v541_v48, 5  ;;  %v549_v61 = vshll.u32 %v413_v39, 16  ;;  %v555_v62 = vshll.u32 %v414_v44, 16  ;;  %v548_v1 = vrot.slane %v546_v56, 4  ;;  %v833_v56 = vld [vmem:[%s3926_s30 + $0x48] sm:$0xe] }
  0x33   : > { %3617 = vmatmul.mubr.msk.bf16.gmra.mxu0 %vm256_vm1, %v3226_v51  ;;  %v529_v0 = vrot.slane %v528_v52, 4  ;;  %v559_v2 = vshrl.u32 %v414_v44, 16  ;;  %v565_v3 = vshll.u32 %v415_v49, 16  ;;  %v538_v14 = vor.u32 %v537_v59, %v533_v55  ;;  %v420_v44 = vld [vmem:[%s3926_s30 + $0x58] sm:$0xf] }
  0x34   : > { %v551_v5 = vrot.slane %v549_v61, 5  ;;  %v557_v7 = vrot.slane %v555_v62, 5  ;;  %v3218_v8 = vrot.slane %v827_v50, 9  ;;  %v896_v16 = vrot.slane %v828_v57, 5  ;;  %v421_v49 = vld [vmem:[%s3926_s30 + $0x5c] sm:$0x1] }
  0x35   : > { %v534_v11 = vsel %vm4013_vm7, %v529_v0, %v533_v55  ;;  %v561_v13 = vrot.slane %v559_v2, 4  ;;  %v567_v17 = vrot.slane %v565_v3, 5  ;;  %v539_v6 = vrot.slane %v538_v14, 4  ;;  %v834_v57 = vld [vmem:[%s3926_s30 + $0x4c] sm:$0xf] }
  0x36   : > { %v552_v20 = vor.u32 %v551_v5, %v548_v1  ;;  %v899_v22 = vrot.slane %v829_v58, 5  ;;  %v3219_v24 = vrot.slane %v830_v63, 9  ;;  %v897_v9 = vsel %vm4007_vm6, %v3218_v8, %v896_v16  ;;  %v835_v62 = vld [vmem:[%s3926_s30 + $0x50] sm:$0x1]  ;;  %v836_v3 = vld [vmem:[%s3926_s30 + $0x54] sm:$0xe] }
  0x37   : > { %v562_v27 = vor.u32 %v561_v13, %v557_v7  ;;  %v898_v28 = vrot.slane %v896_v16, 4  ;;  %v903_v29 = vrot.slane %v831_v4, 5  ;;  %v544_v32 = vsel %vm4013_vm7, %v539_v6, %v543_v60 }
  0x38   : > { %v553_v33 = vrot.slane %v552_v20, 4  ;;  %v906_v34 = vrot.slane %v832_v10, 5  ;;  %v570_v35 = vshrl.u32 %v416_v18, 16  ;;  %v3202_v36 = vcombine.low %v534_v11, %v544_v32  ;;  %v837_v20 = vld [vmem:[%s3926_s30 + $0x58] sm:$0xf] }
  0x39   : > { %v563_v37 = vrot.slane %v562_v27, 4  ;;  %v900_v38 = vsel %vm4007_vm6, %v898_v28, %v899_v22  ;;  %v904_v39 = vsel %vm4007_vm6, %v3219_v24, %v903_v29  ;;  %v905_v42 = vrot.slane %v903_v29, 4  ;;  %v3274_v28 = vld [vmem:[%s3926_s30 + $0xc] sm:$0xf] }
  0x3a   : > { %v558_v40 = vsel %vm4013_vm7, %v553_v33, %v557_v7  ;;  %v3227_v41 = vcombine.low %v897_v9, %v900_v38  ;;  %v572_v43 = vrot.slane %v570_v35, 4  ;;  %3602 = vmatprep.mubr.msk.bf16.mxu1 %vm256_vm1, %v3202_v36  ;;  %v573_v46 = vshll.u32 %v416_v18, 16  ;;  %v838_v9 = vld [vmem:[%s3926_s30 + $0x5c] sm:$0x1]  ;;  %v3275_v33 = vld [vmem:[%s3926_s30 + $0x10] sm:$0xf] }
  0x3b   : > { %v568_v45 = vsel %vm4013_vm7, %v563_v37, %v567_v17  ;;  %v579_v47 = vshll.u32 %v417_v26, 16  ;;  %v583_v48 = vshrl.u32 %v417_v26, 16  ;;  %v907_v51 = vsel %vm4007_vm6, %v905_v42, %v906_v34  ;;  %v3276_v34 = vld [vmem:[%s3926_s30 + $0x14] sm:$0x1] }
  0x3c   : > { %v3203_v50 = vcombine.low %v558_v40, %v568_v45  ;;  %3620 = vmatprep.mubr.msk.bf16.mxu0 %vm256_vm1, %v3227_v41  ;;  %v589_v52 = vshll.u32 %v418_v30, 16  ;;  %v594_v55 = vshrl.u32 %v419_v31, 16  ;;  %v3228_v58 = vcombine.low %v904_v39, %v907_v51  ;;  %v3277_v39 = vld [vmem:[%s3926_s30 + $0x18] sm:$0xf] }
  0x3d   : > { %v575_v59 = vrot.slane %v573_v46, 5  ;;  %v581_v60 = vrot.slane %v579_v47, 5  ;;  %v585_v61 = vrot.slane %v583_v48, 4  ;;  %v597_v1 = vshll.u32 %v419_v31, 16 }
  0x3e   : > { %3603 = vmatmul.mubr.msk.bf16.gmra.mxu1 %vm256_vm1, %v3203_v50  ;;  %v591_v63 = vrot.slane %v589_v52, 5  ;;  %v596_v0 = vrot.slane %v594_v55, 4  ;;  %v603_v2 = vshll.u32 %v420_v44, 16  ;;  %3621 = vmatmul.mubr.msk.bf16.gmra.mxu0 %vm256_vm1, %v3228_v58  ;;  %v607_v5 = vshrl.u32 %v420_v44, 16  ;;  %v3278_v55 = vld [vmem:[%s3926_s30 + $0x1c] sm:$0xf] }
  0x3f   : > { %v576_v4 = vor.u32 %v575_v59, %v572_v43  ;;  %v586_v14 = vor.u32 %v585_v61, %v581_v60  ;;  %v613_v7 = vshll.u32 %v421_v49, 16  ;;  %v599_v8 = vrot.slane %v597_v1, 5  ;;  %v3797_v49 = vld [vmem:[%s3926_s30 + $0xc] sm:$0xff]   ;;  %v3280_v1 = vld [vmem:[%s3926_s30 + $0x24] sm:$0xf] }
  0x40   : > { %v605_v10 = vrot.slane %v603_v2, 5  ;;  %v3220_v11 = vrot.slane %v833_v56, 9  ;;  %v910_v13 = vrot.slane %v834_v57, 5  ;;  %v609_v18 = vrot.slane %v607_v5, 4  ;;  %v3281_v5 = vld [vmem:[%s3926_s30 + $0x28] sm:$0xf] }
  0x41   : > { %v577_v17 = vrot.slane %v576_v4, 4  ;;  %v587_v16 = vrot.slane %v586_v14, 4  ;;  %v615_v6 = vrot.slane %v613_v7, 5  ;;  %v600_v22 = vor.u32 %v599_v8, %v596_v0 }
  0x42   : > { %v911_v24 = vsel %vm4007_vm6, %v3220_v11, %v910_v13  ;;  %v912_v26 = vrot.slane %v910_v13, 4  ;;  %v913_v27 = vrot.slane %v835_v62, 5  ;;  %v610_v31 = vor.u32 %v609_v18, %v605_v10  ;;  %v3282_v13 = vld [vmem:[%s3926_s30 + $0x2c] sm:$0x1] }
  0x43   : > { %v582_v29 = vsel %vm4013_vm7, %v577_v17, %v581_v60  ;;  %v592_v30 = vsel %vm4013_vm7, %v587_v16, %v591_v63  ;;  %v3221_v32 = vrot.slane %v836_v3, 9  ;;  %v601_v36 = vrot.slane %v600_v22, 4  ;;  %v3279_v60 = vld [vmem:[%s3926_s30 + $0x20] sm:$0x1]  ;;  %v3798_v17 = vld [vmem:[%s3926_s30 + $0x18] sm:$0xff]  }
  0x44   : > { %v3204_v35 = vcombine.low %v582_v29, %v592_v30  ;;  %v914_v37 = vsel %vm4007_vm6, %v912_v26, %v913_v27  ;;  %v917_v38 = vrot.slane %v837_v20, 5  ;;  %v611_v40 = vrot.slane %v610_v31, 4  ;;  %v3283_v22 = vld [vmem:[%s3926_s30 + $0x30] sm:$0xf] }
  0x45   : > { %v3229_v41 = vcombine.low %v911_v24, %v914_v37  ;;  %v920_v42 = vrot.slane %v838_v9, 5  ;;  %v1379_v43 = vshrl.u32 %v3274_v28, 16  ;;  %v606_v44 = vsel %vm4013_vm7, %v601_v36, %v605_v10  ;;  %v3284_v37 = vld [vmem:[%s3926_s30 + $0x34] sm:$0xf] }
  0x46   : > { %3606 = vmatprep.mubr.msk.bf16.mxu1 %vm256_vm1, %v3204_v35  ;;  %v918_v45 = vsel %vm4007_vm6, %v3221_v32, %v917_v38  ;;  %v919_v46 = vrot.slane %v917_v38, 4  ;;  %v1382_v47 = vshll.u32 %v3274_v28, 16  ;;  %v616_v48 = vsel %vm4013_vm7, %v611_v40, %v615_v6 }
  0x47   : > { %3624 = vmatprep.mubr.msk.bf16.mxu0 %vm256_vm1, %v3229_v41  ;;  %v1381_v50 = vrot.slane %v1379_v43, 4  ;;  %v1388_v51 = vshll.u32 %v3275_v33, 16  ;;  %v1392_v52 = vshrl.u32 %v3275_v33, 16  ;;  %v3205_v56 = vcombine.low %v606_v44, %v616_v48 }
  0x48   : > { %v921_v57 = vsel %vm4007_vm6, %v919_v46, %v920_v42  ;;  %v1384_v58 = vrot.slane %v1382_v47, 5  ;;  %v1398_v59 = vshll.u32 %v3276_v34, 16  ;;  %v1403_v0 = vshrl.u32 %v3277_v39, 16  ;;  %v3799_v34 = vld [vmem:[%s3926_s30 + $0x24] sm:$0xff]  }
  0x49   : > { %v3230_v61 = vcombine.low %v918_v45, %v921_v57  ;;  %v1390_v62 = vrot.slane %v1388_v51, 5  ;;  %v1394_v63 = vrot.slane %v1392_v52, 4  ;;  %3607 = vmatmul.mubr.msk.bf16.gmra.mxu1 %vm256_vm1, %v3205_v56  ;;  %v1406_v4 = vshll.u32 %v3277_v39, 16  ;;  %v3285_v45 = vld [vmem:[%s3926_s30 + $0x38] sm:$0x1] }
  0x4a   : > { %v1385_v2 = vor.u32 %v1384_v58, %v1381_v50  ;;  %v1400_v3 = vrot.slane %v1398_v59, 5  ;;  %v1412_v14 = vshll.u32 %v3278_v55, 16  ;;  %3630 = vmatprep.mubr.msk.bf16.mxu1 %vm256_vm1, %v3797_v49  ;;  %v1405_v8 = vrot.slane %v1403_v0, 4  ;;  %v3286_v51 = vld [vmem:[%s3926_s30 + $0x3c] sm:$0xf] }
  0x4b   : > { %3625 = vmatmul.mubr.msk.bf16.gmra.mxu0 %vm256_vm1, %v3230_v61  ;;  %v1395_v7 = vor.u32 %v1394_v63, %v1390_v62  ;;  %v1416_v10 = vshrl.u32 %v3278_v55, 16  ;;  %v1422_v11 = vshll.u32 %v3279_v60, 16  ;;  %v1408_v18 = vrot.slane %v1406_v4, 5  ;;  %v3287_v58 = vld [vmem:[%s3926_s30 + $0x40] sm:$0xf] }
  0x4c   : > { %v1386_v16 = vrot.slane %v1385_v2, 4  ;;  %v1414_v6 = vrot.slane %v1412_v14, 5  ;;  %v1427_v20 = vshrl.u32 %v3280_v1, 16  ;;  %v1430_v9 = vshll.u32 %v3280_v1, 16  ;;  %v3288_v1 = vld [vmem:[%s3926_s30 + $0x44] sm:$0x1] }
  0x4d   : > { %v1396_v24 = vrot.slane %v1395_v7, 4  ;;  %v1418_v26 = vrot.slane %v1416_v10, 4  ;;  %v1424_v27 = vrot.slane %v1422_v11, 5  ;;  %v1409_v29 = vor.u32 %v1408_v18, %v1405_v8  ;;  %v3289_v8 = vld [vmem:[%s3926_s30 + $0x48] sm:$0xf]  ;;  %v3801_v11 = vld [vmem:[%s3926_s30 + $0x3c] sm:$0xff]  }
  0x4e   : > { %v1391_v28 = vsel %vm4013_vm7, %v1386_v16, %v1390_v62  ;;  %v1429_v30 = vrot.slane %v1427_v20, 4  ;;  %v1436_v31 = vshll.u32 %v3281_v5, 16  ;;  %v1432_v35 = vrot.slane %v1430_v9, 5  ;;  %v3290_v16 = vld [vmem:[%s3926_s30 + $0x4c] sm:$0xf] }
  0x4f   : > { %v1401_v32 = vsel %vm4013_vm7, %v1396_v24, %v1400_v3  ;;  %v1419_v33 = vor.u32 %v1418_v26, %v1414_v6  ;;  %v1440_v36 = vshrl.u32 %v3281_v5, 16  ;;  %v1410_v39 = vrot.slane %v1409_v29, 4  ;;  %v3800_v3 = vld [vmem:[%s3926_s30 + $0x30] sm:$0xff]  }
  0x50   : > { %v3299_v38 = vcombine.low %v1391_v28, %v1401_v32  ;;  %v1438_v40 = vrot.slane %v1436_v31, 5  ;;  %v1446_v41 = vshll.u32 %v3282_v13, 16  ;;  %v1433_v43 = vor.u32 %v1432_v35, %v1429_v30  ;;  %v3291_v24 = vld [vmem:[%s3926_s30 + $0x50] sm:$0x1]  ;;  %v3292_v35 = vld [vmem:[%s3926_s30 + $0x54] sm:$0xf] }
  0x51   : > { %v1420_v42 = vrot.slane %v1419_v33, 4  ;;  %v1442_v44 = vrot.slane %v1440_v36, 4  ;;  %v1451_v46 = vshrl.u32 %v3283_v22, 16  ;;  %3631 = vmatmul.mubr.msk.bf16.vlgmr.msra.gmra.mxu1 %vm256_vm1, %v3798_v17  ;;  %v1415_v47 = vsel %vm4013_vm7, %v1410_v39, %v1414_v6 }
  0x52   : > { %3648 = vmatprep.mubr.msk.bf16.mxu0 %vm256_vm1, %v3299_v38  ;;  %v1448_v48 = vrot.slane %v1446_v41, 5  ;;  %v1454_v49 = vshll.u32 %v3283_v22, 16  ;;  %v1460_v50 = vshll.u32 %v3284_v37, 16  ;;  %3665 = vmatpush3.bf16.msra.mxu1 %v3972_v19  ;;  %v1434_v55 = vrot.slane %v1433_v43, 4 }
  0x53   : > { %v1425_v52 = vsel %vm4013_vm7, %v1420_v42, %v1424_v27  ;;  %3634 = vmatprep.mubr.msk.bf16.mxu1 %vm256_vm1, %v3799_v34  ;;  %v1443_v56 = vor.u32 %v1442_v44, %v1438_v40  ;;  %v1453_v57 = vrot.slane %v1451_v46, 4  ;;  %v1464_v62 = vshrl.u32 %v3284_v37, 16  ;;  %3746 = vmatprep.subr.msk.bf16.mxu1 %vm281_vm0, %v3951_v12  ;;  %v3802_v42 = vld [vmem:[%s3926_s30 + $0x48] sm:$0xff]  }
  0x54   : > { %v3300_v59 = vcombine.low %v1415_v47, %v1425_v52  ;;  %v1456_v60 = vrot.slane %v1454_v49, 5  ;;  %v1462_v61 = vrot.slane %v1460_v50, 5  ;;  %v1439_v19 = vsel %vm4013_vm7, %v1434_v55, %v1438_v40  ;;  %v3293_v40 = vld [vmem:[%s3926_s30 + $0x58] sm:$0xf]  ;;  %v3294_v49 = vld [vmem:[%s3926_s30 + $0x5c] sm:$0x1] }
  0x55   : > { %v1444_v63 = vrot.slane %v1443_v56, 4  ;;  %v1470_v0 = vshll.u32 %v3285_v45, 16  ;;  %v1475_v2 = vshrl.u32 %v3286_v51, 16  ;;  %v1466_v14 = vrot.slane %v1464_v62, 4  ;;  %v3803_v56 = vld [vmem:[%s3926_s30 + $0x54] sm:$0xff]  }
  0x56   : > { %3649 = vmatmul.mubr.msk.bf16.vlgmr.msra.gmra.mxu0 %vm256_vm1, %v3300_v59  ;;  %v1457_v4 = vor.u32 %v1456_v60, %v1453_v57  ;;  %v1478_v5 = vshll.u32 %v3286_v51, 16  ;;  %v1484_v7 = vshll.u32 %v3287_v58, 16  ;;  %v1488_v17 = vshrl.u32 %v3287_v58, 16  ;;  %v3295_v51 = vld [vmem:[%s3926_s30 + $0x60] sm:$0xf] }
  0x57   : > { %3683 = vmatpush3.bf16.msra.mxu0 %v3979_v21  ;;  %v1449_v12 = vsel %vm4013_vm7, %v1444_v63, %v1448_v48  ;;  %v1472_v10 = vrot.slane %v1470_v0, 5  ;;  %v1477_v13 = vrot.slane %v1475_v2, 4  ;;  %v1467_v20 = vor.u32 %v1466_v14, %v1462_v61  ;;  %v3296_v59 = vld [vmem:[%s3926_s30 + $0x64] sm:$0xf] }
  0x58   : > { %v3301_v18 = vcombine.low %v1439_v19, %v1449_v12  ;;  %v1458_v6 = vrot.slane %v1457_v4, 4  ;;  %v1480_v22 = vrot.slane %v1478_v5, 5  ;;  %3747 = vmatprep.subr.msk.bf16.mxu0 %vm281_vm0, %v3961_v15  ;;  %v1486_v26 = vrot.slane %v1484_v7, 5  ;;  %v3315_v4 = vld [vmem:[%s3926_s30 + $0xc] sm:$0xe] }
  0x59   : > { %v1490_v27 = vrot.slane %v1488_v17, 4  ;;  %v1494_v21 = vshll.u32 %v3288_v1, 16  ;;  %v1499_v9 = vshrl.u32 %v3289_v8, 16  ;;  %3635 = vmatmul.mubr.msk.bf16.gmra.mxu1 %vm256_vm1, %v3800_v3  ;;  %v1468_v29 = vrot.slane %v1467_v20, 4  ;;  %v3297_v3 = vld [vmem:[%s3926_s30 + $0x68] sm:$0x1] }
  0x5a   : > { %3652 = vmatprep.mubr.msk.bf16.mxu0 %vm256_vm1, %v3301_v18  ;;  %v1463_v28 = vsel %vm4013_vm7, %v1458_v6, %v1462_v61  ;;  %v1481_v30 = vor.u32 %v1480_v22, %v1477_v13  ;;  %v1502_v31 = vshll.u32 %v3289_v8, 16  ;;  %3638 = vmatprep.mubr.msk.bf16.mxu1 %vm256_vm1, %v3801_v11  ;;  %v1508_v34 = vshll.u32 %v3290_v16, 16  ;;  %v3316_v12 = vld [vmem:[%s3926_s30 + $0x10] sm:$0xf] }
  0x5b   : > { %v1491_v15 = vor.u32 %v1490_v27, %v1486_v26  ;;  %v1496_v32 = vrot.slane %v1494_v21, 5  ;;  %v1501_v33 = vrot.slane %v1499_v9, 4  ;;  %v1473_v36 = vsel %vm4013_vm7, %v1468_v29, %v1472_v10  ;;  %v3320_v29 = vld [vmem:[%s3926_s30 + $0x20] sm:$0x1] }
  0x5c   : > { %v1482_v37 = vrot.slane %v1481_v30, 4  ;;  %v1504_v38 = vrot.slane %v1502_v31, 5  ;;  %v1512_v39 = vshrl.u32 %v3290_v16, 16  ;;  %v3302_v41 = vcombine.low %v1463_v28, %v1473_v36  ;;  %v3317_v16 = vld [vmem:[%s3926_s30 + $0x14] sm:$0x1]  ;;  %v3804_v30 = vld [vmem:[%s3926_s30 + $0x60] sm:$0xff]  }
  0x5d   : > { %v1492_v43 = vrot.slane %v1491_v15, 4  ;;  %v1510_v44 = vrot.slane %v1508_v34, 5  ;;  %v1518_v45 = vshll.u32 %v3291_v24, 16  ;;  %v1523_v50 = vshrl.u32 %v3292_v35, 16  ;;  %v3318_v24 = vld [vmem:[%s3926_s30 + $0x18] sm:$0xe] }
  0x5e   : > { %v1487_v46 = vsel %vm4013_vm7, %v1482_v37, %v1486_v26  ;;  %v1505_v47 = vor.u32 %v1504_v38, %v1501_v33  ;;  %v1514_v48 = vrot.slane %v1512_v39, 4  ;;  %3653 = vmatmul.mubr.msk.bf16.gmra.mxu0 %vm256_vm1, %v3302_v41  ;;  %v1526_v57 = vshll.u32 %v3292_v35, 16  ;;  %v3319_v28 = vld [vmem:[%s3926_s30 + $0x1c] sm:$0xf]  ;;  %v3321_v34 = vld [vmem:[%s3926_s30 + $0x24] sm:$0xe] }
  0x5f   : > { %v1497_v52 = vsel %vm4013_vm7, %v1492_v43, %v1496_v32  ;;  %v1520_v55 = vrot.slane %v1518_v45, 5  ;;  %v1532_v58 = vshll.u32 %v3293_v40, 16  ;;  %v1525_v19 = vrot.slane %v1523_v50, 4  ;;  %v3322_v39 = vld [vmem:[%s3926_s30 + $0x28] sm:$0xf] }
  0x60   : > { %v3303_v60 = vcombine.low %v1487_v46, %v1497_v52  ;;  %v1506_v61 = vrot.slane %v1505_v47, 4  ;;  %v1515_v62 = vor.u32 %v1514_v48, %v1510_v44  ;;  %v1528_v63 = vrot.slane %v1526_v57, 5  ;;  %v3324_v45 = vld [vmem:[%s3926_s30 + $0x30] sm:$0xe]  ;;  %v3325_v46 = vld [vmem:[%s3926_s30 + $0x34] sm:$0xf] }
  0x61   : > { %v1534_v0 = vrot.slane %v1532_v58, 5  ;;  %v1536_v1 = vshrl.u32 %v3293_v40, 16  ;;  %v1542_v2 = vshll.u32 %v3294_v49, 16  ;;  %3639 = vmatmul.mubr.msk.bf16.gmra.mxu1 %vm256_vm1, %v3802_v42  ;;  %v1547_v7 = vshrl.u32 %v3295_v51, 16  ;;  %v3323_v40 = vld [vmem:[%s3926_s30 + $0x2c] sm:$0x1] }
  0x62   : > { %3656 = vmatprep.mubr.msk.bf16.mxu0 %vm256_vm1, %v3303_v60  ;;  %v1511_v14 = vsel %vm4013_vm7, %v1506_v61, %v1510_v44  ;;  %v1516_v5 = vrot.slane %v1515_v62, 4  ;;  %v1550_v8 = vshll.u32 %v3295_v51, 16  ;;  %3642 = vmatprep.mubr.msk.bf16.mxu1 %vm256_vm1, %v3803_v56  ;;  %v1529_v10 = vor.u32 %v1528_v63, %v1525_v19  ;;  %v3326_v51 = vld [vmem:[%s3926_s30 + $0x38] sm:$0x1]  ;;  %v3328_v63 = vld [vmem:[%s3926_s30 + $0x40] sm:$0xf] }
  0x63   : > { %v1538_v11 = vrot.slane %v1536_v1, 4  ;;  %v1544_v13 = vrot.slane %v1542_v2, 5  ;;  %v1556_v17 = vshll.u32 %v3296_v59, 16  ;;  %v1549_v6 = vrot.slane %v1547_v7, 4  ;;  %v3805_v58 = vld [vmem:[%s3926_s30 + $0x18] sm:$0xff]  }
  0x64   : > { %v1521_v18 = vsel %vm4013_vm7, %v1516_v5, %v1520_v55  ;;  %v1552_v20 = vrot.slane %v1550_v8, 5  ;;  %v1560_v22 = vshrl.u32 %v3296_v59, 16  ;;  %v1530_v27 = vrot.slane %v1529_v10, 4  ;;  %v3327_v59 = vld [vmem:[%s3926_s30 + $0x3c] sm:$0xe] }
  0x65   : > { %v3304_v26 = vcombine.low %v1511_v14, %v1521_v18  ;;  %v1539_v21 = vor.u32 %v1538_v11, %v1534_v0  ;;  %v1558_v9 = vrot.slane %v1556_v17, 5  ;;  %v1566_v32 = vshll.u32 %v3297_v3, 16  ;;  %v3330_v14 = vld [vmem:[%s3926_s30 + $0x48] sm:$0xe]  ;;  %v3331_v5 = vld [vmem:[%s3926_s30 + $0x4c] sm:$0xf] }
  0x66   : > { %v1553_v31 = vor.u32 %v1552_v20, %v1549_v6  ;;  %v1562_v15 = vrot.slane %v1560_v22, 4  ;;  %v3339_v33 = vrot.slane %v3315_v4, 9  ;;  %v1535_v35 = vsel %vm4013_vm7, %v1530_v27, %v1534_v0  ;;  %v3329_v0 = vld [vmem:[%s3926_s30 + $0x44] sm:$0x1]  ;;  %v3332_v11 = vld [vmem:[%s3926_s30 + $0x50] sm:$0x1] }
  0x67   : > { %3657 = vmatmul.mubr.msk.bf16.gmra.mxu0 %vm256_vm1, %v3304_v26  ;;  %v1540_v36 = vrot.slane %v1539_v21, 4  ;;  %v1818_v37 = vrot.slane %v3316_v12, 5  ;;  %v1821_v38 = vrot.slane %v3317_v16, 5  ;;  %v1568_v43 = vrot.slane %v1566_v32, 5  ;;  %v3333_v6 = vld [vmem:[%s3926_s30 + $0x54] sm:$0xe] }
  0x68   : > { %v1554_v41 = vrot.slane %v1553_v31, 4  ;;  %v1563_v42 = vor.u32 %v1562_v15, %v1558_v9  ;;  %v3340_v44 = vrot.slane %v3318_v24, 9  ;;  %v1825_v50 = vrot.slane %v3319_v28, 5  ;;  %v3334_v20 = vld [vmem:[%s3926_s30 + $0x58] sm:$0xf] }
  0x69   : > { %v1545_v47 = vsel %vm4013_vm7, %v1540_v36, %v1544_v13  ;;  %v1819_v48 = vsel %vm4007_vm6, %v3339_v33, %v1818_v37  ;;  %v1820_v49 = vrot.slane %v1818_v37, 4  ;;  %3643 = vmatmul.mubr.msk.bf16.gmra.mxu1 %vm256_vm1, %v3804_v30  ;;  %v1828_v57 = vrot.slane %v3320_v29, 5  ;;  %v3335_v30 = vld [vmem:[%s3926_s30 + $0x5c] sm:$0x1]  ;;  %v3806_v36 = vld [vmem:[%s3926_s30 + $0x24] sm:$0xff]  }
  0x6a   : > { %v3305_v52 = vcombine.low %v1535_v35, %v1545_v47  ;;  %v1559_v55 = vsel %vm4013_vm7, %v1554_v41, %v1558_v9  ;;  %v1564_v56 = vrot.slane %v1563_v42, 4  ;;  %v1826_v61 = vsel %vm4007_vm6, %v3340_v44, %v1825_v50  ;;  %v3337_v35 = vld [vmem:[%s3926_s30 + $0x64] sm:$0xf]  ;;  %v3338_v41 = vld [vmem:[%s3926_s30 + $0x68] sm:$0x1]  ;;  %v3807_v42 = vld [vmem:[%s3926_s30 + $0x30] sm:$0xff]  }
  0x6b   : > { %v1822_v60 = vsel %vm4007_vm6, %v1820_v49, %v1821_v38  ;;  %v1827_v62 = vrot.slane %v1825_v50, 4  ;;  %v3341_v19 = vrot.slane %v3321_v34, 9  ;;  %v1832_v3 = vrot.slane %v3322_v39, 5  ;;  %v3336_v34 = vld [vmem:[%s3926_s30 + $0x60] sm:$0xe] }
  0x6c   : > { %3660 = vmatprep.mubr.msk.bf16.mxu0 %vm256_vm1, %v3305_v52  ;;  %v1569_v1 = vsel %vm4013_vm7, %v1564_v56, %v1568_v43  ;;  %v3348_v2 = vcombine.low %v1819_v48, %v1822_v60  ;;  %v1835_v4 = vrot.slane %v3323_v40, 5  ;;  %v3342_v12 = vrot.slane %v3324_v45, 9  ;;  %v3399_v47 = vld [vmem:[%s3926_s30 + $0x18] sm:$0xf]  ;;  %v3400_v52 = vld [vmem:[%s3926_s30 + $0x1c] sm:$0xf] }
  0x6d   : > { %v3306_v7 = vcombine.low %v1559_v55, %v1569_v1  ;;  %v1829_v8 = vsel %vm4007_vm6, %v1827_v62, %v1828_v57  ;;  %v1839_v10 = vrot.slane %v3325_v46, 5  ;;  %v1833_v17 = vsel %vm4007_vm6, %v3341_v19, %v1832_v3  ;;  %v3402_v19 = vld [vmem:[%s3926_s30 + $0x24] sm:$0xf] }
  0x6e   : > { %3666 = vmatprep.mubr.msk.bf16.mxu1 %vm256_vm1, %v3348_v2  ;;  %v3349_v13 = vcombine.low %v1826_v61, %v1829_v8  ;;  %v1834_v16 = vrot.slane %v1832_v3, 4  ;;  %v1842_v18 = vrot.slane %v3326_v51, 5  ;;  %v3343_v26 = vrot.slane %v3327_v59, 9  ;;  %v3403_v3 = vld [vmem:[%s3926_s30 + $0x28] sm:$0xf] }
  0x6f   : > { %3661 = vmatmul.mubr.msk.bf16.gmra.mxu0 %vm256_vm1, %v3306_v7  ;;  %v4262_v22 = vsel %vm4007_vm6, %v3342_v12, %v1839_v10  ;;  %v1841_v24 = vrot.slane %v1839_v10, 4  ;;  %v1846_v27 = vrot.slane %v3328_v63, 5  ;;  %v1849_v9 = vrot.slane %v3329_v0, 5  ;;  %v3404_v8 = vld [vmem:[%s3926_s30 + $0x2c] sm:$0x1] }
  0x70   : > { %3684 = vmatprep.mubr.msk.bf16.mxu0 %vm256_vm1, %v3805_v58  ;;  %v1836_v21 = vsel %vm4007_vm6, %v1834_v16, %v1835_v4  ;;  %v3344_v28 = vrot.slane %v3330_v14, 9  ;;  %v1853_v29 = vrot.slane %v3331_v5, 5  ;;  %v1856_v40 = vrot.slane %v3332_v11, 5  ;;  %v3440_v12 = vld [vmem:[%s3926_s30 + $0x18] sm:$0xe]  ;;  %v3808_v16 = vld [vmem:[%s3926_s30 + $0x3c] sm:$0xff]  }
  0x71   : > { %v3350_v31 = vcombine.low %v1833_v17, %v1836_v21  ;;  %v1843_v15 = vsel %vm4007_vm6, %v1841_v24, %v1842_v18  ;;  %v1847_v32 = vsel %vm4007_vm6, %v3343_v26, %v1846_v27  ;;  %v1848_v33 = vrot.slane %v1846_v27, 4  ;;  %3667 = vmatmul.mubr.msk.bf16.vlgmr.msra.gmra.mxu1 %vm256_vm1, %v3349_v13  ;;  %v3441_v17 = vld [vmem:[%s3926_s30 + $0x1c] sm:$0xf]  ;;  %v3442_v24 = vld [vmem:[%s3926_s30 + $0x20] sm:$0x1]  ;;  %v3809_v26 = vld [vmem:[%s3926_s30 + $0x48] sm:$0xff]  }
  0x72   : > { %v3351_v37 = vcombine.low %v4262_v22, %v1843_v15  ;;  %v4279_v38 = vsel %vm4007_vm6, %v3344_v28, %v1853_v29  ;;  %v1855_v39 = vrot.slane %v1853_v29, 4  ;;  %3701 = vmatpush3.bf16.msra.mxu1 %v3985_v23  ;;  %v3345_v44 = vrot.slane %v3333_v6, 9  ;;  %v3401_v23 = vld [vmem:[%s3926_s30 + $0x20] sm:$0x1]  ;;  %v3443_v29 = vld [vmem:[%s3926_s30 + $0x24] sm:$0xe] }
  0x73   : > { %3670 = vmatprep.mubr.msk.bf16.mxu1 %vm256_vm1, %v3350_v31  ;;  %v1850_v43 = vsel %vm4007_vm6, %v1848_v33, %v1849_v9  ;;  %v1860_v45 = vrot.slane %v3334_v20, 5  ;;  %v1863_v46 = vrot.slane %v3335_v30, 5  ;;  %v3346_v50 = vrot.slane %v3336_v34, 9  ;;  %v3444_v33 = vld [vmem:[%s3926_s30 + $0x28] sm:$0xf] }
  0x74   : > { %v3352_v48 = vcombine.low %v1847_v32, %v1850_v43  ;;  %v4290_v49 = vsel %vm4007_vm6, %v1855_v39, %v1856_v40  ;;  %v1867_v51 = vrot.slane %v3337_v35, 5  ;;  %v1870_v58 = vrot.slane %v3338_v41, 5  ;;  %v3445_v39 = vld [vmem:[%s3926_s30 + $0x2c] sm:$0x1] }
  0x75   : > { %v3353_v55 = vcombine.low %v4279_v38, %v4290_v49  ;;  %v4298_v56 = vsel %vm4007_vm6, %v3345_v44, %v1860_v45  ;;  %v1862_v57 = vrot.slane %v1860_v45, 4  ;;  %v2329_v61 = vshrl.u32 %v3399_v47, 16  ;;  %v3405_v44 = vld [vmem:[%s3926_s30 + $0x30] sm:$0xf]  ;;  %v3811_v38 = vld [vmem:[%s3926_s30 + $0x60] sm:$0xff]  }
  0x76   : > { %v4302_v59 = vsel %vm4007_vm6, %v3346_v50, %v1867_v51  ;;  %v1869_v60 = vrot.slane %v1867_v51, 4  ;;  %v2332_v62 = vshll.u32 %v3399_v47, 16  ;;  %v2338_v0 = vshll.u32 %v3400_v52, 16 }
  0x77   : > { %3685 = vmatmul.mubr.msk.bf16.vlgmr.msra.gmra.mxu0 %vm256_vm1, %v3806_v36  ;;  %v4308_v63 = vsel %vm4007_vm6, %v1862_v57, %v1863_v46  ;;  %v2342_v1 = vshrl.u32 %v3400_v52, 16  ;;  %v2348_v2 = vshll.u32 %v3401_v23, 16  ;;  %v2331_v5 = vrot.slane %v2329_v61, 4  ;;  %v3406_v57 = vld [vmem:[%s3926_s30 + $0x34] sm:$0xf] }
  0x78   : > { %3719 = vmatpush3.bf16.msra.mxu0 %v3991_v25  ;;  %3688 = vmatprep.mubr.msk.bf16.mxu0 %vm256_vm1, %v3807_v42  ;;  %v3354_v4 = vcombine.low %v4298_v56, %v4308_v63  ;;  %v4317_v14 = vsel %vm4007_vm6, %v1869_v60, %v1870_v58  ;;  %v2334_v7 = vrot.slane %v2332_v62, 5  ;;  %v2340_v11 = vrot.slane %v2338_v0, 5  ;;  %v3407_v61 = vld [vmem:[%s3926_s30 + $0x38] sm:$0x1] }
  0x79   : > { %v3355_v10 = vcombine.low %v4302_v59, %v4317_v14  ;;  %v2344_v25 = vrot.slane %v2342_v1, 4  ;;  %v2350_v13 = vrot.slane %v2348_v2, 5  ;;  %3671 = vmatmul.mubr.msk.bf16.gmra.mxu1 %vm256_vm1, %v3351_v37  ;;  %v2353_v6 = vshrl.u32 %v3402_v19, 16  ;;  %v3810_v0 = vld [vmem:[%s3926_s30 + $0x54] sm:$0xff]  }
  0x7a   : > { %v2335_v18 = vor.u32 %v2334_v7, %v2331_v5  ;;  %v2356_v20 = vshll.u32 %v3402_v19, 16  ;;  %v2362_v22 = vshll.u32 %v3403_v3, 16  ;;  %3674 = vmatprep.mubr.msk.bf16.mxu1 %vm256_vm1, %v3352_v48  ;;  %v2366_v21 = vshrl.u32 %v3403_v3, 16  ;;  %v3408_v7 = vld [vmem:[%s3926_s30 + $0x3c] sm:$0xf] }
  0x7b   : > { %v2345_v27 = vor.u32 %v2344_v25, %v2340_v11  ;;  %v2372_v9 = vshll.u32 %v3404_v8, 16  ;;  %v3464_v28 = vrot.slane %v3440_v12, 9  ;;  %v2355_v31 = vrot.slane %v2353_v6, 4 }
  0x7c   : > { %v2336_v30 = vrot.slane %v2335_v18, 4  ;;  %v2358_v15 = vrot.slane %v2356_v20, 5  ;;  %v2364_v32 = vrot.slane %v2362_v22, 5  ;;  %v2368_v35 = vrot.slane %v2366_v21, 4  ;;  %v3447_v22 = vld [vmem:[%s3926_s30 + $0x34] sm:$0xf] }
  0x7d   : > { %v2346_v34 = vrot.slane %v2345_v27, 4  ;;  %v2374_v36 = vrot.slane %v2372_v9, 5  ;;  %v2768_v37 = vrot.slane %v3441_v17, 5  ;;  %v2771_v42 = vrot.slane %v3442_v24, 5  ;;  %v3446_v17 = vld [vmem:[%s3926_s30 + $0x30] sm:$0xe] }
  0x7e   : > { %v2341_v40 = vsel %vm4013_vm7, %v2336_v30, %v2340_v11  ;;  %v2359_v41 = vor.u32 %v2358_v15, %v2355_v31  ;;  %v3465_v43 = vrot.slane %v3443_v29, 9  ;;  %v2369_v46 = vor.u32 %v2368_v35, %v2364_v32  ;;  %v3409_v11 = vld [vmem:[%s3926_s30 + $0x40] sm:$0xf]  ;;  %v3448_v24 = vld [vmem:[%s3926_s30 + $0x38] sm:$0x1] }
  0x7f   : > { %3689 = vmatmul.mubr.msk.bf16.gmra.mxu0 %vm256_vm1, %v3808_v16  ;;  %v2351_v45 = vsel %vm4013_vm7, %v2346_v34, %v2350_v13  ;;  %v4340_v47 = vsel %vm4007_vm6, %v3464_v28, %v2768_v37  ;;  %v2770_v48 = vrot.slane %v2768_v37, 4  ;;  %v2775_v52 = vrot.slane %v3444_v33, 5  ;;  %v3449_v28 = vld [vmem:[%s3926_s30 + $0x3c] sm:$0xe]  ;;  %v3451_v37 = vld [vmem:[%s3926_s30 + $0x44] sm:$0x1] }
  0x80   : > { %3692 = vmatprep.mubr.msk.bf16.mxu0 %vm256_vm1, %v3809_v26  ;;  %v4343_v50 = vcombine.low %v2341_v40, %v2351_v45  ;;  %v2360_v51 = vrot.slane %v2359_v41, 4  ;;  %v2778_v23 = vrot.slane %v3445_v39, 5  ;;  %v2370_v58 = vrot.slane %v2369_v46, 4 }
  0x81   : > { %v4348_v60 = vsel %vm4007_vm6, %v2770_v48, %v2771_v42  ;;  %v2377_v62 = vshrl.u32 %v3405_v44, 16  ;;  %v2380_v19 = vshll.u32 %v3405_v44, 16  ;;  %3675 = vmatmul.mubr.msk.bf16.gmra.mxu1 %vm256_vm1, %v3353_v55  ;;  %v4362_v3 = vsel %vm4007_vm6, %v3465_v43, %v2775_v52  ;;  %v3411_v43 = vld [vmem:[%s3926_s30 + $0x48] sm:$0xf] }
  0x82   : > { %v2365_v1 = vsel %vm4013_vm7, %v2360_v51, %v2364_v32  ;;  %v3473_v2 = vcombine.low %v4340_v47, %v4348_v60  ;;  %v2777_v5 = vrot.slane %v2775_v52, 4  ;;  %3678 = vmatprep.mubr.msk.bf16.mxu1 %vm256_vm1, %v3354_v4  ;;  %v2375_v49 = vsel %vm4013_vm7, %v2370_v58, %v2374_v36  ;;  %v3410_v4 = vld [vmem:[%s3926_s30 + $0x44] sm:$0x1]  ;;  %v3450_v32 = vld [vmem:[%s3926_s30 + $0x40] sm:$0xf]  ;;  %v3812_v51 = vld [vmem:[%s3926_s30 + $0x6c] sm:$0xff]  }
  0x83   : > { %v2379_v55 = vrot.slane %v2377_v62, 4  ;;  %v2382_v8 = vrot.slane %v2380_v19, 5  ;;  %v2386_v12 = vshll.u32 %v3406_v57, 16  ;;  %v4373_v25 = vcombine.low %v2365_v1, %v2375_v49 }
  0x84   : > { %v4377_v13 = vsel %vm4007_vm6, %v2777_v5, %v2778_v23  ;;  %v2390_v56 = vshrl.u32 %v3406_v57, 16  ;;  %v2396_v63 = vshll.u32 %v3407_v61, 16  ;;  %v2401_v20 = vshrl.u32 %v3408_v7, 16  ;;  %v3412_v61 = vld [vmem:[%s3926_s30 + $0x4c] sm:$0xf] }
  0x85   : > { %v3474_v16 = vcombine.low %v4362_v3, %v4377_v13  ;;  %v2383_v18 = vor.u32 %v2382_v8, %v2379_v55  ;;  %v2388_v6 = vrot.slane %v2386_v12, 5  ;;  %v2404_v21 = vshll.u32 %v3408_v7, 16  ;;  %v3413_v5 = vld [vmem:[%s3926_s30 + $0x50] sm:$0x1]  ;;  %v3414_v7 = vld [vmem:[%s3926_s30 + $0x54] sm:$0xf] }
  0x86   : > { %v2392_v26 = vrot.slane %v2390_v56, 4  ;;  %v2398_v27 = vrot.slane %v2396_v63, 5  ;;  %v2410_v9 = vshll.u32 %v3409_v11, 16  ;;  %v2403_v30 = vrot.slane %v2401_v20, 4  ;;  %v3416_v20 = vld [vmem:[%s3926_s30 + $0x5c] sm:$0x1] }
  0x87   : > { %3693 = vmatmul.mubr.msk.bf16.gmra.mxu0 %vm256_vm1, %v3810_v0  ;;  %v2384_v29 = vrot.slane %v2383_v18, 4  ;;  %v2414_v31 = vshrl.u32 %v3409_v11, 16  ;;  %v2420_v15 = vshll.u32 %v3410_v4, 16  ;;  %v2406_v34 = vrot.slane %v2404_v21, 5  ;;  %v3415_v4 = vld [vmem:[%s3926_s30 + $0x58] sm:$0xf] }
  0x88   : > { %3696 = vmatprep.mubr.msk.bf16.mxu0 %vm256_vm1, %v3811_v38  ;;  %v2393_v33 = vor.u32 %v2392_v26, %v2388_v6  ;;  %v2412_v35 = vrot.slane %v2410_v9, 5  ;;  %v3466_v36 = vrot.slane %v3446_v17, 9  ;;  %v2782_v42 = vrot.slane %v3447_v22, 5  ;;  %v3418_v3 = vld [vmem:[%s3926_s30 + $0x64] sm:$0xf] }
  0x89   : > { %v2389_v39 = vsel %vm4013_vm7, %v2384_v29, %v2388_v6  ;;  %v2416_v40 = vrot.slane %v2414_v31, 4  ;;  %v2422_v41 = vrot.slane %v2420_v15, 5  ;;  %3679 = vmatmul.mubr.msk.bf16.gmra.mxu1 %vm256_vm1, %v3355_v10  ;;  %v2407_v45 = vor.u32 %v2406_v34, %v2403_v30 }
  0x8a   : > { %v2394_v44 = vrot.slane %v2393_v33, 4  ;;  %v2785_v46 = vrot.slane %v3448_v24, 5  ;;  %v3467_v48 = vrot.slane %v3449_v28, 9  ;;  %3702 = vmatprep.mubr.msk.bf16.mxu1 %vm256_vm1, %v4343_v50  ;;  %v4402_v23 = vsel %vm4007_vm6, %v3466_v36, %v2782_v42  ;;  %v3452_v24 = vld [vmem:[%s3926_s30 + $0x48] sm:$0xe] }
  0x8b   : > { %v2417_v52 = vor.u32 %v2416_v40, %v2412_v35  ;;  %v2784_v57 = vrot.slane %v2782_v42, 4  ;;  %v2789_v58 = vrot.slane %v3450_v32, 5  ;;  %v2408_v14 = vrot.slane %v2407_v45, 4  ;;  %v3453_v28 = vld [vmem:[%s3926_s30 + $0x4c] sm:$0xf] }
  0x8c   : > { %v2399_v59 = vsel %vm4013_vm7, %v2394_v44, %v2398_v27  ;;  %v2792_v10 = vrot.slane %v3451_v37, 5  ;;  %v2425_v62 = vshrl.u32 %v3411_v43, 16  ;;  %v2428_v11 = vshll.u32 %v3411_v43, 16  ;;  %v3454_v33 = vld [vmem:[%s3926_s30 + $0x50] sm:$0x1] }
  0x8d   : > { %v3426_v19 = vcombine.low %v2389_v39, %v2399_v59  ;;  %v2418_v0 = vrot.slane %v2417_v52, 4  ;;  %v2786_v50 = vsel %vm4007_vm6, %v2784_v57, %v2785_v46  ;;  %v4411_v1 = vsel %vm4007_vm6, %v3467_v48, %v2789_v58  ;;  %v3455_v39 = vld [vmem:[%s3926_s30 + $0x54] sm:$0xe]  ;;  %v3456_v43 = vld [vmem:[%s3926_s30 + $0x58] sm:$0xf] }
  0x8e   : > { %v2413_v38 = vsel %vm4013_vm7, %v2408_v14, %v2412_v35  ;;  %v3475_v49 = vcombine.low %v4402_v23, %v2786_v50  ;;  %v2791_v55 = vrot.slane %v2789_v58, 4  ;;  %v2427_v8 = vrot.slane %v2425_v62, 4  ;;  %v3417_v52 = vld [vmem:[%s3926_s30 + $0x60] sm:$0xf] }
  0x8f   : > { %3697 = vmatmul.mubr.msk.bf16.gmra.mxu0 %vm256_vm1, %v3812_v51  ;;  %v2423_v12 = vsel %vm4013_vm7, %v2418_v0, %v2422_v41  ;;  %v2434_v56 = vshll.u32 %v3412_v61, 16  ;;  %v2438_v63 = vshrl.u32 %v3412_v61, 16  ;;  %v2444_v6 = vshll.u32 %v3413_v5, 16  ;;  %v3457_v51 = vld [vmem:[%s3926_s30 + $0x5c] sm:$0x1] }
  0x90   : > { %3720 = vmatprep.mubr.msk.bf16.mxu0 %vm256_vm1, %v3473_v2  ;;  %v3427_v17 = vcombine.low %v2413_v38, %v2423_v12  ;;  %v4428_v18 = vsel %vm4007_vm6, %v2791_v55, %v2792_v10  ;;  %v2449_v22 = vshrl.u32 %v3414_v7, 16  ;;  %v2430_v27 = vrot.slane %v2428_v11, 5  ;;  %v3419_v0 = vld [vmem:[%s3926_s30 + $0x68] sm:$0x1]  ;;  %v3420_v55 = vld [vmem:[%s3926_s30 + $0x6c] sm:$0xf] }
  0x91   : > { %v3476_v26 = vcombine.low %v4411_v1, %v4428_v18  ;;  %v2436_v21 = vrot.slane %v2434_v56, 5  ;;  %v2440_v9 = vrot.slane %v2438_v63, 4  ;;  %3703 = vmatmul.mubr.msk.bf16.vlgmr.msra.gmra.mxu1 %vm256_vm1, %v4373_v25  ;;  %v2446_v47 = vrot.slane %v2444_v6, 5  ;;  %v3421_v63 = vld [vmem:[%s3926_s30 + $0x70] sm:$0xf] }
  0x92   : > { %v2451_v60 = vrot.slane %v2449_v22, 4  ;;  %v2452_v2 = vshll.u32 %v3414_v7, 16  ;;  %v2458_v29 = vshll.u32 %v3415_v4, 16  ;;  %3706 = vmatprep.mubr.msk.bf16.mxu1 %vm256_vm1, %v3426_v19  ;;  %v2431_v30 = vor.u32 %v2430_v27, %v2427_v8  ;;  %v3422_v22 = vld [vmem:[%s3926_s30 + $0x74] sm:$0x1] }
  0x93   : > { %v2441_v31 = vor.u32 %v2440_v9, %v2436_v21  ;;  %v2462_v15 = vshrl.u32 %v3415_v4, 16  ;;  %v2468_v32 = vshll.u32 %v3416_v20, 16  ;;  %v3468_v36 = vrot.slane %v3452_v24, 9  ;;  %v3458_v24 = vld [vmem:[%s3926_s30 + $0x60] sm:$0xe] }
  0x94   : > { %v2454_v34 = vrot.slane %v2452_v2, 5  ;;  %v2460_v35 = vrot.slane %v2458_v29, 5  ;;  %v2796_v37 = vrot.slane %v3453_v28, 5  ;;  %v2432_v25 = vrot.slane %v2431_v30, 4  ;;  %v3463_v1 = vld [vmem:[%s3926_s30 + $0x74] sm:$0x1] }
  0x95   : > { %v2442_v40 = vrot.slane %v2441_v31, 4  ;;  %v2464_v41 = vrot.slane %v2462_v15, 4  ;;  %v2470_v42 = vrot.slane %v2468_v32, 5  ;;  %v2799_v48 = vrot.slane %v3454_v33, 5  ;;  %v3460_v31 = vld [vmem:[%s3926_s30 + $0x68] sm:$0x1] }
  0x96   : > { %v2455_v44 = vor.u32 %v2454_v34, %v2451_v60  ;;  %v2797_v45 = vsel %vm4007_vm6, %v3468_v36, %v2796_v37  ;;  %v2798_v46 = vrot.slane %v2796_v37, 4  ;;  %v2437_v23 = vsel %vm4013_vm7, %v2432_v25, %v2436_v21 }
  0x97   : > { %3721 = vmatmul.mubr.msk.bf16.vlgmr.msra.gmra.mxu0 %vm256_vm1, %v3474_v16  ;;  %v2447_v57 = vsel %vm4013_vm7, %v2442_v40, %v2446_v47  ;;  %v2465_v58 = vor.u32 %v2464_v41, %v2460_v35  ;;  %v3469_v59 = vrot.slane %v3455_v39, 9  ;;  %v2803_v62 = vrot.slane %v3456_v43, 5  ;;  %v3459_v47 = vld [vmem:[%s3926_s30 + $0x64] sm:$0xf]  ;;  %v3462_v40 = vld [vmem:[%s3926_s30 + $0x70] sm:$0xf] }
  0x98   : > { %3724 = vmatprep.mubr.msk.bf16.mxu0 %vm256_vm1, %v3475_v49  ;;  %v3428_v14 = vcombine.low %v2437_v23, %v2447_v57  ;;  %v2456_v10 = vrot.slane %v2455_v44, 4  ;;  %v2800_v61 = vsel %vm4007_vm6, %v2798_v46, %v2799_v48  ;;  %v2806_v19 = vrot.slane %v3457_v51, 5 }
  0x99   : > { %v2466_v13 = vrot.slane %v2465_v58, 4  ;;  %v3477_v16 = vcombine.low %v2797_v45, %v2800_v61  ;;  %v2473_v50 = vshrl.u32 %v3417_v52, 16  ;;  %3707 = vmatmul.mubr.msk.bf16.gmra.mxu1 %vm256_vm1, %v3427_v17  ;;  %v4463_v7 = vsel %vm4007_vm6, %v3469_v59, %v2803_v62 }
  0x9a   : > { %v2461_v5 = vsel %vm4013_vm7, %v2456_v10, %v2460_v35  ;;  %v2805_v38 = vrot.slane %v2803_v62, 4  ;;  %v2476_v49 = vshll.u32 %v3417_v52, 16  ;;  %3710 = vmatprep.mubr.msk.bf16.mxu1 %vm256_vm1, %v3428_v14  ;;  %v2482_v11 = vshll.u32 %v3418_v3, 16  ;;  %v3461_v35 = vld [vmem:[%s3926_s30 + $0x6c] sm:$0xe]  ;;  %s4648_s30 = scalar_lea.vmem %s4735_s3, %s3177_s13 }
  0x9b   : > { %v2471_v8 = vsel %vm4013_vm7, %v2466_v13, %v2470_v42  ;;  %v2475_v12 = vrot.slane %v2473_v50, 4  ;;  %v2486_v56 = vshrl.u32 %v3418_v3, 16  ;;  %v2492_v20 = vshll.u32 %v3419_v0, 16 }
  0x9c   : > { %v3429_v4 = vcombine.low %v2461_v5, %v2471_v8  ;;  %v2807_v17 = vsel %vm4007_vm6, %v2805_v38, %v2806_v19  ;;  %v2478_v6 = vrot.slane %v2476_v49, 5  ;;  %v2484_v21 = vrot.slane %v2482_v11, 5 }
  0x9d   : > { %v3478_v27 = vcombine.low %v4463_v7, %v2807_v17  ;;  %v2488_v9 = vrot.slane %v2486_v56, 4  ;;  %v2497_v28 = vshrl.u32 %v3420_v55, 16  ;;  %v2494_v2 = vrot.slane %v2492_v20, 5 }
  0x9e   : > { %v2479_v60 = vor.u32 %v2478_v6, %v2475_v12  ;;  %v2500_v29 = vshll.u32 %v3420_v55, 16  ;;  %v2506_v30 = vshll.u32 %v3421_v63, 16  ;;  %v2510_v33 = vshrl.u32 %v3421_v63, 16 }
  0x9f   : > { %3725 = vmatmul.mubr.msk.bf16.gmra.mxu0 %vm256_vm1, %v3476_v26  ;;  %v2489_v15 = vor.u32 %v2488_v9, %v2484_v21  ;;  %v2499_v32 = vrot.slane %v2497_v28, 4  ;;  %v2516_v34 = vshll.u32 %v3422_v22, 16  ;;  %v3470_v25 = vrot.slane %v3458_v24, 9 }
  0xa0   : > { %3728 = vmatprep.mubr.msk.bf16.mxu0 %vm256_vm1, %v3477_v16  ;;  %v2480_v36 = vrot.slane %v2479_v60, 4  ;;  %v2502_v37 = vrot.slane %v2500_v29, 5  ;;  %v2508_v39 = vrot.slane %v2506_v30, 5  ;;  %v2512_v42 = vrot.slane %v2510_v33, 4 }
  0xa1   : > { %v2490_v41 = vrot.slane %v2489_v15, 4  ;;  %v2518_v43 = vrot.slane %v2516_v34, 5  ;;  %v2810_v44 = vrot.slane %v3459_v47, 5  ;;  %3711 = vmatmul.mubr.msk.bf16.gmra.mxu1 %vm256_vm1, %v3429_v4  ;;  %v2813_v45 = vrot.slane %v3460_v31, 5 }
  0xa2   : > { %v2485_v18 = vsel %vm4013_vm7, %v2480_v36, %v2484_v21  ;;  %v2503_v26 = vor.u32 %v2502_v37, %v2499_v32  ;;  %v3471_v46 = vrot.slane %v3461_v35, 9  ;;  %v2513_v51 = vor.u32 %v2512_v42, %v2508_v39 }
  0xa3   : > { %v2495_v48 = vsel %vm4013_vm7, %v2490_v41, %v2494_v2  ;;  %v2811_v52 = vsel %vm4007_vm6, %v3470_v25, %v2810_v44  ;;  %v2812_v23 = vrot.slane %v2810_v44, 4  ;;  %v2817_v59 = vrot.slane %v3462_v40, 5 }
  0xa4   : > { %v3430_v57 = vcombine.low %v2485_v18, %v2495_v48  ;;  %v2504_v58 = vrot.slane %v2503_v26, 4  ;;  %v2820_v14 = vrot.slane %v3463_v1, 5  ;;  %v2514_v10 = vrot.slane %v2513_v51, 4 }
  0xa5   : > { %v2814_v61 = vsel %vm4007_vm6, %v2812_v23, %v2813_v45  ;;  %v2819_v13 = vrot.slane %v2817_v59, 4  ;;  %v2818_v0 = vsel %vm4007_vm6, %v3471_v46, %v2817_v59 }
  0xa6   : > { %3714 = vmatprep.mubr.msk.bf16.mxu1 %vm256_vm1, %v3430_v57  ;;  %v2509_v62 = vsel %vm4013_vm7, %v2504_v58, %v2508_v39  ;;  %v3479_v3 = vcombine.low %v2811_v52, %v2814_v61  ;;  %v2519_v16 = vsel %vm4013_vm7, %v2514_v10, %v2518_v43 }
  0xa7   : > { %3729 = vmatmul.mubr.msk.bf16.gmra.mxu0 %vm256_vm1, %v3478_v27  ;;  %v3431_v19 = vcombine.low %v2509_v62, %v2519_v16  ;;  %v2821_v50 = vsel %vm4007_vm6, %v2819_v13, %v2820_v14 }
  0xa8   : > { %3732 = vmatprep.mubr.msk.bf16.mxu0 %vm256_vm1, %v3479_v3  ;;  %v3480_v5 = vcombine.low %v2818_v0, %v2821_v50 }
  0xa9   : > { %3715 = vmatmul.mubr.msk.bf16.gmra.mxu1 %vm256_vm1, %v3431_v19 }
  0xaf   : > { %3733 = vmatmul.mubr.msk.bf16.gmra.mxu0 %vm256_vm1, %v3480_v5 }
  0xd5   : > { %v3586_v7 = vpop.f32.mrf.mxu1 }
  0xd6   : > { %392 = vst.msk [vmem:[#allocation2 + $0x50] sm:$0xff] %vm256_vm1, %v3586_v7  ;;  %v3578_v54 = vpop.f32.mrf.mxu0 }
  0xd7   : > { %v351_v38 = vpop.f32.mrf.mxu1  ;;  %384 = vst.msk [vmem:[#allocation2 + $0x10] sm:$0xff] %vm256_vm1, %v3578_v54 }
  0xd8   : > { %390 = vst.msk [vmem:[#allocation2 + $0x40] sm:$0xff] %vm256_vm1, %v351_v38  ;;  %v319_v55 = vpop.f32.mrf.mxu0 }
  0xd9   : > { %v3587_v49 = vpop.f32.mrf.mxu1  ;;  %382 = vst.msk [vmem:[#allocation2] sm:$0xff] %vm256_vm1, %v319_v55 }
  0xda   : > { %393 = vst.msk [vmem:[#allocation2 + $0x58] sm:$0xff] %vm256_vm1, %v3587_v49  ;;  %v3579_v8 = vpop.f32.mrf.mxu0 }
  0xdb   : > { %v354_v53 = vpop.f32.mrf.mxu1  ;;  %385 = vst.msk [vmem:[#allocation2 + $0x18] sm:$0xff] %vm256_vm1, %v3579_v8 }
  0xdc   : > { %391 = vst.msk [vmem:[#allocation2 + $0x48] sm:$0xff] %vm256_vm1, %v354_v53  ;;  %v322_v11 = vpop.f32.mrf.mxu0 }
  0xdd   : > { %v3590_v12 = vpop.f32.mrf.mxu1  ;;  %383 = vst.msk [vmem:[#allocation2 + $0x8] sm:$0xff] %vm256_vm1, %v322_v11  ;;  %v777_v19 = vld [vmem:[#allocation2 + $0x50] sm:$0xff] }
  0xde   : > { %396 = vst.msk [vmem:[#allocation2 + $0x70] sm:$0xff] %vm256_vm1, %v3590_v12  ;;  %v3582_v63 = vpop.f32.mrf.mxu0  ;;  %v769_v24 = vld [vmem:[#allocation2 + $0x10] sm:$0xff] }
  0xdf   : > { %v367_v56 = vpop.f32.mrf.mxu1  ;;  %388 = vst.msk [vmem:[#allocation2 + $0x30] sm:$0xff] %vm256_vm1, %v3582_v63  ;;  %v775_v54 = vld [vmem:[#allocation2 + $0x40] sm:$0xff] }
  0xe0   : > { %394 = vst.msk [vmem:[#allocation2 + $0x60] sm:$0xff] %vm256_vm1, %v367_v56  ;;  %v335_v17 = vpop.f32.mrf.mxu0  ;;  %v767_v21 = vld [vmem:[#allocation2] sm:$0xff] }
  0xe1   : > { %v3591_v4 = vpop.f32.mrf.mxu1  ;;  %386 = vst.msk [vmem:[#allocation2 + $0x20] sm:$0xff] %vm256_vm1, %v335_v17  ;;  %v778_v11 = vld [vmem:[#allocation2 + $0x58] sm:$0xff] }
  0xe2   : > { %397 = vst.msk [vmem:[#allocation2 + $0x78] sm:$0xff] %vm256_vm1, %v3591_v4  ;;  %v3583_v20 = vpop.f32.mrf.mxu0  ;;  %v770_v30 = vld [vmem:[#allocation2 + $0x18] sm:$0xff] }
  0xe3   : > { %v370_v6 = vpop.f32.mrf.mxu1  ;;  %389 = vst.msk [vmem:[#allocation2 + $0x38] sm:$0xff] %vm256_vm1, %v3583_v20 }
  0xe4   : > { %395 = vst.msk [vmem:[#allocation2 + $0x68] sm:$0xff] %vm256_vm1, %v370_v6  ;;  %v338_v22 = vpop.f32.mrf.mxu0  ;;  %v768_v33 = vld [vmem:[#allocation2 + $0x8] sm:$0xff] }
  0xe5   : > { %387 = vst.msk [vmem:[#allocation2 + $0x28] sm:$0xff] %vm256_vm1, %v338_v22  ;;  %v3596_v27 = vpop.f32.mrf.mxu1  ;;  %v776_v6 = vld [vmem:[#allocation2 + $0x48] sm:$0xff] }
  0xe6   : > { %v785_v9 = vadd.f32 %v3596_v27, %v769_v24  ;;  %v773_v37 = vld [vmem:[#allocation2 + $0x30] sm:$0xff] }
  0xe7   : > { %v3614_v28 = vpop.f32.mrf.mxu0  ;;  %v704_v47 = vpop.f32.mrf.mxu1 }
  0xe8   : > { %801 = vst.msk [vmem:[#allocation2 + $0x10] sm:$0xff] %vm256_vm1, %v785_v9  ;;  %v783_v60 = vadd.f32 %v767_v21, %v704_v47  ;;  %v771_v41 = vld [vmem:[#allocation2 + $0x20] sm:$0xff] }
  0xe9   : > { %v1009_v2 = vpop.f32.mrf.mxu0  ;;  %v3597_v29 = vpop.f32.mrf.mxu1 }
  0xea   : > { %799 = vst.msk [vmem:[#allocation2] sm:$0xff] %vm256_vm1, %v783_v60  ;;  %v786_v31 = vadd.f32 %v3597_v29, %v770_v30  ;;  %v774_v52 = vld [vmem:[#allocation2 + $0x38] sm:$0xff] }
  0xeb   : > { %v3615_v15 = vpop.f32.mrf.mxu0  ;;  %v707_v32 = vpop.f32.mrf.mxu1 }
  0xec   : > { %802 = vst.msk [vmem:[#allocation2 + $0x18] sm:$0xff] %vm256_vm1, %v786_v31  ;;  %v784_v34 = vadd.f32 %v768_v33, %v707_v32  ;;  %v772_v14 = vld [vmem:[#allocation2 + $0x28] sm:$0xff]  ;;  %v779_v31 = vld [vmem:[#allocation2 + $0x60] sm:$0xff] }
  0xed   : > { %v1012_v35 = vpop.f32.mrf.mxu0 }
  0xee   : > { %800 = vst.msk [vmem:[#allocation2 + $0x8] sm:$0xff] %vm256_vm1, %v784_v34 }
  0xef   : > { %v1074_v36 = vld [vmem:[#allocation2 + $0x10] sm:$0xff] }
  0xf0   : > { %v1090_v39 = vadd.f32 %v3614_v28, %v1074_v36  ;;  %v781_v28 = vld [vmem:[#allocation2 + $0x70] sm:$0xff]  ;;  %v782_v36 = vld [vmem:[#allocation2 + $0x78] sm:$0xff] }
  0xf1   : > { %v1072_v25 = vld [vmem:[#allocation2] sm:$0xff] }
  0xf2   : > { %v3600_v40 = vpop.f32.mrf.mxu1  ;;  %1106 = vst.msk [vmem:[#allocation2 + $0x10] sm:$0xff] %vm256_vm1, %v1090_v39  ;;  %v1088_v42 = vadd.f32 %v1072_v25, %v1009_v2 }
  0xf3   : > { %v789_v43 = vadd.f32 %v3600_v40, %v773_v37  ;;  %v3618_v44 = vpop.f32.mrf.mxu0  ;;  %v1075_v1 = vld [vmem:[#allocation2 + $0x18] sm:$0xff] }
  0xf4   : > { %v720_v18 = vpop.f32.mrf.mxu1  ;;  %1104 = vst.msk [vmem:[#allocation2] sm:$0xff] %vm256_vm1, %v1088_v42  ;;  %v1091_v26 = vadd.f32 %v3615_v15, %v1075_v1 }
  0xf5   : > { %805 = vst.msk [vmem:[#allocation2 + $0x30] sm:$0xff] %vm256_vm1, %v789_v43  ;;  %v787_v45 = vadd.f32 %v771_v41, %v720_v18  ;;  %v1025_v46 = vpop.f32.mrf.mxu0  ;;  %v1073_v48 = vld [vmem:[#allocation2 + $0x8] sm:$0xff] }
  0xf6   : > { %v3601_v51 = vpop.f32.mrf.mxu1  ;;  %1107 = vst.msk [vmem:[#allocation2 + $0x18] sm:$0xff] %vm256_vm1, %v1091_v26  ;;  %v1089_v23 = vadd.f32 %v1073_v48, %v1012_v35  ;;  %v780_v41 = vld [vmem:[#allocation2 + $0x68] sm:$0xff] }
  0xf7   : > { %803 = vst.msk [vmem:[#allocation2 + $0x20] sm:$0xff] %vm256_vm1, %v787_v45  ;;  %v790_v57 = vadd.f32 %v3601_v51, %v774_v52  ;;  %v3619_v58 = vpop.f32.mrf.mxu0 }
  0xf8   : > { %v723_v59 = vpop.f32.mrf.mxu1  ;;  %1105 = vst.msk [vmem:[#allocation2 + $0x8] sm:$0xff] %vm256_vm1, %v1089_v23 }
  0xf9   : > { %806 = vst.msk [vmem:[#allocation2 + $0x38] sm:$0xff] %vm256_vm1, %v790_v57  ;;  %v788_v10 = vadd.f32 %v772_v14, %v723_v59  ;;  %v1028_v61 = vpop.f32.mrf.mxu0 }
  0xfb   : > { %804 = vst.msk [vmem:[#allocation2 + $0x28] sm:$0xff] %vm256_vm1, %v788_v10 }
  0xfc   : > { %v1078_v62 = vld [vmem:[#allocation2 + $0x30] sm:$0xff] }
  0xfd   : > { %v1094_v3 = vadd.f32 %v3618_v44, %v1078_v62  ;;  %v1308_v44 = vld [vmem:[#allocation2 + $0x10] sm:$0xff]  ;;  %v1309_v57 = vld [vmem:[#allocation2 + $0x18] sm:$0xff] }
  0xfe   : > { %v1076_v13 = vld [vmem:[#allocation2 + $0x20] sm:$0xff]  ;;  %v3604_v16 = vpop.f32.mrf.mxu1  ;;  %v3622_v5 = vpop.f32.mrf.mxu0 }
  0xff   : > { %1110 = vst.msk [vmem:[#allocation2 + $0x30] sm:$0xff] %vm256_vm1, %v1094_v3  ;;  %v1092_v0 = vadd.f32 %v1076_v13, %v1025_v46  ;;  %v793_v50 = vadd.f32 %v3604_v16, %v777_v19  ;;  %v1306_v46 = vld [vmem:[#allocation2] sm:$0xff]  ;;  %v1307_v62 = vld [vmem:[#allocation2 + $0x8] sm:$0xff] }
 0x100   : > { %v1079_v7 = vld [vmem:[#allocation2 + $0x38] sm:$0xff]  ;;  %v736_v38 = vpop.f32.mrf.mxu1  ;;  %v1041_v53 = vpop.f32.mrf.mxu0 }
 0x101   : > { %1108 = vst.msk [vmem:[#allocation2 + $0x20] sm:$0xff] %vm256_vm1, %v1092_v0  ;;  %809 = vst.msk [vmem:[#allocation2 + $0x50] sm:$0xff] %vm256_vm1, %v793_v50  ;;  %v1095_v49 = vadd.f32 %v3619_v58, %v1079_v7  ;;  %v791_v55 = vadd.f32 %v775_v54, %v736_v38 }
 0x102   : > { %v1077_v8 = vld [vmem:[#allocation2 + $0x28] sm:$0xff]  ;;  %v3605_v12 = vpop.f32.mrf.mxu1  ;;  %v3623_v4 = vpop.f32.mrf.mxu0 }
 0x103   : > { %1111 = vst.msk [vmem:[#allocation2 + $0x38] sm:$0xff] %vm256_vm1, %v1095_v49  ;;  %807 = vst.msk [vmem:[#allocation2 + $0x40] sm:$0xff] %vm256_vm1, %v791_v55  ;;  %v1093_v56 = vadd.f32 %v1077_v8, %v1028_v61  ;;  %v794_v63 = vadd.f32 %v3605_v12, %v778_v11 }
 0x104   : > { %v739_v17 = vpop.f32.mrf.mxu1  ;;  %v1044_v22 = vpop.f32.mrf.mxu0 }
 0x105   : > { %1109 = vst.msk [vmem:[#allocation2 + $0x28] sm:$0xff] %vm256_vm1, %v1093_v56  ;;  %810 = vst.msk [vmem:[#allocation2 + $0x58] sm:$0xff] %vm256_vm1, %v794_v63  ;;  %v792_v20 = vadd.f32 %v776_v6, %v739_v17 }
 0x106   : > { %v1312_v50 = vld [vmem:[#allocation2 + $0x30] sm:$0xff] }
 0x107   : > { %808 = vst.msk [vmem:[#allocation2 + $0x48] sm:$0xff] %vm256_vm1, %v792_v20 }
 0x108   : > { %v1082_v24 = vld [vmem:[#allocation2 + $0x50] sm:$0xff]  ;;  %v1310_v55 = vld [vmem:[#allocation2 + $0x20] sm:$0xff] }
 0x109   : > { %v1098_v27 = vadd.f32 %v3622_v5, %v1082_v24  ;;  %v3608_v9 = vpop.f32.mrf.mxu1 }
 0x10a   : > { %v1080_v21 = vld [vmem:[#allocation2 + $0x40] sm:$0xff]  ;;  %v797_v60 = vadd.f32 %v3608_v9, %v781_v28  ;;  %v1313_v63 = vld [vmem:[#allocation2 + $0x38] sm:$0xff] }
 0x10b   : > { %1114 = vst.msk [vmem:[#allocation2 + $0x50] sm:$0xff] %vm256_vm1, %v1098_v27  ;;  %v1096_v47 = vadd.f32 %v1080_v21, %v1041_v53  ;;  %v3626_v2 = vpop.f32.mrf.mxu0  ;;  %v752_v30 = vpop.f32.mrf.mxu1 }
 0x10c   : > { %v1083_v29 = vld [vmem:[#allocation2 + $0x58] sm:$0xff]  ;;  %813 = vst.msk [vmem:[#allocation2 + $0x70] sm:$0xff] %vm256_vm1, %v797_v60  ;;  %v795_v32 = vadd.f32 %v779_v31, %v752_v30  ;;  %v1311_v24 = vld [vmem:[#allocation2 + $0x28] sm:$0xff] }
 0x10d   : > { %1112 = vst.msk [vmem:[#allocation2 + $0x40] sm:$0xff] %vm256_vm1, %v1096_v47  ;;  %v1099_v15 = vadd.f32 %v3623_v4, %v1083_v29  ;;  %v1057_v33 = vpop.f32.mrf.mxu0  ;;  %v3609_v35 = vpop.f32.mrf.mxu1 }
 0x10e   : > { %v1081_v34 = vld [vmem:[#allocation2 + $0x48] sm:$0xff]  ;;  %811 = vst.msk [vmem:[#allocation2 + $0x60] sm:$0xff] %vm256_vm1, %v795_v32  ;;  %v798_v39 = vadd.f32 %v3609_v35, %v782_v36 }
 0x10f   : > { %1115 = vst.msk [vmem:[#allocation2 + $0x58] sm:$0xff] %vm256_vm1, %v1099_v15  ;;  %v1097_v37 = vadd.f32 %v1081_v34, %v1044_v22  ;;  %v3627_v25 = vpop.f32.mrf.mxu0  ;;  %v755_v40 = vpop.f32.mrf.mxu1 }
 0x110   : > { %814 = vst.msk [vmem:[#allocation2 + $0x78] sm:$0xff] %vm256_vm1, %v798_v39  ;;  %v796_v42 = vadd.f32 %v780_v41, %v755_v40 }
 0x111   : > { %1113 = vst.msk [vmem:[#allocation2 + $0x48] sm:$0xff] %vm256_vm1, %v1097_v37  ;;  %v3632_v43 = vpop.f32.mrf.mxu1  ;;  %v1060_v1 = vpop.f32.mrf.mxu0 }
 0x112   : > { %812 = vst.msk [vmem:[#allocation2 + $0x68] sm:$0xff] %vm256_vm1, %v796_v42  ;;  %v1324_v18 = vadd.f32 %v3632_v43, %v1308_v44  ;;  %v1316_v60 = vld [vmem:[#allocation2 + $0x50] sm:$0xff] }
 0x113   : > { %v1086_v26 = vld [vmem:[#allocation2 + $0x70] sm:$0xff]  ;;  %v1243_v45 = vpop.f32.mrf.mxu1 }
 0x114   : > { %v1102_v48 = vadd.f32 %v3626_v2, %v1086_v26  ;;  %1340 = vst.msk [vmem:[#allocation2 + $0x10] sm:$0xff] %vm256_vm1, %v1324_v18  ;;  %v1322_v51 = vadd.f32 %v1306_v46, %v1243_v45  ;;  %v1314_v32 = vld [vmem:[#allocation2 + $0x40] sm:$0xff] }
 0x115   : > { %v1084_v52 = vld [vmem:[#allocation2 + $0x60] sm:$0xff]  ;;  %v3633_v23 = vpop.f32.mrf.mxu1 }
 0x116   : > { %v3650_v58 = vpop.f32.mrf.mxu0  ;;  %1118 = vst.msk [vmem:[#allocation2 + $0x70] sm:$0xff] %vm256_vm1, %v1102_v48  ;;  %v1100_v59 = vadd.f32 %v1084_v52, %v1057_v33  ;;  %1338 = vst.msk [vmem:[#allocation2] sm:$0xff] %vm256_vm1, %v1322_v51  ;;  %v1325_v14 = vadd.f32 %v3633_v23, %v1309_v57  ;;  %v1317_v39 = vld [vmem:[#allocation2 + $0x58] sm:$0xff] }
 0x117   : > { %v1087_v10 = vld [vmem:[#allocation2 + $0x78] sm:$0xff]  ;;  %v1246_v61 = vpop.f32.mrf.mxu1 }
 0x118   : > { %v1657_v3 = vpop.f32.mrf.mxu0  ;;  %1116 = vst.msk [vmem:[#allocation2 + $0x60] sm:$0xff] %vm256_vm1, %v1100_v59  ;;  %v1103_v13 = vadd.f32 %v3627_v25, %v1087_v10  ;;  %1341 = vst.msk [vmem:[#allocation2 + $0x18] sm:$0xff] %vm256_vm1, %v1325_v14  ;;  %v1323_v16 = vadd.f32 %v1307_v62, %v1246_v61  ;;  %v1315_v44 = vld [vmem:[#allocation2 + $0x48] sm:$0xff] }
 0x119   : > { %v1085_v19 = vld [vmem:[#allocation2 + $0x68] sm:$0xff]  ;;  %v3636_v0 = vpop.f32.mrf.mxu1 }
 0x11a   : > { %v3651_v5 = vpop.f32.mrf.mxu0  ;;  %1119 = vst.msk [vmem:[#allocation2 + $0x78] sm:$0xff] %vm256_vm1, %v1103_v13  ;;  %v1101_v7 = vadd.f32 %v1085_v19, %v1060_v1  ;;  %1339 = vst.msk [vmem:[#allocation2 + $0x8] sm:$0xff] %vm256_vm1, %v1323_v16  ;;  %v1328_v38 = vadd.f32 %v3636_v0, %v1312_v50 }
 0x11b   : > { %v1722_v54 = vld [vmem:[#allocation2 + $0x10] sm:$0xff]  ;;  %v1259_v49 = vpop.f32.mrf.mxu1 }
 0x11c   : > { %v1660_v53 = vpop.f32.mrf.mxu0  ;;  %1117 = vst.msk [vmem:[#allocation2 + $0x68] sm:$0xff] %vm256_vm1, %v1101_v7  ;;  %v1738_v8 = vadd.f32 %v3650_v58, %v1722_v54  ;;  %1344 = vst.msk [vmem:[#allocation2 + $0x30] sm:$0xff] %vm256_vm1, %v1328_v38  ;;  %v1326_v12 = vadd.f32 %v1310_v55, %v1259_v49 }
 0x11d   : > { %v1720_v11 = vld [vmem:[#allocation2] sm:$0xff]  ;;  %v3637_v56 = vpop.f32.mrf.mxu1  ;;  %v1320_v48 = vld [vmem:[#allocation2 + $0x70] sm:$0xff] }
 0x11e   : > { %1754 = vst.msk [vmem:[#allocation2 + $0x10] sm:$0xff] %vm256_vm1, %v1738_v8  ;;  %v1736_v4 = vadd.f32 %v1720_v11, %v1657_v3  ;;  %1342 = vst.msk [vmem:[#allocation2 + $0x20] sm:$0xff] %vm256_vm1, %v1326_v12  ;;  %v1329_v17 = vadd.f32 %v3637_v56, %v1313_v63  ;;  %v3654_v6 = vpop.f32.mrf.mxu0 }
 0x11f   : > { %v1723_v20 = vld [vmem:[#allocation2 + $0x18] sm:$0xff]  ;;  %v1262_v22 = vpop.f32.mrf.mxu1  ;;  %v1318_v59 = vld [vmem:[#allocation2 + $0x60] sm:$0xff] }
 0x120   : > { %1752 = vst.msk [vmem:[#allocation2] sm:$0xff] %vm256_vm1, %v1736_v4  ;;  %v1739_v27 = vadd.f32 %v3651_v5, %v1723_v20  ;;  %1345 = vst.msk [vmem:[#allocation2 + $0x38] sm:$0xff] %vm256_vm1, %v1329_v17  ;;  %v1327_v21 = vadd.f32 %v1311_v24, %v1262_v22  ;;  %v1673_v9 = vpop.f32.mrf.mxu0 }
 0x121   : > { %v1721_v28 = vld [vmem:[#allocation2 + $0x8] sm:$0xff]  ;;  %v3640_v47 = vpop.f32.mrf.mxu1  ;;  %v1321_v13 = vld [vmem:[#allocation2 + $0x78] sm:$0xff] }
 0x122   : > { %1755 = vst.msk [vmem:[#allocation2 + $0x18] sm:$0xff] %vm256_vm1, %v1739_v27  ;;  %v1737_v2 = vadd.f32 %v1721_v28, %v1660_v53  ;;  %1343 = vst.msk [vmem:[#allocation2 + $0x28] sm:$0xff] %vm256_vm1, %v1327_v21  ;;  %v1332_v29 = vadd.f32 %v3640_v47, %v1316_v60  ;;  %v3655_v30 = vpop.f32.mrf.mxu0 }
 0x123   : > { %v1726_v31 = vld [vmem:[#allocation2 + $0x30] sm:$0xff]  ;;  %v1275_v15 = vpop.f32.mrf.mxu1  ;;  %v1319_v7 = vld [vmem:[#allocation2 + $0x68] sm:$0xff] }
 0x124   : > { %1753 = vst.msk [vmem:[#allocation2 + $0x8] sm:$0xff] %vm256_vm1, %v1737_v2  ;;  %v1742_v33 = vadd.f32 %v3654_v6, %v1726_v31  ;;  %1348 = vst.msk [vmem:[#allocation2 + $0x50] sm:$0xff] %vm256_vm1, %v1332_v29  ;;  %v1330_v34 = vadd.f32 %v1314_v32, %v1275_v15  ;;  %v1676_v35 = vpop.f32.mrf.mxu0 }
 0x125   : > { %v1724_v36 = vld [vmem:[#allocation2 + $0x20] sm:$0xff]  ;;  %v3641_v37 = vpop.f32.mrf.mxu1  ;;  %v2024_v8 = vld [vmem:[#allocation2 + $0x10] sm:$0xff] }
 0x126   : > { %1758 = vst.msk [vmem:[#allocation2 + $0x30] sm:$0xff] %vm256_vm1, %v1742_v33  ;;  %v1740_v25 = vadd.f32 %v1724_v36, %v1673_v9  ;;  %1346 = vst.msk [vmem:[#allocation2 + $0x40] sm:$0xff] %vm256_vm1, %v1330_v34  ;;  %v1333_v40 = vadd.f32 %v3641_v37, %v1317_v39 }
 0x127   : > { %v3658_v41 = vpop.f32.mrf.mxu0  ;;  %v1727_v42 = vld [vmem:[#allocation2 + $0x38] sm:$0xff]  ;;  %v1278_v43 = vpop.f32.mrf.mxu1  ;;  %v2022_v17 = vld [vmem:[#allocation2] sm:$0xff] }
 0x128   : > { %1756 = vst.msk [vmem:[#allocation2 + $0x20] sm:$0xff] %vm256_vm1, %v1740_v25  ;;  %v1743_v1 = vadd.f32 %v3655_v30, %v1727_v42  ;;  %1349 = vst.msk [vmem:[#allocation2 + $0x58] sm:$0xff] %vm256_vm1, %v1333_v40  ;;  %v1331_v18 = vadd.f32 %v1315_v44, %v1278_v43 }
 0x129   : > { %v1689_v26 = vpop.f32.mrf.mxu0  ;;  %v1725_v45 = vld [vmem:[#allocation2 + $0x28] sm:$0xff]  ;;  %v3644_v46 = vpop.f32.mrf.mxu1  ;;  %v2025_v21 = vld [vmem:[#allocation2 + $0x18] sm:$0xff] }
 0x12a   : > { %1759 = vst.msk [vmem:[#allocation2 + $0x38] sm:$0xff] %vm256_vm1, %v1743_v1  ;;  %v1741_v51 = vadd.f32 %v1725_v45, %v1676_v35  ;;  %1347 = vst.msk [vmem:[#allocation2 + $0x48] sm:$0xff] %vm256_vm1, %v1331_v18  ;;  %v1336_v52 = vadd.f32 %v3644_v46, %v1320_v48 }
 0x12b   : > { %v3659_v23 = vpop.f32.mrf.mxu0  ;;  %v1730_v57 = vld [vmem:[#allocation2 + $0x50] sm:$0xff]  ;;  %v1291_v58 = vpop.f32.mrf.mxu1  ;;  %v2023_v29 = vld [vmem:[#allocation2 + $0x8] sm:$0xff] }
 0x12c   : > { %1757 = vst.msk [vmem:[#allocation2 + $0x28] sm:$0xff] %vm256_vm1, %v1741_v51  ;;  %v1746_v14 = vadd.f32 %v3658_v41, %v1730_v57  ;;  %1352 = vst.msk [vmem:[#allocation2 + $0x70] sm:$0xff] %vm256_vm1, %v1336_v52  ;;  %v1334_v10 = vadd.f32 %v1318_v59, %v1291_v58 }
 0x12d   : > { %v1692_v61 = vpop.f32.mrf.mxu0  ;;  %v1728_v62 = vld [vmem:[#allocation2 + $0x40] sm:$0xff]  ;;  %v3645_v3 = vpop.f32.mrf.mxu1  ;;  %v2028_v34 = vld [vmem:[#allocation2 + $0x30] sm:$0xff] }
 0x12e   : > { %1762 = vst.msk [vmem:[#allocation2 + $0x50] sm:$0xff] %vm256_vm1, %v1746_v14  ;;  %v1744_v16 = vadd.f32 %v1728_v62, %v1689_v26  ;;  %1350 = vst.msk [vmem:[#allocation2 + $0x60] sm:$0xff] %vm256_vm1, %v1334_v10  ;;  %v1337_v19 = vadd.f32 %v3645_v3, %v1321_v13 }
 0x12f   : > { %v3662_v0 = vpop.f32.mrf.mxu0  ;;  %v1731_v50 = vld [vmem:[#allocation2 + $0x58] sm:$0xff]  ;;  %v1294_v5 = vpop.f32.mrf.mxu1  ;;  %v2026_v40 = vld [vmem:[#allocation2 + $0x20] sm:$0xff] }
 0x130   : > { %1760 = vst.msk [vmem:[#allocation2 + $0x40] sm:$0xff] %vm256_vm1, %v1744_v16  ;;  %v1747_v38 = vadd.f32 %v3659_v23, %v1731_v50  ;;  %1353 = vst.msk [vmem:[#allocation2 + $0x78] sm:$0xff] %vm256_vm1, %v1337_v19  ;;  %v1335_v54 = vadd.f32 %v1319_v7, %v1294_v5 }
 0x131   : > { %v1705_v49 = vpop.f32.mrf.mxu0  ;;  %v1729_v55 = vld [vmem:[#allocation2 + $0x48] sm:$0xff]  ;;  %v3668_v53 = vpop.f32.mrf.mxu1  ;;  %v2029_v18 = vld [vmem:[#allocation2 + $0x38] sm:$0xff] }
 0x132   : > { %1763 = vst.msk [vmem:[#allocation2 + $0x58] sm:$0xff] %vm256_vm1, %v1747_v38  ;;  %v1745_v12 = vadd.f32 %v1729_v55, %v1692_v61  ;;  %1351 = vst.msk [vmem:[#allocation2 + $0x68] sm:$0xff] %vm256_vm1, %v1335_v54  ;;  %v2040_v56 = vadd.f32 %v3668_v53, %v2024_v8 }
 0x133   : > { %v3663_v11 = vpop.f32.mrf.mxu0  ;;  %v1734_v63 = vld [vmem:[#allocation2 + $0x70] sm:$0xff]  ;;  %v1959_v4 = vpop.f32.mrf.mxu1  ;;  %v2027_v52 = vld [vmem:[#allocation2 + $0x28] sm:$0xff] }
 0x134   : > { %1761 = vst.msk [vmem:[#allocation2 + $0x48] sm:$0xff] %vm256_vm1, %v1745_v12  ;;  %v1750_v6 = vadd.f32 %v3662_v0, %v1734_v63  ;;  %2056 = vst.msk [vmem:[#allocation2 + $0x10] sm:$0xff] %vm256_vm1, %v2040_v56  ;;  %v2038_v22 = vadd.f32 %v2022_v17, %v1959_v4 }
 0x135   : > { %v1708_v20 = vpop.f32.mrf.mxu0  ;;  %v1732_v24 = vld [vmem:[#allocation2 + $0x60] sm:$0xff]  ;;  %v3669_v27 = vpop.f32.mrf.mxu1  ;;  %v2032_v10 = vld [vmem:[#allocation2 + $0x50] sm:$0xff] }
 0x136   : > { %1766 = vst.msk [vmem:[#allocation2 + $0x70] sm:$0xff] %vm256_vm1, %v1750_v6  ;;  %v1748_v9 = vadd.f32 %v1732_v24, %v1705_v49  ;;  %2054 = vst.msk [vmem:[#allocation2] sm:$0xff] %vm256_vm1, %v2038_v22  ;;  %v2041_v28 = vadd.f32 %v3669_v27, %v2025_v21 }
 0x137   : > { %v3686_v47 = vpop.f32.mrf.mxu0  ;;  %v1735_v60 = vld [vmem:[#allocation2 + $0x78] sm:$0xff]  ;;  %v1962_v2 = vpop.f32.mrf.mxu1  ;;  %v2030_v19 = vld [vmem:[#allocation2 + $0x40] sm:$0xff] }
 0x138   : > { %1764 = vst.msk [vmem:[#allocation2 + $0x60] sm:$0xff] %vm256_vm1, %v1748_v9  ;;  %v1751_v30 = vadd.f32 %v3663_v11, %v1735_v60  ;;  %2057 = vst.msk [vmem:[#allocation2 + $0x18] sm:$0xff] %vm256_vm1, %v2041_v28  ;;  %v2039_v31 = vadd.f32 %v2023_v29, %v1962_v2 }
 0x139   : > { %v2193_v15 = vpop.f32.mrf.mxu0  ;;  %v1733_v32 = vld [vmem:[#allocation2 + $0x68] sm:$0xff]  ;;  %v3672_v33 = vpop.f32.mrf.mxu1  ;;  %v2033_v54 = vld [vmem:[#allocation2 + $0x58] sm:$0xff] }
 0x13a   : > { %1767 = vst.msk [vmem:[#allocation2 + $0x78] sm:$0xff] %vm256_vm1, %v1751_v30  ;;  %v1749_v35 = vadd.f32 %v1733_v32, %v1708_v20  ;;  %2055 = vst.msk [vmem:[#allocation2 + $0x8] sm:$0xff] %vm256_vm1, %v2039_v31  ;;  %v2044_v36 = vadd.f32 %v3672_v33, %v2028_v34 }
 0x13b   : > { %v3687_v37 = vpop.f32.mrf.mxu0  ;;  %v2258_v39 = vld [vmem:[#allocation2 + $0x10] sm:$0xff]  ;;  %v1975_v25 = vpop.f32.mrf.mxu1  ;;  %v2031_v11 = vld [vmem:[#allocation2 + $0x48] sm:$0xff] }
 0x13c   : > { %1765 = vst.msk [vmem:[#allocation2 + $0x68] sm:$0xff] %vm256_vm1, %v1749_v35  ;;  %v2274_v41 = vadd.f32 %v3686_v47, %v2258_v39  ;;  %2060 = vst.msk [vmem:[#allocation2 + $0x30] sm:$0xff] %vm256_vm1, %v2044_v36  ;;  %v2042_v42 = vadd.f32 %v2026_v40, %v1975_v25 }
 0x13d   : > { %v2196_v43 = vpop.f32.mrf.mxu0  ;;  %v2256_v44 = vld [vmem:[#allocation2] sm:$0xff]  ;;  %v3673_v1 = vpop.f32.mrf.mxu1  ;;  %v2036_v20 = vld [vmem:[#allocation2 + $0x70] sm:$0xff] }
 0x13e   : > { %2290 = vst.msk [vmem:[#allocation2 + $0x10] sm:$0xff] %vm256_vm1, %v2274_v41  ;;  %v2272_v26 = vadd.f32 %v2256_v44, %v2193_v15  ;;  %2058 = vst.msk [vmem:[#allocation2 + $0x20] sm:$0xff] %vm256_vm1, %v2042_v42  ;;  %v2045_v45 = vadd.f32 %v3673_v1, %v2029_v18 }
 0x13f   : > { %v3690_v46 = vpop.f32.mrf.mxu0  ;;  %v2259_v48 = vld [vmem:[#allocation2 + $0x18] sm:$0xff]  ;;  %v1978_v51 = vpop.f32.mrf.mxu1  ;;  %v2034_v28 = vld [vmem:[#allocation2 + $0x60] sm:$0xff] }
 0x140   : > { %2288 = vst.msk [vmem:[#allocation2] sm:$0xff] %vm256_vm1, %v2272_v26  ;;  %v2275_v23 = vadd.f32 %v3687_v37, %v2259_v48  ;;  %2061 = vst.msk [vmem:[#allocation2 + $0x38] sm:$0xff] %vm256_vm1, %v2045_v45  ;;  %v2043_v57 = vadd.f32 %v2027_v52, %v1978_v51 }
 0x141   : > { %v2209_v58 = vpop.f32.mrf.mxu0  ;;  %v2257_v59 = vld [vmem:[#allocation2 + $0x8] sm:$0xff]  ;;  %v3676_v14 = vpop.f32.mrf.mxu1  ;;  %v2037_v31 = vld [vmem:[#allocation2 + $0x78] sm:$0xff] }
 0x142   : > { %2291 = vst.msk [vmem:[#allocation2 + $0x18] sm:$0xff] %vm256_vm1, %v2275_v23  ;;  %v2273_v61 = vadd.f32 %v2257_v59, %v2196_v43  ;;  %2059 = vst.msk [vmem:[#allocation2 + $0x28] sm:$0xff] %vm256_vm1, %v2043_v57  ;;  %v2048_v62 = vadd.f32 %v3676_v14, %v2032_v10 }
 0x143   : > { %v3691_v3 = vpop.f32.mrf.mxu0  ;;  %v2262_v13 = vld [vmem:[#allocation2 + $0x30] sm:$0xff]  ;;  %v1991_v16 = vpop.f32.mrf.mxu1  ;;  %v2035_v36 = vld [vmem:[#allocation2 + $0x68] sm:$0xff] }
 0x144   : > { %2289 = vst.msk [vmem:[#allocation2 + $0x8] sm:$0xff] %vm256_vm1, %v2273_v61  ;;  %v2278_v0 = vadd.f32 %v3690_v46, %v2262_v13  ;;  %2064 = vst.msk [vmem:[#allocation2 + $0x50] sm:$0xff] %vm256_vm1, %v2048_v62  ;;  %v2046_v50 = vadd.f32 %v2030_v19, %v1991_v16 }
 0x145   : > { %v2212_v5 = vpop.f32.mrf.mxu0  ;;  %v2260_v7 = vld [vmem:[#allocation2 + $0x20] sm:$0xff]  ;;  %v3677_v38 = vpop.f32.mrf.mxu1  ;;  %v2672_v42 = vld [vmem:[#allocation2 + $0x10] sm:$0xff] }
 0x146   : > { %2294 = vst.msk [vmem:[#allocation2 + $0x30] sm:$0xff] %vm256_vm1, %v2278_v0  ;;  %v2276_v49 = vadd.f32 %v2260_v7, %v2209_v58  ;;  %2062 = vst.msk [vmem:[#allocation2 + $0x40] sm:$0xff] %vm256_vm1, %v2046_v50  ;;  %v2049_v55 = vadd.f32 %v3677_v38, %v2033_v54 }
 0x147   : > { %v3694_v53 = vpop.f32.mrf.mxu0  ;;  %v2263_v8 = vld [vmem:[#allocation2 + $0x38] sm:$0xff]  ;;  %v1994_v12 = vpop.f32.mrf.mxu1  ;;  %v2670_v45 = vld [vmem:[#allocation2] sm:$0xff] }
 0x148   : > { %2292 = vst.msk [vmem:[#allocation2 + $0x20] sm:$0xff] %vm256_vm1, %v2276_v49  ;;  %v2279_v56 = vadd.f32 %v3691_v3, %v2263_v8  ;;  %2065 = vst.msk [vmem:[#allocation2 + $0x58] sm:$0xff] %vm256_vm1, %v2049_v55  ;;  %v2047_v63 = vadd.f32 %v2031_v11, %v1994_v12 }
 0x149   : > { %v2225_v4 = vpop.f32.mrf.mxu0  ;;  %v2261_v17 = vld [vmem:[#allocation2 + $0x28] sm:$0xff]  ;;  %v3680_v6 = vpop.f32.mrf.mxu1  ;;  %v2673_v57 = vld [vmem:[#allocation2 + $0x18] sm:$0xff] }
 0x14a   : > { %2295 = vst.msk [vmem:[#allocation2 + $0x38] sm:$0xff] %vm256_vm1, %v2279_v56  ;;  %v2277_v22 = vadd.f32 %v2261_v17, %v2212_v5  ;;  %2063 = vst.msk [vmem:[#allocation2 + $0x48] sm:$0xff] %vm256_vm1, %v2047_v63  ;;  %v2052_v24 = vadd.f32 %v3680_v6, %v2036_v20 }
 0x14b   : > { %v3695_v27 = vpop.f32.mrf.mxu0  ;;  %v2266_v21 = vld [vmem:[#allocation2 + $0x50] sm:$0xff]  ;;  %v2007_v9 = vpop.f32.mrf.mxu1  ;;  %v2671_v62 = vld [vmem:[#allocation2 + $0x8] sm:$0xff] }
 0x14c   : > { %2293 = vst.msk [vmem:[#allocation2 + $0x28] sm:$0xff] %vm256_vm1, %v2277_v22  ;;  %v2282_v47 = vadd.f32 %v3694_v53, %v2266_v21  ;;  %2068 = vst.msk [vmem:[#allocation2 + $0x70] sm:$0xff] %vm256_vm1, %v2052_v24  ;;  %v2050_v60 = vadd.f32 %v2034_v28, %v2007_v9 }
 0x14d   : > { %v2228_v2 = vpop.f32.mrf.mxu0  ;;  %v2264_v29 = vld [vmem:[#allocation2 + $0x40] sm:$0xff]  ;;  %v3681_v30 = vpop.f32.mrf.mxu1  ;;  %v2676_v50 = vld [vmem:[#allocation2 + $0x30] sm:$0xff] }
 0x14e   : > { %2298 = vst.msk [vmem:[#allocation2 + $0x50] sm:$0xff] %vm256_vm1, %v2282_v47  ;;  %v2280_v15 = vadd.f32 %v2264_v29, %v2225_v4  ;;  %2066 = vst.msk [vmem:[#allocation2 + $0x60] sm:$0xff] %vm256_vm1, %v2050_v60  ;;  %v2053_v32 = vadd.f32 %v3681_v30, %v2037_v31  ;;  %v4641_v31 = vld [vmem:[%s4734_s2] ss:$0 sm:$0xff] }
 0x14f   : > { %v3698_v33 = vpop.f32.mrf.mxu0  ;;  %v2267_v34 = vld [vmem:[#allocation2 + $0x58] sm:$0xff]  ;;  %v2010_v35 = vpop.f32.mrf.mxu1  ;;  %v2674_v55 = vld [vmem:[#allocation2 + $0x20] sm:$0xff] }
 0x150   : > { %2296 = vst.msk [vmem:[#allocation2 + $0x40] sm:$0xff] %vm256_vm1, %v2280_v15  ;;  %v2283_v37 = vadd.f32 %v3695_v27, %v2267_v34  ;;  %2069 = vst.msk [vmem:[#allocation2 + $0x78] sm:$0xff] %vm256_vm1, %v2053_v32  ;;  %v2051_v39 = vadd.f32 %v2035_v36, %v2010_v35 }
 0x151   : > { %v2241_v25 = vpop.f32.mrf.mxu0  ;;  %v2265_v40 = vld [vmem:[#allocation2 + $0x48] sm:$0xff]  ;;  %v3704_v41 = vpop.f32.mrf.mxu1  ;;  %v2677_v63 = vld [vmem:[#allocation2 + $0x38] sm:$0xff] }
 0x152   : > { %2299 = vst.msk [vmem:[#allocation2 + $0x58] sm:$0xff] %vm256_vm1, %v2283_v37  ;;  %v2281_v43 = vadd.f32 %v2265_v40, %v2228_v2  ;;  %2067 = vst.msk [vmem:[#allocation2 + $0x68] sm:$0xff] %vm256_vm1, %v2051_v39  ;;  %v2688_v1 = vadd.f32 %v3704_v41, %v2672_v42 }
 0x153   : > { %v3699_v44 = vpop.f32.mrf.mxu0  ;;  %v2270_v18 = vld [vmem:[#allocation2 + $0x70] sm:$0xff]  ;;  %v2607_v26 = vpop.f32.mrf.mxu1  ;;  %v2675_v24 = vld [vmem:[#allocation2 + $0x28] sm:$0xff] }
 0x154   : > { %2297 = vst.msk [vmem:[#allocation2 + $0x48] sm:$0xff] %vm256_vm1, %v2281_v43  ;;  %v2286_v46 = vadd.f32 %v3698_v33, %v2270_v18  ;;  %2704 = vst.msk [vmem:[#allocation2 + $0x10] sm:$0xff] %vm256_vm1, %v2688_v1  ;;  %v2686_v51 = vadd.f32 %v2670_v45, %v2607_v26 }
 0x155   : > { %v2244_v48 = vpop.f32.mrf.mxu0  ;;  %v2268_v52 = vld [vmem:[#allocation2 + $0x60] sm:$0xff]  ;;  %v3705_v23 = vpop.f32.mrf.mxu1  ;;  %v2680_v60 = vld [vmem:[#allocation2 + $0x50] sm:$0xff] }
 0x156   : > { %2302 = vst.msk [vmem:[#allocation2 + $0x70] sm:$0xff] %vm256_vm1, %v2286_v46  ;;  %v2284_v58 = vadd.f32 %v2268_v52, %v2241_v25  ;;  %2702 = vst.msk [vmem:[#allocation2] sm:$0xff] %vm256_vm1, %v2686_v51  ;;  %v2689_v59 = vadd.f32 %v3705_v23, %v2673_v57 }
 0x157   : > { %v3722_v14 = vpop.f32.mrf.mxu0  ;;  %v2271_v10 = vld [vmem:[#allocation2 + $0x78] sm:$0xff]  ;;  %v2610_v61 = vpop.f32.mrf.mxu1  ;;  %v2678_v33 = vld [vmem:[#allocation2 + $0x40] sm:$0xff] }
 0x158   : > { %2300 = vst.msk [vmem:[#allocation2 + $0x60] sm:$0xff] %vm256_vm1, %v2284_v58  ;;  %v2287_v3 = vadd.f32 %v3699_v44, %v2271_v10  ;;  %2705 = vst.msk [vmem:[#allocation2 + $0x18] sm:$0xff] %vm256_vm1, %v2689_v59  ;;  %v2687_v13 = vadd.f32 %v2671_v62, %v2610_v61 }
 0x159   : > { %v2909_v16 = vpop.f32.mrf.mxu0  ;;  %v2269_v19 = vld [vmem:[#allocation2 + $0x68] sm:$0xff]  ;;  %v3708_v0 = vpop.f32.mrf.mxu1  ;;  %v2681_v40 = vld [vmem:[#allocation2 + $0x58] sm:$0xff] }
 0x15a   : > { %2303 = vst.msk [vmem:[#allocation2 + $0x78] sm:$0xff] %vm256_vm1, %v2287_v3  ;;  %v2285_v5 = vadd.f32 %v2269_v19, %v2244_v48  ;;  %2703 = vst.msk [vmem:[#allocation2 + $0x8] sm:$0xff] %vm256_vm1, %v2687_v13  ;;  %v2692_v7 = vadd.f32 %v3708_v0, %v2676_v50 }
 0x15b   : > { %v3723_v38 = vpop.f32.mrf.mxu0  ;;  %v2974_v54 = vld [vmem:[#allocation2 + $0x10] sm:$0xff]  ;;  %v2623_v49 = vpop.f32.mrf.mxu1  ;;  %v2679_v45 = vld [vmem:[#allocation2 + $0x48] sm:$0xff] }
 0x15c   : > { %2301 = vst.msk [vmem:[#allocation2 + $0x68] sm:$0xff] %vm256_vm1, %v2285_v5  ;;  %v2990_v53 = vadd.f32 %v3722_v14, %v2974_v54  ;;  %2708 = vst.msk [vmem:[#allocation2 + $0x30] sm:$0xff] %vm256_vm1, %v2692_v7  ;;  %v2690_v8 = vadd.f32 %v2674_v55, %v2623_v49 }
 0x15d   : > { %v2912_v12 = vpop.f32.mrf.mxu0  ;;  %v2972_v11 = vld [vmem:[#allocation2] sm:$0xff]  ;;  %v3709_v56 = vpop.f32.mrf.mxu1  ;;  %v2684_v59 = vld [vmem:[#allocation2 + $0x70] sm:$0xff] }
 0x15e   : > { %3006 = vst.msk [vmem:[#allocation2 + $0x10] sm:$0xff] %vm256_vm1, %v2990_v53  ;;  %v2988_v4 = vadd.f32 %v2972_v11, %v2909_v16  ;;  %2706 = vst.msk [vmem:[#allocation2 + $0x20] sm:$0xff] %vm256_vm1, %v2690_v8  ;;  %v2693_v17 = vadd.f32 %v3709_v56, %v2677_v63 }
 0x15f   : > { %v3726_v6 = vpop.f32.mrf.mxu0  ;;  %v2975_v20 = vld [vmem:[#allocation2 + $0x18] sm:$0xff]  ;;  %v2626_v22 = vpop.f32.mrf.mxu1  ;;  %v2682_v19 = vld [vmem:[#allocation2 + $0x60] sm:$0xff] }
 0x160   : > { %3004 = vst.msk [vmem:[#allocation2] sm:$0xff] %vm256_vm1, %v2988_v4  ;;  %v2991_v27 = vadd.f32 %v3723_v38, %v2975_v20  ;;  %2709 = vst.msk [vmem:[#allocation2 + $0x38] sm:$0xff] %vm256_vm1, %v2693_v17  ;;  %v2691_v21 = vadd.f32 %v2675_v24, %v2626_v22 }
 0x161   : > { %v2925_v9 = vpop.f32.mrf.mxu0  ;;  %v2973_v28 = vld [vmem:[#allocation2 + $0x8] sm:$0xff]  ;;  %v3712_v47 = vpop.f32.mrf.mxu1  ;;  %v2685_v55 = vld [vmem:[#allocation2 + $0x78] sm:$0xff] }
 0x162   : > { %3007 = vst.msk [vmem:[#allocation2 + $0x18] sm:$0xff] %vm256_vm1, %v2991_v27  ;;  %v2989_v2 = vadd.f32 %v2973_v28, %v2912_v12  ;;  %2707 = vst.msk [vmem:[#allocation2 + $0x28] sm:$0xff] %vm256_vm1, %v2691_v21  ;;  %v2696_v29 = vadd.f32 %v3712_v47, %v2680_v60 }
 0x163   : > { %v3727_v30 = vpop.f32.mrf.mxu0  ;;  %v2978_v15 = vld [vmem:[#allocation2 + $0x30] sm:$0xff]  ;;  %v2639_v32 = vpop.f32.mrf.mxu1  ;;  %v2683_v17 = vld [vmem:[#allocation2 + $0x68] sm:$0xff] }
 0x164   : > { %3005 = vst.msk [vmem:[#allocation2 + $0x8] sm:$0xff] %vm256_vm1, %v2989_v2  ;;  %v2994_v34 = vadd.f32 %v3726_v6, %v2978_v15  ;;  %2712 = vst.msk [vmem:[#allocation2 + $0x50] sm:$0xff] %vm256_vm1, %v2696_v29  ;;  %v2694_v35 = vadd.f32 %v2678_v33, %v2639_v32 }
 0x165   : > { %v2928_v36 = vpop.f32.mrf.mxu0  ;;  %v3022_v37 = vld [vmem:[#allocation2 + $0x10] sm:$0xff]  ;;  %v2976_v39 = vld [vmem:[#allocation2 + $0x20] sm:$0xff]  ;;  %v3713_v25 = vpop.f32.mrf.mxu1 }
 0x166   : > { %v3045_v41 = vadd.f32 %v4641_v31, %v3022_v37  ;;  %3010 = vst.msk [vmem:[#allocation2 + $0x30] sm:$0xff] %vm256_vm1, %v2994_v34  ;;  %v2992_v42 = vadd.f32 %v2976_v39, %v2925_v9  ;;  %2710 = vst.msk [vmem:[#allocation2 + $0x40] sm:$0xff] %vm256_vm1, %v2694_v35  ;;  %v2697_v43 = vadd.f32 %v3713_v25, %v2681_v40 }
 0x167   : > { %v3730_v44 = vpop.f32.mrf.mxu0  ;;  %v3020_v1 = vld [vmem:[#allocation2] sm:$0xff]  ;;  %v2979_v18 = vld [vmem:[#allocation2 + $0x38] sm:$0xff]  ;;  %v2642_v26 = vpop.f32.mrf.mxu1 }
 0x168   : > { %3061 = vst.msk [vmem:[%s4648_s30 + $0x10] sm:$0xff] %vm256_vm1, %v3045_v41  ;;  %v3043_v46 = vadd.f32 %v4641_v31, %v3020_v1  ;;  %3008 = vst.msk [vmem:[#allocation2 + $0x20] sm:$0xff] %vm256_vm1, %v2992_v42  ;;  %v2995_v48 = vadd.f32 %v3727_v30, %v2979_v18  ;;  %v2695_v51 = vadd.f32 %v2679_v45, %v2642_v26 }
 0x169   : > { %2713 = vst.msk [vmem:[#allocation2 + $0x58] sm:$0xff] %vm256_vm1, %v2697_v43  ;;  %v2941_v52 = vpop.f32.mrf.mxu0  ;;  %v3023_v23 = vld [vmem:[#allocation2 + $0x18] sm:$0xff]  ;;  %v2977_v57 = vld [vmem:[#allocation2 + $0x28] sm:$0xff]  ;;  %v3716_v58 = vpop.f32.mrf.mxu1 }
 0x16a   : > { %3059 = vst.msk [vmem:[%s4648_s30] sm:$0xff] %vm256_vm1, %v3043_v46  ;;  %v3046_v14 = vadd.f32 %v4641_v31, %v3023_v23  ;;  %3011 = vst.msk [vmem:[#allocation2 + $0x38] sm:$0xff] %vm256_vm1, %v2995_v48  ;;  %v2993_v10 = vadd.f32 %v2977_v57, %v2928_v36  ;;  %v2700_v61 = vadd.f32 %v3716_v58, %v2684_v59 }
 0x16b   : > { %2711 = vst.msk [vmem:[#allocation2 + $0x48] sm:$0xff] %vm256_vm1, %v2695_v51  ;;  %v3731_v62 = vpop.f32.mrf.mxu0  ;;  %v3021_v3 = vld [vmem:[#allocation2 + $0x8] sm:$0xff]  ;;  %v2982_v13 = vld [vmem:[#allocation2 + $0x50] sm:$0xff]  ;;  %v2655_v16 = vpop.f32.mrf.mxu1 }
 0x16c   : > { %3062 = vst.msk [vmem:[%s4648_s30 + $0x18] sm:$0xff] %vm256_vm1, %v3046_v14  ;;  %v3044_v0 = vadd.f32 %v4641_v31, %v3021_v3  ;;  %3009 = vst.msk [vmem:[#allocation2 + $0x28] sm:$0xff] %vm256_vm1, %v2993_v10  ;;  %v2998_v50 = vadd.f32 %v3730_v44, %v2982_v13  ;;  %v2698_v5 = vadd.f32 %v2682_v19, %v2655_v16 }
 0x16d   : > { %2716 = vst.msk [vmem:[#allocation2 + $0x70] sm:$0xff] %vm256_vm1, %v2700_v61  ;;  %v2944_v7 = vpop.f32.mrf.mxu0  ;;  %v3026_v38 = vld [vmem:[#allocation2 + $0x30] sm:$0xff]  ;;  %v2980_v54 = vld [vmem:[#allocation2 + $0x40] sm:$0xff]  ;;  %v3717_v49 = vpop.f32.mrf.mxu1 }
 0x16e   : > { %3060 = vst.msk [vmem:[%s4648_s30 + $0x8] sm:$0xff] %vm256_vm1, %v3044_v0  ;;  %v3049_v53 = vadd.f32 %v4641_v31, %v3026_v38  ;;  %3014 = vst.msk [vmem:[#allocation2 + $0x50] sm:$0xff] %vm256_vm1, %v2998_v50  ;;  %v2996_v8 = vadd.f32 %v2980_v54, %v2941_v52  ;;  %v2701_v12 = vadd.f32 %v3717_v49, %v2685_v55 }
 0x16f   : > { %2714 = vst.msk [vmem:[#allocation2 + $0x60] sm:$0xff] %vm256_vm1, %v2698_v5  ;;  %v3734_v11 = vpop.f32.mrf.mxu0  ;;  %v3024_v56 = vld [vmem:[#allocation2 + $0x20] sm:$0xff]  ;;  %v2658_v4 = vpop.f32.mrf.mxu1 }
 0x170   : > { %v2983_v63 = vld [vmem:[#allocation2 + $0x58] sm:$0xff]  ;;  %3065 = vst.msk [vmem:[%s4648_s30 + $0x30] sm:$0xff] %vm256_vm1, %v3049_v53  ;;  %v3047_v6 = vadd.f32 %v4641_v31, %v3024_v56  ;;  %3012 = vst.msk [vmem:[#allocation2 + $0x40] sm:$0xff] %vm256_vm1, %v2996_v8  ;;  %v2699_v22 = vadd.f32 %v2683_v17, %v2658_v4 }
 0x171   : > { %v2999_v20 = vadd.f32 %v3731_v62, %v2983_v63  ;;  %2717 = vst.msk [vmem:[#allocation2 + $0x78] sm:$0xff] %vm256_vm1, %v2701_v12  ;;  %v3027_v24 = vld [vmem:[#allocation2 + $0x38] sm:$0xff]  ;;  %v2957_v21 = vpop.f32.mrf.mxu0 }
 0x172   : > { %v2981_v27 = vld [vmem:[#allocation2 + $0x48] sm:$0xff]  ;;  %3063 = vst.msk [vmem:[%s4648_s30 + $0x20] sm:$0xff] %vm256_vm1, %v3047_v6  ;;  %v3050_v9 = vadd.f32 %v4641_v31, %v3027_v24  ;;  %2715 = vst.msk [vmem:[#allocation2 + $0x68] sm:$0xff] %vm256_vm1, %v2699_v22 }
 0x173   : > { %3015 = vst.msk [vmem:[#allocation2 + $0x58] sm:$0xff] %vm256_vm1, %v2999_v20  ;;  %v2997_v28 = vadd.f32 %v2981_v27, %v2944_v7  ;;  %v3025_v47 = vld [vmem:[#allocation2 + $0x28] sm:$0xff]  ;;  %v3735_v32 = vpop.f32.mrf.mxu0 }
 0x174   : > { %v2986_v60 = vld [vmem:[#allocation2 + $0x70] sm:$0xff]  ;;  %3066 = vst.msk [vmem:[%s4648_s30 + $0x38] sm:$0xff] %vm256_vm1, %v3050_v9  ;;  %v3048_v2 = vadd.f32 %v4641_v31, %v3025_v47 }
 0x175   : > { %3013 = vst.msk [vmem:[#allocation2 + $0x48] sm:$0xff] %vm256_vm1, %v2997_v28  ;;  %v3002_v29 = vadd.f32 %v3734_v11, %v2986_v60  ;;  %v3030_v30 = vld [vmem:[#allocation2 + $0x50] sm:$0xff]  ;;  %v2960_v40 = vpop.f32.mrf.mxu0 }
 0x176   : > { %v2984_v15 = vld [vmem:[#allocation2 + $0x60] sm:$0xff]  ;;  %3064 = vst.msk [vmem:[%s4648_s30 + $0x28] sm:$0xff] %vm256_vm1, %v3048_v2  ;;  %v3053_v33 = vadd.f32 %v4641_v31, %v3030_v30 }
 0x177   : > { %3018 = vst.msk [vmem:[#allocation2 + $0x70] sm:$0xff] %vm256_vm1, %v3002_v29  ;;  %v3000_v34 = vadd.f32 %v2984_v15, %v2957_v21  ;;  %v3028_v35 = vld [vmem:[#allocation2 + $0x40] sm:$0xff] }
 0x178   : > { %v2987_v36 = vld [vmem:[#allocation2 + $0x78] sm:$0xff]  ;;  %3069 = vst.msk [vmem:[%s4648_s30 + $0x50] sm:$0xff] %vm256_vm1, %v3053_v33  ;;  %v3051_v37 = vadd.f32 %v4641_v31, %v3028_v35 }
 0x179   : > { %3016 = vst.msk [vmem:[#allocation2 + $0x60] sm:$0xff] %vm256_vm1, %v3000_v34  ;;  %v3003_v39 = vadd.f32 %v3735_v32, %v2987_v36  ;;  %v2985_v41 = vld [vmem:[#allocation2 + $0x68] sm:$0xff] }
 0x17a   : > { %v3031_v25 = vld [vmem:[#allocation2 + $0x58] sm:$0xff]  ;;  %3067 = vst.msk [vmem:[%s4648_s30 + $0x40] sm:$0xff] %vm256_vm1, %v3051_v37  ;;  %v3001_v43 = vadd.f32 %v2985_v41, %v2960_v40 }
 0x17b   : > { %v3054_v42 = vadd.f32 %v4641_v31, %v3031_v25  ;;  %3019 = vst.msk [vmem:[#allocation2 + $0x78] sm:$0xff] %vm256_vm1, %v3003_v39 }
 0x17c   : > { %v3029_v44 = vld [vmem:[#allocation2 + $0x48] sm:$0xff]  ;;  %3017 = vst.msk [vmem:[#allocation2 + $0x68] sm:$0xff] %vm256_vm1, %v3001_v43 }
 0x17d   : > { %3070 = vst.msk [vmem:[%s4648_s30 + $0x58] sm:$0xff] %vm256_vm1, %v3054_v42  ;;  %v3052_v1 = vadd.f32 %v4641_v31, %v3029_v44 }
 0x17e   : > { %v3034_v18 = vld [vmem:[#allocation2 + $0x70] sm:$0xff] }
 0x17f   : > { %3068 = vst.msk [vmem:[%s4648_s30 + $0x48] sm:$0xff] %vm256_vm1, %v3052_v1  ;;  %v3057_v26 = vadd.f32 %v4641_v31, %v3034_v18 }
 0x180   : > { %v3032_v45 = vld [vmem:[#allocation2 + $0x60] sm:$0xff] }
 0x181   : > { %3073 = vst.msk [vmem:[%s4648_s30 + $0x70] sm:$0xff] %vm256_vm1, %v3057_v26  ;;  %v3055_v46 = vadd.f32 %v4641_v31, %v3032_v45 }
 0x182   : > { %v3035_v48 = vld [vmem:[#allocation2 + $0x78] sm:$0xff] }
 0x183   : > { %3071 = vst.msk [vmem:[%s4648_s30 + $0x60] sm:$0xff] %vm256_vm1, %v3055_v46  ;;  %v3058_v51 = vadd.f32 %v4641_v31, %v3035_v48  ;;  %v3033_v52 = vld [vmem:[#allocation2 + $0x68] sm:$0xff] }
 0x184   : > { %v3056_v23 = vadd.f32 %v4641_v31, %v3033_v52 }
 0x185   : > { %3074 = vst.msk [vmem:[%s4648_s30 + $0x78] sm:$0xff] %vm256_vm1, %v3058_v51 }
 0x186   : > { %3072 = vst.msk [vmem:[%s4648_s30 + $0x68] sm:$0xff] %vm256_vm1, %v3056_v23 }
 0x187 PF: > { %s13_s16 = sadd.s32 1, %s3851_s16   ;;  %s4741_s12 = smov %s3843_s14 }
 0x188   : > { %p10_p7 = scmp.ge.s32.totalorder %s13_s16, 6   ;;  %s4742_s13 = smov %s3847_s15 }
 0x189   : > { %s4743_s14 = smov %s4746_s17  ;;  %s4744_s15 = smov %s4750_s18 }
 0x18a   :  { %12 = sbr.rel (!%p10_p7) target bundleno = 3 (0x3), region = 73 }

// kernel: spade_resnet_block_forward.21
= control target key start
LH: loop header
LB: loop body
LE: loop exit
PB: predicated region body
PF: predicated region fallthrough
CT: control target
= control target key end

     0   :  { %s3995_s15 = smov 0   ;;  %s3997_s16 = smov 0   ;;  %s4882_s0 = inlined_call_operand.vmem [shape: bf16[2,18,18,4], index: 0, kind: input, shape index: {}]   ;;  %s4883_s1 = inlined_call_operand.vmem [shape: bf16[3,3,4,8], index: 1, kind: input, shape index: {}]   ;;  %s4884_s2 = inlined_call_operand.vmem [shape: f32[1,8], index: 2, kind: input, shape index: {}]   ;;  %s4885_s3 = inlined_call_operand.vmem [shape: f32[2,256,8], index: 3, kind: input, shape index: {}]   ;;  %s4886_s4 = inlined_call_operand.vmem [shape: f32[2,256,8], index: 4, kind: output, shape index: {}]  }
   0x1   :  { %s3999_s17 = smov 0   ;;  %s4001_s18 = smov 0  }
   0x2   :  { %s4003_s19 = smov 0  }
   0x3 LB: > { %s23_s20 = sadd.s32 1, %s3960_s17  ;;  %s26_s21 = sadd.s32 1, %s3964_s18  ;;  %s3968_s19 = sphi %s4003_s19, %s14_s19   ;;  %s3964_s18 = sphi %s4001_s18, %s4895_s18   ;;  %s3960_s17 = sphi %s3999_s17, %s4894_s17   ;;  %s3956_s16 = sphi %s3997_s16, %s4893_s16   ;;  %s3952_s15 = sphi %s3995_s15, %s4892_s15  }
   0x4   : > { %p24_p0 = scmp.ge.s32.totalorder %s23_s20, 2  ;;  %p3287_p1 = scmp.ge.s32.totalorder %s3968_s19, 1 }
   0x5   : > { %p193_p2 = scmp.lt.s32.totalorder %s3968_s19, 5 }
   0x6   : > { %s4897_s20 = smov (%p24_p0, %s23_s20), 0  ;;  %s4899_s21 = smov (!%p24_p0, %s26_s21), %s3964_s18 }
   0x7   : > { %p194_p3 = pnand %p3287_p1, %p193_p2  ;;  %p28_p4 = scmp.ge.s32.totalorder %s4899_s21, 2 }
   0x8   : > { %p232_p5 = scmp.lt.s32.totalorder (!%p194_p3), %s3956_s16, 1  ;;  %s3609_s28 = smul.u32 (!%p194_p3), 96, %s3952_s15 }
   0x9   : > { %s4901_s21 = smov (%p28_p4, %s4899_s21), 0  ;;  %197 = sbr.rel (%p194_p3) target bundleno = 394 (0x18a), region = 36 }
   0xa   : > { %s3289_s27 = sshll.u32 (!%p194_p3), %s3952_s15, 4 }
   0xb   : > { %p4737_p6 = scmp.lt.s32.totalorder (!%p194_p3), %s3289_s27, 31 }
   0xe   : > { %v278_v0 = vld [vmem:[%s4883_s1] sm:$0x3]  ;;  %vm344_vm0 = vcmask 1041408   ;;  %v3314_v2 = vld [vmem:[%s4883_s1 + $0x2] sm:$0x3]  ;;  %s4903_s16 = smov (!%p232_p5, %s3956_s16), 1 }
   0xf   : > { %3856 = vmatprep.subr.msk.bf16.mxu1 %vm344_vm0, %v278_v0  ;;  %v346_v1 = vsel %vm344_vm0, %v278_v0, 0  ;;  %3855 = vmatprep.subr.msk.bf16.mxu0 %vm344_vm0, %v278_v0  ;;  %v3339_v3 = vld [vmem:[%s4883_s1 + $0x4] sm:$0x3]  ;;  %s3865_s29 = smul.u32 216, %s4903_s16  ;;  %vm319_vm1 = vcmask 31744   ;;  %v732_v8 = vsel %vm344_vm0, %v3314_v2, 0 }
  0x10   : > { %3854 = vmatpush3.bf16.msra.mxu1 %v346_v1  ;;  %3692 = vmatpush3.bf16.msra.mxu0 %v346_v1  ;;  %v3374_v4 = vld [vmem:[%s4883_s1 + $0x6] sm:$0x3]  ;;  %v3415_v5 = vld [vmem:[%s4883_s1 + $0x8] sm:$0x3]  ;;  %v4059_v6 = vld [vmem:[%s4883_s1 + $0xa] sm:$0x3] }
  0x11   : > { %3857 = vmatprep.subr.msk.bf16.mxu1 %vm344_vm0, %v3314_v2  ;;  %3858 = vmatprep.subr.msk.bf16.mxu0 %vm344_vm0, %v3339_v3  ;;  %s236_s6 = scalar_lea.vmem %s4882_s0, %s3865_s29  ;;  %v4066_v9 = vld [vmem:[%s4883_s1 + $0xc] sm:$0x3]  ;;  %v1037_v11 = vsel %vm344_vm0, %v3339_v3, 0  ;;  %v4073_v12 = vld [vmem:[%s4883_s1 + $0xe] sm:$0x3]  ;;  %v4078_v14 = vsel %vm344_vm0, %v3374_v4, 0 }
  0x12   : > { %s4048_s7 = scalar_lea.vmem %s236_s6, %s3609_s28  ;;  %vm927_vm2 = vcmask 1042432   ;;  %vm928_vm3 = vcmask 1046532   ;;  %v4083_v15 = vld [vmem:[%s4883_s1 + $0x10] sm:$0x3]  ;;  %vm486_vm4 = vsmask.f32 3328 }
  0x13   : > { %v3906_v7 = vld [vmem:[%s4048_s7 + $0x30] sm:$0xff]   ;;  %v3907_v10 = vld [vmem:[%s4048_s7 + $0x3c] sm:$0xff]   ;;  %vm487_vm5 = vsmask.f32 7440  ;;  %v4088_v17 = vsel %vm344_vm0, %v3415_v5, 0  ;;  %v3910_v18 = vld [vmem:[%s4048_s7 + $0x48] sm:$0xff]  }
  0x14   : > { %3701 = vmatprep.mubr.msk.bf16.mxu1 %vm319_vm1, %v3906_v7  ;;  %v3908_v13 = vld [vmem:[%s4048_s7] sm:$0xff]   ;;  %v3909_v16 = vld [vmem:[%s4048_s7 + $0xc] sm:$0xff]   ;;  %v4094_v19 = vsel %vm344_vm0, %v4059_v6, 0  ;;  %v3911_v20 = vld [vmem:[%s4048_s7 + $0x54] sm:$0xff]   ;;  %v4101_v21 = vsel %vm344_vm0, %v4066_v9, 0  ;;  %v4107_v23 = vsel %vm344_vm0, %v4073_v12, 0 }
  0x15   : > { %3702 = vmatmul.mubr.msk.bf16.vlgmr.msra.gmra.mxu1 %vm319_vm1, %v3907_v10  ;;  %3693 = vmatprep.mubr.msk.bf16.mxu0 %vm319_vm1, %v3908_v13  ;;  %v3912_v22 = vld [vmem:[%s4048_s7 + $0x18] sm:$0xff]   ;;  %v3913_v24 = vld [vmem:[%s4048_s7 + $0x24] sm:$0xff]   ;;  %v4113_v25 = vsel %vm344_vm0, %v4083_v15, 0  ;;  %v462_v26 = vld [vmem:[%s4048_s7] sm:$0xf]  ;;  %vm445_vm8 = vcmask 64512  }
  0x16   : > { %3710 = vmatpush3.bf16.msra.mxu1 %v732_v8  ;;  %3694 = vmatmul.mubr.msk.bf16.vlgmr.msra.gmra.mxu0 %vm319_vm1, %v3909_v16  ;;  %v463_v27 = vld [vmem:[%s4048_s7 + $0x4] sm:$0xf]  ;;  %v464_v28 = vld [vmem:[%s4048_s7 + $0x8] sm:$0x1]  ;;  %v490_v29 = vshrl.u32 %v462_v26, 16  ;;  %v493_v30 = vshll.u32 %v462_v26, 16  ;;  %vm4129_vm6 = vmor %vm927_vm2, %vm928_vm3 }
  0x17   : > { %3859 = vmatprep.subr.msk.bf16.mxu1 %vm344_vm0, %v3374_v4  ;;  %3705 = vmatprep.mubr.msk.bf16.mxu1 %vm319_vm1, %v3910_v18  ;;  %v499_v31 = vshll.u32 %v463_v27, 16  ;;  %v503_v32 = vshrl.u32 %v463_v27, 16  ;;  %v465_v33 = vld [vmem:[%s4048_s7 + $0xc] sm:$0xf]  ;;  %v509_v34 = vshll.u32 %v464_v28, 16  ;;  %vm4135_vm7 = vmor %vm486_vm4, %vm487_vm5  ;;  %s4905_s27 = smov (!%p4737_p6, %s3289_s27), 31 }
  0x18   : > { %3728 = vmatpush3.bf16.msra.mxu0 %v1037_v11  ;;  %3697 = vmatprep.mubr.msk.bf16.mxu0 %vm319_vm1, %v3912_v22  ;;  %v466_v35 = vld [vmem:[%s4048_s7 + $0x10] sm:$0xf]  ;;  %v467_v36 = vld [vmem:[%s4048_s7 + $0x14] sm:$0x1]  ;;  %v514_v37 = vshrl.u32 %v465_v33, 16  ;;  %v492_v38 = vrot.slane %v490_v29, 4 }
  0x19   : > { %3860 = vmatprep.subr.msk.bf16.mxu0 %vm344_vm0, %v3415_v5  ;;  %v495_v39 = vrot.slane %v493_v30, 5  ;;  %v501_v40 = vrot.slane %v499_v31, 5  ;;  %v505_v41 = vrot.slane %v503_v32, 4  ;;  %v879_v42 = vld [vmem:[%s4048_s7] sm:$0xe]  ;;  %v511_v43 = vrot.slane %v509_v34, 5 }
  0x1a   : > { %v516_v44 = vrot.slane %v514_v37, 4  ;;  %v517_v45 = vshll.u32 %v465_v33, 16  ;;  %v523_v46 = vshll.u32 %v466_v35, 16  ;;  %v880_v47 = vld [vmem:[%s4048_s7 + $0x4] sm:$0xf]  ;;  %v527_v50 = vshrl.u32 %v466_v35, 16 }
  0x1b   : > { %v496_v48 = vor.u32 %v495_v39, %v492_v38  ;;  %v506_v49 = vor.u32 %v505_v41, %v501_v40  ;;  %v533_v51 = vshll.u32 %v467_v36, 16  ;;  %v881_v52 = vld [vmem:[%s4048_s7 + $0x8] sm:$0x1]  ;;  %v3331_v57 = vrot.slane %v879_v42, 9  ;;  %v882_v59 = vld [vmem:[%s4048_s7 + $0xc] sm:$0xe] }
  0x1c   : > { %v519_v55 = vrot.slane %v517_v45, 5  ;;  %v525_v56 = vrot.slane %v523_v46, 5  ;;  %v932_v58 = vrot.slane %v880_v47, 5  ;;  %v529_v62 = vrot.slane %v527_v50, 4  ;;  %v883_v0 = vld [vmem:[%s4048_s7 + $0x10] sm:$0xf] }
  0x1d   : > { %3706 = vmatmul.mubr.msk.bf16.gmra.mxu1 %vm319_vm1, %v3911_v20  ;;  %v497_v60 = vrot.slane %v496_v48, 4  ;;  %v507_v61 = vrot.slane %v506_v49, 4  ;;  %v535_v63 = vrot.slane %v533_v51, 5  ;;  %v935_v4 = vrot.slane %v881_v52, 5  ;;  %v884_v5 = vld [vmem:[%s4048_s7 + $0x14] sm:$0x1] }
  0x1e   : > { %3698 = vmatmul.mubr.msk.bf16.gmra.mxu0 %vm319_vm1, %v3913_v24  ;;  %v520_v1 = vor.u32 %v519_v55, %v516_v44  ;;  %v933_v2 = vsel %vm4129_vm6, %v3331_v57, %v932_v58  ;;  %v934_v3 = vrot.slane %v932_v58, 4  ;;  %v468_v7 = vld [vmem:[%s4048_s7 + $0x18] sm:$0xf]  ;;  %v530_v11 = vor.u32 %v529_v62, %v525_v56  ;;  %v469_v24 = vld [vmem:[%s4048_s7 + $0x1c] sm:$0xf]  ;;  %s3290_s15 = sshll.u32 %s4903_s16, 5 }
  0x1f   : > { %v502_v8 = vsel %vm4135_vm7, %v497_v60, %v501_v40  ;;  %v512_v10 = vsel %vm4135_vm7, %v507_v61, %v511_v43  ;;  %v3332_v13 = vrot.slane %v882_v59, 9  ;;  %v939_v22 = vrot.slane %v883_v0, 5  ;;  %v470_v29 = vld [vmem:[%s4048_s7 + $0x20] sm:$0x1]  ;;  %v471_v35 = vld [vmem:[%s4048_s7 + $0x24] sm:$0xf]  ;;  %s4752_s29 = sadd.s32 %s3290_s15, %s4905_s27 }
  0x20   : > { %v3315_v16 = vcombine.low %v502_v8, %v512_v10  ;;  %v521_v18 = vrot.slane %v520_v1, 4  ;;  %v936_v20 = vsel %vm4129_vm6, %v934_v3, %v935_v4  ;;  %v531_v26 = vrot.slane %v530_v11, 4  ;;  %v472_v40 = vld [vmem:[%s4048_s7 + $0x28] sm:$0xf]  ;;  %v473_v45 = vld [vmem:[%s4048_s7 + $0x2c] sm:$0x1] }
  0x21   : > { %v3340_v27 = vcombine.low %v933_v2, %v936_v20  ;;  %v942_v28 = vrot.slane %v884_v5, 5  ;;  %v538_v30 = vshrl.u32 %v468_v7, 16  ;;  %v940_v32 = vsel %vm4129_vm6, %v3332_v13, %v939_v22  ;;  %v885_v46 = vld [vmem:[%s4048_s7 + $0x18] sm:$0xe]  ;;  %v886_v51 = vld [vmem:[%s4048_s7 + $0x1c] sm:$0xf] }
  0x22   : > { %3711 = vmatprep.mubr.msk.bf16.mxu1 %vm319_vm1, %v3315_v16  ;;  %v526_v31 = vsel %vm4135_vm7, %v521_v18, %v525_v56  ;;  %v941_v33 = vrot.slane %v939_v22, 4  ;;  %v541_v34 = vshll.u32 %v468_v7, 16  ;;  %v536_v36 = vsel %vm4135_vm7, %v531_v26, %v535_v63  ;;  %v887_v58 = vld [vmem:[%s4048_s7 + $0x20] sm:$0x1]  ;;  %v888_v63 = vld [vmem:[%s4048_s7 + $0x24] sm:$0xe] }
  0x23   : > { %3729 = vmatprep.mubr.msk.bf16.mxu0 %vm319_vm1, %v3340_v27  ;;  %v540_v37 = vrot.slane %v538_v30, 4  ;;  %v547_v38 = vshll.u32 %v469_v24, 16  ;;  %v551_v39 = vshrl.u32 %v469_v24, 16  ;;  %v3316_v41 = vcombine.low %v526_v31, %v536_v36  ;;  %v889_v4 = vld [vmem:[%s4048_s7 + $0x28] sm:$0xf]  ;;  %s3291_s16 = sshll.u32 %s4752_s29, 3 }
  0x24   : > { %v943_v42 = vsel %vm4129_vm6, %v941_v33, %v942_v28  ;;  %v543_v43 = vrot.slane %v541_v34, 5  ;;  %v557_v44 = vshll.u32 %v470_v29, 16  ;;  %v562_v50 = vshrl.u32 %v471_v35, 16  ;;  %v890_v10 = vld [vmem:[%s4048_s7 + $0x2c] sm:$0x1]  ;;  %s4766_s6 = scalar_lea.vmem %s4885_s3, %s3291_s16  ;;  %s4787_s11 = scalar_lea.vmem %s4886_s4, %s3291_s16 }
  0x25   : > { %v3341_v47 = vcombine.low %v940_v32, %v943_v42  ;;  %v549_v48 = vrot.slane %v547_v38, 5  ;;  %v553_v49 = vrot.slane %v551_v39, 4  ;;  %3712 = vmatmul.mubr.msk.bf16.vlgmr.msra.gmra.mxu1 %vm319_vm1, %v3316_v41  ;;  %v565_v56 = vshll.u32 %v471_v35, 16  ;;  %v474_v18 = vld [vmem:[%s4048_s7 + $0x30] sm:$0xf] }
  0x26   : > { %v544_v52 = vor.u32 %v543_v43, %v540_v37  ;;  %v559_v55 = vrot.slane %v557_v44, 5  ;;  %v571_v57 = vshll.u32 %v472_v40, 16  ;;  %3746 = vmatpush3.bf16.msra.mxu1 %v4078_v14  ;;  %v564_v60 = vrot.slane %v562_v50, 4  ;;  %v475_v29 = vld [vmem:[%s4048_s7 + $0x34] sm:$0xf] }
  0x27   : > { %3730 = vmatmul.mubr.msk.bf16.vlgmr.msra.gmra.mxu0 %vm319_vm1, %v3341_v47  ;;  %v554_v59 = vor.u32 %v553_v49, %v549_v48  ;;  %v575_v61 = vshrl.u32 %v472_v40, 16  ;;  %v581_v62 = vshll.u32 %v473_v45, 16  ;;  %v567_v1 = vrot.slane %v565_v56, 5  ;;  %3861 = vmatprep.subr.msk.bf16.mxu1 %vm344_vm0, %v4059_v6  ;;  %v476_v32 = vld [vmem:[%s4048_s7 + $0x38] sm:$0x1] }
  0x28   : > { %v545_v0 = vrot.slane %v544_v52, 4  ;;  %v573_v2 = vrot.slane %v571_v57, 5  ;;  %3764 = vmatpush3.bf16.msra.mxu0 %v4088_v17  ;;  %v3333_v3 = vrot.slane %v885_v46, 9  ;;  %v946_v8 = vrot.slane %v886_v51, 5  ;;  %v477_v39 = vld [vmem:[%s4048_s7 + $0x3c] sm:$0xf] }
  0x29   : > { %v555_v14 = vrot.slane %v554_v59, 4  ;;  %v577_v5 = vrot.slane %v575_v61, 4  ;;  %v583_v7 = vrot.slane %v581_v62, 5  ;;  %3862 = vmatprep.subr.msk.bf16.mxu0 %vm344_vm0, %v4066_v9  ;;  %v568_v13 = vor.u32 %v567_v1, %v564_v60  ;;  %v478_v44 = vld [vmem:[%s4048_s7 + $0x40] sm:$0xf] }
  0x2a   : > { %v550_v11 = vsel %vm4135_vm7, %v545_v0, %v549_v48  ;;  %v949_v17 = vrot.slane %v887_v58, 5  ;;  %v3334_v16 = vrot.slane %v888_v63, 9  ;;  %v947_v22 = vsel %vm4129_vm6, %v3333_v3, %v946_v8  ;;  %v479_v49 = vld [vmem:[%s4048_s7 + $0x44] sm:$0x1]  ;;  %v891_v50 = vld [vmem:[%s4048_s7 + $0x30] sm:$0xe] }
  0x2b   : > { %v560_v6 = vsel %vm4135_vm7, %v555_v14, %v559_v55  ;;  %v578_v20 = vor.u32 %v577_v5, %v573_v2  ;;  %v948_v24 = vrot.slane %v946_v8, 4  ;;  %v569_v27 = vrot.slane %v568_v13, 4  ;;  %v892_v57 = vld [vmem:[%s4048_s7 + $0x34] sm:$0xf]  ;;  %v893_v58 = vld [vmem:[%s4048_s7 + $0x38] sm:$0x1] }
  0x2c   : > { %v3317_v26 = vcombine.low %v550_v11, %v560_v6  ;;  %v953_v9 = vrot.slane %v889_v4, 5  ;;  %v956_v28 = vrot.slane %v890_v10, 5  ;;  %v586_v33 = vshrl.u32 %v474_v18, 16  ;;  %v894_v63 = vld [vmem:[%s4048_s7 + $0x3c] sm:$0xe] }
  0x2d   : > { %v579_v30 = vrot.slane %v578_v20, 4  ;;  %v950_v31 = vsel %vm4129_vm6, %v948_v24, %v949_v17  ;;  %v589_v34 = vshll.u32 %v474_v18, 16  ;;  %v574_v35 = vsel %vm4135_vm7, %v569_v27, %v573_v2  ;;  %v895_v4 = vld [vmem:[%s4048_s7 + $0x40] sm:$0xf]  ;;  %v896_v10 = vld [vmem:[%s4048_s7 + $0x44] sm:$0x1] }
  0x2e   : > { %3715 = vmatprep.mubr.msk.bf16.mxu1 %vm319_vm1, %v3317_v26  ;;  %v3342_v36 = vcombine.low %v947_v22, %v950_v31  ;;  %v954_v37 = vsel %vm4129_vm6, %v3334_v16, %v953_v9  ;;  %v955_v38 = vrot.slane %v953_v9, 4  ;;  %v588_v41 = vrot.slane %v586_v33, 4  ;;  %v480_v18 = vld [vmem:[%s4048_s7 + $0x48] sm:$0xf]  ;;  %v481_v26 = vld [vmem:[%s4048_s7 + $0x4c] sm:$0xf] }
  0x2f   : > { %v584_v40 = vsel %vm4135_vm7, %v579_v30, %v583_v7  ;;  %v591_v42 = vrot.slane %v589_v34, 5  ;;  %v595_v43 = vshll.u32 %v475_v29, 16  ;;  %v599_v47 = vshrl.u32 %v475_v29, 16  ;;  %v482_v30 = vld [vmem:[%s4048_s7 + $0x50] sm:$0x1] }
  0x30   : > { %v3318_v45 = vcombine.low %v574_v35, %v584_v40  ;;  %3733 = vmatprep.mubr.msk.bf16.mxu0 %vm319_vm1, %v3342_v36  ;;  %v957_v46 = vsel %vm4129_vm6, %v955_v38, %v956_v28  ;;  %v605_v48 = vshll.u32 %v476_v32, 16  ;;  %v610_v56 = vshrl.u32 %v477_v39, 16  ;;  %v483_v31 = vld [vmem:[%s4048_s7 + $0x54] sm:$0xf] }
  0x31   : > { %v3343_v51 = vcombine.low %v954_v37, %v957_v46  ;;  %v592_v52 = vor.u32 %v591_v42, %v588_v41  ;;  %v597_v55 = vrot.slane %v595_v43, 5  ;;  %v601_v59 = vrot.slane %v599_v47, 4 }
  0x32   : > { %3716 = vmatmul.mubr.msk.bf16.gmra.mxu1 %vm319_vm1, %v3318_v45  ;;  %v607_v60 = vrot.slane %v605_v48, 5  ;;  %v613_v61 = vshll.u32 %v477_v39, 16  ;;  %v619_v62 = vshll.u32 %v478_v44, 16  ;;  %v612_v1 = vrot.slane %v610_v56, 4  ;;  %v897_v56 = vld [vmem:[%s4048_s7 + $0x48] sm:$0xe] }
  0x33   : > { %3734 = vmatmul.mubr.msk.bf16.gmra.mxu0 %vm319_vm1, %v3343_v51  ;;  %v593_v0 = vrot.slane %v592_v52, 4  ;;  %v623_v2 = vshrl.u32 %v478_v44, 16  ;;  %v629_v3 = vshll.u32 %v479_v49, 16  ;;  %v602_v14 = vor.u32 %v601_v59, %v597_v55  ;;  %v484_v44 = vld [vmem:[%s4048_s7 + $0x58] sm:$0xf] }
  0x34   : > { %v615_v5 = vrot.slane %v613_v61, 5  ;;  %v621_v7 = vrot.slane %v619_v62, 5  ;;  %v3335_v8 = vrot.slane %v891_v50, 9  ;;  %v960_v16 = vrot.slane %v892_v57, 5  ;;  %v485_v49 = vld [vmem:[%s4048_s7 + $0x5c] sm:$0x1] }
  0x35   : > { %v598_v11 = vsel %vm4135_vm7, %v593_v0, %v597_v55  ;;  %v625_v13 = vrot.slane %v623_v2, 4  ;;  %v631_v17 = vrot.slane %v629_v3, 5  ;;  %v603_v6 = vrot.slane %v602_v14, 4  ;;  %v898_v57 = vld [vmem:[%s4048_s7 + $0x4c] sm:$0xf] }
  0x36   : > { %v616_v20 = vor.u32 %v615_v5, %v612_v1  ;;  %v963_v22 = vrot.slane %v893_v58, 5  ;;  %v3336_v24 = vrot.slane %v894_v63, 9  ;;  %v961_v9 = vsel %vm4129_vm6, %v3335_v8, %v960_v16  ;;  %v899_v62 = vld [vmem:[%s4048_s7 + $0x50] sm:$0x1]  ;;  %v900_v3 = vld [vmem:[%s4048_s7 + $0x54] sm:$0xe] }
  0x37   : > { %v626_v27 = vor.u32 %v625_v13, %v621_v7  ;;  %v962_v28 = vrot.slane %v960_v16, 4  ;;  %v967_v29 = vrot.slane %v895_v4, 5  ;;  %v608_v32 = vsel %vm4135_vm7, %v603_v6, %v607_v60 }
  0x38   : > { %v617_v33 = vrot.slane %v616_v20, 4  ;;  %v970_v34 = vrot.slane %v896_v10, 5  ;;  %v634_v35 = vshrl.u32 %v480_v18, 16  ;;  %v3319_v36 = vcombine.low %v598_v11, %v608_v32  ;;  %v901_v20 = vld [vmem:[%s4048_s7 + $0x58] sm:$0xf] }
  0x39   : > { %v627_v37 = vrot.slane %v626_v27, 4  ;;  %v964_v38 = vsel %vm4129_vm6, %v962_v28, %v963_v22  ;;  %v968_v39 = vsel %vm4129_vm6, %v3336_v24, %v967_v29  ;;  %v969_v42 = vrot.slane %v967_v29, 4  ;;  %v3391_v28 = vld [vmem:[%s4048_s7 + $0xc] sm:$0xf] }
  0x3a   : > { %v622_v40 = vsel %vm4135_vm7, %v617_v33, %v621_v7  ;;  %v3344_v41 = vcombine.low %v961_v9, %v964_v38  ;;  %v636_v43 = vrot.slane %v634_v35, 4  ;;  %3719 = vmatprep.mubr.msk.bf16.mxu1 %vm319_vm1, %v3319_v36  ;;  %v637_v46 = vshll.u32 %v480_v18, 16  ;;  %v902_v9 = vld [vmem:[%s4048_s7 + $0x5c] sm:$0x1]  ;;  %v3392_v33 = vld [vmem:[%s4048_s7 + $0x10] sm:$0xf] }
  0x3b   : > { %v632_v45 = vsel %vm4135_vm7, %v627_v37, %v631_v17  ;;  %v643_v47 = vshll.u32 %v481_v26, 16  ;;  %v647_v48 = vshrl.u32 %v481_v26, 16  ;;  %v971_v51 = vsel %vm4129_vm6, %v969_v42, %v970_v34  ;;  %v3393_v34 = vld [vmem:[%s4048_s7 + $0x14] sm:$0x1] }
  0x3c   : > { %v3320_v50 = vcombine.low %v622_v40, %v632_v45  ;;  %3737 = vmatprep.mubr.msk.bf16.mxu0 %vm319_vm1, %v3344_v41  ;;  %v653_v52 = vshll.u32 %v482_v30, 16  ;;  %v658_v55 = vshrl.u32 %v483_v31, 16  ;;  %v3345_v58 = vcombine.low %v968_v39, %v971_v51  ;;  %v3394_v39 = vld [vmem:[%s4048_s7 + $0x18] sm:$0xf] }
  0x3d   : > { %v639_v59 = vrot.slane %v637_v46, 5  ;;  %v645_v60 = vrot.slane %v643_v47, 5  ;;  %v649_v61 = vrot.slane %v647_v48, 4  ;;  %v661_v1 = vshll.u32 %v483_v31, 16 }
  0x3e   : > { %3720 = vmatmul.mubr.msk.bf16.gmra.mxu1 %vm319_vm1, %v3320_v50  ;;  %v655_v63 = vrot.slane %v653_v52, 5  ;;  %v660_v0 = vrot.slane %v658_v55, 4  ;;  %v667_v2 = vshll.u32 %v484_v44, 16  ;;  %3738 = vmatmul.mubr.msk.bf16.gmra.mxu0 %vm319_vm1, %v3345_v58  ;;  %v671_v5 = vshrl.u32 %v484_v44, 16  ;;  %v3395_v55 = vld [vmem:[%s4048_s7 + $0x1c] sm:$0xf] }
  0x3f   : > { %v640_v4 = vor.u32 %v639_v59, %v636_v43  ;;  %v650_v14 = vor.u32 %v649_v61, %v645_v60  ;;  %v677_v7 = vshll.u32 %v485_v49, 16  ;;  %v663_v8 = vrot.slane %v661_v1, 5  ;;  %v3914_v49 = vld [vmem:[%s4048_s7 + $0xc] sm:$0xff]   ;;  %v3397_v1 = vld [vmem:[%s4048_s7 + $0x24] sm:$0xf] }
  0x40   : > { %v669_v10 = vrot.slane %v667_v2, 5  ;;  %v3337_v11 = vrot.slane %v897_v56, 9  ;;  %v974_v13 = vrot.slane %v898_v57, 5  ;;  %v673_v18 = vrot.slane %v671_v5, 4  ;;  %v3398_v5 = vld [vmem:[%s4048_s7 + $0x28] sm:$0xf] }
  0x41   : > { %v641_v17 = vrot.slane %v640_v4, 4  ;;  %v651_v16 = vrot.slane %v650_v14, 4  ;;  %v679_v6 = vrot.slane %v677_v7, 5  ;;  %v664_v22 = vor.u32 %v663_v8, %v660_v0 }
  0x42   : > { %v975_v24 = vsel %vm4129_vm6, %v3337_v11, %v974_v13  ;;  %v976_v26 = vrot.slane %v974_v13, 4  ;;  %v977_v27 = vrot.slane %v899_v62, 5  ;;  %v674_v31 = vor.u32 %v673_v18, %v669_v10  ;;  %v3399_v13 = vld [vmem:[%s4048_s7 + $0x2c] sm:$0x1] }
  0x43   : > { %v646_v29 = vsel %vm4135_vm7, %v641_v17, %v645_v60  ;;  %v656_v30 = vsel %vm4135_vm7, %v651_v16, %v655_v63  ;;  %v3338_v32 = vrot.slane %v900_v3, 9  ;;  %v665_v36 = vrot.slane %v664_v22, 4  ;;  %v3396_v60 = vld [vmem:[%s4048_s7 + $0x20] sm:$0x1]  ;;  %v3915_v17 = vld [vmem:[%s4048_s7 + $0x18] sm:$0xff]  }
  0x44   : > { %v3321_v35 = vcombine.low %v646_v29, %v656_v30  ;;  %v978_v37 = vsel %vm4129_vm6, %v976_v26, %v977_v27  ;;  %v981_v38 = vrot.slane %v901_v20, 5  ;;  %v675_v40 = vrot.slane %v674_v31, 4  ;;  %v3400_v22 = vld [vmem:[%s4048_s7 + $0x30] sm:$0xf] }
  0x45   : > { %v3346_v41 = vcombine.low %v975_v24, %v978_v37  ;;  %v984_v42 = vrot.slane %v902_v9, 5  ;;  %v1443_v43 = vshrl.u32 %v3391_v28, 16  ;;  %v670_v44 = vsel %vm4135_vm7, %v665_v36, %v669_v10  ;;  %v3401_v37 = vld [vmem:[%s4048_s7 + $0x34] sm:$0xf] }
  0x46   : > { %3723 = vmatprep.mubr.msk.bf16.mxu1 %vm319_vm1, %v3321_v35  ;;  %v982_v45 = vsel %vm4129_vm6, %v3338_v32, %v981_v38  ;;  %v983_v46 = vrot.slane %v981_v38, 4  ;;  %v1446_v47 = vshll.u32 %v3391_v28, 16  ;;  %v680_v48 = vsel %vm4135_vm7, %v675_v40, %v679_v6 }
  0x47   : > { %3741 = vmatprep.mubr.msk.bf16.mxu0 %vm319_vm1, %v3346_v41  ;;  %v1445_v50 = vrot.slane %v1443_v43, 4  ;;  %v1452_v51 = vshll.u32 %v3392_v33, 16  ;;  %v1456_v52 = vshrl.u32 %v3392_v33, 16  ;;  %v3322_v56 = vcombine.low %v670_v44, %v680_v48 }
  0x48   : > { %v985_v57 = vsel %vm4129_vm6, %v983_v46, %v984_v42  ;;  %v1448_v58 = vrot.slane %v1446_v47, 5  ;;  %v1462_v59 = vshll.u32 %v3393_v34, 16  ;;  %v1467_v0 = vshrl.u32 %v3394_v39, 16  ;;  %v3916_v34 = vld [vmem:[%s4048_s7 + $0x24] sm:$0xff]  }
  0x49   : > { %v3347_v61 = vcombine.low %v982_v45, %v985_v57  ;;  %v1454_v62 = vrot.slane %v1452_v51, 5  ;;  %v1458_v63 = vrot.slane %v1456_v52, 4  ;;  %3724 = vmatmul.mubr.msk.bf16.gmra.mxu1 %vm319_vm1, %v3322_v56  ;;  %v1470_v4 = vshll.u32 %v3394_v39, 16  ;;  %v3402_v45 = vld [vmem:[%s4048_s7 + $0x38] sm:$0x1] }
  0x4a   : > { %v1449_v2 = vor.u32 %v1448_v58, %v1445_v50  ;;  %v1464_v3 = vrot.slane %v1462_v59, 5  ;;  %v1476_v14 = vshll.u32 %v3395_v55, 16  ;;  %3747 = vmatprep.mubr.msk.bf16.mxu1 %vm319_vm1, %v3914_v49  ;;  %v1469_v8 = vrot.slane %v1467_v0, 4  ;;  %v3403_v51 = vld [vmem:[%s4048_s7 + $0x3c] sm:$0xf] }
  0x4b   : > { %3742 = vmatmul.mubr.msk.bf16.gmra.mxu0 %vm319_vm1, %v3347_v61  ;;  %v1459_v7 = vor.u32 %v1458_v63, %v1454_v62  ;;  %v1480_v10 = vshrl.u32 %v3395_v55, 16  ;;  %v1486_v11 = vshll.u32 %v3396_v60, 16  ;;  %v1472_v18 = vrot.slane %v1470_v4, 5  ;;  %v3404_v58 = vld [vmem:[%s4048_s7 + $0x40] sm:$0xf] }
  0x4c   : > { %v1450_v16 = vrot.slane %v1449_v2, 4  ;;  %v1478_v6 = vrot.slane %v1476_v14, 5  ;;  %v1491_v20 = vshrl.u32 %v3397_v1, 16  ;;  %v1494_v9 = vshll.u32 %v3397_v1, 16  ;;  %v3405_v1 = vld [vmem:[%s4048_s7 + $0x44] sm:$0x1] }
  0x4d   : > { %v1460_v24 = vrot.slane %v1459_v7, 4  ;;  %v1482_v26 = vrot.slane %v1480_v10, 4  ;;  %v1488_v27 = vrot.slane %v1486_v11, 5  ;;  %v1473_v29 = vor.u32 %v1472_v18, %v1469_v8  ;;  %v3406_v8 = vld [vmem:[%s4048_s7 + $0x48] sm:$0xf]  ;;  %v3918_v11 = vld [vmem:[%s4048_s7 + $0x3c] sm:$0xff]  }
  0x4e   : > { %v1455_v28 = vsel %vm4135_vm7, %v1450_v16, %v1454_v62  ;;  %v1493_v30 = vrot.slane %v1491_v20, 4  ;;  %v1500_v31 = vshll.u32 %v3398_v5, 16  ;;  %v1496_v35 = vrot.slane %v1494_v9, 5  ;;  %v3407_v16 = vld [vmem:[%s4048_s7 + $0x4c] sm:$0xf] }
  0x4f   : > { %v1465_v32 = vsel %vm4135_vm7, %v1460_v24, %v1464_v3  ;;  %v1483_v33 = vor.u32 %v1482_v26, %v1478_v6  ;;  %v1504_v36 = vshrl.u32 %v3398_v5, 16  ;;  %v1474_v39 = vrot.slane %v1473_v29, 4  ;;  %v3917_v3 = vld [vmem:[%s4048_s7 + $0x30] sm:$0xff]  }
  0x50   : > { %v3416_v38 = vcombine.low %v1455_v28, %v1465_v32  ;;  %v1502_v40 = vrot.slane %v1500_v31, 5  ;;  %v1510_v41 = vshll.u32 %v3399_v13, 16  ;;  %v1497_v43 = vor.u32 %v1496_v35, %v1493_v30  ;;  %v3408_v24 = vld [vmem:[%s4048_s7 + $0x50] sm:$0x1]  ;;  %v3409_v35 = vld [vmem:[%s4048_s7 + $0x54] sm:$0xf] }
  0x51   : > { %v1484_v42 = vrot.slane %v1483_v33, 4  ;;  %v1506_v44 = vrot.slane %v1504_v36, 4  ;;  %v1515_v46 = vshrl.u32 %v3400_v22, 16  ;;  %3748 = vmatmul.mubr.msk.bf16.vlgmr.msra.gmra.mxu1 %vm319_vm1, %v3915_v17  ;;  %v1479_v47 = vsel %vm4135_vm7, %v1474_v39, %v1478_v6 }
  0x52   : > { %3765 = vmatprep.mubr.msk.bf16.mxu0 %vm319_vm1, %v3416_v38  ;;  %v1512_v48 = vrot.slane %v1510_v41, 5  ;;  %v1518_v49 = vshll.u32 %v3400_v22, 16  ;;  %v1524_v50 = vshll.u32 %v3401_v37, 16  ;;  %3782 = vmatpush3.bf16.msra.mxu1 %v4094_v19  ;;  %v1498_v55 = vrot.slane %v1497_v43, 4 }
  0x53   : > { %v1489_v52 = vsel %vm4135_vm7, %v1484_v42, %v1488_v27  ;;  %3751 = vmatprep.mubr.msk.bf16.mxu1 %vm319_vm1, %v3916_v34  ;;  %v1507_v56 = vor.u32 %v1506_v44, %v1502_v40  ;;  %v1517_v57 = vrot.slane %v1515_v46, 4  ;;  %v1528_v62 = vshrl.u32 %v3401_v37, 16  ;;  %3863 = vmatprep.subr.msk.bf16.mxu1 %vm344_vm0, %v4073_v12  ;;  %v3919_v42 = vld [vmem:[%s4048_s7 + $0x48] sm:$0xff]  }
  0x54   : > { %v3417_v59 = vcombine.low %v1479_v47, %v1489_v52  ;;  %v1520_v60 = vrot.slane %v1518_v49, 5  ;;  %v1526_v61 = vrot.slane %v1524_v50, 5  ;;  %v1503_v19 = vsel %vm4135_vm7, %v1498_v55, %v1502_v40  ;;  %v3410_v40 = vld [vmem:[%s4048_s7 + $0x58] sm:$0xf]  ;;  %v3411_v49 = vld [vmem:[%s4048_s7 + $0x5c] sm:$0x1] }
  0x55   : > { %v1508_v63 = vrot.slane %v1507_v56, 4  ;;  %v1534_v0 = vshll.u32 %v3402_v45, 16  ;;  %v1539_v2 = vshrl.u32 %v3403_v51, 16  ;;  %v1530_v14 = vrot.slane %v1528_v62, 4  ;;  %v3920_v56 = vld [vmem:[%s4048_s7 + $0x54] sm:$0xff]  }
  0x56   : > { %3766 = vmatmul.mubr.msk.bf16.vlgmr.msra.gmra.mxu0 %vm319_vm1, %v3417_v59  ;;  %v1521_v4 = vor.u32 %v1520_v60, %v1517_v57  ;;  %v1542_v5 = vshll.u32 %v3403_v51, 16  ;;  %v1548_v7 = vshll.u32 %v3404_v58, 16  ;;  %v1552_v17 = vshrl.u32 %v3404_v58, 16  ;;  %v3412_v51 = vld [vmem:[%s4048_s7 + $0x60] sm:$0xf] }
  0x57   : > { %3800 = vmatpush3.bf16.msra.mxu0 %v4101_v21  ;;  %v1513_v12 = vsel %vm4135_vm7, %v1508_v63, %v1512_v48  ;;  %v1536_v10 = vrot.slane %v1534_v0, 5  ;;  %v1541_v13 = vrot.slane %v1539_v2, 4  ;;  %v1531_v20 = vor.u32 %v1530_v14, %v1526_v61  ;;  %v3413_v59 = vld [vmem:[%s4048_s7 + $0x64] sm:$0xf] }
  0x58   : > { %v3418_v18 = vcombine.low %v1503_v19, %v1513_v12  ;;  %v1522_v6 = vrot.slane %v1521_v4, 4  ;;  %v1544_v22 = vrot.slane %v1542_v5, 5  ;;  %3864 = vmatprep.subr.msk.bf16.mxu0 %vm344_vm0, %v4083_v15  ;;  %v1550_v26 = vrot.slane %v1548_v7, 5  ;;  %v3432_v4 = vld [vmem:[%s4048_s7 + $0xc] sm:$0xe] }
  0x59   : > { %v1554_v27 = vrot.slane %v1552_v17, 4  ;;  %v1558_v21 = vshll.u32 %v3405_v1, 16  ;;  %v1563_v9 = vshrl.u32 %v3406_v8, 16  ;;  %3752 = vmatmul.mubr.msk.bf16.gmra.mxu1 %vm319_vm1, %v3917_v3  ;;  %v1532_v29 = vrot.slane %v1531_v20, 4  ;;  %v3414_v3 = vld [vmem:[%s4048_s7 + $0x68] sm:$0x1] }
  0x5a   : > { %3769 = vmatprep.mubr.msk.bf16.mxu0 %vm319_vm1, %v3418_v18  ;;  %v1527_v28 = vsel %vm4135_vm7, %v1522_v6, %v1526_v61  ;;  %v1545_v30 = vor.u32 %v1544_v22, %v1541_v13  ;;  %v1566_v31 = vshll.u32 %v3406_v8, 16  ;;  %3755 = vmatprep.mubr.msk.bf16.mxu1 %vm319_vm1, %v3918_v11  ;;  %v1572_v34 = vshll.u32 %v3407_v16, 16  ;;  %v3433_v12 = vld [vmem:[%s4048_s7 + $0x10] sm:$0xf] }
  0x5b   : > { %v1555_v15 = vor.u32 %v1554_v27, %v1550_v26  ;;  %v1560_v32 = vrot.slane %v1558_v21, 5  ;;  %v1565_v33 = vrot.slane %v1563_v9, 4  ;;  %v1537_v36 = vsel %vm4135_vm7, %v1532_v29, %v1536_v10  ;;  %v3437_v29 = vld [vmem:[%s4048_s7 + $0x20] sm:$0x1] }
  0x5c   : > { %v1546_v37 = vrot.slane %v1545_v30, 4  ;;  %v1568_v38 = vrot.slane %v1566_v31, 5  ;;  %v1576_v39 = vshrl.u32 %v3407_v16, 16  ;;  %v3419_v41 = vcombine.low %v1527_v28, %v1537_v36  ;;  %v3434_v16 = vld [vmem:[%s4048_s7 + $0x14] sm:$0x1]  ;;  %v3921_v30 = vld [vmem:[%s4048_s7 + $0x60] sm:$0xff]  }
  0x5d   : > { %v1556_v43 = vrot.slane %v1555_v15, 4  ;;  %v1574_v44 = vrot.slane %v1572_v34, 5  ;;  %v1582_v45 = vshll.u32 %v3408_v24, 16  ;;  %v1587_v50 = vshrl.u32 %v3409_v35, 16  ;;  %v3435_v24 = vld [vmem:[%s4048_s7 + $0x18] sm:$0xe] }
  0x5e   : > { %v1551_v46 = vsel %vm4135_vm7, %v1546_v37, %v1550_v26  ;;  %v1569_v47 = vor.u32 %v1568_v38, %v1565_v33  ;;  %v1578_v48 = vrot.slane %v1576_v39, 4  ;;  %3770 = vmatmul.mubr.msk.bf16.gmra.mxu0 %vm319_vm1, %v3419_v41  ;;  %v1590_v57 = vshll.u32 %v3409_v35, 16  ;;  %v3436_v28 = vld [vmem:[%s4048_s7 + $0x1c] sm:$0xf]  ;;  %v3438_v34 = vld [vmem:[%s4048_s7 + $0x24] sm:$0xe] }
  0x5f   : > { %v1561_v52 = vsel %vm4135_vm7, %v1556_v43, %v1560_v32  ;;  %v1584_v55 = vrot.slane %v1582_v45, 5  ;;  %v1596_v58 = vshll.u32 %v3410_v40, 16  ;;  %v1589_v19 = vrot.slane %v1587_v50, 4  ;;  %v3439_v39 = vld [vmem:[%s4048_s7 + $0x28] sm:$0xf] }
  0x60   : > { %v3420_v60 = vcombine.low %v1551_v46, %v1561_v52  ;;  %v1570_v61 = vrot.slane %v1569_v47, 4  ;;  %v1579_v62 = vor.u32 %v1578_v48, %v1574_v44  ;;  %v1592_v63 = vrot.slane %v1590_v57, 5  ;;  %v3441_v45 = vld [vmem:[%s4048_s7 + $0x30] sm:$0xe]  ;;  %v3442_v46 = vld [vmem:[%s4048_s7 + $0x34] sm:$0xf] }
  0x61   : > { %v1598_v0 = vrot.slane %v1596_v58, 5  ;;  %v1600_v1 = vshrl.u32 %v3410_v40, 16  ;;  %v1606_v2 = vshll.u32 %v3411_v49, 16  ;;  %3756 = vmatmul.mubr.msk.bf16.gmra.mxu1 %vm319_vm1, %v3919_v42  ;;  %v1611_v7 = vshrl.u32 %v3412_v51, 16  ;;  %v3440_v40 = vld [vmem:[%s4048_s7 + $0x2c] sm:$0x1] }
  0x62   : > { %3773 = vmatprep.mubr.msk.bf16.mxu0 %vm319_vm1, %v3420_v60  ;;  %v1575_v14 = vsel %vm4135_vm7, %v1570_v61, %v1574_v44  ;;  %v1580_v5 = vrot.slane %v1579_v62, 4  ;;  %v1614_v8 = vshll.u32 %v3412_v51, 16  ;;  %3759 = vmatprep.mubr.msk.bf16.mxu1 %vm319_vm1, %v3920_v56  ;;  %v1593_v10 = vor.u32 %v1592_v63, %v1589_v19  ;;  %v3443_v51 = vld [vmem:[%s4048_s7 + $0x38] sm:$0x1]  ;;  %v3445_v63 = vld [vmem:[%s4048_s7 + $0x40] sm:$0xf] }
  0x63   : > { %v1602_v11 = vrot.slane %v1600_v1, 4  ;;  %v1608_v13 = vrot.slane %v1606_v2, 5  ;;  %v1620_v17 = vshll.u32 %v3413_v59, 16  ;;  %v1613_v6 = vrot.slane %v1611_v7, 4  ;;  %v3922_v58 = vld [vmem:[%s4048_s7 + $0x18] sm:$0xff]  }
  0x64   : > { %v1585_v18 = vsel %vm4135_vm7, %v1580_v5, %v1584_v55  ;;  %v1616_v20 = vrot.slane %v1614_v8, 5  ;;  %v1624_v22 = vshrl.u32 %v3413_v59, 16  ;;  %v1594_v27 = vrot.slane %v1593_v10, 4  ;;  %v3444_v59 = vld [vmem:[%s4048_s7 + $0x3c] sm:$0xe] }
  0x65   : > { %v3421_v26 = vcombine.low %v1575_v14, %v1585_v18  ;;  %v1603_v21 = vor.u32 %v1602_v11, %v1598_v0  ;;  %v1622_v9 = vrot.slane %v1620_v17, 5  ;;  %v1630_v32 = vshll.u32 %v3414_v3, 16  ;;  %v3447_v14 = vld [vmem:[%s4048_s7 + $0x48] sm:$0xe]  ;;  %v3448_v5 = vld [vmem:[%s4048_s7 + $0x4c] sm:$0xf] }
  0x66   : > { %v1617_v31 = vor.u32 %v1616_v20, %v1613_v6  ;;  %v1626_v15 = vrot.slane %v1624_v22, 4  ;;  %v3456_v33 = vrot.slane %v3432_v4, 9  ;;  %v1599_v35 = vsel %vm4135_vm7, %v1594_v27, %v1598_v0  ;;  %v3446_v0 = vld [vmem:[%s4048_s7 + $0x44] sm:$0x1]  ;;  %v3449_v11 = vld [vmem:[%s4048_s7 + $0x50] sm:$0x1] }
  0x67   : > { %3774 = vmatmul.mubr.msk.bf16.gmra.mxu0 %vm319_vm1, %v3421_v26  ;;  %v1604_v36 = vrot.slane %v1603_v21, 4  ;;  %v1882_v37 = vrot.slane %v3433_v12, 5  ;;  %v1885_v38 = vrot.slane %v3434_v16, 5  ;;  %v1632_v43 = vrot.slane %v1630_v32, 5  ;;  %v3450_v6 = vld [vmem:[%s4048_s7 + $0x54] sm:$0xe] }
  0x68   : > { %v1618_v41 = vrot.slane %v1617_v31, 4  ;;  %v1627_v42 = vor.u32 %v1626_v15, %v1622_v9  ;;  %v3457_v44 = vrot.slane %v3435_v24, 9  ;;  %v1889_v50 = vrot.slane %v3436_v28, 5  ;;  %v3451_v20 = vld [vmem:[%s4048_s7 + $0x58] sm:$0xf] }
  0x69   : > { %v1609_v47 = vsel %vm4135_vm7, %v1604_v36, %v1608_v13  ;;  %v1883_v48 = vsel %vm4129_vm6, %v3456_v33, %v1882_v37  ;;  %v1884_v49 = vrot.slane %v1882_v37, 4  ;;  %3760 = vmatmul.mubr.msk.bf16.gmra.mxu1 %vm319_vm1, %v3921_v30  ;;  %v1892_v57 = vrot.slane %v3437_v29, 5  ;;  %v3452_v30 = vld [vmem:[%s4048_s7 + $0x5c] sm:$0x1]  ;;  %v3923_v36 = vld [vmem:[%s4048_s7 + $0x24] sm:$0xff]  }
  0x6a   : > { %v3422_v52 = vcombine.low %v1599_v35, %v1609_v47  ;;  %v1623_v55 = vsel %vm4135_vm7, %v1618_v41, %v1622_v9  ;;  %v1628_v56 = vrot.slane %v1627_v42, 4  ;;  %v1890_v61 = vsel %vm4129_vm6, %v3457_v44, %v1889_v50  ;;  %v3454_v35 = vld [vmem:[%s4048_s7 + $0x64] sm:$0xf]  ;;  %v3455_v41 = vld [vmem:[%s4048_s7 + $0x68] sm:$0x1]  ;;  %v3924_v42 = vld [vmem:[%s4048_s7 + $0x30] sm:$0xff]  }
  0x6b   : > { %v1886_v60 = vsel %vm4129_vm6, %v1884_v49, %v1885_v38  ;;  %v1891_v62 = vrot.slane %v1889_v50, 4  ;;  %v3458_v19 = vrot.slane %v3438_v34, 9  ;;  %v1896_v3 = vrot.slane %v3439_v39, 5  ;;  %v3453_v34 = vld [vmem:[%s4048_s7 + $0x60] sm:$0xe] }
  0x6c   : > { %3777 = vmatprep.mubr.msk.bf16.mxu0 %vm319_vm1, %v3422_v52  ;;  %v1633_v1 = vsel %vm4135_vm7, %v1628_v56, %v1632_v43  ;;  %v3465_v2 = vcombine.low %v1883_v48, %v1886_v60  ;;  %v1899_v4 = vrot.slane %v3440_v40, 5  ;;  %v3459_v12 = vrot.slane %v3441_v45, 9  ;;  %v3516_v47 = vld [vmem:[%s4048_s7 + $0x18] sm:$0xf]  ;;  %v3517_v52 = vld [vmem:[%s4048_s7 + $0x1c] sm:$0xf] }
  0x6d   : > { %v3423_v7 = vcombine.low %v1623_v55, %v1633_v1  ;;  %v1893_v8 = vsel %vm4129_vm6, %v1891_v62, %v1892_v57  ;;  %v1903_v10 = vrot.slane %v3442_v46, 5  ;;  %v1897_v17 = vsel %vm4129_vm6, %v3458_v19, %v1896_v3  ;;  %v3519_v19 = vld [vmem:[%s4048_s7 + $0x24] sm:$0xf] }
  0x6e   : > { %3783 = vmatprep.mubr.msk.bf16.mxu1 %vm319_vm1, %v3465_v2  ;;  %v3466_v13 = vcombine.low %v1890_v61, %v1893_v8  ;;  %v1898_v16 = vrot.slane %v1896_v3, 4  ;;  %v1906_v18 = vrot.slane %v3443_v51, 5  ;;  %v3460_v26 = vrot.slane %v3444_v59, 9  ;;  %v3520_v3 = vld [vmem:[%s4048_s7 + $0x28] sm:$0xf] }
  0x6f   : > { %3778 = vmatmul.mubr.msk.bf16.gmra.mxu0 %vm319_vm1, %v3423_v7  ;;  %v4384_v22 = vsel %vm4129_vm6, %v3459_v12, %v1903_v10  ;;  %v1905_v24 = vrot.slane %v1903_v10, 4  ;;  %v1910_v27 = vrot.slane %v3445_v63, 5  ;;  %v1913_v9 = vrot.slane %v3446_v0, 5  ;;  %v3521_v8 = vld [vmem:[%s4048_s7 + $0x2c] sm:$0x1] }
  0x70   : > { %3801 = vmatprep.mubr.msk.bf16.mxu0 %vm319_vm1, %v3922_v58  ;;  %v1900_v21 = vsel %vm4129_vm6, %v1898_v16, %v1899_v4  ;;  %v3461_v28 = vrot.slane %v3447_v14, 9  ;;  %v1917_v29 = vrot.slane %v3448_v5, 5  ;;  %v1920_v40 = vrot.slane %v3449_v11, 5  ;;  %v3557_v12 = vld [vmem:[%s4048_s7 + $0x18] sm:$0xe]  ;;  %v3925_v16 = vld [vmem:[%s4048_s7 + $0x3c] sm:$0xff]  }
  0x71   : > { %v3467_v31 = vcombine.low %v1897_v17, %v1900_v21  ;;  %v1907_v15 = vsel %vm4129_vm6, %v1905_v24, %v1906_v18  ;;  %v1911_v32 = vsel %vm4129_vm6, %v3460_v26, %v1910_v27  ;;  %v1912_v33 = vrot.slane %v1910_v27, 4  ;;  %3784 = vmatmul.mubr.msk.bf16.vlgmr.msra.gmra.mxu1 %vm319_vm1, %v3466_v13  ;;  %v3558_v17 = vld [vmem:[%s4048_s7 + $0x1c] sm:$0xf]  ;;  %v3559_v24 = vld [vmem:[%s4048_s7 + $0x20] sm:$0x1]  ;;  %v3926_v26 = vld [vmem:[%s4048_s7 + $0x48] sm:$0xff]  }
  0x72   : > { %v3468_v37 = vcombine.low %v4384_v22, %v1907_v15  ;;  %v4401_v38 = vsel %vm4129_vm6, %v3461_v28, %v1917_v29  ;;  %v1919_v39 = vrot.slane %v1917_v29, 4  ;;  %3818 = vmatpush3.bf16.msra.mxu1 %v4107_v23  ;;  %v3462_v44 = vrot.slane %v3450_v6, 9  ;;  %v3518_v23 = vld [vmem:[%s4048_s7 + $0x20] sm:$0x1]  ;;  %v3560_v29 = vld [vmem:[%s4048_s7 + $0x24] sm:$0xe] }
  0x73   : > { %3787 = vmatprep.mubr.msk.bf16.mxu1 %vm319_vm1, %v3467_v31  ;;  %v1914_v43 = vsel %vm4129_vm6, %v1912_v33, %v1913_v9  ;;  %v1924_v45 = vrot.slane %v3451_v20, 5  ;;  %v1927_v46 = vrot.slane %v3452_v30, 5  ;;  %v3463_v50 = vrot.slane %v3453_v34, 9  ;;  %v3561_v33 = vld [vmem:[%s4048_s7 + $0x28] sm:$0xf] }
  0x74   : > { %v3469_v48 = vcombine.low %v1911_v32, %v1914_v43  ;;  %v4412_v49 = vsel %vm4129_vm6, %v1919_v39, %v1920_v40  ;;  %v1931_v51 = vrot.slane %v3454_v35, 5  ;;  %v1934_v58 = vrot.slane %v3455_v41, 5  ;;  %v3562_v39 = vld [vmem:[%s4048_s7 + $0x2c] sm:$0x1] }
  0x75   : > { %v3470_v55 = vcombine.low %v4401_v38, %v4412_v49  ;;  %v4420_v56 = vsel %vm4129_vm6, %v3462_v44, %v1924_v45  ;;  %v1926_v57 = vrot.slane %v1924_v45, 4  ;;  %v2393_v61 = vshrl.u32 %v3516_v47, 16  ;;  %v3522_v44 = vld [vmem:[%s4048_s7 + $0x30] sm:$0xf]  ;;  %v3928_v38 = vld [vmem:[%s4048_s7 + $0x60] sm:$0xff]  }
  0x76   : > { %v4424_v59 = vsel %vm4129_vm6, %v3463_v50, %v1931_v51  ;;  %v1933_v60 = vrot.slane %v1931_v51, 4  ;;  %v2396_v62 = vshll.u32 %v3516_v47, 16  ;;  %v2402_v0 = vshll.u32 %v3517_v52, 16 }
  0x77   : > { %3802 = vmatmul.mubr.msk.bf16.vlgmr.msra.gmra.mxu0 %vm319_vm1, %v3923_v36  ;;  %v4430_v63 = vsel %vm4129_vm6, %v1926_v57, %v1927_v46  ;;  %v2406_v1 = vshrl.u32 %v3517_v52, 16  ;;  %v2412_v2 = vshll.u32 %v3518_v23, 16  ;;  %v2395_v5 = vrot.slane %v2393_v61, 4  ;;  %v3523_v57 = vld [vmem:[%s4048_s7 + $0x34] sm:$0xf] }
  0x78   : > { %3836 = vmatpush3.bf16.msra.mxu0 %v4113_v25  ;;  %3805 = vmatprep.mubr.msk.bf16.mxu0 %vm319_vm1, %v3924_v42  ;;  %v3471_v4 = vcombine.low %v4420_v56, %v4430_v63  ;;  %v4439_v14 = vsel %vm4129_vm6, %v1933_v60, %v1934_v58  ;;  %v2398_v7 = vrot.slane %v2396_v62, 5  ;;  %v2404_v11 = vrot.slane %v2402_v0, 5  ;;  %v3524_v61 = vld [vmem:[%s4048_s7 + $0x38] sm:$0x1] }
  0x79   : > { %v3472_v10 = vcombine.low %v4424_v59, %v4439_v14  ;;  %v2408_v25 = vrot.slane %v2406_v1, 4  ;;  %v2414_v13 = vrot.slane %v2412_v2, 5  ;;  %3788 = vmatmul.mubr.msk.bf16.gmra.mxu1 %vm319_vm1, %v3468_v37  ;;  %v2417_v6 = vshrl.u32 %v3519_v19, 16  ;;  %v3927_v0 = vld [vmem:[%s4048_s7 + $0x54] sm:$0xff]  }
  0x7a   : > { %v2399_v18 = vor.u32 %v2398_v7, %v2395_v5  ;;  %v2420_v20 = vshll.u32 %v3519_v19, 16  ;;  %v2426_v22 = vshll.u32 %v3520_v3, 16  ;;  %3791 = vmatprep.mubr.msk.bf16.mxu1 %vm319_vm1, %v3469_v48  ;;  %v2430_v21 = vshrl.u32 %v3520_v3, 16  ;;  %v3525_v7 = vld [vmem:[%s4048_s7 + $0x3c] sm:$0xf] }
  0x7b   : > { %v2409_v27 = vor.u32 %v2408_v25, %v2404_v11  ;;  %v2436_v9 = vshll.u32 %v3521_v8, 16  ;;  %v3581_v28 = vrot.slane %v3557_v12, 9  ;;  %v2419_v31 = vrot.slane %v2417_v6, 4 }
  0x7c   : > { %v2400_v30 = vrot.slane %v2399_v18, 4  ;;  %v2422_v15 = vrot.slane %v2420_v20, 5  ;;  %v2428_v32 = vrot.slane %v2426_v22, 5  ;;  %v2432_v35 = vrot.slane %v2430_v21, 4  ;;  %v3564_v22 = vld [vmem:[%s4048_s7 + $0x34] sm:$0xf] }
  0x7d   : > { %v2410_v34 = vrot.slane %v2409_v27, 4  ;;  %v2438_v36 = vrot.slane %v2436_v9, 5  ;;  %v2832_v37 = vrot.slane %v3558_v17, 5  ;;  %v2835_v42 = vrot.slane %v3559_v24, 5  ;;  %v3563_v17 = vld [vmem:[%s4048_s7 + $0x30] sm:$0xe] }
  0x7e   : > { %v2405_v40 = vsel %vm4135_vm7, %v2400_v30, %v2404_v11  ;;  %v2423_v41 = vor.u32 %v2422_v15, %v2419_v31  ;;  %v3582_v43 = vrot.slane %v3560_v29, 9  ;;  %v2433_v46 = vor.u32 %v2432_v35, %v2428_v32  ;;  %v3526_v11 = vld [vmem:[%s4048_s7 + $0x40] sm:$0xf]  ;;  %v3565_v24 = vld [vmem:[%s4048_s7 + $0x38] sm:$0x1] }
  0x7f   : > { %3806 = vmatmul.mubr.msk.bf16.gmra.mxu0 %vm319_vm1, %v3925_v16  ;;  %v2415_v45 = vsel %vm4135_vm7, %v2410_v34, %v2414_v13  ;;  %v4462_v47 = vsel %vm4129_vm6, %v3581_v28, %v2832_v37  ;;  %v2834_v48 = vrot.slane %v2832_v37, 4  ;;  %v2839_v52 = vrot.slane %v3561_v33, 5  ;;  %v3566_v28 = vld [vmem:[%s4048_s7 + $0x3c] sm:$0xe]  ;;  %v3568_v37 = vld [vmem:[%s4048_s7 + $0x44] sm:$0x1] }
  0x80   : > { %3809 = vmatprep.mubr.msk.bf16.mxu0 %vm319_vm1, %v3926_v26  ;;  %v4465_v50 = vcombine.low %v2405_v40, %v2415_v45  ;;  %v2424_v51 = vrot.slane %v2423_v41, 4  ;;  %v2842_v23 = vrot.slane %v3562_v39, 5  ;;  %v2434_v58 = vrot.slane %v2433_v46, 4 }
  0x81   : > { %v4470_v60 = vsel %vm4129_vm6, %v2834_v48, %v2835_v42  ;;  %v2441_v62 = vshrl.u32 %v3522_v44, 16  ;;  %v2444_v19 = vshll.u32 %v3522_v44, 16  ;;  %3792 = vmatmul.mubr.msk.bf16.gmra.mxu1 %vm319_vm1, %v3470_v55  ;;  %v4484_v3 = vsel %vm4129_vm6, %v3582_v43, %v2839_v52  ;;  %v3528_v43 = vld [vmem:[%s4048_s7 + $0x48] sm:$0xf] }
  0x82   : > { %v2429_v1 = vsel %vm4135_vm7, %v2424_v51, %v2428_v32  ;;  %v3590_v2 = vcombine.low %v4462_v47, %v4470_v60  ;;  %v2841_v5 = vrot.slane %v2839_v52, 4  ;;  %3795 = vmatprep.mubr.msk.bf16.mxu1 %vm319_vm1, %v3471_v4  ;;  %v2439_v49 = vsel %vm4135_vm7, %v2434_v58, %v2438_v36  ;;  %v3527_v4 = vld [vmem:[%s4048_s7 + $0x44] sm:$0x1]  ;;  %v3567_v32 = vld [vmem:[%s4048_s7 + $0x40] sm:$0xf]  ;;  %v3929_v51 = vld [vmem:[%s4048_s7 + $0x6c] sm:$0xff]  }
  0x83   : > { %v2443_v55 = vrot.slane %v2441_v62, 4  ;;  %v2446_v8 = vrot.slane %v2444_v19, 5  ;;  %v2450_v12 = vshll.u32 %v3523_v57, 16  ;;  %v4495_v25 = vcombine.low %v2429_v1, %v2439_v49 }
  0x84   : > { %v4499_v13 = vsel %vm4129_vm6, %v2841_v5, %v2842_v23  ;;  %v2454_v56 = vshrl.u32 %v3523_v57, 16  ;;  %v2460_v63 = vshll.u32 %v3524_v61, 16  ;;  %v2465_v20 = vshrl.u32 %v3525_v7, 16  ;;  %v3529_v61 = vld [vmem:[%s4048_s7 + $0x4c] sm:$0xf] }
  0x85   : > { %v3591_v16 = vcombine.low %v4484_v3, %v4499_v13  ;;  %v2447_v18 = vor.u32 %v2446_v8, %v2443_v55  ;;  %v2452_v6 = vrot.slane %v2450_v12, 5  ;;  %v2468_v21 = vshll.u32 %v3525_v7, 16  ;;  %v3530_v5 = vld [vmem:[%s4048_s7 + $0x50] sm:$0x1]  ;;  %v3531_v7 = vld [vmem:[%s4048_s7 + $0x54] sm:$0xf] }
  0x86   : > { %v2456_v26 = vrot.slane %v2454_v56, 4  ;;  %v2462_v27 = vrot.slane %v2460_v63, 5  ;;  %v2474_v9 = vshll.u32 %v3526_v11, 16  ;;  %v2467_v30 = vrot.slane %v2465_v20, 4  ;;  %v3533_v20 = vld [vmem:[%s4048_s7 + $0x5c] sm:$0x1] }
  0x87   : > { %3810 = vmatmul.mubr.msk.bf16.gmra.mxu0 %vm319_vm1, %v3927_v0  ;;  %v2448_v29 = vrot.slane %v2447_v18, 4  ;;  %v2478_v31 = vshrl.u32 %v3526_v11, 16  ;;  %v2484_v15 = vshll.u32 %v3527_v4, 16  ;;  %v2470_v34 = vrot.slane %v2468_v21, 5  ;;  %v3532_v4 = vld [vmem:[%s4048_s7 + $0x58] sm:$0xf] }
  0x88   : > { %3813 = vmatprep.mubr.msk.bf16.mxu0 %vm319_vm1, %v3928_v38  ;;  %v2457_v33 = vor.u32 %v2456_v26, %v2452_v6  ;;  %v2476_v35 = vrot.slane %v2474_v9, 5  ;;  %v3583_v36 = vrot.slane %v3563_v17, 9  ;;  %v2846_v42 = vrot.slane %v3564_v22, 5  ;;  %v3535_v3 = vld [vmem:[%s4048_s7 + $0x64] sm:$0xf] }
  0x89   : > { %v2453_v39 = vsel %vm4135_vm7, %v2448_v29, %v2452_v6  ;;  %v2480_v40 = vrot.slane %v2478_v31, 4  ;;  %v2486_v41 = vrot.slane %v2484_v15, 5  ;;  %3796 = vmatmul.mubr.msk.bf16.gmra.mxu1 %vm319_vm1, %v3472_v10  ;;  %v2471_v45 = vor.u32 %v2470_v34, %v2467_v30 }
  0x8a   : > { %v2458_v44 = vrot.slane %v2457_v33, 4  ;;  %v2849_v46 = vrot.slane %v3565_v24, 5  ;;  %v3584_v48 = vrot.slane %v3566_v28, 9  ;;  %3819 = vmatprep.mubr.msk.bf16.mxu1 %vm319_vm1, %v4465_v50  ;;  %v4524_v23 = vsel %vm4129_vm6, %v3583_v36, %v2846_v42  ;;  %v3569_v24 = vld [vmem:[%s4048_s7 + $0x48] sm:$0xe] }
  0x8b   : > { %v2481_v52 = vor.u32 %v2480_v40, %v2476_v35  ;;  %v2848_v57 = vrot.slane %v2846_v42, 4  ;;  %v2853_v58 = vrot.slane %v3567_v32, 5  ;;  %v2472_v14 = vrot.slane %v2471_v45, 4  ;;  %v3570_v28 = vld [vmem:[%s4048_s7 + $0x4c] sm:$0xf] }
  0x8c   : > { %v2463_v59 = vsel %vm4135_vm7, %v2458_v44, %v2462_v27  ;;  %v2856_v10 = vrot.slane %v3568_v37, 5  ;;  %v2489_v62 = vshrl.u32 %v3528_v43, 16  ;;  %v2492_v11 = vshll.u32 %v3528_v43, 16  ;;  %v3571_v33 = vld [vmem:[%s4048_s7 + $0x50] sm:$0x1] }
  0x8d   : > { %v3543_v19 = vcombine.low %v2453_v39, %v2463_v59  ;;  %v2482_v0 = vrot.slane %v2481_v52, 4  ;;  %v2850_v50 = vsel %vm4129_vm6, %v2848_v57, %v2849_v46  ;;  %v4533_v1 = vsel %vm4129_vm6, %v3584_v48, %v2853_v58  ;;  %v3572_v39 = vld [vmem:[%s4048_s7 + $0x54] sm:$0xe]  ;;  %v3573_v43 = vld [vmem:[%s4048_s7 + $0x58] sm:$0xf] }
  0x8e   : > { %v2477_v38 = vsel %vm4135_vm7, %v2472_v14, %v2476_v35  ;;  %v3592_v49 = vcombine.low %v4524_v23, %v2850_v50  ;;  %v2855_v55 = vrot.slane %v2853_v58, 4  ;;  %v2491_v8 = vrot.slane %v2489_v62, 4  ;;  %v3534_v52 = vld [vmem:[%s4048_s7 + $0x60] sm:$0xf] }
  0x8f   : > { %3814 = vmatmul.mubr.msk.bf16.gmra.mxu0 %vm319_vm1, %v3929_v51  ;;  %v2487_v12 = vsel %vm4135_vm7, %v2482_v0, %v2486_v41  ;;  %v2498_v56 = vshll.u32 %v3529_v61, 16  ;;  %v2502_v63 = vshrl.u32 %v3529_v61, 16  ;;  %v2508_v6 = vshll.u32 %v3530_v5, 16  ;;  %v3574_v51 = vld [vmem:[%s4048_s7 + $0x5c] sm:$0x1] }
  0x90   : > { %3837 = vmatprep.mubr.msk.bf16.mxu0 %vm319_vm1, %v3590_v2  ;;  %v3544_v17 = vcombine.low %v2477_v38, %v2487_v12  ;;  %v4550_v18 = vsel %vm4129_vm6, %v2855_v55, %v2856_v10  ;;  %v2513_v22 = vshrl.u32 %v3531_v7, 16  ;;  %v2494_v27 = vrot.slane %v2492_v11, 5  ;;  %v3536_v0 = vld [vmem:[%s4048_s7 + $0x68] sm:$0x1]  ;;  %v3537_v55 = vld [vmem:[%s4048_s7 + $0x6c] sm:$0xf] }
  0x91   : > { %v3593_v26 = vcombine.low %v4533_v1, %v4550_v18  ;;  %v2500_v21 = vrot.slane %v2498_v56, 5  ;;  %v2504_v9 = vrot.slane %v2502_v63, 4  ;;  %3820 = vmatmul.mubr.msk.bf16.vlgmr.msra.gmra.mxu1 %vm319_vm1, %v4495_v25  ;;  %v2510_v47 = vrot.slane %v2508_v6, 5  ;;  %v3538_v63 = vld [vmem:[%s4048_s7 + $0x70] sm:$0xf] }
  0x92   : > { %v2515_v60 = vrot.slane %v2513_v22, 4  ;;  %v2516_v2 = vshll.u32 %v3531_v7, 16  ;;  %v2522_v29 = vshll.u32 %v3532_v4, 16  ;;  %3823 = vmatprep.mubr.msk.bf16.mxu1 %vm319_vm1, %v3543_v19  ;;  %v2495_v30 = vor.u32 %v2494_v27, %v2491_v8  ;;  %v3539_v22 = vld [vmem:[%s4048_s7 + $0x74] sm:$0x1] }
  0x93   : > { %v2505_v31 = vor.u32 %v2504_v9, %v2500_v21  ;;  %v2526_v15 = vshrl.u32 %v3532_v4, 16  ;;  %v2532_v32 = vshll.u32 %v3533_v20, 16  ;;  %v3585_v36 = vrot.slane %v3569_v24, 9  ;;  %v3575_v24 = vld [vmem:[%s4048_s7 + $0x60] sm:$0xe] }
  0x94   : > { %v2518_v34 = vrot.slane %v2516_v2, 5  ;;  %v2524_v35 = vrot.slane %v2522_v29, 5  ;;  %v2860_v37 = vrot.slane %v3570_v28, 5  ;;  %v2496_v25 = vrot.slane %v2495_v30, 4  ;;  %v3580_v1 = vld [vmem:[%s4048_s7 + $0x74] sm:$0x1] }
  0x95   : > { %v2506_v40 = vrot.slane %v2505_v31, 4  ;;  %v2528_v41 = vrot.slane %v2526_v15, 4  ;;  %v2534_v42 = vrot.slane %v2532_v32, 5  ;;  %v2863_v48 = vrot.slane %v3571_v33, 5  ;;  %v3577_v31 = vld [vmem:[%s4048_s7 + $0x68] sm:$0x1] }
  0x96   : > { %v2519_v44 = vor.u32 %v2518_v34, %v2515_v60  ;;  %v2861_v45 = vsel %vm4129_vm6, %v3585_v36, %v2860_v37  ;;  %v2862_v46 = vrot.slane %v2860_v37, 4  ;;  %v2501_v23 = vsel %vm4135_vm7, %v2496_v25, %v2500_v21 }
  0x97   : > { %3838 = vmatmul.mubr.msk.bf16.vlgmr.msra.gmra.mxu0 %vm319_vm1, %v3591_v16  ;;  %v2511_v57 = vsel %vm4135_vm7, %v2506_v40, %v2510_v47  ;;  %v2529_v58 = vor.u32 %v2528_v41, %v2524_v35  ;;  %v3586_v59 = vrot.slane %v3572_v39, 9  ;;  %v2867_v62 = vrot.slane %v3573_v43, 5  ;;  %v3576_v47 = vld [vmem:[%s4048_s7 + $0x64] sm:$0xf]  ;;  %v3579_v40 = vld [vmem:[%s4048_s7 + $0x70] sm:$0xf] }
  0x98   : > { %3841 = vmatprep.mubr.msk.bf16.mxu0 %vm319_vm1, %v3592_v49  ;;  %v3545_v14 = vcombine.low %v2501_v23, %v2511_v57  ;;  %v2520_v10 = vrot.slane %v2519_v44, 4  ;;  %v2864_v61 = vsel %vm4129_vm6, %v2862_v46, %v2863_v48  ;;  %v2870_v19 = vrot.slane %v3574_v51, 5 }
  0x99   : > { %v2530_v13 = vrot.slane %v2529_v58, 4  ;;  %v3594_v16 = vcombine.low %v2861_v45, %v2864_v61  ;;  %v2537_v50 = vshrl.u32 %v3534_v52, 16  ;;  %3824 = vmatmul.mubr.msk.bf16.gmra.mxu1 %vm319_vm1, %v3544_v17  ;;  %v4585_v7 = vsel %vm4129_vm6, %v3586_v59, %v2867_v62 }
  0x9a   : > { %v2525_v5 = vsel %vm4135_vm7, %v2520_v10, %v2524_v35  ;;  %v2869_v38 = vrot.slane %v2867_v62, 4  ;;  %v2540_v49 = vshll.u32 %v3534_v52, 16  ;;  %3827 = vmatprep.mubr.msk.bf16.mxu1 %vm319_vm1, %v3545_v14  ;;  %v2546_v11 = vshll.u32 %v3535_v3, 16  ;;  %v3578_v35 = vld [vmem:[%s4048_s7 + $0x6c] sm:$0xe] }
  0x9b   : > { %v2535_v8 = vsel %vm4135_vm7, %v2530_v13, %v2534_v42  ;;  %v2539_v12 = vrot.slane %v2537_v50, 4  ;;  %v2550_v56 = vshrl.u32 %v3535_v3, 16  ;;  %v2556_v20 = vshll.u32 %v3536_v0, 16 }
  0x9c   : > { %v3546_v4 = vcombine.low %v2525_v5, %v2535_v8  ;;  %v2871_v17 = vsel %vm4129_vm6, %v2869_v38, %v2870_v19  ;;  %v2542_v6 = vrot.slane %v2540_v49, 5  ;;  %v2548_v21 = vrot.slane %v2546_v11, 5 }
  0x9d   : > { %v3595_v27 = vcombine.low %v4585_v7, %v2871_v17  ;;  %v2552_v9 = vrot.slane %v2550_v56, 4  ;;  %v2561_v28 = vshrl.u32 %v3537_v55, 16  ;;  %v2558_v2 = vrot.slane %v2556_v20, 5 }
  0x9e   : > { %v2543_v60 = vor.u32 %v2542_v6, %v2539_v12  ;;  %v2564_v29 = vshll.u32 %v3537_v55, 16  ;;  %v2570_v30 = vshll.u32 %v3538_v63, 16  ;;  %v2574_v33 = vshrl.u32 %v3538_v63, 16 }
  0x9f   : > { %3842 = vmatmul.mubr.msk.bf16.gmra.mxu0 %vm319_vm1, %v3593_v26  ;;  %v2553_v15 = vor.u32 %v2552_v9, %v2548_v21  ;;  %v2563_v32 = vrot.slane %v2561_v28, 4  ;;  %v2580_v34 = vshll.u32 %v3539_v22, 16  ;;  %v3587_v25 = vrot.slane %v3575_v24, 9 }
  0xa0   : > { %3845 = vmatprep.mubr.msk.bf16.mxu0 %vm319_vm1, %v3594_v16  ;;  %v2544_v36 = vrot.slane %v2543_v60, 4  ;;  %v2566_v37 = vrot.slane %v2564_v29, 5  ;;  %v2572_v39 = vrot.slane %v2570_v30, 5  ;;  %v2576_v42 = vrot.slane %v2574_v33, 4 }
  0xa1   : > { %v2554_v41 = vrot.slane %v2553_v15, 4  ;;  %v2582_v43 = vrot.slane %v2580_v34, 5  ;;  %v2874_v44 = vrot.slane %v3576_v47, 5  ;;  %3828 = vmatmul.mubr.msk.bf16.gmra.mxu1 %vm319_vm1, %v3546_v4  ;;  %v2877_v45 = vrot.slane %v3577_v31, 5 }
  0xa2   : > { %v2549_v18 = vsel %vm4135_vm7, %v2544_v36, %v2548_v21  ;;  %v2567_v26 = vor.u32 %v2566_v37, %v2563_v32  ;;  %v3588_v46 = vrot.slane %v3578_v35, 9  ;;  %v2577_v51 = vor.u32 %v2576_v42, %v2572_v39 }
  0xa3   : > { %v2559_v48 = vsel %vm4135_vm7, %v2554_v41, %v2558_v2  ;;  %v2875_v52 = vsel %vm4129_vm6, %v3587_v25, %v2874_v44  ;;  %v2876_v23 = vrot.slane %v2874_v44, 4  ;;  %v2881_v59 = vrot.slane %v3579_v40, 5 }
  0xa4   : > { %v3547_v57 = vcombine.low %v2549_v18, %v2559_v48  ;;  %v2568_v58 = vrot.slane %v2567_v26, 4  ;;  %v2884_v14 = vrot.slane %v3580_v1, 5  ;;  %v2578_v10 = vrot.slane %v2577_v51, 4 }
  0xa5   : > { %v2878_v61 = vsel %vm4129_vm6, %v2876_v23, %v2877_v45  ;;  %v2883_v13 = vrot.slane %v2881_v59, 4  ;;  %v2882_v0 = vsel %vm4129_vm6, %v3588_v46, %v2881_v59 }
  0xa6   : > { %3831 = vmatprep.mubr.msk.bf16.mxu1 %vm319_vm1, %v3547_v57  ;;  %v2573_v62 = vsel %vm4135_vm7, %v2568_v58, %v2572_v39  ;;  %v3596_v3 = vcombine.low %v2875_v52, %v2878_v61  ;;  %v2583_v16 = vsel %vm4135_vm7, %v2578_v10, %v2582_v43 }
  0xa7   : > { %3846 = vmatmul.mubr.msk.bf16.gmra.mxu0 %vm319_vm1, %v3595_v27  ;;  %v3548_v19 = vcombine.low %v2573_v62, %v2583_v16  ;;  %v2885_v50 = vsel %vm4129_vm6, %v2883_v13, %v2884_v14 }
  0xa8   : > { %3849 = vmatprep.mubr.msk.bf16.mxu0 %vm319_vm1, %v3596_v3  ;;  %v3597_v5 = vcombine.low %v2882_v0, %v2885_v50 }
  0xa9   : > { %3832 = vmatmul.mubr.msk.bf16.gmra.mxu1 %vm319_vm1, %v3548_v19 }
  0xaf   : > { %3850 = vmatmul.mubr.msk.bf16.gmra.mxu0 %vm319_vm1, %v3597_v5 }
  0xd5   : > { %v3703_v7 = vpop.f32.mrf.mxu1 }
  0xd6   : > { %456 = vst.msk [vmem:[#allocation2 + $0x50] sm:$0xff] %vm445_vm8, %v3703_v7  ;;  %v3695_v38 = vpop.f32.mrf.mxu0 }
  0xd7   : > { %v414_v54 = vpop.f32.mrf.mxu1  ;;  %448 = vst.msk [vmem:[#allocation2 + $0x10] sm:$0xff] %vm445_vm8, %v3695_v38 }
  0xd8   : > { %454 = vst.msk [vmem:[#allocation2 + $0x40] sm:$0xff] %vm445_vm8, %v414_v54  ;;  %v382_v55 = vpop.f32.mrf.mxu0 }
  0xd9   : > { %v3704_v49 = vpop.f32.mrf.mxu1  ;;  %446 = vst.msk [vmem:[#allocation2] sm:$0xff] %vm445_vm8, %v382_v55 }
  0xda   : > { %457 = vst.msk [vmem:[#allocation2 + $0x58] sm:$0xff] %vm445_vm8, %v3704_v49  ;;  %v3696_v8 = vpop.f32.mrf.mxu0 }
  0xdb   : > { %v417_v53 = vpop.f32.mrf.mxu1  ;;  %449 = vst.msk [vmem:[#allocation2 + $0x18] sm:$0xff] %vm445_vm8, %v3696_v8 }
  0xdc   : > { %455 = vst.msk [vmem:[#allocation2 + $0x48] sm:$0xff] %vm445_vm8, %v417_v53  ;;  %v385_v11 = vpop.f32.mrf.mxu0 }
  0xdd   : > { %v3707_v12 = vpop.f32.mrf.mxu1  ;;  %447 = vst.msk [vmem:[#allocation2 + $0x8] sm:$0xff] %vm445_vm8, %v385_v11  ;;  %v841_v19 = vld [vmem:[#allocation2 + $0x50] sm:$0xff] }
  0xde   : > { %460 = vst.msk [vmem:[#allocation2 + $0x70] sm:$0xff] %vm445_vm8, %v3707_v12  ;;  %v3699_v63 = vpop.f32.mrf.mxu0  ;;  %v833_v24 = vld [vmem:[#allocation2 + $0x10] sm:$0xff] }
  0xdf   : > { %v430_v56 = vpop.f32.mrf.mxu1  ;;  %452 = vst.msk [vmem:[#allocation2 + $0x30] sm:$0xff] %vm445_vm8, %v3699_v63  ;;  %v839_v38 = vld [vmem:[#allocation2 + $0x40] sm:$0xff] }
  0xe0   : > { %458 = vst.msk [vmem:[#allocation2 + $0x60] sm:$0xff] %vm445_vm8, %v430_v56  ;;  %v398_v17 = vpop.f32.mrf.mxu0  ;;  %v831_v21 = vld [vmem:[#allocation2] sm:$0xff] }
  0xe1   : > { %v3708_v4 = vpop.f32.mrf.mxu1  ;;  %450 = vst.msk [vmem:[#allocation2 + $0x20] sm:$0xff] %vm445_vm8, %v398_v17  ;;  %v842_v11 = vld [vmem:[#allocation2 + $0x58] sm:$0xff] }
  0xe2   : > { %461 = vst.msk [vmem:[#allocation2 + $0x78] sm:$0xff] %vm445_vm8, %v3708_v4  ;;  %v3700_v20 = vpop.f32.mrf.mxu0  ;;  %v834_v30 = vld [vmem:[#allocation2 + $0x18] sm:$0xff] }
  0xe3   : > { %v433_v6 = vpop.f32.mrf.mxu1  ;;  %453 = vst.msk [vmem:[#allocation2 + $0x38] sm:$0xff] %vm445_vm8, %v3700_v20 }
  0xe4   : > { %459 = vst.msk [vmem:[#allocation2 + $0x68] sm:$0xff] %vm445_vm8, %v433_v6  ;;  %v401_v22 = vpop.f32.mrf.mxu0  ;;  %v832_v33 = vld [vmem:[#allocation2 + $0x8] sm:$0xff] }
  0xe5   : > { %451 = vst.msk [vmem:[#allocation2 + $0x28] sm:$0xff] %vm445_vm8, %v401_v22  ;;  %v3713_v27 = vpop.f32.mrf.mxu1  ;;  %v840_v6 = vld [vmem:[#allocation2 + $0x48] sm:$0xff] }
  0xe6   : > { %v849_v9 = vadd.f32 %v3713_v27, %v833_v24  ;;  %v837_v37 = vld [vmem:[#allocation2 + $0x30] sm:$0xff] }
  0xe7   : > { %v3731_v28 = vpop.f32.mrf.mxu0  ;;  %v768_v47 = vpop.f32.mrf.mxu1 }
  0xe8   : > { %865 = vst.msk [vmem:[#allocation2 + $0x10] sm:$0xff] %vm445_vm8, %v849_v9  ;;  %v847_v60 = vadd.f32 %v831_v21, %v768_v47  ;;  %v835_v41 = vld [vmem:[#allocation2 + $0x20] sm:$0xff] }
  0xe9   : > { %v1073_v2 = vpop.f32.mrf.mxu0  ;;  %v3714_v29 = vpop.f32.mrf.mxu1 }
  0xea   : > { %863 = vst.msk [vmem:[#allocation2] sm:$0xff] %vm445_vm8, %v847_v60  ;;  %v850_v31 = vadd.f32 %v3714_v29, %v834_v30  ;;  %v838_v52 = vld [vmem:[#allocation2 + $0x38] sm:$0xff] }
  0xeb   : > { %v3732_v15 = vpop.f32.mrf.mxu0  ;;  %v771_v32 = vpop.f32.mrf.mxu1 }
  0xec   : > { %866 = vst.msk [vmem:[#allocation2 + $0x18] sm:$0xff] %vm445_vm8, %v850_v31  ;;  %v848_v34 = vadd.f32 %v832_v33, %v771_v32  ;;  %v836_v14 = vld [vmem:[#allocation2 + $0x28] sm:$0xff]  ;;  %v843_v31 = vld [vmem:[#allocation2 + $0x60] sm:$0xff] }
  0xed   : > { %v1076_v35 = vpop.f32.mrf.mxu0 }
  0xee   : > { %864 = vst.msk [vmem:[#allocation2 + $0x8] sm:$0xff] %vm445_vm8, %v848_v34 }
  0xef   : > { %v1138_v36 = vld [vmem:[#allocation2 + $0x10] sm:$0xff] }
  0xf0   : > { %v1154_v39 = vadd.f32 %v3731_v28, %v1138_v36  ;;  %v845_v28 = vld [vmem:[#allocation2 + $0x70] sm:$0xff]  ;;  %v846_v36 = vld [vmem:[#allocation2 + $0x78] sm:$0xff] }
  0xf1   : > { %v1136_v25 = vld [vmem:[#allocation2] sm:$0xff] }
  0xf2   : > { %v3717_v40 = vpop.f32.mrf.mxu1  ;;  %1170 = vst.msk [vmem:[#allocation2 + $0x10] sm:$0xff] %vm445_vm8, %v1154_v39  ;;  %v1152_v42 = vadd.f32 %v1136_v25, %v1073_v2 }
  0xf3   : > { %v853_v43 = vadd.f32 %v3717_v40, %v837_v37  ;;  %v3735_v44 = vpop.f32.mrf.mxu0  ;;  %v1139_v1 = vld [vmem:[#allocation2 + $0x18] sm:$0xff] }
  0xf4   : > { %v784_v18 = vpop.f32.mrf.mxu1  ;;  %1168 = vst.msk [vmem:[#allocation2] sm:$0xff] %vm445_vm8, %v1152_v42  ;;  %v1155_v26 = vadd.f32 %v3732_v15, %v1139_v1 }
  0xf5   : > { %869 = vst.msk [vmem:[#allocation2 + $0x30] sm:$0xff] %vm445_vm8, %v853_v43  ;;  %v851_v45 = vadd.f32 %v835_v41, %v784_v18  ;;  %v1089_v46 = vpop.f32.mrf.mxu0  ;;  %v1137_v48 = vld [vmem:[#allocation2 + $0x8] sm:$0xff] }
  0xf6   : > { %v3718_v51 = vpop.f32.mrf.mxu1  ;;  %1171 = vst.msk [vmem:[#allocation2 + $0x18] sm:$0xff] %vm445_vm8, %v1155_v26  ;;  %v1153_v23 = vadd.f32 %v1137_v48, %v1076_v35  ;;  %v844_v41 = vld [vmem:[#allocation2 + $0x68] sm:$0xff] }
  0xf7   : > { %867 = vst.msk [vmem:[#allocation2 + $0x20] sm:$0xff] %vm445_vm8, %v851_v45  ;;  %v854_v57 = vadd.f32 %v3718_v51, %v838_v52  ;;  %v3736_v58 = vpop.f32.mrf.mxu0 }
  0xf8   : > { %v787_v59 = vpop.f32.mrf.mxu1  ;;  %1169 = vst.msk [vmem:[#allocation2 + $0x8] sm:$0xff] %vm445_vm8, %v1153_v23 }
  0xf9   : > { %870 = vst.msk [vmem:[#allocation2 + $0x38] sm:$0xff] %vm445_vm8, %v854_v57  ;;  %v852_v10 = vadd.f32 %v836_v14, %v787_v59  ;;  %v1092_v61 = vpop.f32.mrf.mxu0 }
  0xfb   : > { %868 = vst.msk [vmem:[#allocation2 + $0x28] sm:$0xff] %vm445_vm8, %v852_v10 }
  0xfc   : > { %v1142_v62 = vld [vmem:[#allocation2 + $0x30] sm:$0xff] }
  0xfd   : > { %v1158_v3 = vadd.f32 %v3735_v44, %v1142_v62  ;;  %v1372_v44 = vld [vmem:[#allocation2 + $0x10] sm:$0xff]  ;;  %v1373_v57 = vld [vmem:[#allocation2 + $0x18] sm:$0xff] }
  0xfe   : > { %v1140_v13 = vld [vmem:[#allocation2 + $0x20] sm:$0xff]  ;;  %v3721_v16 = vpop.f32.mrf.mxu1  ;;  %v3739_v5 = vpop.f32.mrf.mxu0 }
  0xff   : > { %1174 = vst.msk [vmem:[#allocation2 + $0x30] sm:$0xff] %vm445_vm8, %v1158_v3  ;;  %v1156_v0 = vadd.f32 %v1140_v13, %v1089_v46  ;;  %v857_v50 = vadd.f32 %v3721_v16, %v841_v19  ;;  %v1370_v46 = vld [vmem:[#allocation2] sm:$0xff]  ;;  %v1371_v62 = vld [vmem:[#allocation2 + $0x8] sm:$0xff] }
 0x100   : > { %v1143_v7 = vld [vmem:[#allocation2 + $0x38] sm:$0xff]  ;;  %v800_v54 = vpop.f32.mrf.mxu1  ;;  %v1105_v53 = vpop.f32.mrf.mxu0 }
 0x101   : > { %1172 = vst.msk [vmem:[#allocation2 + $0x20] sm:$0xff] %vm445_vm8, %v1156_v0  ;;  %873 = vst.msk [vmem:[#allocation2 + $0x50] sm:$0xff] %vm445_vm8, %v857_v50  ;;  %v1159_v49 = vadd.f32 %v3736_v58, %v1143_v7  ;;  %v855_v55 = vadd.f32 %v839_v38, %v800_v54 }
 0x102   : > { %v1141_v8 = vld [vmem:[#allocation2 + $0x28] sm:$0xff]  ;;  %v3722_v12 = vpop.f32.mrf.mxu1  ;;  %v3740_v4 = vpop.f32.mrf.mxu0 }
 0x103   : > { %1175 = vst.msk [vmem:[#allocation2 + $0x38] sm:$0xff] %vm445_vm8, %v1159_v49  ;;  %871 = vst.msk [vmem:[#allocation2 + $0x40] sm:$0xff] %vm445_vm8, %v855_v55  ;;  %v1157_v56 = vadd.f32 %v1141_v8, %v1092_v61  ;;  %v858_v63 = vadd.f32 %v3722_v12, %v842_v11 }
 0x104   : > { %v803_v17 = vpop.f32.mrf.mxu1  ;;  %v1108_v22 = vpop.f32.mrf.mxu0 }
 0x105   : > { %1173 = vst.msk [vmem:[#allocation2 + $0x28] sm:$0xff] %vm445_vm8, %v1157_v56  ;;  %874 = vst.msk [vmem:[#allocation2 + $0x58] sm:$0xff] %vm445_vm8, %v858_v63  ;;  %v856_v20 = vadd.f32 %v840_v6, %v803_v17 }
 0x106   : > { %v1376_v50 = vld [vmem:[#allocation2 + $0x30] sm:$0xff] }
 0x107   : > { %872 = vst.msk [vmem:[#allocation2 + $0x48] sm:$0xff] %vm445_vm8, %v856_v20 }
 0x108   : > { %v1146_v24 = vld [vmem:[#allocation2 + $0x50] sm:$0xff]  ;;  %v1374_v55 = vld [vmem:[#allocation2 + $0x20] sm:$0xff] }
 0x109   : > { %v1162_v27 = vadd.f32 %v3739_v5, %v1146_v24  ;;  %v3725_v9 = vpop.f32.mrf.mxu1 }
 0x10a   : > { %v1144_v21 = vld [vmem:[#allocation2 + $0x40] sm:$0xff]  ;;  %v861_v60 = vadd.f32 %v3725_v9, %v845_v28  ;;  %v1377_v63 = vld [vmem:[#allocation2 + $0x38] sm:$0xff] }
 0x10b   : > { %1178 = vst.msk [vmem:[#allocation2 + $0x50] sm:$0xff] %vm445_vm8, %v1162_v27  ;;  %v1160_v47 = vadd.f32 %v1144_v21, %v1105_v53  ;;  %v3743_v2 = vpop.f32.mrf.mxu0  ;;  %v816_v30 = vpop.f32.mrf.mxu1 }
 0x10c   : > { %v1147_v29 = vld [vmem:[#allocation2 + $0x58] sm:$0xff]  ;;  %877 = vst.msk [vmem:[#allocation2 + $0x70] sm:$0xff] %vm445_vm8, %v861_v60  ;;  %v859_v32 = vadd.f32 %v843_v31, %v816_v30  ;;  %v1375_v24 = vld [vmem:[#allocation2 + $0x28] sm:$0xff] }
 0x10d   : > { %1176 = vst.msk [vmem:[#allocation2 + $0x40] sm:$0xff] %vm445_vm8, %v1160_v47  ;;  %v1163_v15 = vadd.f32 %v3740_v4, %v1147_v29  ;;  %v1121_v33 = vpop.f32.mrf.mxu0  ;;  %v3726_v35 = vpop.f32.mrf.mxu1 }
 0x10e   : > { %v1145_v34 = vld [vmem:[#allocation2 + $0x48] sm:$0xff]  ;;  %875 = vst.msk [vmem:[#allocation2 + $0x60] sm:$0xff] %vm445_vm8, %v859_v32  ;;  %v862_v39 = vadd.f32 %v3726_v35, %v846_v36 }
 0x10f   : > { %1179 = vst.msk [vmem:[#allocation2 + $0x58] sm:$0xff] %vm445_vm8, %v1163_v15  ;;  %v1161_v37 = vadd.f32 %v1145_v34, %v1108_v22  ;;  %v3744_v25 = vpop.f32.mrf.mxu0  ;;  %v819_v40 = vpop.f32.mrf.mxu1 }
 0x110   : > { %878 = vst.msk [vmem:[#allocation2 + $0x78] sm:$0xff] %vm445_vm8, %v862_v39  ;;  %v860_v42 = vadd.f32 %v844_v41, %v819_v40 }
 0x111   : > { %1177 = vst.msk [vmem:[#allocation2 + $0x48] sm:$0xff] %vm445_vm8, %v1161_v37  ;;  %v3749_v43 = vpop.f32.mrf.mxu1  ;;  %v1124_v1 = vpop.f32.mrf.mxu0 }
 0x112   : > { %876 = vst.msk [vmem:[#allocation2 + $0x68] sm:$0xff] %vm445_vm8, %v860_v42  ;;  %v1388_v18 = vadd.f32 %v3749_v43, %v1372_v44  ;;  %v1380_v60 = vld [vmem:[#allocation2 + $0x50] sm:$0xff] }
 0x113   : > { %v1150_v26 = vld [vmem:[#allocation2 + $0x70] sm:$0xff]  ;;  %v1307_v45 = vpop.f32.mrf.mxu1 }
 0x114   : > { %v1166_v48 = vadd.f32 %v3743_v2, %v1150_v26  ;;  %1404 = vst.msk [vmem:[#allocation2 + $0x10] sm:$0xff] %vm445_vm8, %v1388_v18  ;;  %v1386_v51 = vadd.f32 %v1370_v46, %v1307_v45  ;;  %v1378_v32 = vld [vmem:[#allocation2 + $0x40] sm:$0xff] }
 0x115   : > { %v1148_v52 = vld [vmem:[#allocation2 + $0x60] sm:$0xff]  ;;  %v3750_v23 = vpop.f32.mrf.mxu1 }
 0x116   : > { %v3767_v58 = vpop.f32.mrf.mxu0  ;;  %1182 = vst.msk [vmem:[#allocation2 + $0x70] sm:$0xff] %vm445_vm8, %v1166_v48  ;;  %v1164_v59 = vadd.f32 %v1148_v52, %v1121_v33  ;;  %1402 = vst.msk [vmem:[#allocation2] sm:$0xff] %vm445_vm8, %v1386_v51  ;;  %v1389_v14 = vadd.f32 %v3750_v23, %v1373_v57  ;;  %v1381_v39 = vld [vmem:[#allocation2 + $0x58] sm:$0xff] }
 0x117   : > { %v1151_v10 = vld [vmem:[#allocation2 + $0x78] sm:$0xff]  ;;  %v1310_v61 = vpop.f32.mrf.mxu1 }
 0x118   : > { %v1721_v3 = vpop.f32.mrf.mxu0  ;;  %1180 = vst.msk [vmem:[#allocation2 + $0x60] sm:$0xff] %vm445_vm8, %v1164_v59  ;;  %v1167_v13 = vadd.f32 %v3744_v25, %v1151_v10  ;;  %1405 = vst.msk [vmem:[#allocation2 + $0x18] sm:$0xff] %vm445_vm8, %v1389_v14  ;;  %v1387_v16 = vadd.f32 %v1371_v62, %v1310_v61  ;;  %v1379_v44 = vld [vmem:[#allocation2 + $0x48] sm:$0xff] }
 0x119   : > { %v1149_v19 = vld [vmem:[#allocation2 + $0x68] sm:$0xff]  ;;  %v3753_v0 = vpop.f32.mrf.mxu1 }
 0x11a   : > { %v3768_v5 = vpop.f32.mrf.mxu0  ;;  %1183 = vst.msk [vmem:[#allocation2 + $0x78] sm:$0xff] %vm445_vm8, %v1167_v13  ;;  %v1165_v7 = vadd.f32 %v1149_v19, %v1124_v1  ;;  %1403 = vst.msk [vmem:[#allocation2 + $0x8] sm:$0xff] %vm445_vm8, %v1387_v16  ;;  %v1392_v54 = vadd.f32 %v3753_v0, %v1376_v50 }
 0x11b   : > { %v1786_v38 = vld [vmem:[#allocation2 + $0x10] sm:$0xff]  ;;  %v1323_v49 = vpop.f32.mrf.mxu1 }
 0x11c   : > { %v1724_v53 = vpop.f32.mrf.mxu0  ;;  %1181 = vst.msk [vmem:[#allocation2 + $0x68] sm:$0xff] %vm445_vm8, %v1165_v7  ;;  %v1802_v8 = vadd.f32 %v3767_v58, %v1786_v38  ;;  %1408 = vst.msk [vmem:[#allocation2 + $0x30] sm:$0xff] %vm445_vm8, %v1392_v54  ;;  %v1390_v12 = vadd.f32 %v1374_v55, %v1323_v49 }
 0x11d   : > { %v1784_v11 = vld [vmem:[#allocation2] sm:$0xff]  ;;  %v3754_v56 = vpop.f32.mrf.mxu1  ;;  %v1384_v48 = vld [vmem:[#allocation2 + $0x70] sm:$0xff] }
 0x11e   : > { %1818 = vst.msk [vmem:[#allocation2 + $0x10] sm:$0xff] %vm445_vm8, %v1802_v8  ;;  %v1800_v4 = vadd.f32 %v1784_v11, %v1721_v3  ;;  %1406 = vst.msk [vmem:[#allocation2 + $0x20] sm:$0xff] %vm445_vm8, %v1390_v12  ;;  %v1393_v17 = vadd.f32 %v3754_v56, %v1377_v63  ;;  %v3771_v6 = vpop.f32.mrf.mxu0 }
 0x11f   : > { %v1787_v20 = vld [vmem:[#allocation2 + $0x18] sm:$0xff]  ;;  %v1326_v22 = vpop.f32.mrf.mxu1  ;;  %v1382_v59 = vld [vmem:[#allocation2 + $0x60] sm:$0xff] }
 0x120   : > { %1816 = vst.msk [vmem:[#allocation2] sm:$0xff] %vm445_vm8, %v1800_v4  ;;  %v1803_v27 = vadd.f32 %v3768_v5, %v1787_v20  ;;  %1409 = vst.msk [vmem:[#allocation2 + $0x38] sm:$0xff] %vm445_vm8, %v1393_v17  ;;  %v1391_v21 = vadd.f32 %v1375_v24, %v1326_v22  ;;  %v1737_v9 = vpop.f32.mrf.mxu0 }
 0x121   : > { %v1785_v28 = vld [vmem:[#allocation2 + $0x8] sm:$0xff]  ;;  %v3757_v47 = vpop.f32.mrf.mxu1  ;;  %v1385_v13 = vld [vmem:[#allocation2 + $0x78] sm:$0xff] }
 0x122   : > { %1819 = vst.msk [vmem:[#allocation2 + $0x18] sm:$0xff] %vm445_vm8, %v1803_v27  ;;  %v1801_v2 = vadd.f32 %v1785_v28, %v1724_v53  ;;  %1407 = vst.msk [vmem:[#allocation2 + $0x28] sm:$0xff] %vm445_vm8, %v1391_v21  ;;  %v1396_v29 = vadd.f32 %v3757_v47, %v1380_v60  ;;  %v3772_v30 = vpop.f32.mrf.mxu0 }
 0x123   : > { %v1790_v31 = vld [vmem:[#allocation2 + $0x30] sm:$0xff]  ;;  %v1339_v15 = vpop.f32.mrf.mxu1  ;;  %v1383_v7 = vld [vmem:[#allocation2 + $0x68] sm:$0xff] }
 0x124   : > { %1817 = vst.msk [vmem:[#allocation2 + $0x8] sm:$0xff] %vm445_vm8, %v1801_v2  ;;  %v1806_v33 = vadd.f32 %v3771_v6, %v1790_v31  ;;  %1412 = vst.msk [vmem:[#allocation2 + $0x50] sm:$0xff] %vm445_vm8, %v1396_v29  ;;  %v1394_v34 = vadd.f32 %v1378_v32, %v1339_v15  ;;  %v1740_v35 = vpop.f32.mrf.mxu0 }
 0x125   : > { %v1788_v36 = vld [vmem:[#allocation2 + $0x20] sm:$0xff]  ;;  %v3758_v37 = vpop.f32.mrf.mxu1  ;;  %v2088_v8 = vld [vmem:[#allocation2 + $0x10] sm:$0xff] }
 0x126   : > { %1822 = vst.msk [vmem:[#allocation2 + $0x30] sm:$0xff] %vm445_vm8, %v1806_v33  ;;  %v1804_v25 = vadd.f32 %v1788_v36, %v1737_v9  ;;  %1410 = vst.msk [vmem:[#allocation2 + $0x40] sm:$0xff] %vm445_vm8, %v1394_v34  ;;  %v1397_v40 = vadd.f32 %v3758_v37, %v1381_v39 }
 0x127   : > { %v3775_v41 = vpop.f32.mrf.mxu0  ;;  %v1791_v42 = vld [vmem:[#allocation2 + $0x38] sm:$0xff]  ;;  %v1342_v43 = vpop.f32.mrf.mxu1  ;;  %v2086_v17 = vld [vmem:[#allocation2] sm:$0xff] }
 0x128   : > { %1820 = vst.msk [vmem:[#allocation2 + $0x20] sm:$0xff] %vm445_vm8, %v1804_v25  ;;  %v1807_v1 = vadd.f32 %v3772_v30, %v1791_v42  ;;  %1413 = vst.msk [vmem:[#allocation2 + $0x58] sm:$0xff] %vm445_vm8, %v1397_v40  ;;  %v1395_v18 = vadd.f32 %v1379_v44, %v1342_v43 }
 0x129   : > { %v1753_v26 = vpop.f32.mrf.mxu0  ;;  %v1789_v45 = vld [vmem:[#allocation2 + $0x28] sm:$0xff]  ;;  %v3761_v46 = vpop.f32.mrf.mxu1  ;;  %v2089_v21 = vld [vmem:[#allocation2 + $0x18] sm:$0xff] }
 0x12a   : > { %1823 = vst.msk [vmem:[#allocation2 + $0x38] sm:$0xff] %vm445_vm8, %v1807_v1  ;;  %v1805_v51 = vadd.f32 %v1789_v45, %v1740_v35  ;;  %1411 = vst.msk [vmem:[#allocation2 + $0x48] sm:$0xff] %vm445_vm8, %v1395_v18  ;;  %v1400_v52 = vadd.f32 %v3761_v46, %v1384_v48 }
 0x12b   : > { %v3776_v23 = vpop.f32.mrf.mxu0  ;;  %v1794_v57 = vld [vmem:[#allocation2 + $0x50] sm:$0xff]  ;;  %v1355_v58 = vpop.f32.mrf.mxu1  ;;  %v2087_v29 = vld [vmem:[#allocation2 + $0x8] sm:$0xff] }
 0x12c   : > { %1821 = vst.msk [vmem:[#allocation2 + $0x28] sm:$0xff] %vm445_vm8, %v1805_v51  ;;  %v1810_v14 = vadd.f32 %v3775_v41, %v1794_v57  ;;  %1416 = vst.msk [vmem:[#allocation2 + $0x70] sm:$0xff] %vm445_vm8, %v1400_v52  ;;  %v1398_v10 = vadd.f32 %v1382_v59, %v1355_v58 }
 0x12d   : > { %v1756_v61 = vpop.f32.mrf.mxu0  ;;  %v1792_v62 = vld [vmem:[#allocation2 + $0x40] sm:$0xff]  ;;  %v3762_v3 = vpop.f32.mrf.mxu1  ;;  %v2092_v34 = vld [vmem:[#allocation2 + $0x30] sm:$0xff] }
 0x12e   : > { %1826 = vst.msk [vmem:[#allocation2 + $0x50] sm:$0xff] %vm445_vm8, %v1810_v14  ;;  %v1808_v16 = vadd.f32 %v1792_v62, %v1753_v26  ;;  %1414 = vst.msk [vmem:[#allocation2 + $0x60] sm:$0xff] %vm445_vm8, %v1398_v10  ;;  %v1401_v19 = vadd.f32 %v3762_v3, %v1385_v13 }
 0x12f   : > { %v3779_v0 = vpop.f32.mrf.mxu0  ;;  %v1795_v50 = vld [vmem:[#allocation2 + $0x58] sm:$0xff]  ;;  %v1358_v5 = vpop.f32.mrf.mxu1  ;;  %v2090_v40 = vld [vmem:[#allocation2 + $0x20] sm:$0xff] }
 0x130   : > { %1824 = vst.msk [vmem:[#allocation2 + $0x40] sm:$0xff] %vm445_vm8, %v1808_v16  ;;  %v1811_v54 = vadd.f32 %v3776_v23, %v1795_v50  ;;  %1417 = vst.msk [vmem:[#allocation2 + $0x78] sm:$0xff] %vm445_vm8, %v1401_v19  ;;  %v1399_v38 = vadd.f32 %v1383_v7, %v1358_v5 }
 0x131   : > { %v1769_v49 = vpop.f32.mrf.mxu0  ;;  %v1793_v55 = vld [vmem:[#allocation2 + $0x48] sm:$0xff]  ;;  %v3785_v53 = vpop.f32.mrf.mxu1  ;;  %v2093_v18 = vld [vmem:[#allocation2 + $0x38] sm:$0xff] }
 0x132   : > { %1827 = vst.msk [vmem:[#allocation2 + $0x58] sm:$0xff] %vm445_vm8, %v1811_v54  ;;  %v1809_v12 = vadd.f32 %v1793_v55, %v1756_v61  ;;  %1415 = vst.msk [vmem:[#allocation2 + $0x68] sm:$0xff] %vm445_vm8, %v1399_v38  ;;  %v2104_v56 = vadd.f32 %v3785_v53, %v2088_v8 }
 0x133   : > { %v3780_v11 = vpop.f32.mrf.mxu0  ;;  %v1798_v63 = vld [vmem:[#allocation2 + $0x70] sm:$0xff]  ;;  %v2023_v4 = vpop.f32.mrf.mxu1  ;;  %v2091_v52 = vld [vmem:[#allocation2 + $0x28] sm:$0xff] }
 0x134   : > { %1825 = vst.msk [vmem:[#allocation2 + $0x48] sm:$0xff] %vm445_vm8, %v1809_v12  ;;  %v1814_v6 = vadd.f32 %v3779_v0, %v1798_v63  ;;  %2120 = vst.msk [vmem:[#allocation2 + $0x10] sm:$0xff] %vm445_vm8, %v2104_v56  ;;  %v2102_v22 = vadd.f32 %v2086_v17, %v2023_v4 }
 0x135   : > { %v1772_v20 = vpop.f32.mrf.mxu0  ;;  %v1796_v24 = vld [vmem:[#allocation2 + $0x60] sm:$0xff]  ;;  %v3786_v27 = vpop.f32.mrf.mxu1  ;;  %v2096_v10 = vld [vmem:[#allocation2 + $0x50] sm:$0xff] }
 0x136   : > { %1830 = vst.msk [vmem:[#allocation2 + $0x70] sm:$0xff] %vm445_vm8, %v1814_v6  ;;  %v1812_v9 = vadd.f32 %v1796_v24, %v1769_v49  ;;  %2118 = vst.msk [vmem:[#allocation2] sm:$0xff] %vm445_vm8, %v2102_v22  ;;  %v2105_v28 = vadd.f32 %v3786_v27, %v2089_v21 }
 0x137   : > { %v3803_v47 = vpop.f32.mrf.mxu0  ;;  %v1799_v60 = vld [vmem:[#allocation2 + $0x78] sm:$0xff]  ;;  %v2026_v2 = vpop.f32.mrf.mxu1  ;;  %v2094_v19 = vld [vmem:[#allocation2 + $0x40] sm:$0xff] }
 0x138   : > { %1828 = vst.msk [vmem:[#allocation2 + $0x60] sm:$0xff] %vm445_vm8, %v1812_v9  ;;  %v1815_v30 = vadd.f32 %v3780_v11, %v1799_v60  ;;  %2121 = vst.msk [vmem:[#allocation2 + $0x18] sm:$0xff] %vm445_vm8, %v2105_v28  ;;  %v2103_v31 = vadd.f32 %v2087_v29, %v2026_v2 }
 0x139   : > { %v2257_v15 = vpop.f32.mrf.mxu0  ;;  %v1797_v32 = vld [vmem:[#allocation2 + $0x68] sm:$0xff]  ;;  %v3789_v33 = vpop.f32.mrf.mxu1  ;;  %v2097_v38 = vld [vmem:[#allocation2 + $0x58] sm:$0xff] }
 0x13a   : > { %1831 = vst.msk [vmem:[#allocation2 + $0x78] sm:$0xff] %vm445_vm8, %v1815_v30  ;;  %v1813_v35 = vadd.f32 %v1797_v32, %v1772_v20  ;;  %2119 = vst.msk [vmem:[#allocation2 + $0x8] sm:$0xff] %vm445_vm8, %v2103_v31  ;;  %v2108_v36 = vadd.f32 %v3789_v33, %v2092_v34 }
 0x13b   : > { %v3804_v37 = vpop.f32.mrf.mxu0  ;;  %v2322_v39 = vld [vmem:[#allocation2 + $0x10] sm:$0xff]  ;;  %v2039_v25 = vpop.f32.mrf.mxu1  ;;  %v2095_v11 = vld [vmem:[#allocation2 + $0x48] sm:$0xff] }
 0x13c   : > { %1829 = vst.msk [vmem:[#allocation2 + $0x68] sm:$0xff] %vm445_vm8, %v1813_v35  ;;  %v2338_v41 = vadd.f32 %v3803_v47, %v2322_v39  ;;  %2124 = vst.msk [vmem:[#allocation2 + $0x30] sm:$0xff] %vm445_vm8, %v2108_v36  ;;  %v2106_v42 = vadd.f32 %v2090_v40, %v2039_v25 }
 0x13d   : > { %v2260_v43 = vpop.f32.mrf.mxu0  ;;  %v2320_v44 = vld [vmem:[#allocation2] sm:$0xff]  ;;  %v3790_v1 = vpop.f32.mrf.mxu1  ;;  %v2100_v20 = vld [vmem:[#allocation2 + $0x70] sm:$0xff] }
 0x13e   : > { %2354 = vst.msk [vmem:[#allocation2 + $0x10] sm:$0xff] %vm445_vm8, %v2338_v41  ;;  %v2336_v26 = vadd.f32 %v2320_v44, %v2257_v15  ;;  %2122 = vst.msk [vmem:[#allocation2 + $0x20] sm:$0xff] %vm445_vm8, %v2106_v42  ;;  %v2109_v45 = vadd.f32 %v3790_v1, %v2093_v18 }
 0x13f   : > { %v3807_v46 = vpop.f32.mrf.mxu0  ;;  %v2323_v48 = vld [vmem:[#allocation2 + $0x18] sm:$0xff]  ;;  %v2042_v51 = vpop.f32.mrf.mxu1  ;;  %v2098_v28 = vld [vmem:[#allocation2 + $0x60] sm:$0xff] }
 0x140   : > { %2352 = vst.msk [vmem:[#allocation2] sm:$0xff] %vm445_vm8, %v2336_v26  ;;  %v2339_v23 = vadd.f32 %v3804_v37, %v2323_v48  ;;  %2125 = vst.msk [vmem:[#allocation2 + $0x38] sm:$0xff] %vm445_vm8, %v2109_v45  ;;  %v2107_v57 = vadd.f32 %v2091_v52, %v2042_v51 }
 0x141   : > { %v2273_v58 = vpop.f32.mrf.mxu0  ;;  %v2321_v59 = vld [vmem:[#allocation2 + $0x8] sm:$0xff]  ;;  %v3793_v14 = vpop.f32.mrf.mxu1  ;;  %v2101_v31 = vld [vmem:[#allocation2 + $0x78] sm:$0xff] }
 0x142   : > { %2355 = vst.msk [vmem:[#allocation2 + $0x18] sm:$0xff] %vm445_vm8, %v2339_v23  ;;  %v2337_v61 = vadd.f32 %v2321_v59, %v2260_v43  ;;  %2123 = vst.msk [vmem:[#allocation2 + $0x28] sm:$0xff] %vm445_vm8, %v2107_v57  ;;  %v2112_v62 = vadd.f32 %v3793_v14, %v2096_v10 }
 0x143   : > { %v3808_v3 = vpop.f32.mrf.mxu0  ;;  %v2326_v13 = vld [vmem:[#allocation2 + $0x30] sm:$0xff]  ;;  %v2055_v16 = vpop.f32.mrf.mxu1  ;;  %v2099_v36 = vld [vmem:[#allocation2 + $0x68] sm:$0xff] }
 0x144   : > { %2353 = vst.msk [vmem:[#allocation2 + $0x8] sm:$0xff] %vm445_vm8, %v2337_v61  ;;  %v2342_v0 = vadd.f32 %v3807_v46, %v2326_v13  ;;  %2128 = vst.msk [vmem:[#allocation2 + $0x50] sm:$0xff] %vm445_vm8, %v2112_v62  ;;  %v2110_v50 = vadd.f32 %v2094_v19, %v2055_v16 }
 0x145   : > { %v2276_v5 = vpop.f32.mrf.mxu0  ;;  %v2324_v7 = vld [vmem:[#allocation2 + $0x20] sm:$0xff]  ;;  %v3794_v54 = vpop.f32.mrf.mxu1  ;;  %v2736_v42 = vld [vmem:[#allocation2 + $0x10] sm:$0xff] }
 0x146   : > { %2358 = vst.msk [vmem:[#allocation2 + $0x30] sm:$0xff] %vm445_vm8, %v2342_v0  ;;  %v2340_v49 = vadd.f32 %v2324_v7, %v2273_v58  ;;  %2126 = vst.msk [vmem:[#allocation2 + $0x40] sm:$0xff] %vm445_vm8, %v2110_v50  ;;  %v2113_v55 = vadd.f32 %v3794_v54, %v2097_v38 }
 0x147   : > { %v3811_v53 = vpop.f32.mrf.mxu0  ;;  %v2327_v8 = vld [vmem:[#allocation2 + $0x38] sm:$0xff]  ;;  %v2058_v12 = vpop.f32.mrf.mxu1  ;;  %v2734_v45 = vld [vmem:[#allocation2] sm:$0xff] }
 0x148   : > { %2356 = vst.msk [vmem:[#allocation2 + $0x20] sm:$0xff] %vm445_vm8, %v2340_v49  ;;  %v2343_v56 = vadd.f32 %v3808_v3, %v2327_v8  ;;  %2129 = vst.msk [vmem:[#allocation2 + $0x58] sm:$0xff] %vm445_vm8, %v2113_v55  ;;  %v2111_v63 = vadd.f32 %v2095_v11, %v2058_v12 }
 0x149   : > { %v2289_v4 = vpop.f32.mrf.mxu0  ;;  %v2325_v17 = vld [vmem:[#allocation2 + $0x28] sm:$0xff]  ;;  %v3797_v6 = vpop.f32.mrf.mxu1  ;;  %v2737_v57 = vld [vmem:[#allocation2 + $0x18] sm:$0xff] }
 0x14a   : > { %2359 = vst.msk [vmem:[#allocation2 + $0x38] sm:$0xff] %vm445_vm8, %v2343_v56  ;;  %v2341_v22 = vadd.f32 %v2325_v17, %v2276_v5  ;;  %2127 = vst.msk [vmem:[#allocation2 + $0x48] sm:$0xff] %vm445_vm8, %v2111_v63  ;;  %v2116_v24 = vadd.f32 %v3797_v6, %v2100_v20 }
 0x14b   : > { %v3812_v27 = vpop.f32.mrf.mxu0  ;;  %v2330_v21 = vld [vmem:[#allocation2 + $0x50] sm:$0xff]  ;;  %v2071_v9 = vpop.f32.mrf.mxu1  ;;  %v2735_v62 = vld [vmem:[#allocation2 + $0x8] sm:$0xff] }
 0x14c   : > { %2357 = vst.msk [vmem:[#allocation2 + $0x28] sm:$0xff] %vm445_vm8, %v2341_v22  ;;  %v2346_v47 = vadd.f32 %v3811_v53, %v2330_v21  ;;  %2132 = vst.msk [vmem:[#allocation2 + $0x70] sm:$0xff] %vm445_vm8, %v2116_v24  ;;  %v2114_v60 = vadd.f32 %v2098_v28, %v2071_v9 }
 0x14d   : > { %v2292_v2 = vpop.f32.mrf.mxu0  ;;  %v2328_v29 = vld [vmem:[#allocation2 + $0x40] sm:$0xff]  ;;  %v3798_v30 = vpop.f32.mrf.mxu1  ;;  %v2740_v50 = vld [vmem:[#allocation2 + $0x30] sm:$0xff] }
 0x14e   : > { %2362 = vst.msk [vmem:[#allocation2 + $0x50] sm:$0xff] %vm445_vm8, %v2346_v47  ;;  %v2344_v15 = vadd.f32 %v2328_v29, %v2289_v4  ;;  %2130 = vst.msk [vmem:[#allocation2 + $0x60] sm:$0xff] %vm445_vm8, %v2114_v60  ;;  %v2117_v32 = vadd.f32 %v3798_v30, %v2101_v31  ;;  %v4773_v31 = vld [vmem:[%s4884_s2] ss:$0 sm:$0xff] }
 0x14f   : > { %v3815_v33 = vpop.f32.mrf.mxu0  ;;  %v2331_v34 = vld [vmem:[#allocation2 + $0x58] sm:$0xff]  ;;  %v2074_v35 = vpop.f32.mrf.mxu1  ;;  %v2738_v55 = vld [vmem:[#allocation2 + $0x20] sm:$0xff] }
 0x150   : > { %2360 = vst.msk [vmem:[#allocation2 + $0x40] sm:$0xff] %vm445_vm8, %v2344_v15  ;;  %v2347_v37 = vadd.f32 %v3812_v27, %v2331_v34  ;;  %2133 = vst.msk [vmem:[#allocation2 + $0x78] sm:$0xff] %vm445_vm8, %v2117_v32  ;;  %v2115_v39 = vadd.f32 %v2099_v36, %v2074_v35  ;;  %v3125_v34 = vld [vmem:[%s4766_s6 + $0x10] sm:$0xff] }
 0x151   : > { %v2305_v25 = vpop.f32.mrf.mxu0  ;;  %v2329_v40 = vld [vmem:[#allocation2 + $0x48] sm:$0xff]  ;;  %v3821_v41 = vpop.f32.mrf.mxu1  ;;  %v2741_v63 = vld [vmem:[#allocation2 + $0x38] sm:$0xff] }
 0x152   : > { %2363 = vst.msk [vmem:[#allocation2 + $0x58] sm:$0xff] %vm445_vm8, %v2347_v37  ;;  %v2345_v43 = vadd.f32 %v2329_v40, %v2292_v2  ;;  %2131 = vst.msk [vmem:[#allocation2 + $0x68] sm:$0xff] %vm445_vm8, %v2115_v39  ;;  %v2752_v1 = vadd.f32 %v3821_v41, %v2736_v42 }
 0x153   : > { %v3816_v44 = vpop.f32.mrf.mxu0  ;;  %v2334_v18 = vld [vmem:[#allocation2 + $0x70] sm:$0xff]  ;;  %v2671_v26 = vpop.f32.mrf.mxu1  ;;  %v2739_v24 = vld [vmem:[#allocation2 + $0x28] sm:$0xff] }
 0x154   : > { %2361 = vst.msk [vmem:[#allocation2 + $0x48] sm:$0xff] %vm445_vm8, %v2345_v43  ;;  %v2350_v46 = vadd.f32 %v3815_v33, %v2334_v18  ;;  %2768 = vst.msk [vmem:[#allocation2 + $0x10] sm:$0xff] %vm445_vm8, %v2752_v1  ;;  %v2750_v51 = vadd.f32 %v2734_v45, %v2671_v26  ;;  %v3123_v43 = vld [vmem:[%s4766_s6] sm:$0xff] }
 0x155   : > { %v2308_v48 = vpop.f32.mrf.mxu0  ;;  %v2332_v52 = vld [vmem:[#allocation2 + $0x60] sm:$0xff]  ;;  %v3822_v23 = vpop.f32.mrf.mxu1  ;;  %v2744_v60 = vld [vmem:[#allocation2 + $0x50] sm:$0xff] }
 0x156   : > { %2366 = vst.msk [vmem:[#allocation2 + $0x70] sm:$0xff] %vm445_vm8, %v2350_v46  ;;  %v2348_v58 = vadd.f32 %v2332_v52, %v2305_v25  ;;  %2766 = vst.msk [vmem:[#allocation2] sm:$0xff] %vm445_vm8, %v2750_v51  ;;  %v2753_v59 = vadd.f32 %v3822_v23, %v2737_v57  ;;  %v3126_v23 = vld [vmem:[%s4766_s6 + $0x18] sm:$0xff] }
 0x157   : > { %v3839_v14 = vpop.f32.mrf.mxu0  ;;  %v2335_v10 = vld [vmem:[#allocation2 + $0x78] sm:$0xff]  ;;  %v2674_v61 = vpop.f32.mrf.mxu1  ;;  %v2742_v33 = vld [vmem:[#allocation2 + $0x40] sm:$0xff] }
 0x158   : > { %2364 = vst.msk [vmem:[#allocation2 + $0x60] sm:$0xff] %vm445_vm8, %v2348_v58  ;;  %v2351_v3 = vadd.f32 %v3816_v44, %v2335_v10  ;;  %2769 = vst.msk [vmem:[#allocation2 + $0x18] sm:$0xff] %vm445_vm8, %v2753_v59  ;;  %v2751_v13 = vadd.f32 %v2735_v62, %v2674_v61 }
 0x159   : > { %v2973_v16 = vpop.f32.mrf.mxu0  ;;  %v2333_v19 = vld [vmem:[#allocation2 + $0x68] sm:$0xff]  ;;  %v3825_v0 = vpop.f32.mrf.mxu1  ;;  %v2745_v41 = vld [vmem:[#allocation2 + $0x58] sm:$0xff] }
 0x15a   : > { %2367 = vst.msk [vmem:[#allocation2 + $0x78] sm:$0xff] %vm445_vm8, %v2351_v3  ;;  %v2349_v5 = vadd.f32 %v2333_v19, %v2308_v48  ;;  %2767 = vst.msk [vmem:[#allocation2 + $0x8] sm:$0xff] %vm445_vm8, %v2751_v13  ;;  %v2756_v7 = vadd.f32 %v3825_v0, %v2740_v50 }
 0x15b   : > { %v3840_v54 = vpop.f32.mrf.mxu0  ;;  %v3038_v38 = vld [vmem:[#allocation2 + $0x10] sm:$0xff]  ;;  %v2687_v49 = vpop.f32.mrf.mxu1  ;;  %v2743_v48 = vld [vmem:[#allocation2 + $0x48] sm:$0xff] }
 0x15c   : > { %2365 = vst.msk [vmem:[#allocation2 + $0x68] sm:$0xff] %vm445_vm8, %v2349_v5  ;;  %v3054_v53 = vadd.f32 %v3839_v14, %v3038_v38  ;;  %2772 = vst.msk [vmem:[#allocation2 + $0x30] sm:$0xff] %vm445_vm8, %v2756_v7  ;;  %v2754_v8 = vadd.f32 %v2738_v55, %v2687_v49 }
 0x15d   : > { %v2976_v12 = vpop.f32.mrf.mxu0  ;;  %v3036_v11 = vld [vmem:[#allocation2] sm:$0xff]  ;;  %v3826_v56 = vpop.f32.mrf.mxu1  ;;  %v2748_v62 = vld [vmem:[#allocation2 + $0x70] sm:$0xff] }
 0x15e   : > { %3070 = vst.msk [vmem:[#allocation2 + $0x10] sm:$0xff] %vm445_vm8, %v3054_v53  ;;  %v3052_v4 = vadd.f32 %v3036_v11, %v2973_v16  ;;  %2770 = vst.msk [vmem:[#allocation2 + $0x20] sm:$0xff] %vm445_vm8, %v2754_v8  ;;  %v2757_v17 = vadd.f32 %v3826_v56, %v2741_v63  ;;  %v3124_v16 = vld [vmem:[%s4766_s6 + $0x8] sm:$0xff]  ;;  %v3129_v53 = vld [vmem:[%s4766_s6 + $0x30] sm:$0xff] }
 0x15f   : > { %v3843_v6 = vpop.f32.mrf.mxu0  ;;  %v3039_v20 = vld [vmem:[#allocation2 + $0x18] sm:$0xff]  ;;  %v2690_v22 = vpop.f32.mrf.mxu1  ;;  %v2746_v38 = vld [vmem:[#allocation2 + $0x60] sm:$0xff] }
 0x160   : > { %3068 = vst.msk [vmem:[#allocation2] sm:$0xff] %vm445_vm8, %v3052_v4  ;;  %v3055_v27 = vadd.f32 %v3840_v54, %v3039_v20  ;;  %2773 = vst.msk [vmem:[#allocation2 + $0x38] sm:$0xff] %vm445_vm8, %v2757_v17  ;;  %v2755_v21 = vadd.f32 %v2739_v24, %v2690_v22  ;;  %v3127_v22 = vld [vmem:[%s4766_s6 + $0x20] sm:$0xff] }
 0x161   : > { %v2989_v9 = vpop.f32.mrf.mxu0  ;;  %v3037_v28 = vld [vmem:[#allocation2 + $0x8] sm:$0xff]  ;;  %v3829_v47 = vpop.f32.mrf.mxu1  ;;  %v2749_v17 = vld [vmem:[#allocation2 + $0x78] sm:$0xff] }
 0x162   : > { %3071 = vst.msk [vmem:[#allocation2 + $0x18] sm:$0xff] %vm445_vm8, %v3055_v27  ;;  %v3053_v2 = vadd.f32 %v3037_v28, %v2976_v12  ;;  %2771 = vst.msk [vmem:[#allocation2 + $0x28] sm:$0xff] %vm445_vm8, %v2755_v21  ;;  %v2760_v29 = vadd.f32 %v3829_v47, %v2744_v60 }
 0x163   : > { %v3844_v30 = vpop.f32.mrf.mxu0  ;;  %v3042_v15 = vld [vmem:[#allocation2 + $0x30] sm:$0xff]  ;;  %v2703_v32 = vpop.f32.mrf.mxu1  ;;  %v2747_v60 = vld [vmem:[#allocation2 + $0x68] sm:$0xff] }
 0x164   : > { %3069 = vst.msk [vmem:[#allocation2 + $0x8] sm:$0xff] %vm445_vm8, %v3053_v2  ;;  %v3058_v35 = vadd.f32 %v3843_v6, %v3042_v15  ;;  %2776 = vst.msk [vmem:[#allocation2 + $0x50] sm:$0xff] %vm445_vm8, %v2760_v29  ;;  %v2758_v36 = vadd.f32 %v2742_v33, %v2703_v32  ;;  %v3130_v33 = vld [vmem:[%s4766_s6 + $0x38] sm:$0xff] }
 0x165   : > { %v2992_v37 = vpop.f32.mrf.mxu0  ;;  %v3086_v39 = vld [vmem:[#allocation2 + $0x10] sm:$0xff]  ;;  %v3040_v25 = vld [vmem:[#allocation2 + $0x20] sm:$0xff]  ;;  %v3830_v40 = vpop.f32.mrf.mxu1 }
 0x166   : > { %v3109_v42 = vadd.f32 %v4773_v31, %v3086_v39  ;;  %3074 = vst.msk [vmem:[#allocation2 + $0x30] sm:$0xff] %vm445_vm8, %v3058_v35  ;;  %v3056_v44 = vadd.f32 %v3040_v25, %v2989_v9  ;;  %2774 = vst.msk [vmem:[#allocation2 + $0x40] sm:$0xff] %vm445_vm8, %v2758_v36  ;;  %v2761_v1 = vadd.f32 %v3830_v40, %v2745_v41  ;;  %v3128_v40 = vld [vmem:[%s4766_s6 + $0x28] sm:$0xff] }
 0x167   : > { %v3847_v18 = vpop.f32.mrf.mxu0  ;;  %v3084_v26 = vld [vmem:[#allocation2] sm:$0xff]  ;;  %v3043_v45 = vld [vmem:[#allocation2 + $0x38] sm:$0xff]  ;;  %v2706_v46 = vpop.f32.mrf.mxu1 }
 0x168   : > { %v3141_v51 = vadd.f32 %v3125_v34, %v3109_v42  ;;  %v3107_v52 = vadd.f32 %v4773_v31, %v3084_v26  ;;  %3072 = vst.msk [vmem:[#allocation2 + $0x20] sm:$0xff] %vm445_vm8, %v3056_v44  ;;  %v3059_v57 = vadd.f32 %v3844_v30, %v3043_v45  ;;  %2777 = vst.msk [vmem:[#allocation2 + $0x58] sm:$0xff] %vm445_vm8, %v2761_v1 }
 0x169   : > { %v2759_v58 = vadd.f32 %v2743_v48, %v2706_v46  ;;  %v3005_v59 = vpop.f32.mrf.mxu0  ;;  %v3087_v14 = vld [vmem:[#allocation2 + $0x18] sm:$0xff]  ;;  %v3041_v10 = vld [vmem:[#allocation2 + $0x28] sm:$0xff]  ;;  %v3833_v61 = vpop.f32.mrf.mxu1 }
 0x16a   : > { %3157 = vst.msk [vmem:[%s4787_s11 + $0x10] sm:$0xff] %vm445_vm8, %v3141_v51  ;;  %v3139_v3 = vadd.f32 %v3123_v43, %v3107_v52  ;;  %v3110_v13 = vadd.f32 %v4773_v31, %v3087_v14  ;;  %3075 = vst.msk [vmem:[#allocation2 + $0x38] sm:$0xff] %vm445_vm8, %v3059_v57  ;;  %v3057_v19 = vadd.f32 %v3041_v10, %v2992_v37 }
 0x16b   : > { %2775 = vst.msk [vmem:[#allocation2 + $0x48] sm:$0xff] %vm445_vm8, %v2759_v58  ;;  %v2764_v0 = vadd.f32 %v3833_v61, %v2748_v62  ;;  %v3848_v50 = vpop.f32.mrf.mxu0  ;;  %v3085_v5 = vld [vmem:[#allocation2 + $0x8] sm:$0xff]  ;;  %v3046_v7 = vld [vmem:[#allocation2 + $0x50] sm:$0xff]  ;;  %v2719_v54 = vpop.f32.mrf.mxu1  ;;  %v3134_v61 = vld [vmem:[%s4766_s6 + $0x58] sm:$0xff] }
 0x16c   : > { %3155 = vst.msk [vmem:[%s4787_s11] sm:$0xff] %vm445_vm8, %v3139_v3  ;;  %v3142_v49 = vadd.f32 %v3126_v23, %v3110_v13  ;;  %v3108_v55 = vadd.f32 %v4773_v31, %v3085_v5  ;;  %3073 = vst.msk [vmem:[#allocation2 + $0x28] sm:$0xff] %vm445_vm8, %v3057_v19  ;;  %v3062_v8 = vadd.f32 %v3847_v18, %v3046_v7  ;;  %v3133_v18 = vld [vmem:[%s4766_s6 + $0x50] sm:$0xff]  ;;  %v3131_v23 = vld [vmem:[%s4766_s6 + $0x40] sm:$0xff] }
 0x16d   : > { %2780 = vst.msk [vmem:[#allocation2 + $0x70] sm:$0xff] %vm445_vm8, %v2764_v0  ;;  %v2762_v12 = vadd.f32 %v2746_v38, %v2719_v54  ;;  %v3008_v11 = vpop.f32.mrf.mxu0  ;;  %v3090_v56 = vld [vmem:[#allocation2 + $0x30] sm:$0xff]  ;;  %v3044_v63 = vld [vmem:[#allocation2 + $0x40] sm:$0xff]  ;;  %v3834_v4 = vpop.f32.mrf.mxu1 }
 0x16e   : > { %3158 = vst.msk [vmem:[%s4787_s11 + $0x18] sm:$0xff] %vm445_vm8, %v3142_v49  ;;  %v3140_v6 = vadd.f32 %v3124_v16, %v3108_v55  ;;  %v3113_v20 = vadd.f32 %v4773_v31, %v3090_v56  ;;  %3078 = vst.msk [vmem:[#allocation2 + $0x50] sm:$0xff] %vm445_vm8, %v3062_v8  ;;  %v3060_v24 = vadd.f32 %v3044_v63, %v3005_v59  ;;  %v3137_v38 = vld [vmem:[%s4766_s6 + $0x70] sm:$0xff]  ;;  %v3135_v8 = vld [vmem:[%s4766_s6 + $0x60] sm:$0xff] }
 0x16f   : > { %2778 = vst.msk [vmem:[#allocation2 + $0x60] sm:$0xff] %vm445_vm8, %v2762_v12  ;;  %v2765_v27 = vadd.f32 %v3834_v4, %v2749_v17  ;;  %v3851_v21 = vpop.f32.mrf.mxu0  ;;  %v3088_v9 = vld [vmem:[#allocation2 + $0x20] sm:$0xff]  ;;  %v3047_v28 = vld [vmem:[#allocation2 + $0x58] sm:$0xff]  ;;  %v2722_v47 = vpop.f32.mrf.mxu1 }
 0x170   : > { %3156 = vst.msk [vmem:[%s4787_s11 + $0x8] sm:$0xff] %vm445_vm8, %v3140_v6  ;;  %v3145_v2 = vadd.f32 %v3129_v53, %v3113_v20  ;;  %v3111_v29 = vadd.f32 %v4773_v31, %v3088_v9  ;;  %3076 = vst.msk [vmem:[#allocation2 + $0x40] sm:$0xff] %vm445_vm8, %v3060_v24  ;;  %v3063_v30 = vadd.f32 %v3848_v50, %v3047_v28  ;;  %v3132_v50 = vld [vmem:[%s4766_s6 + $0x48] sm:$0xff]  ;;  %v3138_v63 = vld [vmem:[%s4766_s6 + $0x78] sm:$0xff] }
 0x171   : > { %2781 = vst.msk [vmem:[#allocation2 + $0x78] sm:$0xff] %vm445_vm8, %v2765_v27  ;;  %v2763_v15 = vadd.f32 %v2747_v60, %v2722_v47  ;;  %v3091_v32 = vld [vmem:[#allocation2 + $0x38] sm:$0xff]  ;;  %v3021_v35 = vpop.f32.mrf.mxu0  ;;  %v3136_v20 = vld [vmem:[%s4766_s6 + $0x68] sm:$0xff] }
 0x172   : > { %v3045_v34 = vld [vmem:[#allocation2 + $0x48] sm:$0xff]  ;;  %3161 = vst.msk [vmem:[%s4787_s11 + $0x30] sm:$0xff] %vm445_vm8, %v3145_v2  ;;  %v3143_v36 = vadd.f32 %v3127_v22, %v3111_v29  ;;  %v3114_v37 = vadd.f32 %v4773_v31, %v3091_v32  ;;  %3079 = vst.msk [vmem:[#allocation2 + $0x58] sm:$0xff] %vm445_vm8, %v3063_v30 }
 0x173   : > { %v3061_v39 = vadd.f32 %v3045_v34, %v3008_v11  ;;  %2779 = vst.msk [vmem:[#allocation2 + $0x68] sm:$0xff] %vm445_vm8, %v2763_v15  ;;  %v3089_v25 = vld [vmem:[#allocation2 + $0x28] sm:$0xff]  ;;  %v3852_v45 = vpop.f32.mrf.mxu0 }
 0x174   : > { %v3050_v41 = vld [vmem:[#allocation2 + $0x70] sm:$0xff]  ;;  %3159 = vst.msk [vmem:[%s4787_s11 + $0x20] sm:$0xff] %vm445_vm8, %v3143_v36  ;;  %v3146_v42 = vadd.f32 %v3130_v33, %v3114_v37  ;;  %v3112_v43 = vadd.f32 %v4773_v31, %v3089_v25 }
 0x175   : > { %3077 = vst.msk [vmem:[#allocation2 + $0x48] sm:$0xff] %vm445_vm8, %v3061_v39  ;;  %v3066_v44 = vadd.f32 %v3851_v21, %v3050_v41  ;;  %v3094_v1 = vld [vmem:[#allocation2 + $0x50] sm:$0xff]  ;;  %v3024_v62 = vpop.f32.mrf.mxu0 }
 0x176   : > { %v3048_v26 = vld [vmem:[#allocation2 + $0x60] sm:$0xff]  ;;  %3162 = vst.msk [vmem:[%s4787_s11 + $0x38] sm:$0xff] %vm445_vm8, %v3146_v42  ;;  %v3144_v46 = vadd.f32 %v3128_v40, %v3112_v43  ;;  %v3117_v48 = vadd.f32 %v4773_v31, %v3094_v1 }
 0x177   : > { %3082 = vst.msk [vmem:[#allocation2 + $0x70] sm:$0xff] %vm445_vm8, %v3066_v44  ;;  %v3064_v51 = vadd.f32 %v3048_v26, %v3021_v35  ;;  %v3092_v52 = vld [vmem:[#allocation2 + $0x40] sm:$0xff] }
 0x178   : > { %v3051_v57 = vld [vmem:[#allocation2 + $0x78] sm:$0xff]  ;;  %3160 = vst.msk [vmem:[%s4787_s11 + $0x28] sm:$0xff] %vm445_vm8, %v3144_v46  ;;  %v3149_v58 = vadd.f32 %v3133_v18, %v3117_v48  ;;  %v3115_v59 = vadd.f32 %v4773_v31, %v3092_v52 }
 0x179   : > { %3080 = vst.msk [vmem:[#allocation2 + $0x60] sm:$0xff] %vm445_vm8, %v3064_v51  ;;  %v3067_v14 = vadd.f32 %v3852_v45, %v3051_v57  ;;  %v3095_v10 = vld [vmem:[#allocation2 + $0x58] sm:$0xff] }
 0x17a   : > { %v3049_v3 = vld [vmem:[#allocation2 + $0x68] sm:$0xff]  ;;  %3165 = vst.msk [vmem:[%s4787_s11 + $0x50] sm:$0xff] %vm445_vm8, %v3149_v58  ;;  %v3147_v13 = vadd.f32 %v3131_v23, %v3115_v59  ;;  %v3118_v16 = vadd.f32 %v4773_v31, %v3095_v10 }
 0x17b   : > { %3083 = vst.msk [vmem:[#allocation2 + $0x78] sm:$0xff] %vm445_vm8, %v3067_v14  ;;  %v3065_v19 = vadd.f32 %v3049_v3, %v3024_v62 }
 0x17c   : > { %v3093_v0 = vld [vmem:[#allocation2 + $0x48] sm:$0xff]  ;;  %3163 = vst.msk [vmem:[%s4787_s11 + $0x40] sm:$0xff] %vm445_vm8, %v3147_v13  ;;  %v3150_v5 = vadd.f32 %v3134_v61, %v3118_v16 }
 0x17d   : > { %v3116_v7 = vadd.f32 %v4773_v31, %v3093_v0  ;;  %3081 = vst.msk [vmem:[#allocation2 + $0x68] sm:$0xff] %vm445_vm8, %v3065_v19 }
 0x17e   : > { %v3098_v54 = vld [vmem:[#allocation2 + $0x70] sm:$0xff]  ;;  %3166 = vst.msk [vmem:[%s4787_s11 + $0x58] sm:$0xff] %vm445_vm8, %v3150_v5 }
 0x17f   : > { %v3148_v49 = vadd.f32 %v3132_v50, %v3116_v7  ;;  %v3121_v55 = vadd.f32 %v4773_v31, %v3098_v54 }
 0x180   : > { %v3096_v53 = vld [vmem:[#allocation2 + $0x60] sm:$0xff] }
 0x181   : > { %3164 = vst.msk [vmem:[%s4787_s11 + $0x48] sm:$0xff] %vm445_vm8, %v3148_v49  ;;  %v3153_v12 = vadd.f32 %v3137_v38, %v3121_v55  ;;  %v3119_v11 = vadd.f32 %v4773_v31, %v3096_v53 }
 0x182   : > { %v3099_v56 = vld [vmem:[#allocation2 + $0x78] sm:$0xff] }
 0x183   : > { %3169 = vst.msk [vmem:[%s4787_s11 + $0x70] sm:$0xff] %vm445_vm8, %v3153_v12  ;;  %v3151_v4 = vadd.f32 %v3135_v8, %v3119_v11  ;;  %v3122_v17 = vadd.f32 %v4773_v31, %v3099_v56 }
 0x184   : > { %v3097_v6 = vld [vmem:[#allocation2 + $0x68] sm:$0xff] }
 0x185   : > { %3167 = vst.msk [vmem:[%s4787_s11 + $0x60] sm:$0xff] %vm445_vm8, %v3151_v4  ;;  %v3154_v22 = vadd.f32 %v3138_v63, %v3122_v17  ;;  %v3120_v24 = vadd.f32 %v4773_v31, %v3097_v6 }
 0x187   : > { %3170 = vst.msk [vmem:[%s4787_s11 + $0x78] sm:$0xff] %vm445_vm8, %v3154_v22  ;;  %v3152_v27 = vadd.f32 %v3136_v20, %v3120_v24 }
 0x189   : > { %3168 = vst.msk [vmem:[%s4787_s11 + $0x68] sm:$0xff] %vm445_vm8, %v3152_v27 }
 0x18a PF: > { %s14_s19 = sadd.s32 1, %s3968_s19   ;;  %s4892_s15 = smov %s3960_s17 }
 0x18b   : > { %p11_p7 = scmp.ge.s32.totalorder %s14_s19, 6   ;;  %s4893_s16 = smov %s3964_s18 }
 0x18c   : > { %s4894_s17 = smov %s4897_s20  ;;  %s4895_s18 = smov %s4901_s21 }
 0x18d   :  { %13 = sbr.rel (!%p11_p7) target bundleno = 3 (0x3), region = 80 }

</bundles_post_ra>
